<compile_context>
chip_gen: v5e
topology: v5e:2x2
jax: 0.10.0
libtpu: 0.0.40
codegen_flags: <defaults>
</compile_context>

<pallas_src>
import functools

import jax
import jax.numpy as jnp
from jax.experimental import pallas as pl
from jax.experimental.pallas import tpu as pltpu

KSIZE = 7
PAD = 3
STRIDE = 2


# ---------------------------------------------------------------------------
# Host-side constant prep
# ---------------------------------------------------------------------------
def _make_sel(l_in):
    """0/1 matrix folding zero-pad(3) + stride-2 parity split into a matmul.

    sel[l, p*l_half + t] = 1  iff  l == 2*t + p - PAD,  p in {0, 1}
    so (y @ sel)[r, p*l_half + t] == ypad[r, 2*t + p]  (ypad = zero-pad(y, 3));
    out-of-range targets give all-zero columns == the zero padding.
    """
    l_half = (l_in + 2 * PAD) // STRIDE
    rows = jnp.arange(l_in, dtype=jnp.int32)[:, None]
    cols = jnp.arange(l_half, dtype=jnp.int32)[None, :]
    halves = [(rows == 2 * cols + p - PAD).astype(jnp.float32) for p in range(2)]
    return jnp.concatenate(halves, axis=1)              # (l_in, 2*l_half)


# ---------------------------------------------------------------------------
# In-kernel helpers (trace-time Python, all shapes static)
# ---------------------------------------------------------------------------
def _conv_layer(y, sel, wm, bias, bsz, cin, l_in):
    """Conv1d(k=7, s=2, p=3) + bias + ReLU for a whole batch tile.

    y    : (bsz*cin, l_in)   rows b-major (b*cin + ci)
    sel  : (l_in, 2*l_half)  constant 0/1 pad+parity matrix (from wrapper)
    wm   : (cout, 7*cin)     tap-major weight  wm[:, k*cin+ci] == w[:, ci, k]
    bias : (cout, 1)
    returns (cout, bsz*l_out)  columns b-major (b*l_out + t)
    """
    l_half = (l_in + 2 * PAD) // STRIDE
    l_out = l_in // STRIDE
    # pad + parity split: ONE batched MXU dot for the whole tile
    a = jnp.dot(y, sel, preferred_element_type=jnp.float32)   # (bsz*cin, 2*l_half)
    # im2col in VMEM: rows k-major, columns b-major -> ONE conv dot per layer
    blocks = []
    for k in range(KSIZE):
        off = (k % 2) * l_half + k // 2
        blocks.append(jnp.concatenate(
            [a[s * cin:(s + 1) * cin, off:off + l_out] for s in range(bsz)],
            axis=1))                                           # (cin, bsz*l_out)
    xc = jnp.concatenate(blocks, axis=0)                       # (7*cin, bsz*l_out)
    z = jnp.dot(wm, xc, preferred_element_type=jnp.float32) + bias
    return jnp.maximum(z, jnp.float32(0.0))


def _to_sample_rows(z, bsz, l_out):
    """(cout, bsz*l_out) columns b-major  ->  (bsz*cout, l_out) rows b-major."""
    return jnp.concatenate(
        [z[:, s * l_out:(s + 1) * l_out] for s in range(bsz)], axis=0)


# ---------------------------------------------------------------------------
# Fused encoder kernel for one batch tile
# ---------------------------------------------------------------------------
def _encoder_kernel(x_ref, sel1_ref, sel2_ref, sel3_ref,
                    wm1_ref, b1_ref, wm2_ref, b2_ref, wm3_ref, b3_ref,
                    wfcr_ref, bfc_ref, o_ref, *, bsz, cin, hid, lin):
    l1, l2, l3 = lin // 2, lin // 4, lin // 8
    latent = o_ref.shape[-1]

    # (bsz, cin, lin) -> (bsz*cin, lin): free leading-dim merge.
    y = x_ref[...].reshape(bsz * cin, lin)

    z1 = _conv_layer(y, sel1_ref[...], wm1_ref[...], b1_ref[...], bsz, cin, lin)
    y1 = _to_sample_rows(z1, bsz, l1)                          # (bsz*hid, l1)
    z2 = _conv_layer(y1, sel2_ref[...], wm2_ref[...], b2_ref[...], bsz, hid, l1)
    y2 = _to_sample_rows(z2, bsz, l2)                          # (bsz*hid, l2)
    z3 = _conv_layer(y2, sel3_ref[...], wm3_ref[...], b3_ref[...], bsz, hid, l2)
    # z3: (hid, bsz*l3), columns b-major.

    # FC:  out[s, j] = bfc[j] + sum_{c,t} wfc[j, c*l3 + t] * z3[c, s*l3 + t]
    # Stack per-sample transposed blocks -> (bsz, l3, hid) and contract (c, t)
    # as l3 accumulated lane-dense (bsz, hid) @ (hid, latent) matmuls against
    # the host-prepared wfc_r[t] = wfc[:, :, t]^T.  No flat scratch, no masked
    # 17-lane stores, no in-kernel weight transpose.
    yt = jnp.concatenate(
        [z3[:, s * l3:(s + 1) * l3].T.reshape(1, l3, hid) for s in range(bsz)],
        axis=0)                                                # (bsz, l3, hid)
    acc = jnp.zeros((bsz, latent), jnp.float32)
    for t in range(l3):
        acc = acc + jnp.dot(yt[:, t, :], wfcr_ref[t],
                            preferred_element_type=jnp.float32)
    o_ref[...] = (acc + bfc_ref[...]).astype(o_ref.dtype)


# ---------------------------------------------------------------------------
# Wrapper: batch-tiled pallas_call
# ---------------------------------------------------------------------------
def encoder_forward(params, x, *, batch_tile=None):
    n, cin, lin = x.shape
    hid = params["w1"].shape[0]
    latent = params["wfc"].shape[0]
    assert lin % 8 == 0, "three stride-2 convs require length divisible by 8"
    l1, l2, l3 = lin // 2, lin // 4, lin // 8
    feat = hid * l3
    assert params["wfc"].shape[1] == feat

    if batch_tile is None:
        batch_tile = next(b for b in (8, 4, 2, 1) if n % b == 0)
    bsz = batch_tile
    assert n % bsz == 0, "batch_tile must divide batch size"

    # --- one-time host-side weight layout prep (tiny) ---
    # conv weights as (Cout, 7*Cin) with tap-major contraction rows
    wm1 = params["w1"].transpose(0, 2, 1).reshape(hid, KSIZE * cin)
    wm2 = params["w2"].transpose(0, 2, 1).reshape(hid, KSIZE * hid)
    wm3 = params["w3"].transpose(0, 2, 1).reshape(hid, KSIZE * hid)
    b1 = params["b1"].reshape(hid, 1)
    b2 = params["b2"].reshape(hid, 1)
    b3 = params["b3"].reshape(hid, 1)
    # fc weight re-laid-out so wfc_r[t, c, j] == wfc[j, c*l3 + t]
    wfc_r = params["wfc"].reshape(latent, hid, l3).transpose(2, 1, 0)
    bfc = params["bfc"].reshape(1, latent)
    # pad/parity selection matrices (hoisted out of the kernel entirely)
    sel1, sel2, sel3 = _make_sel(lin), _make_sel(l1), _make_sel(l2)

    weight_args = (sel1, sel2, sel3, wm1, b1, wm2, b2, wm3, b3, wfc_r, bfc)

    def _const_spec(shape):
        nd = len(shape)
        return pl.BlockSpec(shape, lambda i, _nd=nd: (0,) * _nd)

    x_spec = pl.BlockSpec((bsz, cin, lin), lambda i: (i, 0, 0))
    out_spec = pl.BlockSpec((bsz, latent), lambda i: (i, 0))
    weight_specs = [_const_spec(a.shape) for a in weight_args]

    # --- cost estimate (advisory, helps XLA schedule around the call) ---
    def _dot_flops(m, k, nn):
        return 2 * m * k * nn

    flops = 0
    for (ci, li) in ((cin, lin), (hid, l1), (hid, l2)):
        lh = (li + 2 * PAD) // STRIDE
        lo = li // STRIDE
        flops += _dot_flops(n * ci, li, 2 * lh)          # pad/parity dot
        flops += _dot_flops(hid, KSIZE * ci, n * lo)     # conv dot
    flops += _dot_flops(n, feat, latent)                 # fc
    weight_bytes = 4 * sum(int(a.size) for a in weight_args)
    bytes_accessed = 4 * (int(x.size) + n * latent) + weight_bytes * (n // bsz)
    cost = pl.CostEstimate(flops=int(flops), transcendentals=0,
                           bytes_accessed=int(bytes_accessed))

    # --- VMEM budget (resident weights + double-buffered batch tiles) ---
    tile_bytes = 4 * (bsz * cin * lin + bsz * latent)
    vmem_need = 2 * tile_bytes + 2 * weight_bytes + 6 * 4 * bsz * cin * lin + (2 << 20)
    vmem_limit = int(min(max(vmem_need, 32 << 20), 48 << 20))

    kernel = functools.partial(_encoder_kernel, bsz=bsz, cin=cin, hid=hid, lin=lin)
    return pl.pallas_call(
        kernel,
        out_shape=jax.ShapeDtypeStruct((n, latent), jnp.float32),
        grid=(n // bsz,),
        in_specs=[x_spec] + weight_specs,
        out_specs=out_spec,
        compiler_params=pltpu.CompilerParams(
            dimension_semantics=("parallel",),        # megacore batch split on v7x
            vmem_limit_bytes=vmem_limit),
        cost_estimate=cost,
    )(x, *weight_args)


# ---------------------------------------------------------------------------
# Pure-JAX reference and parameter init
# ---------------------------------------------------------------------------
def encoder_reference(params, x):
    def conv(x, w, b):
        y = jax.lax.conv_general_dilated(
            x, w, window_strides=(STRIDE,), padding=[(PAD, PAD)],
            dimension_numbers=("NCH", "OIH", "NCH"))
        return jax.nn.relu(y + b[None, :, None])

    h = conv(x, params["w1"], params["b1"])
    h = conv(h, params["w2"], params["b2"])
    h = conv(h, params["w3"], params["b3"])
    flat = h.reshape(h.shape[0], -1)
    return flat @ params["wfc"].T + params["bfc"]


def init_params(key, in_ch, hid, latent, l_final):
    keys = jax.random.split(key, 8)

    def conv_init(kw, kb, cout, cin):
        bound = 1.0 / float(jnp.sqrt(cin * KSIZE))
        w = jax.random.uniform(kw, (cout, cin, KSIZE), jnp.float32, -bound, bound)
        b = jax.random.uniform(kb, (cout,), jnp.float32, -bound, bound)
        return w, b

    w1, b1 = conv_init(keys[0], keys[1], hid, in_ch)
    w2, b2 = conv_init(keys[2], keys[3], hid, hid)
    w3, b3 = conv_init(keys[4], keys[5], hid, hid)
    fan_in = hid * l_final
    bound = 1.0 / float(jnp.sqrt(fan_in))
    wfc = jax.random.uniform(keys[6], (latent, fan_in), jnp.float32, -bound, bound)
    bfc = jax.random.uniform(keys[7], (latent,), jnp.float32, -bound, bound)
    return dict(w1=w1, b1=b1, w2=w2, b2=b2, w3=w3, b3=b3, wfc=wfc, bfc=bfc)


if __name__ == "__main__":
    # Small shapes consistent with the module: three stride-2 convs end at
    # length 17 (fc expects hidden_channels * 17):  136 -> 68 -> 34 -> 17.
    N, IN_CH, HID, LATENT, LIN = 16, 16, 32, 128, 136
    L_FINAL = LIN // 8                                    # = 17

    key = jax.random.PRNGKey(0)
    kx, kp = jax.random.split(key)
    x = jax.random.normal(kx, (N, IN_CH, LIN), dtype=jnp.float32)
    params = init_params(kp, IN_CH, HID, LATENT, L_FINAL)

    y = jax.block_until_ready(encoder_forward(params, x, batch_tile=8))
    y_ref = jax.block_until_ready(encoder_reference(params, x))

    assert y.shape == (N, LATENT), y.shape
    assert jnp.allclose(y, y_ref, rtol=1e-4, atol=1e-4), float(
        jnp.max(jnp.abs(y - y_ref)))
    print("KERNEL_OK")
</pallas_src>

<mosaic_0001>
module attributes {stable_mosaic.version = 11 : i64} {
  func.func @_encoder_kernel(%arg0: i32, %arg1: memref<8x16x136xf32, #tpu.memory_space<vmem>>, %arg2: memref<136x142xf32, #tpu.memory_space<vmem>>, %arg3: memref<68x74xf32, #tpu.memory_space<vmem>>, %arg4: memref<34x40xf32, #tpu.memory_space<vmem>>, %arg5: memref<32x112xf32, #tpu.memory_space<vmem>>, %arg6: memref<32x1xf32, #tpu.memory_space<vmem>>, %arg7: memref<32x224xf32, #tpu.memory_space<vmem>>, %arg8: memref<32x1xf32, #tpu.memory_space<vmem>>, %arg9: memref<32x224xf32, #tpu.memory_space<vmem>>, %arg10: memref<32x1xf32, #tpu.memory_space<vmem>>, %arg11: memref<17x32x128xf32, #tpu.memory_space<vmem>>, %arg12: memref<1x128xf32, #tpu.memory_space<vmem>>, %arg13: memref<8x128xf32, #tpu.memory_space<vmem>>) attributes {dimension_semantics = [#tpu.dimension_semantics<parallel>], iteration_bounds = array<i64: 2>, scalar_prefetch = 0 : i64, scratch_operands = 0 : i64, tpu.core_type = #tpu.core_type<tc>, window_params = [{transform_indices = @transform_0, window_bounds = array<i64: 8, 16, 136>}, {pipeline_mode = #tpu.pipeline_mode<synchronous>, transform_indices = @transform_1, window_bounds = array<i64: 136, 142>}, {pipeline_mode = #tpu.pipeline_mode<synchronous>, transform_indices = @transform_2, window_bounds = array<i64: 68, 74>}, {pipeline_mode = #tpu.pipeline_mode<synchronous>, transform_indices = @transform_3, window_bounds = array<i64: 34, 40>}, {pipeline_mode = #tpu.pipeline_mode<synchronous>, transform_indices = @transform_4, window_bounds = array<i64: 32, 112>}, {pipeline_mode = #tpu.pipeline_mode<synchronous>, transform_indices = @transform_5, window_bounds = array<i64: 32, 1>}, {pipeline_mode = #tpu.pipeline_mode<synchronous>, transform_indices = @transform_6, window_bounds = array<i64: 32, 224>}, {pipeline_mode = #tpu.pipeline_mode<synchronous>, transform_indices = @transform_7, window_bounds = array<i64: 32, 1>}, {pipeline_mode = #tpu.pipeline_mode<synchronous>, transform_indices = @transform_8, window_bounds = array<i64: 32, 224>}, {pipeline_mode = #tpu.pipeline_mode<synchronous>, transform_indices = @transform_9, window_bounds = array<i64: 32, 1>}, {pipeline_mode = #tpu.pipeline_mode<synchronous>, transform_indices = @transform_10, window_bounds = array<i64: 17, 32, 128>}, {pipeline_mode = #tpu.pipeline_mode<synchronous>, transform_indices = @transform_11, window_bounds = array<i64: 1, 128>}, {transform_indices = @transform_12, window_bounds = array<i64: 8, 128>}]} {
    %c0 = arith.constant 0 : index
    %c0_0 = arith.constant 0 : index
    %c0_1 = arith.constant 0 : index
    %0 = vector.load %arg1[%c0, %c0_0, %c0_1] : memref<8x16x136xf32, #tpu.memory_space<vmem>>, vector<8x16x136xf32>
    %1 = vector.shape_cast %0 : vector<8x16x136xf32> to vector<128x136xf32>
    %c0_2 = arith.constant 0 : index
    %c0_3 = arith.constant 0 : index
    %2 = vector.load %arg2[%c0_2, %c0_3] : memref<136x142xf32, #tpu.memory_space<vmem>>, vector<136x142xf32>
    %c0_4 = arith.constant 0 : index
    %c0_5 = arith.constant 0 : index
    %3 = vector.load %arg5[%c0_4, %c0_5] : memref<32x112xf32, #tpu.memory_space<vmem>>, vector<32x112xf32>
    %c0_6 = arith.constant 0 : index
    %c0_7 = arith.constant 0 : index
    %4 = vector.load %arg6[%c0_6, %c0_7] : memref<32x1xf32, #tpu.memory_space<vmem>>, vector<32x1xf32>
    %cst = arith.constant dense<0.000000e+00> : vector<128x142xf32>
    %5 = tpu.matmul %1, %2, %cst {dimension_numbers = #tpu.dot_dimension_numbers<[1], [0], [0], [1], [0, 0, 1, 1], [], []>} : vector<128x136xf32>, vector<136x142xf32>, vector<128x142xf32> -> vector<128x142xf32>
    %6 = vector.extract_strided_slice %5 {offsets = [0, 0], sizes = [16, 68], strides = [1, 1]} : vector<128x142xf32> to vector<16x68xf32>
    %7 = vector.extract_strided_slice %5 {offsets = [16, 0], sizes = [16, 68], strides = [1, 1]} : vector<128x142xf32> to vector<16x68xf32>
    %8 = vector.extract_strided_slice %5 {offsets = [32, 0], sizes = [16, 68], strides = [1, 1]} : vector<128x142xf32> to vector<16x68xf32>
    %9 = vector.extract_strided_slice %5 {offsets = [48, 0], sizes = [16, 68], strides = [1, 1]} : vector<128x142xf32> to vector<16x68xf32>
    %10 = vector.extract_strided_slice %5 {offsets = [64, 0], sizes = [16, 68], strides = [1, 1]} : vector<128x142xf32> to vector<16x68xf32>
    %11 = vector.extract_strided_slice %5 {offsets = [80, 0], sizes = [16, 68], strides = [1, 1]} : vector<128x142xf32> to vector<16x68xf32>
    %12 = vector.extract_strided_slice %5 {offsets = [96, 0], sizes = [16, 68], strides = [1, 1]} : vector<128x142xf32> to vector<16x68xf32>
    %13 = vector.extract_strided_slice %5 {offsets = [112, 0], sizes = [16, 68], strides = [1, 1]} : vector<128x142xf32> to vector<16x68xf32>
    %14 = tpu.concatenate %6, %7, %8, %9, %10, %11, %12, %13 in 1 : vector<16x68xf32>, vector<16x68xf32>, vector<16x68xf32>, vector<16x68xf32>, vector<16x68xf32>, vector<16x68xf32>, vector<16x68xf32>, vector<16x68xf32> -> vector<16x544xf32>
    %15 = vector.extract_strided_slice %5 {offsets = [0, 71], sizes = [16, 68], strides = [1, 1]} : vector<128x142xf32> to vector<16x68xf32>
    %16 = vector.extract_strided_slice %5 {offsets = [16, 71], sizes = [16, 68], strides = [1, 1]} : vector<128x142xf32> to vector<16x68xf32>
    %17 = vector.extract_strided_slice %5 {offsets = [32, 71], sizes = [16, 68], strides = [1, 1]} : vector<128x142xf32> to vector<16x68xf32>
    %18 = vector.extract_strided_slice %5 {offsets = [48, 71], sizes = [16, 68], strides = [1, 1]} : vector<128x142xf32> to vector<16x68xf32>
    %19 = vector.extract_strided_slice %5 {offsets = [64, 71], sizes = [16, 68], strides = [1, 1]} : vector<128x142xf32> to vector<16x68xf32>
    %20 = vector.extract_strided_slice %5 {offsets = [80, 71], sizes = [16, 68], strides = [1, 1]} : vector<128x142xf32> to vector<16x68xf32>
    %21 = vector.extract_strided_slice %5 {offsets = [96, 71], sizes = [16, 68], strides = [1, 1]} : vector<128x142xf32> to vector<16x68xf32>
    %22 = vector.extract_strided_slice %5 {offsets = [112, 71], sizes = [16, 68], strides = [1, 1]} : vector<128x142xf32> to vector<16x68xf32>
    %23 = tpu.concatenate %15, %16, %17, %18, %19, %20, %21, %22 in 1 : vector<16x68xf32>, vector<16x68xf32>, vector<16x68xf32>, vector<16x68xf32>, vector<16x68xf32>, vector<16x68xf32>, vector<16x68xf32>, vector<16x68xf32> -> vector<16x544xf32>
    %24 = vector.extract_strided_slice %5 {offsets = [0, 1], sizes = [16, 68], strides = [1, 1]} : vector<128x142xf32> to vector<16x68xf32>
    %25 = vector.extract_strided_slice %5 {offsets = [16, 1], sizes = [16, 68], strides = [1, 1]} : vector<128x142xf32> to vector<16x68xf32>
    %26 = vector.extract_strided_slice %5 {offsets = [32, 1], sizes = [16, 68], strides = [1, 1]} : vector<128x142xf32> to vector<16x68xf32>
    %27 = vector.extract_strided_slice %5 {offsets = [48, 1], sizes = [16, 68], strides = [1, 1]} : vector<128x142xf32> to vector<16x68xf32>
    %28 = vector.extract_strided_slice %5 {offsets = [64, 1], sizes = [16, 68], strides = [1, 1]} : vector<128x142xf32> to vector<16x68xf32>
    %29 = vector.extract_strided_slice %5 {offsets = [80, 1], sizes = [16, 68], strides = [1, 1]} : vector<128x142xf32> to vector<16x68xf32>
    %30 = vector.extract_strided_slice %5 {offsets = [96, 1], sizes = [16, 68], strides = [1, 1]} : vector<128x142xf32> to vector<16x68xf32>
    %31 = vector.extract_strided_slice %5 {offsets = [112, 1], sizes = [16, 68], strides = [1, 1]} : vector<128x142xf32> to vector<16x68xf32>
    %32 = tpu.concatenate %24, %25, %26, %27, %28, %29, %30, %31 in 1 : vector<16x68xf32>, vector<16x68xf32>, vector<16x68xf32>, vector<16x68xf32>, vector<16x68xf32>, vector<16x68xf32>, vector<16x68xf32>, vector<16x68xf32> -> vector<16x544xf32>
    %33 = vector.extract_strided_slice %5 {offsets = [0, 72], sizes = [16, 68], strides = [1, 1]} : vector<128x142xf32> to vector<16x68xf32>
    %34 = vector.extract_strided_slice %5 {offsets = [16, 72], sizes = [16, 68], strides = [1, 1]} : vector<128x142xf32> to vector<16x68xf32>
    %35 = vector.extract_strided_slice %5 {offsets = [32, 72], sizes = [16, 68], strides = [1, 1]} : vector<128x142xf32> to vector<16x68xf32>
    %36 = vector.extract_strided_slice %5 {offsets = [48, 72], sizes = [16, 68], strides = [1, 1]} : vector<128x142xf32> to vector<16x68xf32>
    %37 = vector.extract_strided_slice %5 {offsets = [64, 72], sizes = [16, 68], strides = [1, 1]} : vector<128x142xf32> to vector<16x68xf32>
    %38 = vector.extract_strided_slice %5 {offsets = [80, 72], sizes = [16, 68], strides = [1, 1]} : vector<128x142xf32> to vector<16x68xf32>
    %39 = vector.extract_strided_slice %5 {offsets = [96, 72], sizes = [16, 68], strides = [1, 1]} : vector<128x142xf32> to vector<16x68xf32>
    %40 = vector.extract_strided_slice %5 {offsets = [112, 72], sizes = [16, 68], strides = [1, 1]} : vector<128x142xf32> to vector<16x68xf32>
    %41 = tpu.concatenate %33, %34, %35, %36, %37, %38, %39, %40 in 1 : vector<16x68xf32>, vector<16x68xf32>, vector<16x68xf32>, vector<16x68xf32>, vector<16x68xf32>, vector<16x68xf32>, vector<16x68xf32>, vector<16x68xf32> -> vector<16x544xf32>
    %42 = vector.extract_strided_slice %5 {offsets = [0, 2], sizes = [16, 68], strides = [1, 1]} : vector<128x142xf32> to vector<16x68xf32>
    %43 = vector.extract_strided_slice %5 {offsets = [16, 2], sizes = [16, 68], strides = [1, 1]} : vector<128x142xf32> to vector<16x68xf32>
    %44 = vector.extract_strided_slice %5 {offsets = [32, 2], sizes = [16, 68], strides = [1, 1]} : vector<128x142xf32> to vector<16x68xf32>
    %45 = vector.extract_strided_slice %5 {offsets = [48, 2], sizes = [16, 68], strides = [1, 1]} : vector<128x142xf32> to vector<16x68xf32>
    %46 = vector.extract_strided_slice %5 {offsets = [64, 2], sizes = [16, 68], strides = [1, 1]} : vector<128x142xf32> to vector<16x68xf32>
    %47 = vector.extract_strided_slice %5 {offsets = [80, 2], sizes = [16, 68], strides = [1, 1]} : vector<128x142xf32> to vector<16x68xf32>
    %48 = vector.extract_strided_slice %5 {offsets = [96, 2], sizes = [16, 68], strides = [1, 1]} : vector<128x142xf32> to vector<16x68xf32>
    %49 = vector.extract_strided_slice %5 {offsets = [112, 2], sizes = [16, 68], strides = [1, 1]} : vector<128x142xf32> to vector<16x68xf32>
    %50 = tpu.concatenate %42, %43, %44, %45, %46, %47, %48, %49 in 1 : vector<16x68xf32>, vector<16x68xf32>, vector<16x68xf32>, vector<16x68xf32>, vector<16x68xf32>, vector<16x68xf32>, vector<16x68xf32>, vector<16x68xf32> -> vector<16x544xf32>
    %51 = vector.extract_strided_slice %5 {offsets = [0, 73], sizes = [16, 68], strides = [1, 1]} : vector<128x142xf32> to vector<16x68xf32>
    %52 = vector.extract_strided_slice %5 {offsets = [16, 73], sizes = [16, 68], strides = [1, 1]} : vector<128x142xf32> to vector<16x68xf32>
    %53 = vector.extract_strided_slice %5 {offsets = [32, 73], sizes = [16, 68], strides = [1, 1]} : vector<128x142xf32> to vector<16x68xf32>
    %54 = vector.extract_strided_slice %5 {offsets = [48, 73], sizes = [16, 68], strides = [1, 1]} : vector<128x142xf32> to vector<16x68xf32>
    %55 = vector.extract_strided_slice %5 {offsets = [64, 73], sizes = [16, 68], strides = [1, 1]} : vector<128x142xf32> to vector<16x68xf32>
    %56 = vector.extract_strided_slice %5 {offsets = [80, 73], sizes = [16, 68], strides = [1, 1]} : vector<128x142xf32> to vector<16x68xf32>
    %57 = vector.extract_strided_slice %5 {offsets = [96, 73], sizes = [16, 68], strides = [1, 1]} : vector<128x142xf32> to vector<16x68xf32>
    %58 = vector.extract_strided_slice %5 {offsets = [112, 73], sizes = [16, 68], strides = [1, 1]} : vector<128x142xf32> to vector<16x68xf32>
    %59 = tpu.concatenate %51, %52, %53, %54, %55, %56, %57, %58 in 1 : vector<16x68xf32>, vector<16x68xf32>, vector<16x68xf32>, vector<16x68xf32>, vector<16x68xf32>, vector<16x68xf32>, vector<16x68xf32>, vector<16x68xf32> -> vector<16x544xf32>
    %60 = vector.extract_strided_slice %5 {offsets = [0, 3], sizes = [16, 68], strides = [1, 1]} : vector<128x142xf32> to vector<16x68xf32>
    %61 = vector.extract_strided_slice %5 {offsets = [16, 3], sizes = [16, 68], strides = [1, 1]} : vector<128x142xf32> to vector<16x68xf32>
    %62 = vector.extract_strided_slice %5 {offsets = [32, 3], sizes = [16, 68], strides = [1, 1]} : vector<128x142xf32> to vector<16x68xf32>
    %63 = vector.extract_strided_slice %5 {offsets = [48, 3], sizes = [16, 68], strides = [1, 1]} : vector<128x142xf32> to vector<16x68xf32>
    %64 = vector.extract_strided_slice %5 {offsets = [64, 3], sizes = [16, 68], strides = [1, 1]} : vector<128x142xf32> to vector<16x68xf32>
    %65 = vector.extract_strided_slice %5 {offsets = [80, 3], sizes = [16, 68], strides = [1, 1]} : vector<128x142xf32> to vector<16x68xf32>
    %66 = vector.extract_strided_slice %5 {offsets = [96, 3], sizes = [16, 68], strides = [1, 1]} : vector<128x142xf32> to vector<16x68xf32>
    %67 = vector.extract_strided_slice %5 {offsets = [112, 3], sizes = [16, 68], strides = [1, 1]} : vector<128x142xf32> to vector<16x68xf32>
    %68 = tpu.concatenate %60, %61, %62, %63, %64, %65, %66, %67 in 1 : vector<16x68xf32>, vector<16x68xf32>, vector<16x68xf32>, vector<16x68xf32>, vector<16x68xf32>, vector<16x68xf32>, vector<16x68xf32>, vector<16x68xf32> -> vector<16x544xf32>
    %69 = tpu.concatenate %14, %23, %32, %41, %50, %59, %68 in 0 : vector<16x544xf32>, vector<16x544xf32>, vector<16x544xf32>, vector<16x544xf32>, vector<16x544xf32>, vector<16x544xf32>, vector<16x544xf32> -> vector<112x544xf32>
    %cst_8 = arith.constant dense<0.000000e+00> : vector<32x544xf32>
    %70 = tpu.matmul %3, %69, %cst_8 {dimension_numbers = #tpu.dot_dimension_numbers<[1], [0], [0], [1], [0, 0, 1, 1], [], []>} : vector<32x112xf32>, vector<112x544xf32>, vector<32x544xf32> -> vector<32x544xf32>
    %71 = vector.broadcast %4 : vector<32x1xf32> to vector<32x544xf32>
    %72 = arith.addf %70, %71 : vector<32x544xf32>
    %cst_9 = arith.constant 0.000000e+00 : f32
    %73 = vector.broadcast %cst_9 : f32 to vector<32x544xf32>
    %74 = arith.maximumf %72, %73 : vector<32x544xf32>
    %75 = vector.extract_strided_slice %74 {offsets = [0, 0], sizes = [32, 68], strides = [1, 1]} : vector<32x544xf32> to vector<32x68xf32>
    %76 = vector.extract_strided_slice %74 {offsets = [0, 68], sizes = [32, 68], strides = [1, 1]} : vector<32x544xf32> to vector<32x68xf32>
    %77 = vector.extract_strided_slice %74 {offsets = [0, 136], sizes = [32, 68], strides = [1, 1]} : vector<32x544xf32> to vector<32x68xf32>
    %78 = vector.extract_strided_slice %74 {offsets = [0, 204], sizes = [32, 68], strides = [1, 1]} : vector<32x544xf32> to vector<32x68xf32>
    %79 = vector.extract_strided_slice %74 {offsets = [0, 272], sizes = [32, 68], strides = [1, 1]} : vector<32x544xf32> to vector<32x68xf32>
    %80 = vector.extract_strided_slice %74 {offsets = [0, 340], sizes = [32, 68], strides = [1, 1]} : vector<32x544xf32> to vector<32x68xf32>
    %81 = vector.extract_strided_slice %74 {offsets = [0, 408], sizes = [32, 68], strides = [1, 1]} : vector<32x544xf32> to vector<32x68xf32>
    %82 = vector.extract_strided_slice %74 {offsets = [0, 476], sizes = [32, 68], strides = [1, 1]} : vector<32x544xf32> to vector<32x68xf32>
    %83 = tpu.concatenate %75, %76, %77, %78, %79, %80, %81, %82 in 0 : vector<32x68xf32>, vector<32x68xf32>, vector<32x68xf32>, vector<32x68xf32>, vector<32x68xf32>, vector<32x68xf32>, vector<32x68xf32>, vector<32x68xf32> -> vector<256x68xf32>
    %c0_10 = arith.constant 0 : index
    %c0_11 = arith.constant 0 : index
    %84 = vector.load %arg3[%c0_10, %c0_11] : memref<68x74xf32, #tpu.memory_space<vmem>>, vector<68x74xf32>
    %c0_12 = arith.constant 0 : index
    %c0_13 = arith.constant 0 : index
    %85 = vector.load %arg7[%c0_12, %c0_13] : memref<32x224xf32, #tpu.memory_space<vmem>>, vector<32x224xf32>
    %c0_14 = arith.constant 0 : index
    %c0_15 = arith.constant 0 : index
    %86 = vector.load %arg8[%c0_14, %c0_15] : memref<32x1xf32, #tpu.memory_space<vmem>>, vector<32x1xf32>
    %cst_16 = arith.constant dense<0.000000e+00> : vector<256x74xf32>
    %87 = tpu.matmul %83, %84, %cst_16 {dimension_numbers = #tpu.dot_dimension_numbers<[1], [0], [0], [1], [0, 0, 1, 1], [], []>} : vector<256x68xf32>, vector<68x74xf32>, vector<256x74xf32> -> vector<256x74xf32>
    %88 = vector.extract_strided_slice %87 {offsets = [0, 0], sizes = [32, 34], strides = [1, 1]} : vector<256x74xf32> to vector<32x34xf32>
    %89 = vector.extract_strided_slice %87 {offsets = [32, 0], sizes = [32, 34], strides = [1, 1]} : vector<256x74xf32> to vector<32x34xf32>
    %90 = vector.extract_strided_slice %87 {offsets = [64, 0], sizes = [32, 34], strides = [1, 1]} : vector<256x74xf32> to vector<32x34xf32>
    %91 = vector.extract_strided_slice %87 {offsets = [96, 0], sizes = [32, 34], strides = [1, 1]} : vector<256x74xf32> to vector<32x34xf32>
    %92 = vector.extract_strided_slice %87 {offsets = [128, 0], sizes = [32, 34], strides = [1, 1]} : vector<256x74xf32> to vector<32x34xf32>
    %93 = vector.extract_strided_slice %87 {offsets = [160, 0], sizes = [32, 34], strides = [1, 1]} : vector<256x74xf32> to vector<32x34xf32>
    %94 = vector.extract_strided_slice %87 {offsets = [192, 0], sizes = [32, 34], strides = [1, 1]} : vector<256x74xf32> to vector<32x34xf32>
    %95 = vector.extract_strided_slice %87 {offsets = [224, 0], sizes = [32, 34], strides = [1, 1]} : vector<256x74xf32> to vector<32x34xf32>
    %96 = tpu.concatenate %88, %89, %90, %91, %92, %93, %94, %95 in 1 : vector<32x34xf32>, vector<32x34xf32>, vector<32x34xf32>, vector<32x34xf32>, vector<32x34xf32>, vector<32x34xf32>, vector<32x34xf32>, vector<32x34xf32> -> vector<32x272xf32>
    %97 = vector.extract_strided_slice %87 {offsets = [0, 37], sizes = [32, 34], strides = [1, 1]} : vector<256x74xf32> to vector<32x34xf32>
    %98 = vector.extract_strided_slice %87 {offsets = [32, 37], sizes = [32, 34], strides = [1, 1]} : vector<256x74xf32> to vector<32x34xf32>
    %99 = vector.extract_strided_slice %87 {offsets = [64, 37], sizes = [32, 34], strides = [1, 1]} : vector<256x74xf32> to vector<32x34xf32>
    %100 = vector.extract_strided_slice %87 {offsets = [96, 37], sizes = [32, 34], strides = [1, 1]} : vector<256x74xf32> to vector<32x34xf32>
    %101 = vector.extract_strided_slice %87 {offsets = [128, 37], sizes = [32, 34], strides = [1, 1]} : vector<256x74xf32> to vector<32x34xf32>
    %102 = vector.extract_strided_slice %87 {offsets = [160, 37], sizes = [32, 34], strides = [1, 1]} : vector<256x74xf32> to vector<32x34xf32>
    %103 = vector.extract_strided_slice %87 {offsets = [192, 37], sizes = [32, 34], strides = [1, 1]} : vector<256x74xf32> to vector<32x34xf32>
    %104 = vector.extract_strided_slice %87 {offsets = [224, 37], sizes = [32, 34], strides = [1, 1]} : vector<256x74xf32> to vector<32x34xf32>
    %105 = tpu.concatenate %97, %98, %99, %100, %101, %102, %103, %104 in 1 : vector<32x34xf32>, vector<32x34xf32>, vector<32x34xf32>, vector<32x34xf32>, vector<32x34xf32>, vector<32x34xf32>, vector<32x34xf32>, vector<32x34xf32> -> vector<32x272xf32>
    %106 = vector.extract_strided_slice %87 {offsets = [0, 1], sizes = [32, 34], strides = [1, 1]} : vector<256x74xf32> to vector<32x34xf32>
    %107 = vector.extract_strided_slice %87 {offsets = [32, 1], sizes = [32, 34], strides = [1, 1]} : vector<256x74xf32> to vector<32x34xf32>
    %108 = vector.extract_strided_slice %87 {offsets = [64, 1], sizes = [32, 34], strides = [1, 1]} : vector<256x74xf32> to vector<32x34xf32>
    %109 = vector.extract_strided_slice %87 {offsets = [96, 1], sizes = [32, 34], strides = [1, 1]} : vector<256x74xf32> to vector<32x34xf32>
    %110 = vector.extract_strided_slice %87 {offsets = [128, 1], sizes = [32, 34], strides = [1, 1]} : vector<256x74xf32> to vector<32x34xf32>
    %111 = vector.extract_strided_slice %87 {offsets = [160, 1], sizes = [32, 34], strides = [1, 1]} : vector<256x74xf32> to vector<32x34xf32>
    %112 = vector.extract_strided_slice %87 {offsets = [192, 1], sizes = [32, 34], strides = [1, 1]} : vector<256x74xf32> to vector<32x34xf32>
    %113 = vector.extract_strided_slice %87 {offsets = [224, 1], sizes = [32, 34], strides = [1, 1]} : vector<256x74xf32> to vector<32x34xf32>
    %114 = tpu.concatenate %106, %107, %108, %109, %110, %111, %112, %113 in 1 : vector<32x34xf32>, vector<32x34xf32>, vector<32x34xf32>, vector<32x34xf32>, vector<32x34xf32>, vector<32x34xf32>, vector<32x34xf32>, vector<32x34xf32> -> vector<32x272xf32>
    %115 = vector.extract_strided_slice %87 {offsets = [0, 38], sizes = [32, 34], strides = [1, 1]} : vector<256x74xf32> to vector<32x34xf32>
    %116 = vector.extract_strided_slice %87 {offsets = [32, 38], sizes = [32, 34], strides = [1, 1]} : vector<256x74xf32> to vector<32x34xf32>
    %117 = vector.extract_strided_slice %87 {offsets = [64, 38], sizes = [32, 34], strides = [1, 1]} : vector<256x74xf32> to vector<32x34xf32>
    %118 = vector.extract_strided_slice %87 {offsets = [96, 38], sizes = [32, 34], strides = [1, 1]} : vector<256x74xf32> to vector<32x34xf32>
    %119 = vector.extract_strided_slice %87 {offsets = [128, 38], sizes = [32, 34], strides = [1, 1]} : vector<256x74xf32> to vector<32x34xf32>
    %120 = vector.extract_strided_slice %87 {offsets = [160, 38], sizes = [32, 34], strides = [1, 1]} : vector<256x74xf32> to vector<32x34xf32>
    %121 = vector.extract_strided_slice %87 {offsets = [192, 38], sizes = [32, 34], strides = [1, 1]} : vector<256x74xf32> to vector<32x34xf32>
    %122 = vector.extract_strided_slice %87 {offsets = [224, 38], sizes = [32, 34], strides = [1, 1]} : vector<256x74xf32> to vector<32x34xf32>
    %123 = tpu.concatenate %115, %116, %117, %118, %119, %120, %121, %122 in 1 : vector<32x34xf32>, vector<32x34xf32>, vector<32x34xf32>, vector<32x34xf32>, vector<32x34xf32>, vector<32x34xf32>, vector<32x34xf32>, vector<32x34xf32> -> vector<32x272xf32>
    %124 = vector.extract_strided_slice %87 {offsets = [0, 2], sizes = [32, 34], strides = [1, 1]} : vector<256x74xf32> to vector<32x34xf32>
    %125 = vector.extract_strided_slice %87 {offsets = [32, 2], sizes = [32, 34], strides = [1, 1]} : vector<256x74xf32> to vector<32x34xf32>
    %126 = vector.extract_strided_slice %87 {offsets = [64, 2], sizes = [32, 34], strides = [1, 1]} : vector<256x74xf32> to vector<32x34xf32>
    %127 = vector.extract_strided_slice %87 {offsets = [96, 2], sizes = [32, 34], strides = [1, 1]} : vector<256x74xf32> to vector<32x34xf32>
    %128 = vector.extract_strided_slice %87 {offsets = [128, 2], sizes = [32, 34], strides = [1, 1]} : vector<256x74xf32> to vector<32x34xf32>
    %129 = vector.extract_strided_slice %87 {offsets = [160, 2], sizes = [32, 34], strides = [1, 1]} : vector<256x74xf32> to vector<32x34xf32>
    %130 = vector.extract_strided_slice %87 {offsets = [192, 2], sizes = [32, 34], strides = [1, 1]} : vector<256x74xf32> to vector<32x34xf32>
    %131 = vector.extract_strided_slice %87 {offsets = [224, 2], sizes = [32, 34], strides = [1, 1]} : vector<256x74xf32> to vector<32x34xf32>
    %132 = tpu.concatenate %124, %125, %126, %127, %128, %129, %130, %131 in 1 : vector<32x34xf32>, vector<32x34xf32>, vector<32x34xf32>, vector<32x34xf32>, vector<32x34xf32>, vector<32x34xf32>, vector<32x34xf32>, vector<32x34xf32> -> vector<32x272xf32>
    %133 = vector.extract_strided_slice %87 {offsets = [0, 39], sizes = [32, 34], strides = [1, 1]} : vector<256x74xf32> to vector<32x34xf32>
    %134 = vector.extract_strided_slice %87 {offsets = [32, 39], sizes = [32, 34], strides = [1, 1]} : vector<256x74xf32> to vector<32x34xf32>
    %135 = vector.extract_strided_slice %87 {offsets = [64, 39], sizes = [32, 34], strides = [1, 1]} : vector<256x74xf32> to vector<32x34xf32>
    %136 = vector.extract_strided_slice %87 {offsets = [96, 39], sizes = [32, 34], strides = [1, 1]} : vector<256x74xf32> to vector<32x34xf32>
    %137 = vector.extract_strided_slice %87 {offsets = [128, 39], sizes = [32, 34], strides = [1, 1]} : vector<256x74xf32> to vector<32x34xf32>
    %138 = vector.extract_strided_slice %87 {offsets = [160, 39], sizes = [32, 34], strides = [1, 1]} : vector<256x74xf32> to vector<32x34xf32>
    %139 = vector.extract_strided_slice %87 {offsets = [192, 39], sizes = [32, 34], strides = [1, 1]} : vector<256x74xf32> to vector<32x34xf32>
    %140 = vector.extract_strided_slice %87 {offsets = [224, 39], sizes = [32, 34], strides = [1, 1]} : vector<256x74xf32> to vector<32x34xf32>
    %141 = tpu.concatenate %133, %134, %135, %136, %137, %138, %139, %140 in 1 : vector<32x34xf32>, vector<32x34xf32>, vector<32x34xf32>, vector<32x34xf32>, vector<32x34xf32>, vector<32x34xf32>, vector<32x34xf32>, vector<32x34xf32> -> vector<32x272xf32>
    %142 = vector.extract_strided_slice %87 {offsets = [0, 3], sizes = [32, 34], strides = [1, 1]} : vector<256x74xf32> to vector<32x34xf32>
    %143 = vector.extract_strided_slice %87 {offsets = [32, 3], sizes = [32, 34], strides = [1, 1]} : vector<256x74xf32> to vector<32x34xf32>
    %144 = vector.extract_strided_slice %87 {offsets = [64, 3], sizes = [32, 34], strides = [1, 1]} : vector<256x74xf32> to vector<32x34xf32>
    %145 = vector.extract_strided_slice %87 {offsets = [96, 3], sizes = [32, 34], strides = [1, 1]} : vector<256x74xf32> to vector<32x34xf32>
    %146 = vector.extract_strided_slice %87 {offsets = [128, 3], sizes = [32, 34], strides = [1, 1]} : vector<256x74xf32> to vector<32x34xf32>
    %147 = vector.extract_strided_slice %87 {offsets = [160, 3], sizes = [32, 34], strides = [1, 1]} : vector<256x74xf32> to vector<32x34xf32>
    %148 = vector.extract_strided_slice %87 {offsets = [192, 3], sizes = [32, 34], strides = [1, 1]} : vector<256x74xf32> to vector<32x34xf32>
    %149 = vector.extract_strided_slice %87 {offsets = [224, 3], sizes = [32, 34], strides = [1, 1]} : vector<256x74xf32> to vector<32x34xf32>
    %150 = tpu.concatenate %142, %143, %144, %145, %146, %147, %148, %149 in 1 : vector<32x34xf32>, vector<32x34xf32>, vector<32x34xf32>, vector<32x34xf32>, vector<32x34xf32>, vector<32x34xf32>, vector<32x34xf32>, vector<32x34xf32> -> vector<32x272xf32>
    %151 = tpu.concatenate %96, %105, %114, %123, %132, %141, %150 in 0 : vector<32x272xf32>, vector<32x272xf32>, vector<32x272xf32>, vector<32x272xf32>, vector<32x272xf32>, vector<32x272xf32>, vector<32x272xf32> -> vector<224x272xf32>
    %cst_17 = arith.constant dense<0.000000e+00> : vector<32x272xf32>
    %152 = tpu.matmul %85, %151, %cst_17 {dimension_numbers = #tpu.dot_dimension_numbers<[1], [0], [0], [1], [0, 0, 1, 1], [], []>} : vector<32x224xf32>, vector<224x272xf32>, vector<32x272xf32> -> vector<32x272xf32>
    %153 = vector.broadcast %86 : vector<32x1xf32> to vector<32x272xf32>
    %154 = arith.addf %152, %153 : vector<32x272xf32>
    %cst_18 = arith.constant 0.000000e+00 : f32
    %155 = vector.broadcast %cst_18 : f32 to vector<32x272xf32>
    %156 = arith.maximumf %154, %155 : vector<32x272xf32>
    %157 = vector.extract_strided_slice %156 {offsets = [0, 0], sizes = [32, 34], strides = [1, 1]} : vector<32x272xf32> to vector<32x34xf32>
    %158 = vector.extract_strided_slice %156 {offsets = [0, 34], sizes = [32, 34], strides = [1, 1]} : vector<32x272xf32> to vector<32x34xf32>
    %159 = vector.extract_strided_slice %156 {offsets = [0, 68], sizes = [32, 34], strides = [1, 1]} : vector<32x272xf32> to vector<32x34xf32>
    %160 = vector.extract_strided_slice %156 {offsets = [0, 102], sizes = [32, 34], strides = [1, 1]} : vector<32x272xf32> to vector<32x34xf32>
    %161 = vector.extract_strided_slice %156 {offsets = [0, 136], sizes = [32, 34], strides = [1, 1]} : vector<32x272xf32> to vector<32x34xf32>
    %162 = vector.extract_strided_slice %156 {offsets = [0, 170], sizes = [32, 34], strides = [1, 1]} : vector<32x272xf32> to vector<32x34xf32>
    %163 = vector.extract_strided_slice %156 {offsets = [0, 204], sizes = [32, 34], strides = [1, 1]} : vector<32x272xf32> to vector<32x34xf32>
    %164 = vector.extract_strided_slice %156 {offsets = [0, 238], sizes = [32, 34], strides = [1, 1]} : vector<32x272xf32> to vector<32x34xf32>
    %165 = tpu.concatenate %157, %158, %159, %160, %161, %162, %163, %164 in 0 : vector<32x34xf32>, vector<32x34xf32>, vector<32x34xf32>, vector<32x34xf32>, vector<32x34xf32>, vector<32x34xf32>, vector<32x34xf32>, vector<32x34xf32> -> vector<256x34xf32>
    %c0_19 = arith.constant 0 : index
    %c0_20 = arith.constant 0 : index
    %166 = vector.load %arg4[%c0_19, %c0_20] : memref<34x40xf32, #tpu.memory_space<vmem>>, vector<34x40xf32>
    %c0_21 = arith.constant 0 : index
    %c0_22 = arith.constant 0 : index
    %167 = vector.load %arg9[%c0_21, %c0_22] : memref<32x224xf32, #tpu.memory_space<vmem>>, vector<32x224xf32>
    %c0_23 = arith.constant 0 : index
    %c0_24 = arith.constant 0 : index
    %168 = vector.load %arg10[%c0_23, %c0_24] : memref<32x1xf32, #tpu.memory_space<vmem>>, vector<32x1xf32>
    %cst_25 = arith.constant dense<0.000000e+00> : vector<256x40xf32>
    %169 = tpu.matmul %165, %166, %cst_25 {dimension_numbers = #tpu.dot_dimension_numbers<[1], [0], [0], [1], [0, 0, 1, 1], [], []>} : vector<256x34xf32>, vector<34x40xf32>, vector<256x40xf32> -> vector<256x40xf32>
    %170 = vector.extract_strided_slice %169 {offsets = [0, 0], sizes = [32, 17], strides = [1, 1]} : vector<256x40xf32> to vector<32x17xf32>
    %171 = vector.extract_strided_slice %169 {offsets = [32, 0], sizes = [32, 17], strides = [1, 1]} : vector<256x40xf32> to vector<32x17xf32>
    %172 = vector.extract_strided_slice %169 {offsets = [64, 0], sizes = [32, 17], strides = [1, 1]} : vector<256x40xf32> to vector<32x17xf32>
    %173 = vector.extract_strided_slice %169 {offsets = [96, 0], sizes = [32, 17], strides = [1, 1]} : vector<256x40xf32> to vector<32x17xf32>
    %174 = vector.extract_strided_slice %169 {offsets = [128, 0], sizes = [32, 17], strides = [1, 1]} : vector<256x40xf32> to vector<32x17xf32>
    %175 = vector.extract_strided_slice %169 {offsets = [160, 0], sizes = [32, 17], strides = [1, 1]} : vector<256x40xf32> to vector<32x17xf32>
    %176 = vector.extract_strided_slice %169 {offsets = [192, 0], sizes = [32, 17], strides = [1, 1]} : vector<256x40xf32> to vector<32x17xf32>
    %177 = vector.extract_strided_slice %169 {offsets = [224, 0], sizes = [32, 17], strides = [1, 1]} : vector<256x40xf32> to vector<32x17xf32>
    %178 = tpu.concatenate %170, %171, %172, %173, %174, %175, %176, %177 in 1 : vector<32x17xf32>, vector<32x17xf32>, vector<32x17xf32>, vector<32x17xf32>, vector<32x17xf32>, vector<32x17xf32>, vector<32x17xf32>, vector<32x17xf32> -> vector<32x136xf32>
    %179 = vector.extract_strided_slice %169 {offsets = [0, 20], sizes = [32, 17], strides = [1, 1]} : vector<256x40xf32> to vector<32x17xf32>
    %180 = vector.extract_strided_slice %169 {offsets = [32, 20], sizes = [32, 17], strides = [1, 1]} : vector<256x40xf32> to vector<32x17xf32>
    %181 = vector.extract_strided_slice %169 {offsets = [64, 20], sizes = [32, 17], strides = [1, 1]} : vector<256x40xf32> to vector<32x17xf32>
    %182 = vector.extract_strided_slice %169 {offsets = [96, 20], sizes = [32, 17], strides = [1, 1]} : vector<256x40xf32> to vector<32x17xf32>
    %183 = vector.extract_strided_slice %169 {offsets = [128, 20], sizes = [32, 17], strides = [1, 1]} : vector<256x40xf32> to vector<32x17xf32>
    %184 = vector.extract_strided_slice %169 {offsets = [160, 20], sizes = [32, 17], strides = [1, 1]} : vector<256x40xf32> to vector<32x17xf32>
    %185 = vector.extract_strided_slice %169 {offsets = [192, 20], sizes = [32, 17], strides = [1, 1]} : vector<256x40xf32> to vector<32x17xf32>
    %186 = vector.extract_strided_slice %169 {offsets = [224, 20], sizes = [32, 17], strides = [1, 1]} : vector<256x40xf32> to vector<32x17xf32>
    %187 = tpu.concatenate %179, %180, %181, %182, %183, %184, %185, %186 in 1 : vector<32x17xf32>, vector<32x17xf32>, vector<32x17xf32>, vector<32x17xf32>, vector<32x17xf32>, vector<32x17xf32>, vector<32x17xf32>, vector<32x17xf32> -> vector<32x136xf32>
    %188 = vector.extract_strided_slice %169 {offsets = [0, 1], sizes = [32, 17], strides = [1, 1]} : vector<256x40xf32> to vector<32x17xf32>
    %189 = vector.extract_strided_slice %169 {offsets = [32, 1], sizes = [32, 17], strides = [1, 1]} : vector<256x40xf32> to vector<32x17xf32>
    %190 = vector.extract_strided_slice %169 {offsets = [64, 1], sizes = [32, 17], strides = [1, 1]} : vector<256x40xf32> to vector<32x17xf32>
    %191 = vector.extract_strided_slice %169 {offsets = [96, 1], sizes = [32, 17], strides = [1, 1]} : vector<256x40xf32> to vector<32x17xf32>
    %192 = vector.extract_strided_slice %169 {offsets = [128, 1], sizes = [32, 17], strides = [1, 1]} : vector<256x40xf32> to vector<32x17xf32>
    %193 = vector.extract_strided_slice %169 {offsets = [160, 1], sizes = [32, 17], strides = [1, 1]} : vector<256x40xf32> to vector<32x17xf32>
    %194 = vector.extract_strided_slice %169 {offsets = [192, 1], sizes = [32, 17], strides = [1, 1]} : vector<256x40xf32> to vector<32x17xf32>
    %195 = vector.extract_strided_slice %169 {offsets = [224, 1], sizes = [32, 17], strides = [1, 1]} : vector<256x40xf32> to vector<32x17xf32>
    %196 = tpu.concatenate %188, %189, %190, %191, %192, %193, %194, %195 in 1 : vector<32x17xf32>, vector<32x17xf32>, vector<32x17xf32>, vector<32x17xf32>, vector<32x17xf32>, vector<32x17xf32>, vector<32x17xf32>, vector<32x17xf32> -> vector<32x136xf32>
    %197 = vector.extract_strided_slice %169 {offsets = [0, 21], sizes = [32, 17], strides = [1, 1]} : vector<256x40xf32> to vector<32x17xf32>
    %198 = vector.extract_strided_slice %169 {offsets = [32, 21], sizes = [32, 17], strides = [1, 1]} : vector<256x40xf32> to vector<32x17xf32>
    %199 = vector.extract_strided_slice %169 {offsets = [64, 21], sizes = [32, 17], strides = [1, 1]} : vector<256x40xf32> to vector<32x17xf32>
    %200 = vector.extract_strided_slice %169 {offsets = [96, 21], sizes = [32, 17], strides = [1, 1]} : vector<256x40xf32> to vector<32x17xf32>
    %201 = vector.extract_strided_slice %169 {offsets = [128, 21], sizes = [32, 17], strides = [1, 1]} : vector<256x40xf32> to vector<32x17xf32>
    %202 = vector.extract_strided_slice %169 {offsets = [160, 21], sizes = [32, 17], strides = [1, 1]} : vector<256x40xf32> to vector<32x17xf32>
    %203 = vector.extract_strided_slice %169 {offsets = [192, 21], sizes = [32, 17], strides = [1, 1]} : vector<256x40xf32> to vector<32x17xf32>
    %204 = vector.extract_strided_slice %169 {offsets = [224, 21], sizes = [32, 17], strides = [1, 1]} : vector<256x40xf32> to vector<32x17xf32>
    %205 = tpu.concatenate %197, %198, %199, %200, %201, %202, %203, %204 in 1 : vector<32x17xf32>, vector<32x17xf32>, vector<32x17xf32>, vector<32x17xf32>, vector<32x17xf32>, vector<32x17xf32>, vector<32x17xf32>, vector<32x17xf32> -> vector<32x136xf32>
    %206 = vector.extract_strided_slice %169 {offsets = [0, 2], sizes = [32, 17], strides = [1, 1]} : vector<256x40xf32> to vector<32x17xf32>
    %207 = vector.extract_strided_slice %169 {offsets = [32, 2], sizes = [32, 17], strides = [1, 1]} : vector<256x40xf32> to vector<32x17xf32>
    %208 = vector.extract_strided_slice %169 {offsets = [64, 2], sizes = [32, 17], strides = [1, 1]} : vector<256x40xf32> to vector<32x17xf32>
    %209 = vector.extract_strided_slice %169 {offsets = [96, 2], sizes = [32, 17], strides = [1, 1]} : vector<256x40xf32> to vector<32x17xf32>
    %210 = vector.extract_strided_slice %169 {offsets = [128, 2], sizes = [32, 17], strides = [1, 1]} : vector<256x40xf32> to vector<32x17xf32>
    %211 = vector.extract_strided_slice %169 {offsets = [160, 2], sizes = [32, 17], strides = [1, 1]} : vector<256x40xf32> to vector<32x17xf32>
    %212 = vector.extract_strided_slice %169 {offsets = [192, 2], sizes = [32, 17], strides = [1, 1]} : vector<256x40xf32> to vector<32x17xf32>
    %213 = vector.extract_strided_slice %169 {offsets = [224, 2], sizes = [32, 17], strides = [1, 1]} : vector<256x40xf32> to vector<32x17xf32>
    %214 = tpu.concatenate %206, %207, %208, %209, %210, %211, %212, %213 in 1 : vector<32x17xf32>, vector<32x17xf32>, vector<32x17xf32>, vector<32x17xf32>, vector<32x17xf32>, vector<32x17xf32>, vector<32x17xf32>, vector<32x17xf32> -> vector<32x136xf32>
    %215 = vector.extract_strided_slice %169 {offsets = [0, 22], sizes = [32, 17], strides = [1, 1]} : vector<256x40xf32> to vector<32x17xf32>
    %216 = vector.extract_strided_slice %169 {offsets = [32, 22], sizes = [32, 17], strides = [1, 1]} : vector<256x40xf32> to vector<32x17xf32>
    %217 = vector.extract_strided_slice %169 {offsets = [64, 22], sizes = [32, 17], strides = [1, 1]} : vector<256x40xf32> to vector<32x17xf32>
    %218 = vector.extract_strided_slice %169 {offsets = [96, 22], sizes = [32, 17], strides = [1, 1]} : vector<256x40xf32> to vector<32x17xf32>
    %219 = vector.extract_strided_slice %169 {offsets = [128, 22], sizes = [32, 17], strides = [1, 1]} : vector<256x40xf32> to vector<32x17xf32>
    %220 = vector.extract_strided_slice %169 {offsets = [160, 22], sizes = [32, 17], strides = [1, 1]} : vector<256x40xf32> to vector<32x17xf32>
    %221 = vector.extract_strided_slice %169 {offsets = [192, 22], sizes = [32, 17], strides = [1, 1]} : vector<256x40xf32> to vector<32x17xf32>
    %222 = vector.extract_strided_slice %169 {offsets = [224, 22], sizes = [32, 17], strides = [1, 1]} : vector<256x40xf32> to vector<32x17xf32>
    %223 = tpu.concatenate %215, %216, %217, %218, %219, %220, %221, %222 in 1 : vector<32x17xf32>, vector<32x17xf32>, vector<32x17xf32>, vector<32x17xf32>, vector<32x17xf32>, vector<32x17xf32>, vector<32x17xf32>, vector<32x17xf32> -> vector<32x136xf32>
    %224 = vector.extract_strided_slice %169 {offsets = [0, 3], sizes = [32, 17], strides = [1, 1]} : vector<256x40xf32> to vector<32x17xf32>
    %225 = vector.extract_strided_slice %169 {offsets = [32, 3], sizes = [32, 17], strides = [1, 1]} : vector<256x40xf32> to vector<32x17xf32>
    %226 = vector.extract_strided_slice %169 {offsets = [64, 3], sizes = [32, 17], strides = [1, 1]} : vector<256x40xf32> to vector<32x17xf32>
    %227 = vector.extract_strided_slice %169 {offsets = [96, 3], sizes = [32, 17], strides = [1, 1]} : vector<256x40xf32> to vector<32x17xf32>
    %228 = vector.extract_strided_slice %169 {offsets = [128, 3], sizes = [32, 17], strides = [1, 1]} : vector<256x40xf32> to vector<32x17xf32>
    %229 = vector.extract_strided_slice %169 {offsets = [160, 3], sizes = [32, 17], strides = [1, 1]} : vector<256x40xf32> to vector<32x17xf32>
    %230 = vector.extract_strided_slice %169 {offsets = [192, 3], sizes = [32, 17], strides = [1, 1]} : vector<256x40xf32> to vector<32x17xf32>
    %231 = vector.extract_strided_slice %169 {offsets = [224, 3], sizes = [32, 17], strides = [1, 1]} : vector<256x40xf32> to vector<32x17xf32>
    %232 = tpu.concatenate %224, %225, %226, %227, %228, %229, %230, %231 in 1 : vector<32x17xf32>, vector<32x17xf32>, vector<32x17xf32>, vector<32x17xf32>, vector<32x17xf32>, vector<32x17xf32>, vector<32x17xf32>, vector<32x17xf32> -> vector<32x136xf32>
    %233 = tpu.concatenate %178, %187, %196, %205, %214, %223, %232 in 0 : vector<32x136xf32>, vector<32x136xf32>, vector<32x136xf32>, vector<32x136xf32>, vector<32x136xf32>, vector<32x136xf32>, vector<32x136xf32> -> vector<224x136xf32>
    %cst_26 = arith.constant dense<0.000000e+00> : vector<32x136xf32>
    %234 = tpu.matmul %167, %233, %cst_26 {dimension_numbers = #tpu.dot_dimension_numbers<[1], [0], [0], [1], [0, 0, 1, 1], [], []>} : vector<32x224xf32>, vector<224x136xf32>, vector<32x136xf32> -> vector<32x136xf32>
    %235 = vector.broadcast %168 : vector<32x1xf32> to vector<32x136xf32>
    %236 = arith.addf %234, %235 : vector<32x136xf32>
    %cst_27 = arith.constant 0.000000e+00 : f32
    %237 = vector.broadcast %cst_27 : f32 to vector<32x136xf32>
    %238 = arith.maximumf %236, %237 : vector<32x136xf32>
    %239 = vector.extract_strided_slice %238 {offsets = [0, 0], sizes = [32, 17], strides = [1, 1]} : vector<32x136xf32> to vector<32x17xf32>
    %240 = tpu.transpose %239, [1, 0] : vector<32x17xf32> -> vector<17x32xf32>
    %241 = vector.shape_cast %240 : vector<17x32xf32> to vector<1x17x32xf32>
    %242 = vector.extract_strided_slice %238 {offsets = [0, 17], sizes = [32, 17], strides = [1, 1]} : vector<32x136xf32> to vector<32x17xf32>
    %243 = tpu.transpose %242, [1, 0] : vector<32x17xf32> -> vector<17x32xf32>
    %244 = vector.shape_cast %243 : vector<17x32xf32> to vector<1x17x32xf32>
    %245 = vector.extract_strided_slice %238 {offsets = [0, 34], sizes = [32, 17], strides = [1, 1]} : vector<32x136xf32> to vector<32x17xf32>
    %246 = tpu.transpose %245, [1, 0] : vector<32x17xf32> -> vector<17x32xf32>
    %247 = vector.shape_cast %246 : vector<17x32xf32> to vector<1x17x32xf32>
    %248 = vector.extract_strided_slice %238 {offsets = [0, 51], sizes = [32, 17], strides = [1, 1]} : vector<32x136xf32> to vector<32x17xf32>
    %249 = tpu.transpose %248, [1, 0] : vector<32x17xf32> -> vector<17x32xf32>
    %250 = vector.shape_cast %249 : vector<17x32xf32> to vector<1x17x32xf32>
    %251 = vector.extract_strided_slice %238 {offsets = [0, 68], sizes = [32, 17], strides = [1, 1]} : vector<32x136xf32> to vector<32x17xf32>
    %252 = tpu.transpose %251, [1, 0] : vector<32x17xf32> -> vector<17x32xf32>
    %253 = vector.shape_cast %252 : vector<17x32xf32> to vector<1x17x32xf32>
    %254 = vector.extract_strided_slice %238 {offsets = [0, 85], sizes = [32, 17], strides = [1, 1]} : vector<32x136xf32> to vector<32x17xf32>
    %255 = tpu.transpose %254, [1, 0] : vector<32x17xf32> -> vector<17x32xf32>
    %256 = vector.shape_cast %255 : vector<17x32xf32> to vector<1x17x32xf32>
    %257 = vector.extract_strided_slice %238 {offsets = [0, 102], sizes = [32, 17], strides = [1, 1]} : vector<32x136xf32> to vector<32x17xf32>
    %258 = tpu.transpose %257, [1, 0] : vector<32x17xf32> -> vector<17x32xf32>
    %259 = vector.shape_cast %258 : vector<17x32xf32> to vector<1x17x32xf32>
    %260 = vector.extract_strided_slice %238 {offsets = [0, 119], sizes = [32, 17], strides = [1, 1]} : vector<32x136xf32> to vector<32x17xf32>
    %261 = tpu.transpose %260, [1, 0] : vector<32x17xf32> -> vector<17x32xf32>
    %262 = vector.shape_cast %261 : vector<17x32xf32> to vector<1x17x32xf32>
    %263 = tpu.concatenate %241, %244, %247, %250, %253, %256, %259, %262 in 0 : vector<1x17x32xf32>, vector<1x17x32xf32>, vector<1x17x32xf32>, vector<1x17x32xf32>, vector<1x17x32xf32>, vector<1x17x32xf32>, vector<1x17x32xf32>, vector<1x17x32xf32> -> vector<8x17x32xf32>
    %cst_28 = arith.constant 0.000000e+00 : f32
    %264 = vector.broadcast %cst_28 : f32 to vector<8x128xf32>
    %265 = vector.extract_strided_slice %263 {offsets = [0, 0, 0], sizes = [8, 1, 32], strides = [1, 1, 1]} : vector<8x17x32xf32> to vector<8x1x32xf32>
    %266 = vector.shape_cast %265 : vector<8x1x32xf32> to vector<8x32xf32>
    %c0_29 = arith.constant 0 : index
    %c0_30 = arith.constant 0 : index
    %c0_31 = arith.constant 0 : index
    %267 = vector.load %arg11[%c0_29, %c0_30, %c0_31] : memref<17x32x128xf32, #tpu.memory_space<vmem>>, vector<1x32x128xf32>
    %268 = vector.shape_cast %267 : vector<1x32x128xf32> to vector<32x128xf32>
    %cst_32 = arith.constant dense<0.000000e+00> : vector<8x128xf32>
    %269 = tpu.matmul %266, %268, %cst_32 {dimension_numbers = #tpu.dot_dimension_numbers<[1], [0], [0], [1], [0, 0, 1, 1], [], []>} : vector<8x32xf32>, vector<32x128xf32>, vector<8x128xf32> -> vector<8x128xf32>
    %270 = arith.addf %264, %269 : vector<8x128xf32>
    %271 = vector.extract_strided_slice %263 {offsets = [0, 1, 0], sizes = [8, 1, 32], strides = [1, 1, 1]} : vector<8x17x32xf32> to vector<8x1x32xf32>
    %272 = vector.shape_cast %271 : vector<8x1x32xf32> to vector<8x32xf32>
    %c1 = arith.constant 1 : index
    %c0_33 = arith.constant 0 : index
    %c0_34 = arith.constant 0 : index
    %273 = vector.load %arg11[%c1, %c0_33, %c0_34] : memref<17x32x128xf32, #tpu.memory_space<vmem>>, vector<1x32x128xf32>
    %274 = vector.shape_cast %273 : vector<1x32x128xf32> to vector<32x128xf32>
    %cst_35 = arith.constant dense<0.000000e+00> : vector<8x128xf32>
    %275 = tpu.matmul %272, %274, %cst_35 {dimension_numbers = #tpu.dot_dimension_numbers<[1], [0], [0], [1], [0, 0, 1, 1], [], []>} : vector<8x32xf32>, vector<32x128xf32>, vector<8x128xf32> -> vector<8x128xf32>
    %276 = arith.addf %270, %275 : vector<8x128xf32>
    %277 = vector.extract_strided_slice %263 {offsets = [0, 2, 0], sizes = [8, 1, 32], strides = [1, 1, 1]} : vector<8x17x32xf32> to vector<8x1x32xf32>
    %278 = vector.shape_cast %277 : vector<8x1x32xf32> to vector<8x32xf32>
    %c2 = arith.constant 2 : index
    %c0_36 = arith.constant 0 : index
    %c0_37 = arith.constant 0 : index
    %279 = vector.load %arg11[%c2, %c0_36, %c0_37] : memref<17x32x128xf32, #tpu.memory_space<vmem>>, vector<1x32x128xf32>
    %280 = vector.shape_cast %279 : vector<1x32x128xf32> to vector<32x128xf32>
    %cst_38 = arith.constant dense<0.000000e+00> : vector<8x128xf32>
    %281 = tpu.matmul %278, %280, %cst_38 {dimension_numbers = #tpu.dot_dimension_numbers<[1], [0], [0], [1], [0, 0, 1, 1], [], []>} : vector<8x32xf32>, vector<32x128xf32>, vector<8x128xf32> -> vector<8x128xf32>
    %282 = arith.addf %276, %281 : vector<8x128xf32>
    %283 = vector.extract_strided_slice %263 {offsets = [0, 3, 0], sizes = [8, 1, 32], strides = [1, 1, 1]} : vector<8x17x32xf32> to vector<8x1x32xf32>
    %284 = vector.shape_cast %283 : vector<8x1x32xf32> to vector<8x32xf32>
    %c3 = arith.constant 3 : index
    %c0_39 = arith.constant 0 : index
    %c0_40 = arith.constant 0 : index
    %285 = vector.load %arg11[%c3, %c0_39, %c0_40] : memref<17x32x128xf32, #tpu.memory_space<vmem>>, vector<1x32x128xf32>
    %286 = vector.shape_cast %285 : vector<1x32x128xf32> to vector<32x128xf32>
    %cst_41 = arith.constant dense<0.000000e+00> : vector<8x128xf32>
    %287 = tpu.matmul %284, %286, %cst_41 {dimension_numbers = #tpu.dot_dimension_numbers<[1], [0], [0], [1], [0, 0, 1, 1], [], []>} : vector<8x32xf32>, vector<32x128xf32>, vector<8x128xf32> -> vector<8x128xf32>
    %288 = arith.addf %282, %287 : vector<8x128xf32>
    %289 = vector.extract_strided_slice %263 {offsets = [0, 4, 0], sizes = [8, 1, 32], strides = [1, 1, 1]} : vector<8x17x32xf32> to vector<8x1x32xf32>
    %290 = vector.shape_cast %289 : vector<8x1x32xf32> to vector<8x32xf32>
    %c4 = arith.constant 4 : index
    %c0_42 = arith.constant 0 : index
    %c0_43 = arith.constant 0 : index
    %291 = vector.load %arg11[%c4, %c0_42, %c0_43] : memref<17x32x128xf32, #tpu.memory_space<vmem>>, vector<1x32x128xf32>
    %292 = vector.shape_cast %291 : vector<1x32x128xf32> to vector<32x128xf32>
    %cst_44 = arith.constant dense<0.000000e+00> : vector<8x128xf32>
    %293 = tpu.matmul %290, %292, %cst_44 {dimension_numbers = #tpu.dot_dimension_numbers<[1], [0], [0], [1], [0, 0, 1, 1], [], []>} : vector<8x32xf32>, vector<32x128xf32>, vector<8x128xf32> -> vector<8x128xf32>
    %294 = arith.addf %288, %293 : vector<8x128xf32>
    %295 = vector.extract_strided_slice %263 {offsets = [0, 5, 0], sizes = [8, 1, 32], strides = [1, 1, 1]} : vector<8x17x32xf32> to vector<8x1x32xf32>
    %296 = vector.shape_cast %295 : vector<8x1x32xf32> to vector<8x32xf32>
    %c5 = arith.constant 5 : index
    %c0_45 = arith.constant 0 : index
    %c0_46 = arith.constant 0 : index
    %297 = vector.load %arg11[%c5, %c0_45, %c0_46] : memref<17x32x128xf32, #tpu.memory_space<vmem>>, vector<1x32x128xf32>
    %298 = vector.shape_cast %297 : vector<1x32x128xf32> to vector<32x128xf32>
    %cst_47 = arith.constant dense<0.000000e+00> : vector<8x128xf32>
    %299 = tpu.matmul %296, %298, %cst_47 {dimension_numbers = #tpu.dot_dimension_numbers<[1], [0], [0], [1], [0, 0, 1, 1], [], []>} : vector<8x32xf32>, vector<32x128xf32>, vector<8x128xf32> -> vector<8x128xf32>
    %300 = arith.addf %294, %299 : vector<8x128xf32>
    %301 = vector.extract_strided_slice %263 {offsets = [0, 6, 0], sizes = [8, 1, 32], strides = [1, 1, 1]} : vector<8x17x32xf32> to vector<8x1x32xf32>
    %302 = vector.shape_cast %301 : vector<8x1x32xf32> to vector<8x32xf32>
    %c6 = arith.constant 6 : index
    %c0_48 = arith.constant 0 : index
    %c0_49 = arith.constant 0 : index
    %303 = vector.load %arg11[%c6, %c0_48, %c0_49] : memref<17x32x128xf32, #tpu.memory_space<vmem>>, vector<1x32x128xf32>
    %304 = vector.shape_cast %303 : vector<1x32x128xf32> to vector<32x128xf32>
    %cst_50 = arith.constant dense<0.000000e+00> : vector<8x128xf32>
    %305 = tpu.matmul %302, %304, %cst_50 {dimension_numbers = #tpu.dot_dimension_numbers<[1], [0], [0], [1], [0, 0, 1, 1], [], []>} : vector<8x32xf32>, vector<32x128xf32>, vector<8x128xf32> -> vector<8x128xf32>
    %306 = arith.addf %300, %305 : vector<8x128xf32>
    %307 = vector.extract_strided_slice %263 {offsets = [0, 7, 0], sizes = [8, 1, 32], strides = [1, 1, 1]} : vector<8x17x32xf32> to vector<8x1x32xf32>
    %308 = vector.shape_cast %307 : vector<8x1x32xf32> to vector<8x32xf32>
    %c7 = arith.constant 7 : index
    %c0_51 = arith.constant 0 : index
    %c0_52 = arith.constant 0 : index
    %309 = vector.load %arg11[%c7, %c0_51, %c0_52] : memref<17x32x128xf32, #tpu.memory_space<vmem>>, vector<1x32x128xf32>
    %310 = vector.shape_cast %309 : vector<1x32x128xf32> to vector<32x128xf32>
    %cst_53 = arith.constant dense<0.000000e+00> : vector<8x128xf32>
    %311 = tpu.matmul %308, %310, %cst_53 {dimension_numbers = #tpu.dot_dimension_numbers<[1], [0], [0], [1], [0, 0, 1, 1], [], []>} : vector<8x32xf32>, vector<32x128xf32>, vector<8x128xf32> -> vector<8x128xf32>
    %312 = arith.addf %306, %311 : vector<8x128xf32>
    %313 = vector.extract_strided_slice %263 {offsets = [0, 8, 0], sizes = [8, 1, 32], strides = [1, 1, 1]} : vector<8x17x32xf32> to vector<8x1x32xf32>
    %314 = vector.shape_cast %313 : vector<8x1x32xf32> to vector<8x32xf32>
    %c8 = arith.constant 8 : index
    %c0_54 = arith.constant 0 : index
    %c0_55 = arith.constant 0 : index
    %315 = vector.load %arg11[%c8, %c0_54, %c0_55] : memref<17x32x128xf32, #tpu.memory_space<vmem>>, vector<1x32x128xf32>
    %316 = vector.shape_cast %315 : vector<1x32x128xf32> to vector<32x128xf32>
    %cst_56 = arith.constant dense<0.000000e+00> : vector<8x128xf32>
    %317 = tpu.matmul %314, %316, %cst_56 {dimension_numbers = #tpu.dot_dimension_numbers<[1], [0], [0], [1], [0, 0, 1, 1], [], []>} : vector<8x32xf32>, vector<32x128xf32>, vector<8x128xf32> -> vector<8x128xf32>
    %318 = arith.addf %312, %317 : vector<8x128xf32>
    %319 = vector.extract_strided_slice %263 {offsets = [0, 9, 0], sizes = [8, 1, 32], strides = [1, 1, 1]} : vector<8x17x32xf32> to vector<8x1x32xf32>
    %320 = vector.shape_cast %319 : vector<8x1x32xf32> to vector<8x32xf32>
    %c9 = arith.constant 9 : index
    %c0_57 = arith.constant 0 : index
    %c0_58 = arith.constant 0 : index
    %321 = vector.load %arg11[%c9, %c0_57, %c0_58] : memref<17x32x128xf32, #tpu.memory_space<vmem>>, vector<1x32x128xf32>
    %322 = vector.shape_cast %321 : vector<1x32x128xf32> to vector<32x128xf32>
    %cst_59 = arith.constant dense<0.000000e+00> : vector<8x128xf32>
    %323 = tpu.matmul %320, %322, %cst_59 {dimension_numbers = #tpu.dot_dimension_numbers<[1], [0], [0], [1], [0, 0, 1, 1], [], []>} : vector<8x32xf32>, vector<32x128xf32>, vector<8x128xf32> -> vector<8x128xf32>
    %324 = arith.addf %318, %323 : vector<8x128xf32>
    %325 = vector.extract_strided_slice %263 {offsets = [0, 10, 0], sizes = [8, 1, 32], strides = [1, 1, 1]} : vector<8x17x32xf32> to vector<8x1x32xf32>
    %326 = vector.shape_cast %325 : vector<8x1x32xf32> to vector<8x32xf32>
    %c10 = arith.constant 10 : index
    %c0_60 = arith.constant 0 : index
    %c0_61 = arith.constant 0 : index
    %327 = vector.load %arg11[%c10, %c0_60, %c0_61] : memref<17x32x128xf32, #tpu.memory_space<vmem>>, vector<1x32x128xf32>
    %328 = vector.shape_cast %327 : vector<1x32x128xf32> to vector<32x128xf32>
    %cst_62 = arith.constant dense<0.000000e+00> : vector<8x128xf32>
    %329 = tpu.matmul %326, %328, %cst_62 {dimension_numbers = #tpu.dot_dimension_numbers<[1], [0], [0], [1], [0, 0, 1, 1], [], []>} : vector<8x32xf32>, vector<32x128xf32>, vector<8x128xf32> -> vector<8x128xf32>
    %330 = arith.addf %324, %329 : vector<8x128xf32>
    %331 = vector.extract_strided_slice %263 {offsets = [0, 11, 0], sizes = [8, 1, 32], strides = [1, 1, 1]} : vector<8x17x32xf32> to vector<8x1x32xf32>
    %332 = vector.shape_cast %331 : vector<8x1x32xf32> to vector<8x32xf32>
    %c11 = arith.constant 11 : index
    %c0_63 = arith.constant 0 : index
    %c0_64 = arith.constant 0 : index
    %333 = vector.load %arg11[%c11, %c0_63, %c0_64] : memref<17x32x128xf32, #tpu.memory_space<vmem>>, vector<1x32x128xf32>
    %334 = vector.shape_cast %333 : vector<1x32x128xf32> to vector<32x128xf32>
    %cst_65 = arith.constant dense<0.000000e+00> : vector<8x128xf32>
    %335 = tpu.matmul %332, %334, %cst_65 {dimension_numbers = #tpu.dot_dimension_numbers<[1], [0], [0], [1], [0, 0, 1, 1], [], []>} : vector<8x32xf32>, vector<32x128xf32>, vector<8x128xf32> -> vector<8x128xf32>
    %336 = arith.addf %330, %335 : vector<8x128xf32>
    %337 = vector.extract_strided_slice %263 {offsets = [0, 12, 0], sizes = [8, 1, 32], strides = [1, 1, 1]} : vector<8x17x32xf32> to vector<8x1x32xf32>
    %338 = vector.shape_cast %337 : vector<8x1x32xf32> to vector<8x32xf32>
    %c12 = arith.constant 12 : index
    %c0_66 = arith.constant 0 : index
    %c0_67 = arith.constant 0 : index
    %339 = vector.load %arg11[%c12, %c0_66, %c0_67] : memref<17x32x128xf32, #tpu.memory_space<vmem>>, vector<1x32x128xf32>
    %340 = vector.shape_cast %339 : vector<1x32x128xf32> to vector<32x128xf32>
    %cst_68 = arith.constant dense<0.000000e+00> : vector<8x128xf32>
    %341 = tpu.matmul %338, %340, %cst_68 {dimension_numbers = #tpu.dot_dimension_numbers<[1], [0], [0], [1], [0, 0, 1, 1], [], []>} : vector<8x32xf32>, vector<32x128xf32>, vector<8x128xf32> -> vector<8x128xf32>
    %342 = arith.addf %336, %341 : vector<8x128xf32>
    %343 = vector.extract_strided_slice %263 {offsets = [0, 13, 0], sizes = [8, 1, 32], strides = [1, 1, 1]} : vector<8x17x32xf32> to vector<8x1x32xf32>
    %344 = vector.shape_cast %343 : vector<8x1x32xf32> to vector<8x32xf32>
    %c13 = arith.constant 13 : index
    %c0_69 = arith.constant 0 : index
    %c0_70 = arith.constant 0 : index
    %345 = vector.load %arg11[%c13, %c0_69, %c0_70] : memref<17x32x128xf32, #tpu.memory_space<vmem>>, vector<1x32x128xf32>
    %346 = vector.shape_cast %345 : vector<1x32x128xf32> to vector<32x128xf32>
    %cst_71 = arith.constant dense<0.000000e+00> : vector<8x128xf32>
    %347 = tpu.matmul %344, %346, %cst_71 {dimension_numbers = #tpu.dot_dimension_numbers<[1], [0], [0], [1], [0, 0, 1, 1], [], []>} : vector<8x32xf32>, vector<32x128xf32>, vector<8x128xf32> -> vector<8x128xf32>
    %348 = arith.addf %342, %347 : vector<8x128xf32>
    %349 = vector.extract_strided_slice %263 {offsets = [0, 14, 0], sizes = [8, 1, 32], strides = [1, 1, 1]} : vector<8x17x32xf32> to vector<8x1x32xf32>
    %350 = vector.shape_cast %349 : vector<8x1x32xf32> to vector<8x32xf32>
    %c14 = arith.constant 14 : index
    %c0_72 = arith.constant 0 : index
    %c0_73 = arith.constant 0 : index
    %351 = vector.load %arg11[%c14, %c0_72, %c0_73] : memref<17x32x128xf32, #tpu.memory_space<vmem>>, vector<1x32x128xf32>
    %352 = vector.shape_cast %351 : vector<1x32x128xf32> to vector<32x128xf32>
    %cst_74 = arith.constant dense<0.000000e+00> : vector<8x128xf32>
    %353 = tpu.matmul %350, %352, %cst_74 {dimension_numbers = #tpu.dot_dimension_numbers<[1], [0], [0], [1], [0, 0, 1, 1], [], []>} : vector<8x32xf32>, vector<32x128xf32>, vector<8x128xf32> -> vector<8x128xf32>
    %354 = arith.addf %348, %353 : vector<8x128xf32>
    %355 = vector.extract_strided_slice %263 {offsets = [0, 15, 0], sizes = [8, 1, 32], strides = [1, 1, 1]} : vector<8x17x32xf32> to vector<8x1x32xf32>
    %356 = vector.shape_cast %355 : vector<8x1x32xf32> to vector<8x32xf32>
    %c15 = arith.constant 15 : index
    %c0_75 = arith.constant 0 : index
    %c0_76 = arith.constant 0 : index
    %357 = vector.load %arg11[%c15, %c0_75, %c0_76] : memref<17x32x128xf32, #tpu.memory_space<vmem>>, vector<1x32x128xf32>
    %358 = vector.shape_cast %357 : vector<1x32x128xf32> to vector<32x128xf32>
    %cst_77 = arith.constant dense<0.000000e+00> : vector<8x128xf32>
    %359 = tpu.matmul %356, %358, %cst_77 {dimension_numbers = #tpu.dot_dimension_numbers<[1], [0], [0], [1], [0, 0, 1, 1], [], []>} : vector<8x32xf32>, vector<32x128xf32>, vector<8x128xf32> -> vector<8x128xf32>
    %360 = arith.addf %354, %359 : vector<8x128xf32>
    %361 = vector.extract_strided_slice %263 {offsets = [0, 16, 0], sizes = [8, 1, 32], strides = [1, 1, 1]} : vector<8x17x32xf32> to vector<8x1x32xf32>
    %362 = vector.shape_cast %361 : vector<8x1x32xf32> to vector<8x32xf32>
    %c16 = arith.constant 16 : index
    %c0_78 = arith.constant 0 : index
    %c0_79 = arith.constant 0 : index
    %363 = vector.load %arg11[%c16, %c0_78, %c0_79] : memref<17x32x128xf32, #tpu.memory_space<vmem>>, vector<1x32x128xf32>
    %364 = vector.shape_cast %363 : vector<1x32x128xf32> to vector<32x128xf32>
    %cst_80 = arith.constant dense<0.000000e+00> : vector<8x128xf32>
    %365 = tpu.matmul %362, %364, %cst_80 {dimension_numbers = #tpu.dot_dimension_numbers<[1], [0], [0], [1], [0, 0, 1, 1], [], []>} : vector<8x32xf32>, vector<32x128xf32>, vector<8x128xf32> -> vector<8x128xf32>
    %366 = arith.addf %360, %365 : vector<8x128xf32>
    %c0_81 = arith.constant 0 : index
    %c0_82 = arith.constant 0 : index
    %367 = vector.load %arg12[%c0_81, %c0_82] : memref<1x128xf32, #tpu.memory_space<vmem>>, vector<1x128xf32>
    %368 = vector.broadcast %367 : vector<1x128xf32> to vector<8x128xf32>
    %369 = arith.addf %366, %368 : vector<8x128xf32>
    %c0_83 = arith.constant 0 : index
    %c0_84 = arith.constant 0 : index
    %370 = vector.load %arg13[%c0_83, %c0_84] : memref<8x128xf32, #tpu.memory_space<vmem>>, vector<8x128xf32>
    tpu.vector_store %arg13[%c0_83, %c0_84], %369 {strides = array<i32>} : memref<8x128xf32, #tpu.memory_space<vmem>>, vector<8x128xf32>,
    return
  }
  func.func @transform_0(%arg0: i32) -> (i32, i32, i32) {
    %c0_i32 = arith.constant 0 : i32
    %c0_i32_0 = arith.constant 0 : i32
    %c0_i32_1 = arith.constant 0 : i32
    return %arg0, %c0_i32, %c0_i32_0 : i32, i32, i32
  }
  func.func @transform_1(%arg0: i32) -> (i32, i32) {
    %c0_i32 = arith.constant 0 : i32
    %c0_i32_0 = arith.constant 0 : i32
    %c0_i32_1 = arith.constant 0 : i32
    return %c0_i32, %c0_i32_0 : i32, i32
  }
  func.func @transform_2(%arg0: i32) -> (i32, i32) {
    %c0_i32 = arith.constant 0 : i32
    %c0_i32_0 = arith.constant 0 : i32
    %c0_i32_1 = arith.constant 0 : i32
    return %c0_i32, %c0_i32_0 : i32, i32
  }
  func.func @transform_3(%arg0: i32) -> (i32, i32) {
    %c0_i32 = arith.constant 0 : i32
    %c0_i32_0 = arith.constant 0 : i32
    %c0_i32_1 = arith.constant 0 : i32
    return %c0_i32, %c0_i32_0 : i32, i32
  }
  func.func @transform_4(%arg0: i32) -> (i32, i32) {
    %c0_i32 = arith.constant 0 : i32
    %c0_i32_0 = arith.constant 0 : i32
    %c0_i32_1 = arith.constant 0 : i32
    return %c0_i32, %c0_i32_0 : i32, i32
  }
  func.func @transform_5(%arg0: i32) -> (i32, i32) {
    %c0_i32 = arith.constant 0 : i32
    %c0_i32_0 = arith.constant 0 : i32
    %c0_i32_1 = arith.constant 0 : i32
    return %c0_i32, %c0_i32_0 : i32, i32
  }
  func.func @transform_6(%arg0: i32) -> (i32, i32) {
    %c0_i32 = arith.constant 0 : i32
    %c0_i32_0 = arith.constant 0 : i32
    %c0_i32_1 = arith.constant 0 : i32
    return %c0_i32, %c0_i32_0 : i32, i32
  }
  func.func @transform_7(%arg0: i32) -> (i32, i32) {
    %c0_i32 = arith.constant 0 : i32
    %c0_i32_0 = arith.constant 0 : i32
    %c0_i32_1 = arith.constant 0 : i32
    return %c0_i32, %c0_i32_0 : i32, i32
  }
  func.func @transform_8(%arg0: i32) -> (i32, i32) {
    %c0_i32 = arith.constant 0 : i32
    %c0_i32_0 = arith.constant 0 : i32
    %c0_i32_1 = arith.constant 0 : i32
    return %c0_i32, %c0_i32_0 : i32, i32
  }
  func.func @transform_9(%arg0: i32) -> (i32, i32) {
    %c0_i32 = arith.constant 0 : i32
    %c0_i32_0 = arith.constant 0 : i32
    %c0_i32_1 = arith.constant 0 : i32
    return %c0_i32, %c0_i32_0 : i32, i32
  }
  func.func @transform_10(%arg0: i32) -> (i32, i32, i32) {
    %c0_i32 = arith.constant 0 : i32
    %c0_i32_0 = arith.constant 0 : i32
    %c0_i32_1 = arith.constant 0 : i32
    %c0_i32_2 = arith.constant 0 : i32
    return %c0_i32, %c0_i32_0, %c0_i32_1 : i32, i32, i32
  }
  func.func @transform_11(%arg0: i32) -> (i32, i32) {
    %c0_i32 = arith.constant 0 : i32
    %c0_i32_0 = arith.constant 0 : i32
    %c0_i32_1 = arith.constant 0 : i32
    return %c0_i32, %c0_i32_0 : i32, i32
  }
  func.func @transform_12(%arg0: i32) -> (i32, i32) {
    %c0_i32 = arith.constant 0 : i32
    %c0_i32_0 = arith.constant 0 : i32
    return %arg0, %c0_i32 : i32, i32
  }
}

</mosaic_0001>

<bundles_post_ra>
// kernel: tpu_custom_call.1
= control target key start
LH: loop header
LB: loop body
LE: loop exit
PB: predicated region body
PF: predicated region fallthrough
CT: control target
= control target key end

     0   :  { %s11934_s0 = inlined_call_operand.hbm [shape: f32[16,16,136], index: 0, kind: input, shape index: {}]   ;;  %s11935_s1 = inlined_call_operand.hbm [shape: f32[136,142], index: 1, kind: input, shape index: {}]   ;;  %s11936_s2 = inlined_call_operand.vmem [shape: f32[68,74], index: 2, kind: input, shape index: {}]   ;;  %s11937_s3 = inlined_call_operand.hbm [shape: f32[34,40], index: 3, kind: input, shape index: {}]   ;;  %s11938_s4 = inlined_call_operand.hbm [shape: f32[32,112], index: 4, kind: input, shape index: {}]   ;;  %s11939_s5 = inlined_call_operand.vmem [shape: f32[32,1], index: 5, kind: input, shape index: {}]   ;;  %s11940_s6 = inlined_call_operand.hbm [shape: f32[32,224], index: 6, kind: input, shape index: {}]   ;;  %s11941_s7 = inlined_call_operand.vmem [shape: f32[32,1], index: 7, kind: input, shape index: {}]   ;;  %s11942_s8 = inlined_call_operand.hbm [shape: f32[32,224], index: 8, kind: input, shape index: {}]   ;;  %s11943_s9 = inlined_call_operand.vmem [shape: f32[32,1], index: 9, kind: input, shape index: {}]   ;;  %s11944_s10 = inlined_call_operand.hbm [shape: f32[17,32,128], index: 10, kind: input, shape index: {}]   ;;  %s11945_s11 = inlined_call_operand.vmem [shape: f32[1,128], index: 11, kind: input, shape index: {}]   ;;  %s11946_s12 = inlined_call_operand.hbm [shape: f32[16,128], index: 12, kind: output, shape index: {}]  }
   0x1   :  { %12131 = sst [smem:[#allocation41_spill]] %s11934_s0 }
   0x2   :  { %12132 = sst [smem:[#allocation42_spill]] %s11935_s1 }
   0x3   :  { %12133 = sst [smem:[#allocation43_spill]] %s11936_s2 }
   0x4   :  { %12134 = sst [smem:[#allocation44_spill]] %s11937_s3 }
   0x5   :  { %12135 = sst [smem:[#allocation45_spill]] %s11938_s4 }
   0x6   :  { %12136 = sst [smem:[#allocation46_spill]] %s11940_s6 }
   0x7   :  { %12137 = sst [smem:[#allocation47_spill]] %s11943_s9 }
   0x8   :  { %12138 = sst [smem:[#allocation48_spill]] %s11945_s11 }
   0x9   :  { %12139 = sst [smem:[#allocation49_spill]] %s11946_s12 }
   0xa   :  { %17 = vsyncpa [#allocation3], 0 }
   0xb   :  { %19 = vsyncpa [#allocation3 + $0x1], 0 }
   0xc   :  { %20 = vsyncpa [#allocation6], 0 }
   0xd   :  { %21 = vsyncpa [#allocation9], 0 }
   0xe   :  { %22 = vsyncpa [#allocation12], 0 }
   0xf   :  { %23 = vsyncpa [#allocation4], 0 }
  0x10   :  { %25 = vsyncpa [#allocation4 + $0x1], 0  ;;  %s8187_s21 = smov 0   ;;  %s8189_s22 = smov 0  }
  0x11   :  { %s8191_s23 = smov 0   ;;  %s8193_s24 = smov 0  }
  0x12 LB: > { %s12140_s1 = sld [smem:[#allocation42_spill]]  ;;  %s8211_s28 = sadd.s32 4294967295, %s8011_s24   ;;  %s8011_s24 = sphi %s8193_s24, %s12339_s24   ;;  %s8007_s23 = sphi %s8191_s23, %s12338_s23   ;;  %s8003_s22 = sphi %s8189_s22, %s12337_s22   ;;  %s7999_s21 = sphi %s8187_s21, %s12336_s21  }
  0x13   : > { %p5809_p0 = scmp.ge.s32.totalorder %s8011_s24, 1  ;;  %p52_p1 = scmp.eq.s32.totalorder %s8211_s28, 0 }
  0x14   : > { %p319_p2 = scmp.lt.s32.totalorder %s8011_s24, 3  ;;  %s8013_s30 = smov [#allocation5]  }
  0x15   : > { %s332_s13 = sshll.u32 %s8013_s30, 4  ;;  %s12143_s4 = sld [smem:[#allocation45_spill]]  ;;  %s333_s13 = int_to_ptr.vmem [resolvable:$true] %s332_s13 }
  0x16   : > { %p8216_p3 = pnand %p5809_p0, %p319_p2  ;;  %s11949_s18 = smov 256  }
  0x17   : > { %s11950_s19 = smov 16   ;;  %s8016_s20 = smov [#allocation8]  }
  0x18   : > { %s330_s27 = sshll.u32 %s12140_s1, 4  ;;  %p6041_p4 = pneg %p8216_p3  ;;  %s331_s27 = int_to_ptr.hbm [resolvable:$true] %s330_s27 }
  0x19   : > { %s363_s25 = sshll.u32 %s8016_s20, 4  ;;  %s395_s1 = sshll.u32 %s11942_s8, 4  ;;  %s364_s25 = int_to_ptr.vmem [resolvable:$true] %s363_s25  ;;  %s396_s1 = int_to_ptr.hbm [resolvable:$true] %s395_s1 }
  0x1a   : > { %p8225_p6 = pnand %p6041_p4, %p52_p1  ;;  %s8017_s15 = smov 128  }
  0x1b   : > { %s361_s17 = sshll.u32 %s12143_s4, 4  ;;  %s8018_s16 = smov 8   ;;  %s362_s17 = int_to_ptr.hbm [resolvable:$true] %s361_s17 }
  0x1c   : > { %6044 = dma.hbm_to_vmem [thread:$0]  (!%p8225_p6), %s331_s27, 4352, %s333_s13, [#allocation6], %s11949_s18, %s11949_s18, %s11950_s19  }
  0x1d   : > { %6050 = dma.hbm_to_vmem [thread:$0]  (!%p8225_p6), %s362_s17, 512, %s364_s25, [#allocation9], %s8017_s15, %s8017_s15, %s8018_s16  }
  0x1e   : > { %s12144_s3 = sld [smem:[#allocation44_spill]]  ;;  %s8019_s9 = smov [#allocation11]  }
  0x1f   : > { %s397_s27 = sshll.u32 %s8019_s9, 4  ;;  %s8020_s13 = smov [#allocation7]   ;;  %s398_s27 = int_to_ptr.vmem [resolvable:$true] %s397_s27 }
  0x20   : > { %6056 = dma.hbm_to_vmem [thread:$0]  (!%p8225_p6), %s396_s1, 1024, %s398_s27, [#allocation12], %s11949_s18, %s11949_s18, %s11950_s19  }
  0x21   : > { %s349_s20 = sshll.u32 %s8020_s13, 4  ;;  %s12145_s6 = sld [smem:[#allocation46_spill]]  ;;  %s350_s20 = int_to_ptr.vmem [resolvable:$true] %s349_s20 }
  0x22   : > { %s412_s1 = sshll.u32 %s11944_s10, 4  ;;  %s8021_s25 = smov [#allocation10]   ;;  %s413_s1 = int_to_ptr.hbm [resolvable:$true] %s412_s1 }
  0x23   : > { %s380_s30 = sshll.u32 %s8021_s25, 4  ;;  %s5808_s13 = sadd.s32 4294967294, %s8011_s24   ;;  %s381_s30 = int_to_ptr.vmem [resolvable:$true] %s380_s30 }
  0x24   : > { %s347_s12 = sshll.u32 %s12144_s3, 4  ;;  %s38_s17 = sadd.s32 1, %s8007_s23  ;;  %s348_s12 = int_to_ptr.hbm [resolvable:$true] %s347_s12 }
  0x25   : > { %6047 = dma.hbm_to_vmem [thread:$0]  (!%p8225_p6), %s348_s12, 640, %s350_s20, [#allocation6], %s8017_s15, %s8017_s15, %s8018_s16  }
  0x26   : > { %s8022_s12 = smov [#allocation13]   ;;  %s8267_s20 = sadd.s32 1, %s8011_s24  }
  0x27   : > { %s378_s4 = sshll.u32 %s12145_s6, 4  ;;  %s414_s27 = sshll.u32 %s8022_s12, 4  ;;  %s379_s4 = int_to_ptr.hbm [resolvable:$true] %s378_s4  ;;  %s415_s27 = int_to_ptr.vmem [resolvable:$true] %s414_s27 }
  0x28   : > { %6053 = dma.hbm_to_vmem [thread:$0]  (!%p8225_p6), %s379_s4, 1024, %s381_s30, [#allocation9], %s11949_s18, %s11949_s18, %s11950_s19  }
  0x29   : > { %6059 = dma.hbm_to_vmem [thread:$0]  (!%p8225_p6), %s413_s1, 8704, %s415_s27, [#allocation12], %s8017_s15, %s8017_s15, %s8018_s16  }
  0x2a   : > { %s35_s26 = ssub.s32 %s8011_s24, %s8267_s20  ;;  %p45_p8 = scmp.ne.s32.totalorder %s8007_s23, %s8003_s22 }
  0x2b   : > { %p36_p7 = scmp.eq.s32.totalorder %s35_s26, 0  ;;  %p46_p9 = scmp.eq.s32.totalorder %s8011_s24, 0 }
  0x2c   : > { %p51_p10 = scmp.ne.s32.totalorder %s8003_s22, %s7999_s21  ;;  %p306_p13 = scmp.eq.s32.totalorder %s8211_s28, 1 }
  0x2d   : > { %s8278_s4 = scalar_select %p36_p7, %s8007_s23, %s38_s17  }
  0x2e   : > { %p8280_p11 = por %p46_p9, %p45_p8  ;;  %p8286_p12 = por %p52_p1, %p51_p10 }
  0x2f   : > { %p312_p0 = scmp.eq.s32.totalorder %s5808_s13, 1  ;;  %p6074_p2 = scmp.lt.s32.totalorder %s8011_s24, 2 }
  0x30   : > { %s431_s15 = sand.u32 1, %s8007_s23   ;;  %p8293_p4 = por %p306_p13, %p45_p8 }
  0x31   : > { %p8297_p6 = por %p312_p0, %p51_p10  ;;  %s5817_s1 = sshll.u32 %s431_s15, 8 }
  0x32   : > { %s5990_s25 = sshll.u32 %s8011_s24, 8  ;;  %s12150_s0 = sld [smem:[#allocation41_spill]] }
  0x33   : > { %s435_s26 = scalar_lea.vmem [#allocation2], %s5817_s1  ;;  %p8307_p7 = pnand %p6074_p2, %p8280_p11 }
  0x34   : > { %s444_s17 = sshll.u32 %s435_s26, 4  ;;  %s432_s19 = scalar_lea.sflag [#allocation3], %s431_s15  ;;  %s445_s17 = int_to_ptr.vmem [resolvable:$true] %s444_s17 }
  0x35   : > { %p7907_p9 = pneg %p8307_p7 }
  0x38   : > { %s441_s27 = scalar_lea.hbm %s12150_s0, %s5990_s25  ;;  %s7910_s30 = scalar_lea.hbm %s12150_s0, 512 }
  0x39   : > { %s442_s18 = sshll.u32 %s441_s27, 4  ;;  %s443_s18 = int_to_ptr.hbm [resolvable:$true] %s442_s18 }
  0x3a   : > { %s7903_s3 = sshra.s32 %s443_s18, 4  ;;  %s7904_s3 = int_to_ptr.hbm [resolvable:$true] %s7903_s3 }
  0x3b   : > { %s7905_s6 = scalar_lea.hbm %s7904_s3, 256  ;;  %p7911_p11 = scmp.lt.s32.totalorder %s7904_s3, %s12150_s0 }
  0x3c   : > { %p7906_p8 = scmp.ne.s32.totalorder %s7904_s3, %s7905_s6  ;;  %p7912_p0 = scmp.lt.s32.totalorder %s7910_s30, %s7905_s6 }
  0x3e   : > { %p7908_p10 = pnand %p7907_p9, %p7906_p8  ;;  %p7913_p2 = por %p7912_p0, %p7911_p11 }
  0x40   : > { %p7909_p13 = pneg %p7908_p10 }
  0x42   : > { %p7914_p5 = pnand %p7913_p2, %p7909_p13 }
  0x44   : > { %7917 = shalt.err (!%p7914_p5)
}
  0x45   : > { %s12152_s15 = smov 16   ;;  %s12153_s27 = smov 256  }
  0x46   : > { %6063 = dma.hbm_to_vmem [thread:$0]  (!%p8307_p7), %s443_s18, 4096, %s445_s17, %s432_s19, %s12153_s27, %s12153_s27, %s12152_s15  }
  0x47   : > { %456 = sbr.rel (%p8216_p3) target bundleno = 2806 (0xaf6), region = 68 }
  0x4c   : > { %s8327_s26 = sand.u32 1, %s8003_s22  }
  0x4d   : > { %s5822_s3 = sshll.u32 %s8327_s26, 8  ;;  %s459_s6 = scalar_lea.sflag [#allocation3], %s8327_s26 }
  0x4e   : > { %s8331_s1 = scalar_lea.vmem [#allocation2], %s5822_s3 }
  0x4f   : > { %7978 = dma.done.wait (%p8286_p12), %s459_s6, 4096  }
  0x50   : > { %7980 = vsyncadd (%p8286_p12), %s459_s6, 4294963200 }
  0x51   : > { %7982 = dma.done.wait (%p52_p1), [#allocation6], 4992  }
  0x52   : > { %7984 = vsyncadd (%p52_p1), [#allocation6], 4294962304 }
  0x53   : > { %7986 = dma.done.wait (%p52_p1), [#allocation9], 1536  }
  0x54   : > { %7988 = vsyncadd (%p52_p1), [#allocation9], 4294965760 }
  0x55   : > { %7990 = dma.done.wait (%p52_p1), [#allocation12], 9728  }
  0x56   : > { %7992 = vsyncadd (%p52_p1), [#allocation12], 4294957568  ;;  %vm609_vm0 = vcmask 64512   ;;  %v597_v0 = vld [vmem:[#allocation5 + $0xf0] sm:$0xff]  ;;  %v599_v1 = vld [vmem:[#allocation5 + $0x100] sm:$0xff]  ;;  %s8023_s29 = smov 127  }
  0x57   : > { %v8350_v2 = vld [vmem:[%s8331_s1 + $0xb8] sm:$0xff]  ;;  %658 = vmatpush.msra.mxu0 %v597_v0  ;;  %5991 = vmatpush.msra.mxu2 %v599_v1  ;;  %v595_v3 = vld [vmem:[#allocation5 + $0xe0] sm:$0xff]  ;;  %v593_v4 = vld [vmem:[#allocation5 + $0xd0] sm:$0xff]  ;;  %s8024_s18 = smov 57   ;;  %s8025_s19 = smov 126   ;;  %vm974_vm1 = vcmask 556032  }
  0x58   : > { %5841 = vmatmul.msk.f32.vlgmr.msra.gmra.mxu2 %vm609_vm0, %v8350_v2  ;;  %738 = vmatpush.msra.mxu1 %v599_v1  ;;  %v598_v5 = vld [vmem:[#allocation5 + $0xf8] sm:$0xff]  ;;  %v596_v6 = vld [vmem:[#allocation5 + $0xe8] sm:$0xff]  ;;  %v591_v7 = vld [vmem:[#allocation5 + $0xc0] sm:$0xff]  ;;  %s8026_s14 = smov 56   ;;  %s8027_s17 = smov 125   ;;  %vm1396_vm2 = vcmask 449536  }
  0x59   : > { %659 = vmatpush.msra.mxu0 %v595_v3  ;;  %788 = vmatpush.msrb.mxu2 %v598_v5  ;;  %v594_v8 = vld [vmem:[#allocation5 + $0xd8] sm:$0xff]  ;;  %v589_v9 = vld [vmem:[#allocation5 + $0xb0] sm:$0xff]  ;;  %v8355_v10 = vld [vmem:[%s8331_s1 + $0xc8] sm:$0xff]  ;;  %s12023_s13 = smov 68   ;;  %s8029_s25 = smov 55   ;;  %vm1409_vm3 = vcmask 1006592  }
  0x5a   : > { %v587_v11 = vld [vmem:[#allocation5 + $0xa0] sm:$0xff]  ;;  %v592_v12 = vld [vmem:[#allocation5 + $0xc8] sm:$0xff]  ;;  %v585_v13 = vld [vmem:[#allocation5 + $0x90] sm:$0xff]  ;;  %s12025_s30 = smov 67   ;;  %s11955_s12 = smov 66   ;;  %vm1221_vm4 = vcmask 1014784  }
  0x5b   : > { %660 = vmatpush.msra.mxu0 %v593_v4  ;;  %789 = vmatpush.msrb.mxu2 %v596_v6  ;;  %v590_v14 = vld [vmem:[#allocation5 + $0xb8] sm:$0xff]  ;;  %v536_v15 = vld [vmem:[%s8331_s1 + $0x8] sm:$0xff]  ;;  %v583_v16 = vld [vmem:[#allocation5 + $0x80] sm:$0xff]  ;;  %s11951_s9 = smov 7   ;;  %s12019_s15 = smov 65   ;;  %vm1208_vm5 = vcmask 457728  }
  0x5c   : > { %v588_v17 = vld [vmem:[#allocation5 + $0xa8] sm:$0xff]  ;;  %5830 = vmatmul.msk.f32.vlgmr.msra.gmra.mxu1 %vm609_vm0, %v536_v15  ;;  %v581_v18 = vld [vmem:[#allocation5 + $0x70] sm:$0xff]  ;;  %v586_v19 = vld [vmem:[#allocation5 + $0x98] sm:$0xff]  ;;  %s12043_s27 = smov 124   ;;  %s12013_s3 = smov 64   ;;  %vm1021_vm6 = vcmask 1022976  }
  0x5d   : > { %661 = vmatpush.msra.mxu0 %v591_v7  ;;  %790 = vmatpush.msrb.mxu2 %v594_v8  ;;  %v600_v20 = vld [vmem:[#allocation5 + $0x108] sm:$0xff]  ;;  %v8362_v21 = vld [vmem:[%s8331_s1 + $0xd8] sm:$0xff]  ;;  %v579_v22 = vld [vmem:[#allocation5 + $0x60] sm:$0xff]  ;;  %s11953_s6 = smov 6   ;;  %vm1006_vm7 = vcmask 465920   ;;  %vm1596_vm8 = vcmask 916480  }
  0x5e   : > { %v584_v23 = vld [vmem:[#allocation5 + $0x88] sm:$0xff]  ;;  %868 = vmatpush.msra.mxu3 %v600_v20  ;;  %v538_v24 = vld [vmem:[%s8331_s1 + $0x18] sm:$0xff]  ;;  %v577_v25 = vld [vmem:[#allocation5 + $0x50] sm:$0xff]  ;;  %vm979_vm9 = vcmask 621568   ;;  %vm1424_vm10 = vcmask 515072   ;;  %vm1236_vm11 = vcmask 523264  }
  0x5f   : > { %662 = vmatpush.msra.mxu0 %v589_v9  ;;  %791 = vmatpush.msrb.mxu2 %v592_v12  ;;  %v582_v26 = vld [vmem:[#allocation5 + $0x78] sm:$0xff]  ;;  %v575_v27 = vld [vmem:[#allocation5 + $0x40] sm:$0xff]  ;;  %v580_v28 = vld [vmem:[#allocation5 + $0x68] sm:$0xff]  ;;  %vm1038_vm12 = vcmask 531456   ;;  %vm1053_vm13 = vcmask 39936   ;;  %vm1249_vm14 = vcmask 31744  }
  0x60   : > { %5842 = vmatmul.msk.f32.gmra.mxu2 %vm609_vm0, %v8355_v10  ;;  %5846 = vmatmul.msk.f32.vlgmr.msra.gmra.mxu3 %vm609_vm0, %v536_v15  ;;  %v573_v29 = vld [vmem:[#allocation5 + $0x30] sm:$0xff]  ;;  %v578_v30 = vld [vmem:[#allocation5 + $0x58] sm:$0xff]  ;;  %v8370_v31 = vld [vmem:[%s8331_s1 + $0xe8] sm:$0xff]  ;;  %vm1437_vm15 = vcmask 23552   ;;  %s12164_s2 = sld [smem:[#allocation43_spill]]  ;;  %s12324_s0 = smov 68  }
  0x61   : > { %663 = vmatpush.msra.mxu0 %v587_v11  ;;  %792 = vmatpush.msrb.mxu2 %v590_v14  ;;  %v571_v32 = vld [vmem:[#allocation5 + $0x20] sm:$0xff]  ;;  %v576_v33 = vld [vmem:[#allocation5 + $0x48] sm:$0xff]  ;;  %v569_v35 = vld [vmem:[#allocation5 + $0x10] sm:$0xff] }
  0x62   : > { %v540_v34 = vld [vmem:[%s8331_s1 + $0x28] sm:$0xff]  ;;  %v574_v36 = vld [vmem:[#allocation5 + $0x38] sm:$0xff]  ;;  %v567_v37 = vld [vmem:[#allocation5] sm:$0xff] }
  0x63   : > { %664 = vmatpush.msra.mxu0 %v585_v13  ;;  %793 = vmatpush.msrb.mxu2 %v588_v17  ;;  %v572_v38 = vld [vmem:[#allocation5 + $0x28] sm:$0xff]  ;;  %v535_v39 = vld [vmem:[%s8331_s1] sm:$0xff]  ;;  %v570_v40 = vld [vmem:[#allocation5 + $0x18] sm:$0xff] }
  0x64   : > { %5831 = vmatmul.msk.f32.gmra.mxu1 %vm609_vm0, %v538_v24  ;;  %v8379_v41 = vld [vmem:[%s8331_s1 + $0xf8] sm:$0xff]  ;;  %v568_v42 = vld [vmem:[#allocation5 + $0x8] sm:$0xff]  ;;  %v537_v44 = vld [vmem:[%s8331_s1 + $0x10] sm:$0xff] }
  0x65   : > { %665 = vmatpush.msra.mxu0 %v583_v16  ;;  %794 = vmatpush.msrb.mxu2 %v586_v19  ;;  %v542_v43 = vld [vmem:[%s8331_s1 + $0x38] sm:$0xff]  ;;  %v544_v45 = vld [vmem:[%s8331_s1 + $0x48] sm:$0xff]  ;;  %v539_v46 = vld [vmem:[%s8331_s1 + $0x20] sm:$0xff] }
  0x66   : > { %v546_v47 = vld [vmem:[%s8331_s1 + $0x58] sm:$0xff]  ;;  %v541_v48 = vld [vmem:[%s8331_s1 + $0x30] sm:$0xff]  ;;  %v548_v49 = vld [vmem:[%s8331_s1 + $0x68] sm:$0xff] }
  0x67   : > { %666 = vmatpush.msra.mxu0 %v581_v18  ;;  %795 = vmatpush.msrb.mxu2 %v584_v23  ;;  %v543_v50 = vld [vmem:[%s8331_s1 + $0x40] sm:$0xff]  ;;  %v550_v51 = vld [vmem:[%s8331_s1 + $0x78] sm:$0xff]  ;;  %v545_v52 = vld [vmem:[%s8331_s1 + $0x50] sm:$0xff] }
  0x68   : > { %5843 = vmatmul.msk.f32.gmra.mxu2 %vm609_vm0, %v8362_v21  ;;  %5847 = vmatmul.msk.f32.gmra.mxu3 %vm609_vm0, %v538_v24  ;;  %v552_v53 = vld [vmem:[%s8331_s1 + $0x88] sm:$0xff]  ;;  %v547_v54 = vld [vmem:[%s8331_s1 + $0x60] sm:$0xff]  ;;  %v554_v55 = vld [vmem:[%s8331_s1 + $0x98] sm:$0xff] }
  0x69   : > { %667 = vmatpush.msra.mxu0 %v579_v22  ;;  %796 = vmatpush.msrb.mxu2 %v582_v26  ;;  %v549_v56 = vld [vmem:[%s8331_s1 + $0x70] sm:$0xff]  ;;  %v556_v57 = vld [vmem:[%s8331_s1 + $0xa8] sm:$0xff]  ;;  %v551_v58 = vld [vmem:[%s8331_s1 + $0x80] sm:$0xff] }
  0x6a   : > { %v553_v59 = vld [vmem:[%s8331_s1 + $0x90] sm:$0xff]  ;;  %v555_v60 = vld [vmem:[%s8331_s1 + $0xa0] sm:$0xff] }
  0x6b   : > { %668 = vmatpush.msra.mxu0 %v577_v25  ;;  %797 = vmatpush.msrb.mxu2 %v580_v28  ;;  %v557_v61 = vld [vmem:[%s8331_s1 + $0xb0] sm:$0xff]  ;;  %v559_v62 = vld [vmem:[%s8331_s1 + $0xc0] sm:$0xff] }
  0x6c   : > { %5832 = vmatmul.msk.f32.gmra.mxu1 %vm609_vm0, %v540_v34  ;;  %v561_v0 = vld [vmem:[%s8331_s1 + $0xd0] sm:$0xff] }
  0x6d   : > { %669 = vmatpush.msra.mxu0 %v575_v27  ;;  %798 = vmatpush.msrb.mxu2 %v578_v30  ;;  %v565_v5 = vld [vmem:[%s8331_s1 + $0xf0] sm:$0xff] }
  0x6f   : > { %670 = vmatpush.msra.mxu0 %v573_v29  ;;  %799 = vmatpush.msrb.mxu2 %v576_v33 }
  0x70   : > { %5844 = vmatmul.msk.f32.gmra.mxu2 %vm609_vm0, %v8370_v31  ;;  %5848 = vmatmul.msk.f32.gmra.mxu3 %vm609_vm0, %v540_v34 }
  0x71   : > { %671 = vmatpush.msra.mxu0 %v571_v32  ;;  %800 = vmatpush.msrb.mxu2 %v574_v36 }
  0x73   : > { %672 = vmatpush.msra.mxu0 %v569_v35  ;;  %801 = vmatpush.msrb.mxu2 %v572_v38 }
  0x74   : > { %5833 = vmatmul.msk.f32.gmra.mxu1 %vm609_vm0, %v542_v43 }
  0x75   : > { %673 = vmatpush.msra.mxu0 %v567_v37  ;;  %802 = vmatpush.msrb.mxu2 %v570_v40 }
  0x76   : > { %674 = vmatmul.f32.vlgmr.msra.gmra.mxu0 %v535_v39 }
  0x77   : > { %803 = vmatpush.msrb.mxu2 %v568_v42 }
  0x78   : > { %5845 = vmatmul.msk.f32.gmra.mxu2 %vm609_vm0, %v8379_v41  ;;  %5849 = vmatmul.msk.f32.gmra.mxu3 %vm609_vm0, %v542_v43 }
  0x7c   : > { %5834 = vmatmul.msk.f32.gmra.mxu1 %vm609_vm0, %v544_v45 }
  0x7e   : > { %677 = vmatmul.f32.gmra.mxu0 %v537_v44 }
  0x80   : > { %804 = vmatmul.f32.vlgmr.msrb.gmra.mxu2 %v535_v39  ;;  %5850 = vmatmul.msk.f32.gmra.mxu3 %vm609_vm0, %v544_v45 }
  0x84   : > { %5835 = vmatmul.msk.f32.gmra.mxu1 %vm609_vm0, %v546_v47 }
  0x86   : > { %680 = vmatmul.f32.gmra.mxu0 %v539_v46 }
  0x88   : > { %807 = vmatmul.f32.gmra.mxu2 %v537_v44  ;;  %5851 = vmatmul.msk.f32.gmra.mxu3 %vm609_vm0, %v546_v47 }
  0x8c   : > { %5836 = vmatmul.msk.f32.gmra.mxu1 %vm609_vm0, %v548_v49 }
  0x8e   : > { %683 = vmatmul.f32.gmra.mxu0 %v541_v48 }
  0x90   : > { %810 = vmatmul.f32.gmra.mxu2 %v539_v46  ;;  %5852 = vmatmul.msk.f32.gmra.mxu3 %vm609_vm0, %v548_v49 }
  0x94   : > { %5837 = vmatmul.msk.f32.gmra.mxu1 %vm609_vm0, %v550_v51 }
  0x96   : > { %686 = vmatmul.f32.gmra.mxu0 %v543_v50 }
  0x98   : > { %813 = vmatmul.f32.gmra.mxu2 %v541_v48  ;;  %5853 = vmatmul.msk.f32.gmra.mxu3 %vm609_vm0, %v550_v51 }
  0x9c   : > { %5838 = vmatmul.msk.f32.gmra.mxu1 %vm609_vm0, %v552_v53 }
  0x9e   : > { %689 = vmatmul.f32.gmra.mxu0 %v545_v52 }
  0xa0   : > { %816 = vmatmul.f32.gmra.mxu2 %v543_v50  ;;  %5854 = vmatmul.msk.f32.gmra.mxu3 %vm609_vm0, %v552_v53 }
  0xa4   : > { %5839 = vmatmul.msk.f32.gmra.mxu1 %vm609_vm0, %v554_v55 }
  0xa6   : > { %692 = vmatmul.f32.gmra.mxu0 %v547_v54 }
  0xa8   : > { %819 = vmatmul.f32.gmra.mxu2 %v545_v52  ;;  %5855 = vmatmul.msk.f32.gmra.mxu3 %vm609_vm0, %v554_v55 }
  0xac   : > { %5840 = vmatmul.msk.f32.gmra.mxu1 %vm609_vm0, %v556_v57 }
  0xae   : > { %695 = vmatmul.f32.gmra.mxu0 %v549_v56 }
  0xb0   : > { %822 = vmatmul.f32.gmra.mxu2 %v547_v54  ;;  %5856 = vmatmul.msk.f32.gmra.mxu3 %vm609_vm0, %v556_v57 }
  0xb6   : > { %698 = vmatmul.f32.gmra.mxu0 %v551_v58 }
  0xb8   : > { %825 = vmatmul.f32.gmra.mxu2 %v549_v56  ;;  %5857 = vmatmul.msk.f32.gmra.mxu3 %vm609_vm0, %v8350_v2  ;;  %v563_v2 = vld [vmem:[%s8331_s1 + $0xe0] sm:$0xff]  ;;  %s11983_s1 = smov 63  }
  0xbe   : > { %701 = vmatmul.f32.gmra.mxu0 %v553_v59 }
  0xc0   : > { %828 = vmatmul.f32.gmra.mxu2 %v551_v58  ;;  %5858 = vmatmul.msk.f32.gmra.mxu3 %vm609_vm0, %v8355_v10 }
  0xc6   : > { %704 = vmatmul.f32.gmra.mxu0 %v555_v60 }
  0xc8   : > { %831 = vmatmul.f32.gmra.mxu2 %v553_v59  ;;  %5859 = vmatmul.msk.f32.gmra.mxu3 %vm609_vm0, %v8362_v21 }
  0xce   : > { %707 = vmatmul.f32.gmra.mxu0 %v557_v61 }
  0xd0   : > { %834 = vmatmul.f32.gmra.mxu2 %v555_v60  ;;  %5860 = vmatmul.msk.f32.gmra.mxu3 %vm609_vm0, %v8370_v31 }
  0xd6   : > { %710 = vmatmul.f32.gmra.mxu0 %v559_v62 }
  0xd8   : > { %837 = vmatmul.f32.gmra.mxu2 %v557_v61  ;;  %5861 = vmatmul.msk.f32.gmra.mxu3 %vm609_vm0, %v8379_v41 }
  0xd9   : > { %v740_v3 = vpop.f32.mrf.mxu1 }
  0xdb   : > { %v8428_v63 = vpop.f32.mrf.mxu2 }
  0xde   : > { %713 = vmatmul.f32.gmra.mxu0 %v561_v0 }
  0xe0   : > { %840 = vmatmul.f32.gmra.mxu2 %v559_v62 }
  0xe1   : > { %v743_v6 = vpop.f32.mrf.mxu1 }
  0xe3   : > { %v8433_v1 = vpop.f32.mrf.mxu2  ;;  %v870_v11 = vpop.f32.mrf.mxu3 }
  0xe6   : > { %716 = vmatmul.f32.gmra.mxu0 %v563_v2 }
  0xe8   : > { %843 = vmatmul.f32.gmra.mxu2 %v561_v0 }
  0xe9   : > { %v746_v9 = vpop.f32.mrf.mxu1 }
  0xeb   : > { %v8436_v4 = vpop.f32.mrf.mxu2  ;;  %v873_v20 = vpop.f32.mrf.mxu3 }
  0xee   : > { %719 = vmatmul.f32.gmra.mxu0 %v565_v5 }
  0xf0   : > { %846 = vmatmul.f32.gmra.mxu2 %v563_v2 }
  0xf1   : > { %v749_v16 = vpop.f32.mrf.mxu1 }
  0xf3   : > { %v675_v7 = vpop.f32.mrf.mxu0  ;;  %v8439_v8 = vpop.f32.mrf.mxu2 }
  0xf4   : > { %v8441_v10 = vadd.f32 %v740_v3, %v675_v7  ;;  %v876_v28 = vpop.f32.mrf.mxu3 }
  0xf8   : > { %849 = vmatmul.f32.gmra.mxu2 %v565_v5 }
  0xf9   : > { %v752_v26 = vpop.f32.mrf.mxu1 }
  0xfb   : > { %v678_v12 = vpop.f32.mrf.mxu0  ;;  %v8443_v13 = vpop.f32.mrf.mxu2 }
  0xfc   : > { %v8445_v14 = vadd.f32 %v743_v6, %v678_v12  ;;  %v879_v34 = vpop.f32.mrf.mxu3 }
  0xfe   : > { %v6224_v15 = vpack.i.bf16 %v8445_v14, %v8441_v10 }
 0x100   : > { %6225 = vrot.lane.b32.xlu2 %v6224_v15, %s8023_s29 }
 0x101   : > { %v755_v33 = vpop.f32.mrf.mxu1 }
 0x103   : > { %v681_v17 = vpop.f32.mrf.mxu0  ;;  %v805_v18 = vpop.f32.mrf.mxu2 }
 0x104   : > { %v871_v19 = vadd.f32 %v870_v11, %v805_v18  ;;  %v747_v22 = vadd.f32 %v746_v9, %v681_v17  ;;  %v882_v45 = vpop.f32.mrf.mxu3 }
 0x106   : > { %v6239_v21 = vpack.i.bf16 %v871_v19, %v8441_v10 }
 0x108   : > { %6240 = vrot.lane.b32.xlu1 %v6239_v21, %s8024_s18  ;;  %6230 = vrot.lane.b32.xlu2 %v6224_v15, %s8025_s19 }
 0x109   : > { %v758_v39 = vpop.f32.mrf.mxu1 }
 0x10b   : > { %v684_v23 = vpop.f32.mrf.mxu0  ;;  %v808_v24 = vpop.f32.mrf.mxu2 }
 0x10c   : > { %v750_v25 = vadd.f32 %v749_v16, %v684_v23  ;;  %v874_v29 = vadd.f32 %v873_v20, %v808_v24  ;;  %v885_v55 = vpop.f32.mrf.mxu3 }
 0x10e   : > { %v6254_v27 = vpack.i.bf16 %v750_v25, %v747_v22  ;;  %v6259_v32 = vpack.i.bf16 %v874_v29, %v8445_v14 }
 0x110   : > { %6245 = vrot.lane.b32.xlu1 %v6239_v21, %s8026_s14  ;;  %6235 = vrot.lane.b32.xlu2 %v6224_v15, %s8027_s17 }
 0x111   : > { %6255 = vrot.lane.b32.xlu0 %v6254_v27, %s12023_s13  ;;  %v761_v46 = vpop.f32.mrf.mxu1 }
 0x113   : > { %v687_v30 = vpop.f32.mrf.mxu0  ;;  %v811_v31 = vpop.f32.mrf.mxu2 }
 0x114   : > { %v753_v40 = vadd.f32 %v752_v26, %v687_v30  ;;  %v877_v48 = vadd.f32 %v876_v28, %v811_v31  ;;  %v888_v62 = vpop.f32.mrf.mxu3 }
 0x116   : > { %v6289_v51 = vpack.i.bf16 %v877_v48, %v747_v22 }
 0x118   : > { %6250 = vrot.lane.b32.xlu1 %v6239_v21, %s8029_s25  ;;  %6260 = vrot.lane.b32.xlu2 %v6259_v32, %s8024_s18  ;;  %s12045_s18 = smov 123  }
 0x119   : > { %6265 = vrot.lane.b32.xlu0 %v6254_v27, %s12025_s30  ;;  %v764_v53 = vpop.f32.mrf.mxu1 }
 0x11b   : > { %v690_v35 = vpop.f32.mrf.mxu0  ;;  %v814_v36 = vpop.f32.mrf.mxu2 }
 0x11c   : > { %v880_v37 = vadd.f32 %v879_v34, %v814_v36  ;;  %v756_v41 = vadd.f32 %v755_v33, %v690_v35  ;;  %v891_v15 = vpop.f32.mrf.mxu3 }
 0x11e   : > { %v6309_v38 = vpack.i.bf16 %v880_v37, %v750_v25  ;;  %v6314_v43 = vpack.i.bf16 %v756_v41, %v753_v40 }
 0x120   : > { %6270 = vrot.lane.b32.xlu2 %v6259_v32, %s8026_s14  ;;  %6310 = vrot.lane.b32.xlu1 %v6309_v38, %s8027_s17  ;;  %s11965_s14 = smov 5  }
 0x121   : > { %6275 = vrot.lane.b32.xlu0 %v6254_v27, %s11955_s12  ;;  %v767_v57 = vpop.f32.mrf.mxu1  ;;  %s11961_s12 = smov 76  }
 0x123   : > { %v693_v42 = vpop.f32.mrf.mxu0  ;;  %v817_v44 = vpop.f32.mrf.mxu2 }
 0x124   : > { %v883_v47 = vadd.f32 %v882_v45, %v817_v44  ;;  %v759_v58 = vadd.f32 %v758_v39, %v693_v42  ;;  %v894_v24 = vpop.f32.mrf.mxu3 }
 0x126   : > { %v6339_v50 = vpack.i.bf16 %v883_v47, %v753_v40 }
 0x128   : > { %6280 = vrot.lane.b32.xlu2 %v6259_v32, %s8029_s25  ;;  %6315 = vrot.lane.b32.xlu1 %v6314_v43, %s11951_s9  ;;  %s11959_s25 = smov 75   ;;  %s11967_s9 = smov 8  }
 0x129   : > { %6285 = vrot.lane.b32.xlu0 %v6254_v27, %s12019_s15  ;;  %v770_v2 = vpop.f32.mrf.mxu1 }
 0x12b   : > { %v696_v49 = vpop.f32.mrf.mxu0  ;;  %v820_v56 = vpop.f32.mrf.mxu2 }
 0x12c   : > { %v762_v59 = vadd.f32 %v761_v46, %v696_v49  ;;  %v886_v5 = vadd.f32 %v885_v55, %v820_v56  ;;  %v897_v28 = vpop.f32.mrf.mxu3 }
 0x12e   : > { %v6364_v61 = vpack.i.bf16 %v762_v59, %v759_v58  ;;  %v6359_v11 = vpack.i.bf16 %v886_v5, %v756_v41 }
 0x130   : > { %6340 = vrot.lane.b32.xlu2 %v6339_v50, %s12019_s15  ;;  %6320 = vrot.lane.b32.xlu1 %v6309_v38, %s12043_s27 }
 0x131   : > { %6290 = vrot.lane.b32.xlu0 %v6289_v51, %s8027_s17 }
 0x133   : > { %v699_v52 = vpop.f32.mrf.mxu0  ;;  %v823_v0 = vpop.f32.mrf.mxu2 }
 0x134   : > { %v889_v16 = vadd.f32 %v888_v62, %v823_v0  ;;  %v765_v20 = vadd.f32 %v764_v53, %v699_v52  ;;  %v900_v33 = vpop.f32.mrf.mxu3 }
 0x136   : > { %v6384_v19 = vpack.i.bf16 %v889_v16, %v759_v58 }
 0x138   : > { %6345 = vrot.lane.b32.xlu2 %v6339_v50, %s12013_s3  ;;  %6325 = vrot.lane.b32.xlu1 %v6314_v43, %s11953_s6  ;;  %s11957_s6 = smov 74  }
 0x139   : > { %6295 = vrot.lane.b32.xlu0 %v6289_v51, %s12043_s27 }
 0x13b   : > { %v702_v54 = vpop.f32.mrf.mxu0  ;;  %v826_v12 = vpop.f32.mrf.mxu2 }
 0x13c   : > { %v892_v17 = vadd.f32 %v891_v15, %v826_v12  ;;  %v768_v21 = vadd.f32 %v767_v57, %v702_v54  ;;  %v903_v44 = vpop.f32.mrf.mxu3 }
 0x13e   : > { %v6404_v18 = vpack.i.bf16 %v892_v17, %v762_v59  ;;  %v6409_v25 = vpack.i.bf16 %v768_v21, %v765_v20 }
 0x140   : > { %6350 = vrot.lane.b32.xlu2 %v6339_v50, %s11983_s1  ;;  %6330 = vrot.lane.b32.xlu1 %v6309_v38, %s12045_s18 }
 0x141   : > { %6300 = vrot.lane.b32.xlu0 %v6289_v51, %s12045_s18 }
 0x143   : > { %v705_v60 = vpop.f32.mrf.mxu0  ;;  %v829_v23 = vpop.f32.mrf.mxu2 }
 0x144   : > { %v771_v3 = vadd.f32 %v770_v2, %v705_v60  ;;  %v895_v37 = vadd.f32 %v894_v24, %v829_v23  ;;  %v906_v50 = vpop.f32.mrf.mxu3 }
 0x146   : > { %v6439_v39 = vpack.i.bf16 %v895_v37, %v765_v20 }
 0x148   : > { %6335 = vrot.lane.b32.xlu1 %v6314_v43, %s11965_s14  ;;  %6365 = vrot.lane.b32.xlu2 %v6364_v61, %s11959_s25  ;;  %s11971_s25 = smov 3  }
 0x149   : > { %6305 = vrot.lane.b32.xlu0 %v6314_v43, %s11967_s9  ;;  %s11973_s9 = smov 14  }
 0x14b   : > { %v708_v6 = vpop.f32.mrf.mxu0  ;;  %v832_v27 = vpop.f32.mrf.mxu2 }
 0x14c   : > { %v8473_v7 = vadd.f32 %v8428_v63, %v708_v6  ;;  %v898_v29 = vadd.f32 %v897_v28, %v832_v27  ;;  %v909_v60 = vpop.f32.mrf.mxu3 }
 0x14e   : > { %v8476_v9 = vpack.i.bf16 %v8473_v7, %v771_v3  ;;  %v6459_v31 = vpack.i.bf16 %v898_v29, %v768_v21 }
 0x150   : > { %6375 = vrot.lane.b32.xlu2 %v6364_v61, %s11957_s6  ;;  %6355 = vrot.lane.b32.xlu1 %v6364_v61, %s11961_s12  ;;  %s11963_s6 = smov 4   ;;  %s11969_s12 = smov 15  }
 0x151   : > { %6360 = vrot.lane.b32.xlu0 %v6359_v11, %s12019_s15  ;;  %s8078_s15 = smov 104  }
 0x153   : > { %v835_v32 = vpop.f32.mrf.mxu2  ;;  %v711_v43 = vpop.f32.mrf.mxu0 }
 0x154   : > { %v901_v34 = vadd.f32 %v900_v33, %v835_v32  ;;  %v777_v57 = vadd.f32 %v8433_v1, %v711_v43  ;;  %v8573_v20 = vpop.f32.mrf.mxu3 }
 0x156   : > { %v6484_v38 = vpack.i.bf16 %v901_v34, %v771_v3 }
 0x158   : > { %6405 = vrot.lane.b32.xlu2 %v6404_v18, %s11965_s14  ;;  %6385 = vrot.lane.b32.xlu1 %v6384_v19, %s11965_s14  ;;  %s11977_s14 = smov 16  }
 0x159   : > { %6370 = vrot.lane.b32.xlu0 %v6359_v11, %s12013_s3  ;;  %s8075_s3 = smov 44  }
 0x15a   : > { %v8484_v63 = vpop.permute.xlu2 %6225 }
 0x15b   : > { %v838_v45 = vpop.f32.mrf.mxu2  ;;  %v714_v49 = vpop.f32.mrf.mxu0 }
 0x15c   : > { %v780_v52 = vadd.f32 %v8436_v4, %v714_v49  ;;  %v904_v55 = vadd.f32 %v903_v44, %v838_v45  ;;  %v915_v32 = vpop.f32.mrf.mxu3 }
 0x15e   : > { %v8540_v58 = vpack.i.bf16 %v780_v52, %v777_v57  ;;  %v6504_v59 = vpack.i.bf16 %v904_v55, %v8473_v7 }
 0x160   : > { %6415 = vrot.lane.b32.xlu2 %v6404_v18, %s11963_s6  ;;  %6390 = vrot.lane.b32.xlu1 %v6384_v19, %s11963_s6  ;;  %s11981_s6 = smov 73  }
 0x161   : > { %6380 = vrot.lane.b32.xlu0 %v6359_v11, %s11983_s1  ;;  %s11989_s1 = smov 71  }
 0x162   : > { %v8489_v22 = vpop.permute.xlu2 %6230 }
 0x163   : > { %v841_v51 = vpop.f32.mrf.mxu2  ;;  %v717_v6 = vpop.f32.mrf.mxu0 }
 0x164   : > { %v907_v4 = vadd.f32 %v906_v50, %v841_v51  ;;  %v8586_v28 = vadd.f32 %v8439_v8, %v717_v6 }
 0x166   : > { %v6529_v12 = vpack.i.bf16 %v907_v4, %v777_v57 }
 0x168   : > { %6425 = vrot.lane.b32.xlu2 %v6404_v18, %s11971_s25  ;;  %6395 = vrot.lane.b32.xlu1 %v6384_v19, %s11971_s25  ;;  %s11987_s25 = smov 13  }
 0x169   : > { %6410 = vrot.lane.b32.xlu0 %v6409_v25, %s11969_s12  ;;  %s11975_s12 = smov 84  }
 0x16a   : > { %v8494_v26 = vpop.permute.xlu2 %6235 }
 0x16b   : > { %v844_v0 = vpop.f32.mrf.mxu2  ;;  %v6238_v1 = vunpack.i.h.bf16 %v8494_v26  ;;  %v6237_v7 = vunpack.i.l.bf16 %v8494_v26  ;;  %v720_v21 = vpop.f32.mrf.mxu0 }
 0x16c   : > { %v910_v23 = vadd.f32 %v909_v60, %v844_v0  ;;  %v786_v26 = vadd.f32 %v8443_v13, %v720_v21 }
 0x16e   : > { %v8588_v29 = vpack.i.bf16 %v910_v23, %v780_v52  ;;  %v8591_v33 = vpack.i.bf16 %v786_v26, %v8586_v28  ;;  %v6232_v23 = vunpack.i.l.bf16 %v8489_v22 }
 0x170   : > { %6430 = vrot.lane.b32.xlu2 %v6364_v61, %s11981_s6  ;;  %6400 = vrot.lane.b32.xlu1 %v6409_v25, %s11977_s14  ;;  %s11995_s14 = smov 12  }
 0x171   : > { %6420 = vrot.lane.b32.xlu0 %v6409_v25, %s11973_s9  ;;  %s11979_s9 = smov 83  }
 0x172   : > { %v8499_v30 = vpop.permute.xlu2 %6260 }
 0x173   : > { %v8571_v19 = vpop.f32.mrf.mxu2 }
 0x178   : > { %6460 = vrot.lane.b32.xlu1 %v6459_v31, %s11981_s6  ;;  %6455 = vrot.lane.b32.xlu2 %v8476_v9, %s11975_s12  ;;  %s11991_s12 = smov 72  }
 0x179   : > { %6435 = vrot.lane.b32.xlu0 %v6409_v25, %s11987_s25 }
 0x17a   : > { %v8505_v35 = vpop.permute.xlu1 %6240  ;;  %v8507_v36 = vpop.permute.xlu2 %6270 }
 0x180   : > { %6465 = vrot.lane.b32.xlu1 %v8476_v9, %s11979_s9  ;;  %6485 = vrot.lane.b32.xlu2 %v6484_v38, %s11987_s25  ;;  %s11985_s9 = smov 82  }
 0x181   : > { %6440 = vrot.lane.b32.xlu0 %v6439_v39, %s11981_s6  ;;  %s8056_s6 = smov 11  }
 0x182   : > { %v8513_v40 = vpop.permute.xlu1 %6245  ;;  %v8515_v41 = vpop.permute.xlu2 %6280 }
 0x183   : > { %v8517_v42 = vpop.permute.xlu0 %6255  ;;  %v6283_v13 = vunpack.i.h.bf16 %v8515_v41  ;;  %v6282_v34 = vunpack.i.l.bf16 %v8515_v41 }
 0x185   : > { %v1398_v51 = vsel %vm1396_vm2, %v6282_v34, %v6283_v13  ;;  %v6247_v13 = vunpack.i.l.bf16 %v8513_v40 }
 0x188   : > { %6470 = vrot.lane.b32.xlu1 %v6459_v31, %s11991_s12  ;;  %6490 = vrot.lane.b32.xlu2 %v6484_v38, %s11995_s14 }
 0x189   : > { %6445 = vrot.lane.b32.xlu0 %v6439_v39, %s11991_s12  ;;  %s8062_s12 = smov 22  }
 0x18a   : > { %v8522_v46 = vpop.permute.xlu1 %6250  ;;  %v8524_v47 = vpop.permute.xlu2 %6340 }
 0x18b   : > { %v8526_v48 = vpop.permute.xlu0 %6265  ;;  %v6252_v43 = vunpack.i.l.bf16 %v8522_v46 }
 0x190   : > { %6475 = vrot.lane.b32.xlu1 %v8476_v9, %s11985_s9  ;;  %6495 = vrot.lane.b32.xlu2 %v6484_v38, %s8056_s6  ;;  %s8058_s9 = smov 24  }
 0x191   : > { %6450 = vrot.lane.b32.xlu0 %v6439_v39, %s11989_s1  ;;  %v6253_v39 = vunpack.i.h.bf16 %v8522_v46 }
 0x192   : > { %v8533_v53 = vpop.permute.xlu1 %6310  ;;  %v8535_v54 = vpop.permute.xlu2 %6345 }
 0x193   : > { %v8537_v56 = vpop.permute.xlu0 %6275  ;;  %v1397_v0 = vsel %vm1396_vm2, %v6252_v43, %v6253_v39  ;;  %vm982_vm2 = vcmask 130048  }
 0x194   : > { %v6278_v55 = vunpack.i.h.bf16 %v8537_v56  ;;  %v6277_v6 = vunpack.i.l.bf16 %v8537_v56 }
 0x198   : > { %6480 = vrot.lane.b32.xlu1 %v6459_v31, %s11989_s1  ;;  %6500 = vrot.lane.b32.xlu2 %v8540_v58, %s8058_s9  ;;  %s12011_s9 = smov 81   ;;  %s11993_s1 = smov 80   ;;  %v850_v31 = vpop.f32.mrf.mxu2 }
 0x199   : > { %6505 = vrot.lane.b32.xlu0 %v6504_v59, %s11987_s25  ;;  %s8060_s25 = smov 23   ;;  %v916_v8 = vadd.f32 %v915_v32, %v850_v31 }
 0x19a   : > { %v8546_v61 = vpop.permute.xlu2 %6350  ;;  %v8548_v62 = vpop.permute.xlu1 %6315 }
 0x19b   : > { %v8550_v2 = vpop.permute.xlu0 %6285  ;;  %v8616_v46 = vpack.i.bf16 %v916_v8, %v786_v26  ;;  %v1374_v8 = vsel %vm974_vm1, %v6232_v23, %v6277_v6 }
 0x19c   : > { %v6288_v3 = vunpack.i.h.bf16 %v8550_v2  ;;  %v6287_v5 = vunpack.i.l.bf16 %v8550_v2 }
 0x19e   : > { %v1563_v11 = vsel %vm974_vm1, %v6238_v1, %v6288_v3  ;;  %v1562_v15 = vsel %vm974_vm1, %v6237_v7, %v6287_v5  ;;  %v6233_v1 = vunpack.i.h.bf16 %v8489_v22 }
 0x19f   : > { %1611 = vmatpush.msrb.mxu1 %v1563_v11  ;;  %v6273_v11 = vunpack.i.h.bf16 %v8507_v36 }
 0x1a0   : > { %6530 = vrot.lane.b32.xlu1 %v6529_v12, %s12011_s9  ;;  %6510 = vrot.lane.b32.xlu2 %v8540_v58, %s8060_s25  ;;  %s8065_s25 = smov 21   ;;  %v1375_v32 = vsel %vm974_vm1, %v6233_v1, %v6278_v55  ;;  %v6262_v1 = vunpack.i.l.bf16 %v8499_v30 }
 0x1a1   : > { %1612 = vmatpush.msrb.mxu1 %v1562_v15  ;;  %6515 = vrot.lane.b32.xlu0 %v6504_v59, %s11995_s14  ;;  %s8068_s14 = smov 90  }
 0x1a2   : > { %v8565_v16 = vpop.permute.xlu1 %6320  ;;  %v8567_v17 = vpop.permute.xlu2 %6365 }
 0x1a3   : > { %v8569_v18 = vpop.permute.xlu0 %6290  ;;  %v6323_v60 = vunpack.i.h.bf16 %v8565_v16  ;;  %v6322_v4 = vunpack.i.l.bf16 %v8565_v16  ;;  %v12004_v16 = vunpack.i.h.bf16 %v8567_v17 }
 0x1a5   : > { %v1223_v22 = vsel %vm1221_vm4, %v6322_v4, %v6323_v60 }
 0x1a8   : > { %6535 = vrot.lane.b32.xlu1 %v6529_v12, %s11993_s1  ;;  %6520 = vrot.lane.b32.xlu2 %v8540_v58, %s8062_s12  ;;  %s8063_s12 = smov 79  }
 0x1a9   : > { %6525 = vrot.lane.b32.xlu0 %v6504_v59, %s8056_s6  ;;  %s8064_s6 = smov 92  }
 0x1aa   : > { %v8578_v24 = vpop.permute.xlu1 %6325  ;;  %v8580_v25 = vpop.permute.xlu2 %6375 }
 0x1ab   : > { %v8583_v27 = vpop.permute.xlu0 %6295 }
 0x1ac   : > { %v6298_v15 = vunpack.i.h.bf16 %v8583_v27  ;;  %v6297_v21 = vunpack.i.l.bf16 %v8583_v27  ;;  %v6343_v27 = vunpack.i.h.bf16 %v8524_v47 }
 0x1ae   : > { %v1222_v43 = vsel %vm1221_vm4, %v6297_v21, %v6298_v15  ;;  %vm1070_vm4 = vcmask 596992  }
 0x1b0   : > { %6540 = vrot.lane.b32.xlu1 %v6529_v12, %s8063_s12  ;;  %6550 = vrot.lane.b32.xlu2 %v8588_v29, %s12011_s9  ;;  %v6272_v12 = vunpack.i.l.bf16 %v8507_v36  ;;  %v6248_v36 = vunpack.i.h.bf16 %v8513_v40 }
 0x1b1   : > { %6545 = vrot.lane.b32.xlu0 %v8591_v33, %s8064_s6  ;;  %s8066_s6 = smov 91  }
 0x1b2   : > { %v8599_v37 = vpop.permute.xlu1 %6330  ;;  %v8601_v38 = vpop.permute.xlu2 %6405  ;;  %v1210_v39 = vsel %vm1208_vm5, %v6272_v12, %v6273_v11  ;;  %v6292_v11 = vunpack.i.l.bf16 %v8569_v18 }
 0x1b3   : > { %v8605_v44 = vpop.permute.xlu0 %6300  ;;  %v6333_v45 = vunpack.i.h.bf16 %v8599_v37  ;;  %v6332_v41 = vunpack.i.l.bf16 %v8599_v37  ;;  %v1313_v40 = vsel %vm974_vm1, %v1210_v39, %v1223_v22 }
 0x1b4   : > { %v6303_v49 = vunpack.i.h.bf16 %v8605_v44  ;;  %v6302_v50 = vunpack.i.l.bf16 %v8605_v44 }
 0x1b5   : > { %v1411_v52 = vsel %vm1409_vm3, %v6332_v41, %v6333_v45  ;;  %v6268_v41 = vunpack.i.h.bf16 %v8526_v48 }
 0x1b6   : > { %v1501_v57 = vsel %vm974_vm1, %v1398_v51, %v1411_v52  ;;  %v1410_v59 = vsel %vm1409_vm3, %v6302_v50, %v6303_v49  ;;  %v6313_v50 = vunpack.i.h.bf16 %v8533_v53  ;;  %v6312_v51 = vunpack.i.l.bf16 %v8533_v53 }
 0x1b7   : > { %1613 = vmatpush.msrb.mxu1 %v1501_v57  ;;  %v1500_v7 = vsel %vm974_vm1, %v1397_v0, %v1410_v59  ;;  %v1209_v52 = vsel %vm1208_vm5, %v6247_v13, %v6248_v36  ;;  %v6228_v57 = vunpack.i.h.bf16 %v8484_v63  ;;  %v6267_v59 = vunpack.i.l.bf16 %v8526_v48 }
 0x1b8   : > { %6560 = vrot.lane.b32.xlu2 %v8588_v29, %s11993_s1  ;;  %6590 = vrot.lane.b32.xlu1 %v8616_v46, %s8065_s25  ;;  %s8067_s1 = smov 20   ;;  %v1312_v4 = vsel %vm974_vm1, %v1209_v52, %v1222_v43  ;;  %v6263_v0 = vunpack.i.h.bf16 %v8499_v30  ;;  %v913_v30 = vadd.f32 %v8573_v20, %v8571_v19  ;;  %v6242_v36 = vunpack.i.l.bf16 %v8505_v35 }
 0x1b9   : > { %6555 = vrot.lane.b32.xlu0 %v8591_v33, %s8066_s6  ;;  %1614 = vmatpush.msrb.mxu1 %v1500_v7  ;;  %v6293_v7 = vunpack.i.h.bf16 %v8569_v18  ;;  %v1187_v23 = vsel %vm974_vm1, %v6228_v57, %v6268_v41  ;;  %v6258_v20 = vunpack.i.h.bf16 %v8517_v42  ;;  %vm985_vm3 = vcmask 687104  }
 0x1ba   : > { %v8637_v26 = vpop.permute.xlu1 %6335  ;;  %v8639_v31 = vpop.permute.xlu2 %6415  ;;  %v6574_v39 = vpack.i.bf16 %v913_v30, %v8586_v28  ;;  %vm1452_vm5 = vcmask 580608  }
 0x1bb   : > { %v8646_v34 = vpop.permute.xlu0 %6305  ;;  %1615 = vmatpush.msrb.mxu1 %v1375_v32  ;;  %v6243_v32 = vunpack.i.h.bf16 %v8505_v35  ;;  %v1022_v19 = vsel %vm1021_vm6, %v6292_v11, %v6293_v7  ;;  %v6337_v57 = vunpack.i.l.bf16 %v8637_v26  ;;  %v8719_v11 = vld [vmem:[#allocation8] sm:$0xff] }
 0x1bd   : > { %1616 = vmatpush.msrb.mxu1 %v1374_v8  ;;  %v1008_v8 = vsel %vm1006_vm7, %v6262_v1, %v6263_v0  ;;  %v1007_v43 = vsel %vm1006_vm7, %v6242_v36, %v6243_v32  ;;  %v8744_v32 = vld [vmem:[#allocation8 + $0x8] sm:$0xff]  ;;  %vm1465_vm7 = vcmask 89088  }
 0x1be   : > { %v1124_v52 = vsel %vm974_vm1, %v1007_v43, %v1022_v19  ;;  %v6328_v19 = vunpack.i.h.bf16 %v8578_v24  ;;  %v6327_v43 = vunpack.i.l.bf16 %v8578_v24  ;;  %v11998_v24 = vunpack.i.l.bf16 %v8580_v25 }
 0x1bf   : > { %1617 = vmatpush.msrb.mxu1 %v1313_v40  ;;  %v6257_v40 = vunpack.i.l.bf16 %v8517_v42 }
 0x1c0   : > { %6570 = vrot.lane.b32.xlu2 %v8588_v29, %s8063_s12  ;;  %6595 = vrot.lane.b32.xlu1 %v8616_v46, %s8067_s1  ;;  %v6227_v29 = vunpack.i.l.bf16 %v8484_v63  ;;  %v1023_v63 = vsel %vm1021_vm6, %v6312_v51, %v6313_v50  ;;  %v6338_v51 = vunpack.i.h.bf16 %v8637_v26  ;;  %s8069_s12 = smov 19   ;;  %vm1264_vm6 = vcmask 588800  }
 0x1c1   : > { %6565 = vrot.lane.b32.xlu0 %v8591_v33, %s8068_s14  ;;  %1618 = vmatpush.msrb.mxu1 %v1312_v4  ;;  %v1125_v35 = vsel %vm974_vm1, %v1008_v8, %v1023_v63  ;;  %v975_v26 = vsel %vm974_vm1, %v8441_v10, %v6257_v40 }
 0x1c2   : > { %v8675_v12 = vpop.permute.xlu2 %6425  ;;  %v8677_v21 = vpop.permute.xlu1 %6355  ;;  %v1186_v22 = vsel %vm974_vm1, %v6227_v29, %v6267_v59  ;;  %v1565_v29 = vsel %vm609_vm0, %v6288_v3, %v6338_v51 }
 0x1c3   : > { %v8686_v13 = vpop.permute.xlu0 %6360  ;;  %1619 = vmatpush.msrb.mxu1 %v1187_v23  ;;  %v1564_v23 = vsel %vm609_vm0, %v6287_v5, %v6337_v57  ;;  %v6427_v36 = vunpack.i.l.bf16 %v8675_v12  ;;  %v12000_v48 = vunpack.i.h.bf16 %v8677_v21 }
 0x1c5   : > { %1620 = vmatpush.msrb.mxu1 %v1186_v22  ;;  %v6353_v22 = vunpack.i.h.bf16 %v8546_v61 }
 0x1c7   : > { %1621 = vmatpush.msrb.mxu1 %v1125_v35 }
 0x1c8   : > { %6610 = vrot.lane.b32.xlu2 %v8540_v58, %s8065_s25  ;;  %6600 = vrot.lane.b32.xlu1 %v8616_v46, %s8069_s12  ;;  %v976_v58 = vsel %vm974_vm1, %v8445_v14, %v6258_v20 }
 0x1c9   : > { %6575 = vrot.lane.b32.xlu0 %v6574_v39, %s8065_s25  ;;  %1622 = vmatpush.msrb.mxu1 %v1124_v52  ;;  %s12017_s25 = smov 120  }
 0x1ca   : > { %v8709_v28 = vpop.permute.xlu2 %6430  ;;  %v8711_v4 = vpop.permute.xlu1 %6385 }
 0x1cb   : > { %v6371_v0 = vpop.permute.xlu0 %6370  ;;  %v12003_v1 = vunpack.i.h.bf16 %v8709_v28  ;;  %v12001_v46 = vunpack.i.l.bf16 %v8709_v28  ;;  %1623 = vmatpush.msrb.mxu1 %v976_v58 }
 0x1cc   : > { %v6373_v51 = vunpack.i.h.bf16 %v6371_v0  ;;  %v6372_v52 = vunpack.i.l.bf16 %v6371_v0 }
 0x1cd   : > { %1624 = vmatpush.msrb.mxu1 %v975_v26  ;;  %v1567_v14 = vsel %vm979_vm9, %v1565_v29, %v12003_v1  ;;  %v1566_v10 = vsel %vm979_vm9, %v1564_v23, %v12001_v46  ;;  %v8768_v26 = vld [vmem:[#allocation8 + $0x10] sm:$0xff]  ;;  %v605_v29 = vld [vmem:[%s11939_s5] sm:$0xff]  ;;  %v1376_v23 = vsel %vm609_vm0, %v6277_v6, %v6327_v43  ;;  %v608_v43 = vld [vmem:[%s11939_s5 + $0x18] sm:$0xff] }
 0x1ce   : > { %1640 = vmatpush.msrb.mxu3 %v1567_v14  ;;  %5862 = vmatmul.msk.f32.vlgmr.msrb.gmra.mxu1 %vm1596_vm8, %v8719_v11  ;;  %12154 = vst [vmem:[#allocation20_spill] sm:$0xff] %v8768_v26  ;;  %v1238_v44 = vsel %vm1236_vm11, %v6372_v52, %v6373_v51  ;;  %v1378_v56 = vsel %vm979_vm9, %v1376_v23, %v11998_v24  ;;  %v12002_v51 = vunpack.i.l.bf16 %v8567_v17  ;;  %v6308_v23 = vunpack.i.h.bf16 %v8646_v34 }
 0x1cf   : > { %v1315_v6 = vsel %vm609_vm0, %v6323_v60, %v1238_v44 }
 0x1d0   : > { %1641 = vmatpush.msrb.mxu3 %v1566_v10  ;;  %6605 = vrot.lane.b32.xlu1 %v8476_v9, %s12011_s9  ;;  %v6352_v9 = vunpack.i.l.bf16 %v8546_v61  ;;  %v11999_v61 = vunpack.i.h.bf16 %v8580_v25  ;;  %v8070_v10 = vmov 0   ;;  %s12015_s9 = smov 60  }
 0x1d1   : > { %6580 = vrot.lane.b32.xlu0 %v6574_v39, %s8067_s1  ;;  %6619 = vset.pattern.permute.xlu1 %v8070_v10  ;;  %s8074_s1 = smov 52  }
 0x1d2   : > { %v8742_v3 = vpop.permute.xlu1 %6390  ;;  %v1425_v58 = vsel %vm1424_vm10, %v6352_v9, %v6353_v22  ;;  %6621 = vset.pattern.permute.xlu0 %v8070_v10  ;;  %6620 = vset.pattern.permute.xlu2 %v8070_v10  ;;  %v6318_v22 = vunpack.i.h.bf16 %v8548_v62  ;;  %v6307_v10 = vunpack.i.l.bf16 %v8646_v34  ;;  %v978_v34 = vsel %vm609_vm0, %v6258_v20, %v6308_v23 }
 0x1d3   : > { %v6381_v30 = vpop.permute.xlu0 %6380  ;;  %v1502_v0 = vsel %vm609_vm0, %v6303_v49, %v1425_v58  ;;  %v6348_v49 = vunpack.i.h.bf16 %v8535_v54  ;;  %v981_v18 = vsel %vm979_vm9, %v978_v34, %v12000_v48  ;;  %v6408_v34 = vunpack.i.h.bf16 %v8601_v38 }
 0x1d4   : > { %v6383_v2 = vunpack.i.h.bf16 %v6381_v30  ;;  %v6382_v5 = vunpack.i.l.bf16 %v6381_v30  ;;  %v6393_v48 = vunpack.i.h.bf16 %v8742_v3 }
 0x1d6   : > { %v1426_v63 = vsel %vm1424_vm10, %v6382_v5, %v6383_v2  ;;  %5863 = vmatmul.msk.f32.gmra.mxu1 %vm1596_vm8, %v8744_v32  ;;  %v6417_v2 = vunpack.i.l.bf16 %v8639_v31  ;;  %v6363_v5 = vunpack.i.h.bf16 %v8686_v13  ;;  %vm1277_vm10 = vcmask 97280  }
 0x1d7   : > { %v1503_v8 = vsel %vm609_vm0, %v6333_v45, %v1426_v63  ;;  %v12005_v63 = vunpack.i.l.bf16 %v8742_v3 }
 0x1d8   : > { %v1505_v35 = vsel %vm979_vm9, %v1503_v8, %v6427_v36  ;;  %1578 = vperm.xlu1 %6619, %v605_v29   ;;  %v1317_v8 = vsel %vm979_vm9, %v1315_v6, %v6417_v2  ;;  %v6407_v29 = vunpack.i.l.bf16 %v8601_v38 }
 0x1d9   : > { %1642 = vmatpush.msrb.mxu3 %v1505_v35  ;;  %6585 = vrot.lane.b32.xlu0 %v6574_v39, %s8069_s12  ;;  %v1377_v39 = vsel %vm609_vm0, %v6278_v55, %v6328_v19  ;;  %v6347_v55 = vunpack.i.l.bf16 %v8535_v54  ;;  %v6362_v54 = vunpack.i.l.bf16 %v8686_v13  ;;  %s8071_s12 = smov 89   ;;  %v8816_v19 = vld [vmem:[#allocation8 + $0x18] sm:$0xff]  ;;  %v6317_v35 = vunpack.i.l.bf16 %v8548_v62 }
 0x1da   : > { %v8761_v57 = vpop.permute.xlu1 %6395  ;;  %v1379_v30 = vsel %vm979_vm9, %v1377_v39, %v11999_v61  ;;  %12155 = vst [vmem:[#allocation21_spill] sm:$0xff] %v8816_v19  ;;  %v1189_v62 = vsel %vm609_vm0, %v6268_v41, %v6318_v22  ;;  %v8959_v61 = vsel %vm1053_vm13, %v6407_v29, %v6408_v34 }
 0x1db   : > { %v6397_v37 = vunpack.i.l.bf16 %v8761_v57  ;;  %v8765_v45 = vpop.permute.xlu0 %6410  ;;  %v1237_v13 = vsel %vm1236_vm11, %v6347_v55, %v6348_v49  ;;  %v1040_v58 = vsel %vm1038_vm12, %v6362_v54, %v6363_v5  ;;  %v1188_v39 = vsel %vm609_vm0, %v6267_v59, %v6317_v35  ;;  %v8862_v49 = vpop.permute.xlu2 %6455 }
 0x1dc   : > { %v1127_v41 = vsel %vm609_vm0, %v6313_v50, %v1040_v58  ;;  %v6398_v46 = vunpack.i.h.bf16 %v8761_v57  ;;  %v6413_v1 = vunpack.i.h.bf16 %v8765_v45  ;;  %vm1987_vm11 = vcmask 1043456  }
 0x1dd   : > { %v1504_v14 = vsel %vm979_vm9, %v1502_v0, %v6397_v37  ;;  %v1191_v0 = vsel %vm979_vm9, %v1189_v62, %v12004_v16  ;;  %v1129_v53 = vsel %vm979_vm9, %v1127_v41, %v6407_v29 }
 0x1de   : > { %1643 = vmatpush.msrb.mxu3 %v1504_v14  ;;  %5864 = vmatmul.msk.f32.gmra.mxu1 %vm1596_vm8, %v8768_v26  ;;  %v6387_v14 = vunpack.i.l.bf16 %v8711_v4 }
 0x1e0   : > { %1644 = vmatpush.msrb.mxu3 %v1379_v30  ;;  %1593 = vperm.xlu1 %6619, %v608_v43   ;;  %v607_v30 = vld [vmem:[%s11939_s5 + $0x10] sm:$0xff] }
 0x1e1   : > { %6615 = vrot.lane.b32.xlu0 %v8591_v33, %s8071_s12  ;;  %v1314_v33 = vsel %vm609_vm0, %v6298_v15, %v1237_v13  ;;  %v6342_v15 = vunpack.i.l.bf16 %v8524_v47  ;;  %v1190_v47 = vsel %vm979_vm9, %v1188_v39, %v12002_v51 }
 0x1e2   : > { %1645 = vmatpush.msrb.mxu3 %v1378_v56  ;;  %v8807_v9 = vpop.permute.xlu1 %6400  ;;  %v1316_v52 = vsel %vm979_vm9, %v1314_v33, %v12005_v63  ;;  %v11997_v56 = vunpack.i.l.bf16 %v8677_v21  ;;  %v606_v33 = vld [vmem:[%s11939_s5 + $0x8] sm:$0xff] }
 0x1e3   : > { %v8810_v60 = vpop.permute.xlu0 %6420  ;;  %v1039_v50 = vsel %vm1038_vm12, %v6342_v15, %v6343_v27  ;;  %v8892_v20 = vpop.permute.xlu2 %6485  ;;  %1583 = vperm.xlu2 %6620, %v606_v33   ;;  %v6388_v33 = vunpack.i.h.bf16 %v8711_v4  ;;  %v6403_v57 = vunpack.i.h.bf16 %v8807_v9  ;;  %vm988_vm12 = vcmask 195584  }
 0x1e4   : > { %1646 = vmatpush.msrb.mxu3 %v1317_v8  ;;  %v1126_v55 = vsel %vm609_vm0, %v6293_v7, %v1039_v50  ;;  %v977_v7 = vsel %vm609_vm0, %v6257_v40, %v6307_v10 }
 0x1e5   : > { %v1128_v6 = vsel %vm979_vm9, %v1126_v55, %v6387_v14  ;;  %v980_v5 = vsel %vm979_vm9, %v977_v7, %v11997_v56  ;;  %v8974_v38 = vsel %vm1053_vm13, %v6387_v14, %v6388_v33  ;;  %vm1480_vm13 = vcmask 646144  }
 0x1e6   : > { %1647 = vmatpush.msrb.mxu3 %v1316_v52  ;;  %5865 = vmatmul.msk.f32.gmra.mxu1 %vm1596_vm8, %v8816_v19 }
 0x1e8   : > { %1648 = vmatpush.msrb.mxu3 %v1191_v0 }
 0x1e9   : > { %1588 = vperm.xlu0 %6621, %v607_v30  }
 0x1ea   : > { %1649 = vmatpush.msrb.mxu3 %v1190_v47  ;;  %v8852_v44 = vpop.permute.xlu1 %6460 }
 0x1eb   : > { %v8855_v59 = vpop.permute.xlu0 %6435  ;;  %v8900_v42 = vpop.permute.xlu2 %6490  ;;  %v6463_v34 = vunpack.i.h.bf16 %v8852_v44 }
 0x1ec   : > { %1650 = vmatpush.msrb.mxu3 %v1129_v53  ;;  %v6437_v4 = vunpack.i.l.bf16 %v8855_v59 }
 0x1ee   : > { %1651 = vmatpush.msrb.mxu3 %v1128_v6 }
 0x1f0   : > { %1652 = vmatpush.msrb.mxu3 %v981_v18  ;;  %v6418_v18 = vunpack.i.h.bf16 %v8639_v31  ;;  %v6412_v31 = vunpack.i.l.bf16 %v8765_v45  ;;  %v1438_v45 = vsel %vm1437_vm15, %v6397_v37, %v6398_v46  ;;  %v6402_v46 = vunpack.i.l.bf16 %v8807_v9 }
 0x1f2   : > { %1653 = vmatpush.msrb.mxu3 %v980_v5  ;;  %v8886_v54 = vpop.permute.xlu1 %6465  ;;  %v6428_v5 = vunpack.i.h.bf16 %v8675_v12  ;;  %v8966_v51 = vsel %vm1249_vm14, %v6417_v2, %v6418_v18  ;;  %v6438_v2 = vunpack.i.h.bf16 %v8855_v59  ;;  %v12157_v59 = vunpack.i.h.bf16 %v8567_v17 }
 0x1f3   : > { %v8888_v22 = vpop.permute.xlu0 %6440  ;;  %5866 = vmatmul.msk.f32.vlgmr.msrb.gmra.mxu3 %vm1596_vm8, %v8719_v11  ;;  %v8911_v43 = vpop.permute.xlu2 %6495 }
 0x1f4   : > { %v1439_v16 = vsel %vm1437_vm15, %v6427_v36, %v6428_v5  ;;  %v12156_v5 = vunpack.i.l.bf16 %v8742_v3  ;;  %v9002_v29 = vsel %vm982_vm2, %v12157_v59, %v6413_v1  ;;  %v12158_v3 = vunpack.i.h.bf16 %v8709_v28 }
 0x1f5   : > { %vm1292_vm15 = vcmask 654336  }
 0x1f6   : > { %v8993_v33 = vsel %vm1249_vm14, %v12156_v5, %v6393_v48  ;;  %v1569_v37 = vsel %vm982_vm2, %v12158_v3, %v6438_v2  ;;  %v12159_v48 = vunpack.i.l.bf16 %v8567_v17  ;;  %v6493_v2 = vunpack.i.h.bf16 %v8900_v42 }
 0x1f7   : > { %v12160_v3 = vunpack.i.l.bf16 %v8709_v28  ;;  %vm991_vm14 = vcmask 752640  }
 0x1f8   : > { %v9012_v5 = vsel %vm982_vm2, %v12159_v48, %v6412_v31 }
 0x1f9   : > { %v1568_v48 = vsel %vm982_vm2, %v12160_v3, %v6437_v4 }
 0x1fa   : > { %v8894_v8 = vpop.permute.xlu1 %6470 }
 0x1fb   : > { %v8896_v13 = vpop.permute.xlu0 %6445  ;;  %5867 = vmatmul.msk.f32.gmra.mxu3 %vm1596_vm8, %v8744_v32  ;;  %v8923_v15 = vpop.permute.xlu2 %6500 }
 0x1fc   : > { %v6448_v4 = vunpack.i.h.bf16 %v8896_v13  ;;  %v6447_v3 = vunpack.i.l.bf16 %v8896_v13 }
 0x202   : > { %v8902_v40 = vpop.permute.xlu1 %6475 }
 0x203   : > { %v8904_v35 = vpop.permute.xlu0 %6450  ;;  %5868 = vmatmul.msk.f32.gmra.mxu3 %vm1596_vm8, %v8768_v26  ;;  %v8929_v41 = vpop.permute.xlu2 %6510 }
 0x204   : > { %v6453_v18 = vunpack.i.h.bf16 %v8904_v35  ;;  %v6452_v63 = vunpack.i.l.bf16 %v8904_v35 }
 0x206   : > { %v1453_v9 = vsel %vm1452_vm5, %v6452_v63, %v6453_v18 }
 0x207   : > { %v1506_v28 = vsel %vm982_vm2, %v1438_v45, %v1453_v9 }
 0x20a   : > { %v8913_v52 = vpop.permute.xlu1 %6480 }
 0x20b   : > { %v8915_v58 = vpop.permute.xlu0 %6505  ;;  %5869 = vmatmul.msk.f32.gmra.mxu3 %vm1596_vm8, %v8816_v19  ;;  %v8935_v53 = vpop.permute.xlu2 %6520  ;;  %v6483_v12 = vunpack.i.h.bf16 %v8913_v52  ;;  %v6482_v36 = vunpack.i.l.bf16 %v8913_v52  ;;  %v6423_v19 = vunpack.i.h.bf16 %v8810_v60 }
 0x20d   : > { %v1454_v59 = vsel %vm1452_vm5, %v6482_v36, %v6483_v12  ;;  %v6497_v12 = vunpack.i.l.bf16 %v8911_v43  ;;  %v6473_v36 = vunpack.i.h.bf16 %v8894_v8  ;;  %vm1305_vm5 = vcmask 162816  }
 0x212   : > { %v8919_v62 = vpop.permute.xlu1 %6530 }
 0x213   : > { %v8921_v27 = vpop.permute.xlu0 %6515  ;;  %v8941_v55 = vpop.permute.xlu2 %6550 }
 0x21a   : > { %v8925_v0 = vpop.permute.xlu1 %6535 }
 0x21b   : > { %v8927_v39 = vpop.permute.xlu0 %6525  ;;  %v8955_v24 = vpop.permute.xlu2 %6560 }
 0x21c   : > { %v12162_v17 = vunpack.i.l.bf16 %v8927_v39 }
 0x222   : > { %v8931_v47 = vpop.permute.xlu1 %6540 }
 0x223   : > { %v8933_v23 = vpop.permute.xlu0 %6545  ;;  %v9023_v31 = vpop.permute.xlu2 %6570 }
 0x22a   : > { %v8937_v50 = vpop.permute.xlu1 %6590 }
 0x22b   : > { %v8939_v10 = vpop.permute.xlu0 %6555 }
 0x232   : > { %v8943_v30 = vpop.permute.xlu1 %6595 }
 0x233   : > { %v8945_v6 = vpop.permute.xlu0 %6565 }
 0x23a   : > { %v8949_v7 = vpop.permute.xlu1 %6600 }
 0x23b   : > { %v8953_v56 = vpop.permute.xlu0 %6575 }
 0x242   : > { %v8985_v14 = vpop.permute.xlu1 %6605 }
 0x243   : > { %v12008_v35 = vunpack.i.h.bf16 %v8985_v14  ;;  %v8997_v52 = vpop.permute.xlu0 %6580  ;;  %v12161_v63 = vunpack.i.l.bf16 %v8985_v14 }
 0x245   : > { %v1571_v1 = vsel %vm985_vm3, %v1569_v37, %v12008_v35  ;;  %v6462_v37 = vunpack.i.l.bf16 %v8852_v44  ;;  %v1570_v18 = vsel %vm985_vm3, %v1568_v48, %v12161_v63  ;;  %v6472_v35 = vunpack.i.l.bf16 %v8894_v8 }
 0x246   : > { %1669 = vmatpush.msrb.mxu0 %v1571_v1  ;;  %v1507_v1 = vsel %vm982_vm2, %v1439_v16, %v1454_v59  ;;  %v6478_v44 = vunpack.i.h.bf16 %v8902_v40  ;;  %v6422_v48 = vunpack.i.l.bf16 %v8810_v60  ;;  %v6443_v63 = vunpack.i.h.bf16 %v8888_v22  ;;  %v1910_v60 = vld [vmem:[%s12164_s2 + $0x40] sm:$0xf] }
 0x247   : > { %v1509_v26 = vsel %vm985_vm3, %v1507_v1, %v12162_v17  ;;  %v6442_v8 = vunpack.i.l.bf16 %v8888_v22  ;;  %v12163_v16 = vunpack.i.h.bf16 %v8677_v21  ;;  %v6498_v59 = vunpack.i.h.bf16 %v8911_v43  ;;  %5882 = vmatpush.msk.msra.mxu3 %vm1987_vm11, %v1910_v60 }
 0x248   : > { %1670 = vmatpush.msrb.mxu0 %v1570_v18  ;;  %v1508_v18 = vsel %vm985_vm3, %v1506_v28, %v6497_v12  ;;  %v6467_v22 = vunpack.i.l.bf16 %v8886_v54  ;;  %v12165_v43 = vunpack.i.h.bf16 %v8580_v25  ;;  %v1072_v1 = vsel %vm1070_vm4, %v6462_v37, %v6463_v34 }
 0x249   : > { %v984_v45 = vsel %vm982_vm2, %v12163_v16, %v6403_v57  ;;  %v6517_v28 = vunpack.i.l.bf16 %v8921_v27  ;;  %v1266_v13 = vsel %vm1264_vm6, %v6472_v35, %v6473_v36  ;;  %v12166_v34 = vunpack.i.l.bf16 %v8580_v25 }
 0x24a   : > { %1671 = vmatpush.msrb.mxu0 %v1509_v26  ;;  %v1381_v57 = vsel %vm982_vm2, %v12165_v43, %v6423_v19  ;;  %v1265_v26 = vsel %vm1264_vm6, %v6447_v3, %v6448_v4  ;;  %v6488_v19 = vunpack.i.h.bf16 %v8892_v20  ;;  %v1071_v60 = vsel %vm1070_vm4, %v6442_v8, %v6443_v63  ;;  %v6611_v8 = vpop.permute.xlu2 %6610 }
 0x24b   : > { %v9052_v9 = vpop.permute.xlu0 %6585  ;;  %v9055_v17 = vpop.f32.mrf.mxu1  ;;  %v1383_v16 = vsel %vm985_vm3, %v1381_v57, %v6478_v44  ;;  %v1380_v37 = vsel %vm982_vm2, %v12166_v34, %v6422_v48  ;;  %v12167_v43 = vunpack.i.l.bf16 %v8677_v21  ;;  %v12168_v35 = vunpack.i.l.bf16 %v8902_v40 }
 0x24c   : > { %1672 = vmatpush.msrb.mxu0 %v1508_v18  ;;  %v1909_v18 = vld [vmem:[%s12164_s2 + $0x38] sm:$0xff]  ;;  %v9089_v4 = vsel %vm1465_vm7, %v6497_v12, %v6498_v59  ;;  %v12169_v3 = vunpack.i.h.bf16 %v8862_v49  ;;  %v12170_v48 = vunpack.i.l.bf16 %v8900_v42  ;;  %v6487_v63 = vunpack.i.l.bf16 %v8892_v20 }
 0x24d   : > { %v9083_v57 = vsel %vm982_vm2, %v12167_v43, %v6402_v46  ;;  %1999 = vmatpush.msra.mxu3 %v1909_v18  ;;  %v1382_v36 = vsel %vm985_vm3, %v1380_v37, %v12168_v35  ;;  %v1908_v46 = vld [vmem:[%s12164_s2 + $0x30] sm:$0xff]  ;;  %v1319_v12 = vsel %vm982_vm2, %v8966_v51, %v1266_v13  ;;  %v1131_v59 = vsel %vm982_vm2, %v8959_v61, %v1072_v1  ;;  %v1907_v61 = vld [vmem:[%s12164_s2 + $0x28] sm:$0xff]  ;;  %v1906_v43 = vld [vmem:[%s12164_s2 + $0x20] sm:$0xff] }
 0x24e   : > { %1673 = vmatpush.msrb.mxu0 %v1383_v16  ;;  %v9094_v25 = vsel %vm985_vm3, %v984_v45, %v12169_v3  ;;  %v9099_v21 = vsel %vm1277_vm10, %v12170_v48, %v6493_v2  ;;  %v1318_v45 = vsel %vm982_vm2, %v8993_v33, %v1265_v26  ;;  %v1321_v2 = vsel %vm985_vm3, %v1319_v12, %v6517_v28 }
 0x24f   : > { %2000 = vmatpush.msra.mxu3 %v1908_v46  ;;  %v12171_v16 = vunpack.i.h.bf16 %v8886_v54  ;;  %v1194_v51 = vsel %vm985_vm3, %v9012_v5, %v6467_v22  ;;  %v9124_v33 = vsel %vm982_vm2, %v8974_v38, %v1071_v60  ;;  %v6528_v13 = vunpack.i.h.bf16 %v8927_v39 }
 0x250   : > { %1674 = vmatpush.msrb.mxu0 %v1382_v36  ;;  %v6573_v26 = vunpack.i.h.bf16 %v9023_v31  ;;  %v6572_v1 = vunpack.i.l.bf16 %v9023_v31  ;;  %v6613_v5 = vunpack.i.h.bf16 %v6611_v8  ;;  %v12172_v38 = vmov %v12170_v48 }
 0x251   : > { %v1195_v18 = vsel %vm985_vm3, %v9002_v29, %v12171_v16  ;;  %2001 = vmatpush.msra.mxu3 %v1907_v61  ;;  %v6507_v29 = vunpack.i.l.bf16 %v8915_v58  ;;  %v1320_v37 = vsel %vm985_vm3, %v1318_v45, %v12172_v38  ;;  %v6543_v31 = vunpack.i.h.bf16 %v8931_v47 }
 0x252   : > { %1675 = vmatpush.msrb.mxu0 %v1321_v2  ;;  %v6542_v35 = vunpack.i.l.bf16 %v8931_v47  ;;  %v6612_v48 = vunpack.i.l.bf16 %v6611_v8  ;;  %v6603_v42 = vunpack.i.h.bf16 %v8949_v7  ;;  %v6602_v46 = vunpack.i.l.bf16 %v8949_v7  ;;  %v1905_v2 = vld [vmem:[%s12164_s2 + $0x18] sm:$0xff] }
 0x253   : > { %v6616_v34 = vpop.permute.xlu0 %6615  ;;  %v9136_v60 = vpop.f32.mrf.mxu1  ;;  %2002 = vmatpush.msra.mxu3 %v1906_v43  ;;  %v12173_v12 = vunpack.i.h.bf16 %v8985_v14  ;;  %vm1493_vm2 = vcmask 154624   ;;  %v12174_v16 = vunpack.i.l.bf16 %v8927_v39  ;;  %v1482_v61 = vsel %vm1480_vm13, %v6572_v1, %v6573_v26  ;;  %v1904_v39 = vld [vmem:[%s12164_s2 + $0x10] sm:$0xff] }
 0x254   : > { %v6618_v36 = vunpack.i.h.bf16 %v6616_v34  ;;  %v6617_v3 = vunpack.i.l.bf16 %v6616_v34  ;;  %1676 = vmatpush.msrb.mxu0 %v1320_v37  ;;  %v6588_v7 = vunpack.i.h.bf16 %v9052_v9  ;;  %v6587_v34 = vunpack.i.l.bf16 %v9052_v9  ;;  %v9164_v37 = vpop.permute.xlu1 %1578 }
 0x255   : > { %v1573_v45 = vsel %vm988_vm12, %v12173_v12, %v6613_v5  ;;  %v1467_v8 = vsel %vm1465_vm7, %v12174_v16, %v6528_v13  ;;  %v12175_v5 = vunpack.i.l.bf16 %v8985_v14  ;;  %2003 = vmatpush.msra.mxu3 %v1905_v2  ;;  %v6523_v13 = vunpack.i.h.bf16 %v8935_v53 }
 0x256   : > { %1727 = vmatpush.msra.mxu1 %v6618_v36  ;;  %1677 = vmatpush.msrb.mxu0 %v1195_v18  ;;  %v1575_v47 = vsel %vm991_vm14, %v1573_v45, %v6618_v36  ;;  %v1133_v18 = vsel %vm985_vm3, %v1131_v59, %v6507_v29  ;;  %v1481_v14 = vsel %vm1480_vm13, %v6542_v35, %v6543_v31  ;;  %v6563_v59 = vunpack.i.h.bf16 %v8955_v24 }
 0x257   : > { %1698 = vmatpush.msra.mxu2 %v1575_v47  ;;  %v1572_v38 = vsel %vm988_vm12, %v12175_v5, %v6612_v48  ;;  %v9174_v26 = vadd.f32 %v9055_v17, %v9164_v37  ;;  %v6562_v1 = vunpack.i.l.bf16 %v8955_v24  ;;  %v1495_v43 = vsel %vm1493_vm2, %v6602_v46, %v6603_v42  ;;  %2004 = vmatpush.msra.mxu3 %v1904_v39 }
 0x258   : > { %1728 = vmatpush.msra.mxu1 %v6617_v3  ;;  %1678 = vmatpush.msrb.mxu0 %v1194_v51  ;;  %v1574_v9 = vsel %vm991_vm14, %v1572_v38, %v6617_v3  ;;  %v1511_v36 = vsel %vm988_vm12, %v1467_v8, %v1482_v61  ;;  %v1903_v51 = vld [vmem:[%s12164_s2 + $0x8] sm:$0xff]  ;;  %v6518_v31 = vunpack.i.h.bf16 %v8921_v27  ;;  %v6568_v35 = vunpack.i.h.bf16 %v8945_v6 }
 0x259   : > { %1699 = vmatpush.msra.mxu2 %v1574_v9  ;;  %v1513_v17 = vsel %vm991_vm14, %v1511_v36, %v6602_v46  ;;  %v1754_v24 = vmax.f32 %v9174_v26, 0.0  ;;  %v6522_v3 = vunpack.i.l.bf16 %v8935_v53  ;;  %v1494_v48 = vsel %vm1493_vm2, %v6587_v34, %v6588_v7  ;;  %2005 = vmatpush.msra.mxu3 %v1903_v51 }
 0x25a   : > { %1729 = vmatpush.msra.mxu1 %v1495_v43  ;;  %1679 = vmatpush.msrb.mxu0 %v1133_v18  ;;  %v1132_v42 = vsel %vm985_vm3, %v9124_v33, %v6487_v63  ;;  %v1510_v12 = vsel %vm988_vm12, %v9089_v4, %v1481_v14  ;;  %v6538_v46 = vunpack.i.h.bf16 %v8925_v0  ;;  %v6537_v2 = vunpack.i.l.bf16 %v8925_v0  ;;  %v1902_v33 = vld [vmem:[%s12164_s2] sm:$0xff]  ;;  %s8113_s2 = smov 47  }
 0x25b   : > { %1700 = vmatpush.msra.mxu2 %v1513_v17  ;;  %v9195_v45 = vpop.f32.mrf.mxu1  ;;  %v6567_v53 = vunpack.i.l.bf16 %v8945_v6  ;;  %v1512_v47 = vsel %vm991_vm14, %v1510_v12, %v6587_v34  ;;  %v6598_v16 = vunpack.i.h.bf16 %v8943_v30  ;;  %v6597_v4 = vunpack.i.l.bf16 %v8943_v30  ;;  %1782 = vrot.lane.b32.xlu2 %v1754_v24, %s12015_s9 }
 0x25c   : > { %1730 = vmatpush.msra.mxu1 %v1494_v48  ;;  %1680 = vmatpush.msrb.mxu0 %v1132_v42  ;;  %v1385_v8 = vsel %vm988_vm12, %v6478_v44, %v6523_v13  ;;  %v12176_v0 = vunpack.i.l.bf16 %v8862_v49  ;;  %vm1085_vm4 = vcmask 105472   ;;  %v1279_v30 = vsel %vm1277_vm10, %v6517_v28, %v6518_v31  ;;  %v9238_v9 = vpop.permute.xlu1 %1593 }
 0x25d   : > { %1701 = vmatpush.msra.mxu2 %v1512_v47  ;;  %v1387_v61 = vsel %vm991_vm14, %v1385_v8, %v6568_v35  ;;  %v1294_v44 = vsel %vm1292_vm15, %v6562_v1, %v6563_v59  ;;  %v6583_v7 = vunpack.i.h.bf16 %v8997_v52  ;;  %v12177_v34 = vunpack.i.l.bf16 %v8902_v40  ;;  %2006 = vmatpush.msra.mxu3 %v1902_v33 }
 0x25e   : > { %v986_v6 = vsel %vm985_vm3, %v9083_v57, %v12176_v0  ;;  %1731 = vmatpush.msra.mxu1 %v6568_v35  ;;  %1681 = vmatpush.msrb.mxu0 %v9094_v25  ;;  %v6582_v57 = vunpack.i.l.bf16 %v8997_v52  ;;  %vm1102_vm3 = vcmask 662528   ;;  %v9225_v25 = vpop.permute.xlu2 %1583  ;;  %v6513_v38 = vunpack.i.h.bf16 %v8929_v41 }
 0x25f   : > { %1702 = vmatpush.msra.mxu2 %v1387_v61  ;;  %v1384_v5 = vsel %vm988_vm12, %v12177_v34, %v6522_v3  ;;  %v1293_v28 = vsel %vm1292_vm15, %v6537_v2, %v6538_v46  ;;  %v1630_v52 = vadd.f32 %v9136_v60, %v9225_v25  ;;  %v6553_v18 = vunpack.i.h.bf16 %v8941_v55  ;;  %5883 = vmatmul.msk.f32.vlgmr.msra.gmra.mxu3 %vm974_vm1, %v1754_v24 }
 0x260   : > { %1732 = vmatpush.msra.mxu1 %v6567_v53  ;;  %1682 = vmatpush.msrb.mxu0 %v986_v6  ;;  %v1386_v27 = vsel %vm991_vm14, %v1384_v5, %v6567_v53  ;;  %v6552_v40 = vunpack.i.l.bf16 %v8941_v55  ;;  %v1307_v39 = vsel %vm1305_vm5, %v6597_v4, %v6598_v16  ;;  %v1323_v13 = vsel %vm988_vm12, %v1279_v30, %v1294_v44  ;;  %v9284_v16 = vpop.permute.xlu0 %1588  ;;  %v12182_v5 = vld [vmem:[#allocation21_spill] sm:$0xff] }
 0x261   : > { %1703 = vmatpush.msra.mxu2 %v1386_v27  ;;  %5870 = vmatmul.msk.f32.vlgmr.msrb.gmra.mxu0 %vm1596_vm8, %v8719_v11  ;;  %v6508_v14 = vunpack.i.h.bf16 %v8915_v58  ;;  %v6558_v26 = vunpack.i.h.bf16 %v8939_v10  ;;  %v1325_v60 = vsel %vm991_vm14, %v1323_v13, %v6597_v4  ;;  %v1759_v59 = vmax.f32 %v1630_v52, 0.0 }
 0x262   : > { %1733 = vmatpush.msra.mxu1 %v1307_v39  ;;  %v6512_v55 = vunpack.i.l.bf16 %v8929_v41  ;;  %v6533_v1 = vunpack.i.h.bf16 %v8919_v62  ;;  %v1306_v43 = vsel %vm1305_vm5, %v6582_v57, %v6583_v7  ;;  %v1322_v36 = vsel %vm988_vm12, %v9099_v21, %v1293_v28 }
 0x263   : > { %1704 = vmatpush.msra.mxu2 %v1325_v60  ;;  %v1635_v51 = vpop.f32.mrf.mxu1  ;;  %v6532_v31 = vunpack.i.l.bf16 %v8919_v62  ;;  %v6557_v35 = vunpack.i.l.bf16 %v8939_v10  ;;  %v1324_v17 = vsel %vm991_vm14, %v1322_v36, %v6582_v57  ;;  %v6593_v41 = vunpack.i.h.bf16 %v8937_v50  ;;  %1786 = vrot.lane.b32.xlu2 %v1759_v59, %s12015_s9  ;;  %v12181_v57 = vld [vmem:[#allocation20_spill] sm:$0xff] }
 0x264   : > { %1734 = vmatpush.msra.mxu1 %v1306_v43  ;;  %v1636_v24 = vadd.f32 %v1635_v51, %v9238_v9  ;;  %v6592_v3 = vunpack.i.l.bf16 %v8937_v50  ;;  %v12178_v48 = vunpack.i.h.bf16 %v8886_v54  ;;  %vm1117_vm6 = vcmask 171008  }
 0x265   : > { %1705 = vmatpush.msra.mxu2 %v1324_v17  ;;  %v1087_v10 = vsel %vm1085_vm4, %v6507_v29, %v6508_v14  ;;  %v1104_v21 = vsel %vm1102_vm3, %v6552_v40, %v6553_v18  ;;  %v6578_v50 = vunpack.i.h.bf16 %v8953_v56  ;;  %v6577_v46 = vunpack.i.l.bf16 %v8953_v56 }
 0x266   : > { %v1197_v42 = vsel %vm988_vm12, %v12178_v48, %v6513_v38  ;;  %1735 = vmatpush.msra.mxu1 %v6558_v26  ;;  %v1769_v12 = vmax.f32 %v1636_v24, 0.0  ;;  %v1196_v2 = vsel %vm988_vm12, %v6467_v22, %v6512_v55  ;;  %v1103_v47 = vsel %vm1102_vm3, %v6532_v31, %v6533_v1 }
 0x267   : > { %v1199_v62 = vsel %vm991_vm14, %v1197_v42, %v6558_v26  ;;  %v1198_v53 = vsel %vm991_vm14, %v1196_v2, %v6557_v35  ;;  %v6503_v58 = vunpack.i.h.bf16 %v8923_v15  ;;  %v1119_v56 = vsel %vm1117_vm6, %v6592_v3, %v6593_v41  ;;  %5884 = vmatmul.msk.f32.gmra.mxu3 %vm974_vm1, %v1759_v59 }
 0x268   : > { %1706 = vmatpush.msra.mxu2 %v1199_v62  ;;  %1736 = vmatpush.msra.mxu1 %v6557_v35  ;;  %v1135_v29 = vsel %vm988_vm12, %v1087_v10, %v1104_v21  ;;  %v6548_v54 = vunpack.i.h.bf16 %v8933_v23  ;;  %v1086_v33 = vsel %vm1085_vm4, %v6487_v63, %v6488_v19  ;;  %v6502_v4 = vunpack.i.l.bf16 %v8923_v15 }
 0x269   : > { %1794 = vrot.lane.b32.xlu0 %v1769_v12, %s12015_s9  ;;  %5871 = vmatmul.msk.f32.gmra.mxu0 %vm1596_vm8, %v8744_v32  ;;  %v1137_v22 = vsel %vm991_vm14, %v1135_v29, %v6592_v3  ;;  %v1118_v8 = vsel %vm1117_vm6, %v6577_v46, %v6578_v50  ;;  %v1134_v0 = vsel %vm988_vm12, %v1086_v33, %v1103_v47  ;;  %v6547_v6 = vunpack.i.l.bf16 %v8933_v23 }
 0x26a   : > { %1707 = vmatpush.msra.mxu2 %v1198_v53  ;;  %1737 = vmatpush.msra.mxu1 %v1119_v56  ;;  %v1136_v61 = vsel %vm991_vm14, %v1134_v0, %v6577_v46  ;;  %v12179_v20 = vunpack.i.h.bf16 %v8862_v49  ;;  %v1633_v63 = vadd.f32 %v9195_v45, %v9284_v16  ;;  %v12180_v30 = vunpack.i.l.bf16 %v8862_v49 }
 0x26b   : > { %vm1831_vm7 = vcmask 424960   ;;  %vm1864_vm10 = vcmask 359424   ;;  %vm1897_vm11 = vcmask 293888   ;;  %vm2225_vm13 = vcmask 834560  }
 0x26c   : > { %1708 = vmatpush.msra.mxu2 %v1137_v22  ;;  %1738 = vmatpush.msra.mxu1 %v1118_v8  ;;  %v990_v19 = vsel %vm988_vm12, %v12179_v20, %v6503_v58  ;;  %v989_v44 = vsel %vm988_vm12, %v12180_v30, %v6502_v4  ;;  %v1764_v7 = vmax.f32 %v1633_v63, 0.0  ;;  %vm2216_vm12 = vcmask 277504  }
 0x26d   : > { %v993_v15 = vsel %vm991_vm14, %v990_v19, %v6548_v54  ;;  %v992_v23 = vsel %vm991_vm14, %v989_v44, %v6547_v6  ;;  %vm3016_vm14 = vcmask 785408   ;;  %vm2234_vm15 = vcmask 343040  }
 0x26e   : > { %1709 = vmatpush.msra.mxu2 %v1136_v61  ;;  %1739 = vmatpush.msra.mxu1 %v6548_v54  ;;  %vm2243_vm2 = vcmask 900096   ;;  %vm3304_vm4 = vcmask 146432   ;;  %vm3619_vm5 = vcmask 138240   ;;  %vm3628_vm3 = vcmask 416768  }
 0x26f   : > { %5885 = vmatmul.msk.f32.gmra.mxu3 %vm974_vm1, %v1764_v7  ;;  %vm3637_vm6 = vcmask 695296  }
 0x270   : > { %1710 = vmatpush.msra.mxu2 %v993_v15  ;;  %1740 = vmatpush.msra.mxu1 %v6547_v6 }
 0x271   : > { %5878 = vmatmul.msk.f32.vlgmr.msra.gmra.mxu1 %vm1596_vm8, %v8719_v11  ;;  %5872 = vmatmul.msk.f32.gmra.mxu0 %vm1596_vm8, %v12181_v57 }
 0x272   : > { %1711 = vmatpush.msra.mxu2 %v992_v23 }
 0x273   : > { %5874 = vmatmul.msk.f32.vlgmr.msra.gmra.mxu2 %vm1596_vm8, %v8719_v11 }
 0x276   : > { %v1655_v45 = vpop.f32.mrf.mxu3 }
 0x277   : > { %v1656_v49 = vadd.f32 %v1655_v45, %v9164_v37  ;;  %5886 = vmatmul.msk.f32.gmra.mxu3 %vm974_vm1, %v1769_v12 }
 0x279   : > { %v1755_v34 = vmax.f32 %v1656_v49, 0.0  ;;  %5879 = vmatmul.msk.f32.gmra.mxu1 %vm1596_vm8, %v8744_v32  ;;  %5873 = vmatmul.msk.f32.gmra.mxu0 %vm1596_vm8, %v12182_v5 }
 0x27b   : > { %5875 = vmatmul.msk.f32.gmra.mxu2 %vm1596_vm8, %v8744_v32  ;;  %1784 = vrot.lane.b32.xlu1 %v1755_v34, %s12015_s9 }
 0x27e   : > { %v1658_v11 = vpop.f32.mrf.mxu3 }
 0x27f   : > { %v1659_v38 = vadd.f32 %v1658_v11, %v9225_v25 }
 0x281   : > { %5880 = vmatmul.msk.f32.gmra.mxu1 %vm1596_vm8, %v12181_v57  ;;  %v1760_v27 = vmax.f32 %v1659_v38, 0.0 }
 0x283   : > { %5876 = vmatmul.msk.f32.gmra.mxu2 %vm1596_vm8, %v12181_v57  ;;  %1788 = vrot.lane.b32.xlu0 %v1760_v27, %s12015_s9 }
 0x284   : > { %1790 = vrot.lane.b32.xlu1 %v1764_v7, %s12015_s9 }
 0x286   : > { %v1661_v28 = vpop.f32.mrf.mxu3 }
 0x287   : > { %v1662_v32 = vadd.f32 %v1661_v28, %v9284_v16 }
 0x289   : > { %v1765_v52 = vmax.f32 %v1662_v32, 0.0  ;;  %5881 = vmatmul.msk.f32.gmra.mxu1 %vm1596_vm8, %v12182_v5 }
 0x28b   : > { %5877 = vmatmul.msk.f32.gmra.mxu2 %vm1596_vm8, %v12182_v5  ;;  %1792 = vrot.lane.b32.xlu2 %v1765_v52, %s12015_s9  ;;  %vm1798_vm8 = vcmask 490496  }
 0x28c   : > { %1807 = vrot.lane.b32.xlu1 %v1765_v52, %s12017_s25  ;;  %1805 = vrot.lane.b32.xlu0 %v1760_v27, %s12017_s25 }
 0x28e   : > { %v1664_v18 = vpop.f32.mrf.mxu3 }
 0x28f   : > { %v1665_v40 = vadd.f32 %v1664_v18, %v9238_v9 }
 0x291   : > { %v1770_v39 = vmax.f32 %v1665_v40, 0.0 }
 0x293   : > { %1803 = vrot.lane.b32.xlu2 %v1755_v34, %s12017_s25 }
 0x294   : > { %1796 = vrot.lane.b32.xlu1 %v1770_v39, %s12015_s9  ;;  %1815 = vrot.lane.b32.xlu0 %v1755_v34, %s8074_s1  ;;  %s8076_s9 = smov 112  }
 0x29b   : > { %1819 = vrot.lane.b32.xlu2 %v1760_v27, %s8074_s1 }
 0x29c   : > { %1823 = vrot.lane.b32.xlu1 %v1765_v52, %s8074_s1  ;;  %1827 = vrot.lane.b32.xlu0 %v1770_v39, %s8074_s1 }
 0x2a3   : > { %1809 = vrot.lane.b32.xlu2 %v1770_v39, %s12017_s25  ;;  %s8077_s25 = smov 36  }
 0x2b5   : > { %v1783_v55 = vpop.permute.xlu2 %1782 }
 0x2bd   : > { %v1787_v24 = vpop.permute.xlu2 %1786 }
 0x2db   : > { %v1795_v43 = vpop.permute.xlu0 %1794 }
 0x2de   : > { %v1684_v13 = vpop.f32.mrf.mxu0 }
 0x2df   : > { %v1685_v14 = vadd.f32 %v1684_v13, %v9164_v37 }
 0x2e1   : > { %v1756_v26 = vmax.f32 %v1685_v14, 0.0 }
 0x2e3   : > { %1848 = vrot.lane.b32.xlu0 %v1756_v26, %s8075_s3  ;;  %1836 = vrot.lane.b32.xlu2 %v1756_v26, %s8076_s9 }
 0x2e4   : > { %1817 = vrot.lane.b32.xlu1 %v1756_v26, %s8074_s1 }
 0x2e5   : > { %v1793_v12 = vpop.permute.xlu2 %1792 }
 0x2e6   : > { %v1687_v60 = vpop.f32.mrf.mxu0 }
 0x2e7   : > { %v1688_v59 = vadd.f32 %v1687_v60, %v9225_v25 }
 0x2e9   : > { %v1761_v1 = vmax.f32 %v1688_v59, 0.0 }
 0x2eb   : > { %1821 = vrot.lane.b32.xlu0 %v1761_v1, %s8074_s1  ;;  %1852 = vrot.lane.b32.xlu2 %v1761_v1, %s8075_s3 }
 0x2ed   : > { %v1785_v36 = vpop.permute.xlu1 %1784  ;;  %v1804_v6 = vpop.permute.xlu2 %1803 }
 0x2ee   : > { %v1799_v51 = vsel %vm1798_vm8, %v1783_v55, %v1785_v36  ;;  %v1690_v31 = vpop.f32.mrf.mxu0  ;;  %v1742_v53 = vpop.f32.mrf.mxu1 }
 0x2ef   : > { %5887 = vmatmul.msk.f32.gmra.mxu3 %vm974_vm1, %v1799_v51  ;;  %v1691_v35 = vadd.f32 %v1690_v31, %v9284_v16  ;;  %v1743_v0 = vadd.f32 %v1742_v53, %v9164_v37 }
 0x2f1   : > { %v1766_v17 = vmax.f32 %v1691_v35, 0.0  ;;  %v1758_v20 = vmax.f32 %v1743_v0, 0.0 }
 0x2f3   : > { %1838 = vrot.lane.b32.xlu0 %v1761_v1, %s8076_s9  ;;  %1825 = vrot.lane.b32.xlu2 %v1766_v17, %s8074_s1 }
 0x2f4   : > { %1840 = vrot.lane.b32.xlu1 %v1766_v17, %s8076_s9 }
 0x2f5   : > { %v1789_v3 = vpop.permute.xlu0 %1788  ;;  %v1820_v57 = vpop.permute.xlu2 %1819 }
 0x2f6   : > { %v1791_v41 = vpop.permute.xlu1 %1790  ;;  %v1713_v48 = vpop.f32.mrf.mxu2  ;;  %v1800_v42 = vsel %vm1798_vm8, %v1787_v24, %v1789_v3 }
 0x2f7   : > { %v1693_v62 = vpop.f32.mrf.mxu0  ;;  %5888 = vmatmul.msk.f32.gmra.mxu3 %vm974_vm1, %v1800_v42  ;;  %v1801_v50 = vsel %vm1798_vm8, %v1791_v41, %v1793_v12  ;;  %v1714_v2 = vadd.f32 %v1713_v48, %v9164_v37  ;;  %v1745_v22 = vpop.f32.mrf.mxu1 }
 0x2f8   : > { %v1694_v10 = vadd.f32 %v1693_v62, %v9238_v9  ;;  %v1746_v63 = vadd.f32 %v1745_v22, %v9225_v25  ;;  %v9381_v37 = vpop.f32.mrf.mxu3 }
 0x2f9   : > { %v1757_v58 = vmax.f32 %v1714_v2, 0.0 }
 0x2fa   : > { %v1771_v21 = vmax.f32 %v1694_v10, 0.0  ;;  %v1763_v44 = vmax.f32 %v1746_v63, 0.0 }
 0x2fc   : > { %1860 = vrot.lane.b32.xlu0 %v1771_v21, %s8075_s3  ;;  %1842 = vrot.lane.b32.xlu2 %v1771_v21, %s8076_s9  ;;  %s12029_s9 = smov 29  }
 0x2fd   : > { %1856 = vrot.lane.b32.xlu1 %v1766_v17, %s8075_s3  ;;  %v1810_v49 = vpop.permute.xlu2 %1809 }
 0x2fe   : > { %v1808_v46 = vpop.permute.xlu1 %1807  ;;  %v1716_v47 = vpop.f32.mrf.mxu2 }
 0x2ff   : > { %5889 = vmatmul.msk.f32.gmra.mxu3 %vm974_vm1, %v1801_v50  ;;  %v1717_v29 = vadd.f32 %v1716_v47, %v9225_v25  ;;  %v1748_v19 = vpop.f32.mrf.mxu1  ;;  %v1806_v30 = vpop.permute.xlu0 %1805 }
 0x300   : > { %v1749_v15 = vadd.f32 %v1748_v19, %v9284_v16 }
 0x301   : > { %v1762_v33 = vmax.f32 %v1717_v29, 0.0 }
 0x302   : > { %v1768_v23 = vmax.f32 %v1749_v15, 0.0 }
 0x304   : > { %1881 = vrot.lane.b32.xlu0 %v1757_v58, %s8077_s25  ;;  %1869 = vrot.lane.b32.xlu2 %v1757_v58, %s8078_s15 }
 0x305   : > { %1829 = vrot.lane.b32.xlu1 %v1771_v21, %s8074_s1 }
 0x306   : > { %v1797_v56 = vpop.permute.xlu1 %1796  ;;  %v1719_v4 = vpop.f32.mrf.mxu2 }
 0x307   : > { %v1802_v54 = vsel %vm1798_vm8, %v1795_v43, %v1797_v56  ;;  %v1720_v8 = vadd.f32 %v1719_v4, %v9284_v16  ;;  %v9388_v16 = vpop.f32.mrf.mxu3  ;;  %v1751_v5 = vpop.f32.mrf.mxu1  ;;  %vm4875_vm8 = vcmask 72704  }
 0x308   : > { %5890 = vmatmul.msk.f32.gmra.mxu3 %vm974_vm1, %v1802_v54  ;;  %v6632_v34 = vpack.i.bf16 %v9388_v16, %v9381_v37  ;;  %v1752_v38 = vadd.f32 %v1751_v5, %v9238_v9  ;;  %v1816_v52 = vpop.permute.xlu0 %1815 }
 0x309   : > { %v1767_v61 = vmax.f32 %v1720_v8, 0.0 }
 0x30a   : > { %v1773_v27 = vmax.f32 %v1752_v38, 0.0 }
 0x30c   : > { %1854 = vrot.lane.b32.xlu0 %v1762_v33, %s8075_s3  ;;  %1885 = vrot.lane.b32.xlu2 %v1762_v33, %s8077_s25 }
 0x30d   : > { %1850 = vrot.lane.b32.xlu1 %v1757_v58, %s8075_s3 }
 0x30e   : > { %v1722_v7 = vpop.f32.mrf.mxu2  ;;  %v1824_v18 = vpop.permute.xlu1 %1823 }
 0x30f   : > { %v1723_v45 = vadd.f32 %v1722_v7, %v9238_v9  ;;  %v9399_v11 = vpop.f32.mrf.mxu3 }
 0x310   : > { %5891 = vmatmul.msk.f32.gmra.mxu3 %vm974_vm1, %v1804_v6  ;;  %v1828_v9 = vpop.permute.xlu0 %1827 }
 0x311   : > { %v1772_v25 = vmax.f32 %v1723_v45, 0.0 }
 0x314   : > { %1871 = vrot.lane.b32.xlu0 %v1762_v33, %s8078_s15  ;;  %1858 = vrot.lane.b32.xlu2 %v1767_v61, %s8075_s3 }
 0x315   : > { %1883 = vrot.lane.b32.xlu1 %v1758_v20, %s8077_s25 }
 0x317   : > { %v9405_v28 = vpop.f32.mrf.mxu3 }
 0x318   : > { %5892 = vmatmul.msk.f32.gmra.mxu3 %vm974_vm1, %v1806_v30  ;;  %v6657_v32 = vpack.i.bf16 %v9405_v28, %v9399_v11 }
 0x31c   : > { %1887 = vrot.lane.b32.xlu0 %v1763_v44, %s8077_s25  ;;  %1891 = vrot.lane.b32.xlu2 %v1768_v23, %s8077_s25 }
 0x31d   : > { %1873 = vrot.lane.b32.xlu1 %v1767_v61, %s8078_s15 }
 0x320   : > { %5893 = vmatmul.msk.f32.gmra.mxu3 %vm974_vm1, %v1808_v46 }
 0x324   : > { %1893 = vrot.lane.b32.xlu0 %v1772_v25, %s8077_s25  ;;  %1875 = vrot.lane.b32.xlu2 %v1772_v25, %s8078_s15  ;;  %s12041_s15 = smov 34  }
 0x325   : > { %1889 = vrot.lane.b32.xlu1 %v1767_v61, %s8077_s25 }
 0x328   : > { %5894 = vmatmul.msk.f32.gmra.mxu3 %vm974_vm1, %v1810_v49 }
 0x32c   : > { %6633 = vrot.lane.b32.xlu0 %v6632_v34, %s8068_s14  ;;  %6628 = vrot.lane.b32.xlu2 %v6632_v34, %s8023_s29 }
 0x32d   : > { %1862 = vrot.lane.b32.xlu1 %v1772_v25, %s8075_s3  ;;  %s12033_s3 = smov 33  }
 0x334   : > { %6648 = vrot.lane.b32.xlu0 %v6632_v34, %s8027_s17  ;;  %6643 = vrot.lane.b32.xlu2 %v6632_v34, %s8071_s12 }
 0x335   : > { %1895 = vrot.lane.b32.xlu1 %v1773_v27, %s8077_s25  ;;  %s12183_s25 = smov 66  }
 0x33c   : > { %6658 = vrot.lane.b32.xlu0 %v6657_v32, %s8023_s29  ;;  %6653 = vrot.lane.b32.xlu2 %v6657_v32, %s8066_s6 }
 0x33d   : > { %6623 = vrot.lane.b32.xlu1 %v6632_v34, %s8066_s6  ;;  %v1837_v40 = vpop.permute.xlu2 %1836  ;;  %s12031_s6 = smov 31  }
 0x344   : > { %6673 = vrot.lane.b32.xlu0 %v6657_v32, %s8071_s12  ;;  %6668 = vrot.lane.b32.xlu2 %v6657_v32, %s8025_s19  ;;  %s12027_s12 = smov 30  }
 0x345   : > { %6638 = vrot.lane.b32.xlu1 %v6632_v34, %s8025_s19  ;;  %v9418_v26 = vpop.permute.xlu2 %1852 }
 0x34d   : > { %6663 = vrot.lane.b32.xlu1 %v6657_v32, %s8068_s14  ;;  %v1826_v55 = vpop.permute.xlu2 %1825  ;;  %s12021_s14 = smov 32  }
 0x34e   : > { %v1834_v43 = vsel %vm1831_vm7, %v1824_v18, %v1826_v55 }
 0x355   : > { %6678 = vrot.lane.b32.xlu1 %v6657_v32, %s8027_s17  ;;  %v1849_v39 = vpop.permute.xlu0 %1848 }
 0x356   : > { %v1818_v13 = vpop.permute.xlu1 %1817  ;;  %v1843_v41 = vpop.permute.xlu2 %1842 }
 0x357   : > { %v1832_v14 = vsel %vm1831_vm7, %v1816_v52, %v1818_v13 }
 0x358   : > { %5895 = vmatmul.msk.f32.gmra.mxu3 %vm974_vm1, %v1832_v14 }
 0x35d   : > { %v1822_v60 = vpop.permute.xlu0 %1821 }
 0x35e   : > { %v1833_v59 = vsel %vm1831_vm7, %v1820_v57, %v1822_v60  ;;  %v1870_v10 = vpop.permute.xlu2 %1869 }
 0x360   : > { %5896 = vmatmul.msk.f32.gmra.mxu3 %vm974_vm1, %v1833_v59 }
 0x365   : > { %v1839_v48 = vpop.permute.xlu0 %1838 }
 0x366   : > { %v1841_v1 = vpop.permute.xlu1 %1840  ;;  %v9439_v46 = vpop.permute.xlu2 %1885 }
 0x368   : > { %5897 = vmatmul.msk.f32.gmra.mxu3 %vm974_vm1, %v1834_v43 }
 0x36e   : > { %v1861_v12 = vpop.permute.xlu0 %1860  ;;  %v1859_v29 = vpop.permute.xlu2 %1858 }
 0x36f   : > { %v9422_v36 = vpop.permute.xlu1 %1856 }
 0x370   : > { %v1867_v6 = vsel %vm1864_vm10, %v9422_v36, %v1859_v29 }
 0x372   : > { %v2020_v51 = vpop.f32.mrf.mxu3 }
 0x376   : > { %v1882_v53 = vpop.permute.xlu0 %1881  ;;  %v1892_v8 = vpop.permute.xlu2 %1891 }
 0x377   : > { %v1830_v31 = vpop.permute.xlu1 %1829 }
 0x378   : > { %v1835_v35 = vsel %vm1831_vm7, %v1828_v9, %v1830_v31  ;;  %vm4934_vm7 = vcmask 1041409  }
 0x379   : > { %5898 = vmatmul.msk.f32.gmra.mxu3 %vm974_vm1, %v1835_v35 }
 0x37a   : > { %v2023_v17 = vpop.f32.mrf.mxu3 }
 0x37b   : > { %v6687_v24 = vpack.i.bf16 %v2023_v17, %v2020_v51 }
 0x37d   : > { %6688 = vrot.lane.b32.xlu0 %v6687_v24, %s8027_s17  ;;  %6683 = vrot.lane.b32.xlu2 %v6687_v24, %s12041_s15 }
 0x37e   : > { %6693 = vrot.lane.b32.xlu1 %v6687_v24, %s12033_s3  ;;  %v1855_v22 = vpop.permute.xlu0 %1854  ;;  %v1876_v19 = vpop.permute.xlu2 %1875 }
 0x37f   : > { %v1851_v21 = vpop.permute.xlu1 %1850  ;;  %v1866_v4 = vsel %vm1864_vm10, %v9418_v26, %v1855_v22 }
 0x380   : > { %v1865_v56 = vsel %vm1864_vm10, %v1849_v39, %v1851_v21 }
 0x381   : > { %5899 = vmatmul.msk.f32.gmra.mxu3 %vm974_vm1, %v1837_v40 }
 0x382   : > { %v2026_v3 = vpop.f32.mrf.mxu3 }
 0x385   : > { %6703 = vrot.lane.b32.xlu0 %v6687_v24, %s12021_s14  ;;  %6698 = vrot.lane.b32.xlu2 %v6687_v24, %s12043_s27 }
 0x386   : > { %6708 = vrot.lane.b32.xlu1 %v6687_v24, %s12045_s18  ;;  %v1872_v30 = vpop.permute.xlu0 %1871  ;;  %v9467_v44 = vpop.permute.xlu2 %6628 }
 0x387   : > { %v1884_v2 = vpop.permute.xlu1 %1883 }
 0x388   : > { %v1898_v38 = vsel %vm1897_vm11, %v1882_v53, %v1884_v2 }
 0x389   : > { %5900 = vmatmul.msk.f32.gmra.mxu3 %vm974_vm1, %v1839_v48 }
 0x38b   : > { %v2029_v42 = vpop.f32.mrf.mxu3 }
 0x38c   : > { %v6717_v62 = vpack.i.bf16 %v2029_v42, %v2026_v3 }
 0x38d   : > { %6713 = vrot.lane.b32.xlu2 %v6687_v24, %s12031_s6 }
 0x38e   : > { %6718 = vrot.lane.b32.xlu0 %v6717_v62, %s12041_s15  ;;  %6723 = vrot.lane.b32.xlu1 %v6717_v62, %s8027_s17  ;;  %v1888_v23 = vpop.permute.xlu0 %1887  ;;  %v9472_v7 = vpop.permute.xlu2 %6643  ;;  %s12194_s15 = smov 7  }
 0x38f   : > { %v1874_v54 = vpop.permute.xlu1 %1873  ;;  %12185 = vst [vmem:[#allocation20_spill] sm:$0xff] %v9472_v7  ;;  %v1899_v40 = vsel %vm1897_vm11, %v9439_v46, %v1888_v23 }
 0x391   : > { %5901 = vmatmul.msk.f32.gmra.mxu3 %vm974_vm1, %v1841_v1 }
 0x393   : > { %v2032_v50 = vpop.f32.mrf.mxu3 }
 0x395   : > { %6728 = vrot.lane.b32.xlu2 %v6717_v62, %s12033_s3  ;;  %s12051_s3 = smov 99  }
 0x396   : > { %6733 = vrot.lane.b32.xlu0 %v6717_v62, %s12043_s27  ;;  %6738 = vrot.lane.b32.xlu1 %v6717_v62, %s12021_s14  ;;  %s12184_s14 = smov 65   ;;  %v1894_v57 = vpop.permute.xlu0 %1893  ;;  %v9476_v45 = vpop.permute.xlu2 %6653  ;;  %s12195_s27 = smov 5  }
 0x397   : > { %v1890_v0 = vpop.permute.xlu1 %1889 }
 0x398   : > { %v1900_v26 = vsel %vm1897_vm11, %v1890_v0, %v1892_v8 }
 0x399   : > { %5902 = vmatmul.msk.f32.gmra.mxu3 %vm974_vm1, %v1843_v41 }
 0x39b   : > { %v2035_v47 = vpop.f32.mrf.mxu3 }
 0x39c   : > { %v6752_v58 = vpack.i.bf16 %v2035_v47, %v2032_v50 }
 0x39d   : > { %6743 = vrot.lane.b32.xlu2 %v6717_v62, %s12045_s18  ;;  %s12049_s18 = smov 97  }
 0x39e   : > { %6748 = vrot.lane.b32.xlu0 %v6717_v62, %s12031_s6  ;;  %6753 = vrot.lane.b32.xlu1 %v6752_v58, %s12023_s13  ;;  %v9479_v49 = vpop.permute.xlu0 %6633  ;;  %v9481_v5 = vpop.permute.xlu2 %6668 }
 0x39f   : > { %v1863_v63 = vpop.permute.xlu1 %1862  ;;  %12186 = vst [vmem:[#allocation21_spill] sm:$0xff] %v9481_v5 }
 0x3a0   : > { %v1868_v15 = vsel %vm1864_vm10, %v1861_v12, %v1863_v63  ;;  %vm4937_vm10 = vcmask 1042434  }
 0x3a1   : > { %5903 = vmatmul.msk.f32.gmra.mxu3 %vm974_vm1, %v1865_v56 }
 0x3a3   : > { %v2038_v33 = vpop.f32.mrf.mxu3 }
 0x3a5   : > { %6758 = vrot.lane.b32.xlu2 %v6752_v58, %s12031_s6 }
 0x3a6   : > { %6763 = vrot.lane.b32.xlu0 %v6752_v58, %s12025_s30  ;;  %6768 = vrot.lane.b32.xlu1 %v6752_v58, %s12027_s12  ;;  %v9487_v52 = vpop.permute.xlu0 %6648 }
 0x3a7   : > { %v1896_v25 = vpop.permute.xlu1 %1895 }
 0x3a8   : > { %v1901_v55 = vsel %vm1897_vm11, %v1894_v57, %v1896_v25  ;;  %vm4940_vm11 = vcmask 1043459  }
 0x3a9   : > { %5904 = vmatmul.msk.f32.gmra.mxu3 %vm974_vm1, %v1866_v4 }
 0x3ab   : > { %v2041_v61 = vpop.f32.mrf.mxu3 }
 0x3ac   : > { %v6792_v20 = vpack.i.bf16 %v2041_v61, %v2038_v33 }
 0x3ad   : > { %6773 = vrot.lane.b32.xlu2 %v6752_v58, %s12183_s25 }
 0x3ae   : > { %6778 = vrot.lane.b32.xlu0 %v6752_v58, %s12029_s9  ;;  %6783 = vrot.lane.b32.xlu1 %v6752_v58, %s12184_s14  ;;  %v9499_v13 = vpop.permute.xlu0 %6658 }
 0x3af   : > { %v9485_v27 = vpop.permute.xlu1 %6623 }
 0x3b1   : > { %5905 = vmatmul.msk.f32.gmra.mxu3 %vm974_vm1, %v1867_v6 }
 0x3b5   : > { %6788 = vrot.lane.b32.xlu2 %v6792_v20, %s12023_s13  ;;  %s12039_s13 = smov 102  }
 0x3b6   : > { %6793 = vrot.lane.b32.xlu0 %v6792_v20, %s12031_s6  ;;  %6798 = vrot.lane.b32.xlu1 %v6792_v20, %s12025_s30  ;;  %s12035_s30 = smov 101   ;;  %s12037_s6 = smov 100   ;;  %v9512_v1 = vpop.permute.xlu0 %6673 }
 0x3b7   : > { %v9497_v39 = vpop.permute.xlu1 %6638 }
 0x3b8   : > { %12187 = vst [vmem:[#allocation22_spill] sm:$0xff] %v9497_v39 }
 0x3b9   : > { %5906 = vmatmul.msk.f32.gmra.mxu3 %vm974_vm1, %v1868_v15 }
 0x3bd   : > { %6803 = vrot.lane.b32.xlu2 %v6792_v20, %s12027_s12  ;;  %s12188_s12 = smov 64  }
 0x3be   : > { %6808 = vrot.lane.b32.xlu0 %v6792_v20, %s12183_s25  ;;  %6813 = vrot.lane.b32.xlu1 %v6792_v20, %s12029_s9  ;;  %s12189_s9 = smov 63  }
 0x3bf   : > { %v9508_v59 = vpop.permute.xlu1 %6663 }
 0x3c0   : > { %v6665_v39 = vunpack.i.l.bf16 %v9508_v59 }
 0x3c1   : > { %5907 = vmatmul.msk.f32.gmra.mxu3 %vm974_vm1, %v1870_v10 }
 0x3c5   : > { %6818 = vrot.lane.b32.xlu2 %v6792_v20, %s12184_s14 }
 0x3c7   : > { %v9519_v31 = vpop.permute.xlu1 %6678 }
 0x3c9   : > { %5908 = vmatmul.msk.f32.gmra.mxu3 %vm974_vm1, %v1872_v30 }
 0x3d1   : > { %5909 = vmatmul.msk.f32.gmra.mxu3 %vm974_vm1, %v1874_v54 }
 0x3d7   : > { %v9489_v18 = vpop.permute.xlu2 %6683 }
 0x3d9   : > { %5910 = vmatmul.msk.f32.gmra.mxu3 %vm974_vm1, %v1876_v19 }
 0x3db   : > { %v2044_v34 = vpop.f32.mrf.mxu3 }
 0x3df   : > { %v9503_v14 = vpop.permute.xlu2 %6698 }
 0x3e1   : > { %5911 = vmatmul.msk.f32.gmra.mxu3 %vm974_vm1, %v1898_v38 }
 0x3e3   : > { %v2047_v32 = vpop.f32.mrf.mxu3 }
 0x3e4   : > { %v6822_v9 = vpack.i.bf16 %v2047_v32, %v2044_v34 }
 0x3e6   : > { %6823 = vrot.lane.b32.xlu0 %v6822_v9, %s12039_s13  ;;  %6833 = vrot.lane.b32.xlu2 %v6822_v9, %s12035_s30 }
 0x3e7   : > { %6828 = vrot.lane.b32.xlu1 %v6822_v9, %s12184_s14  ;;  %v9514_v43 = vpop.permute.xlu2 %6713 }
 0x3e9   : > { %5912 = vmatmul.msk.f32.gmra.mxu3 %vm974_vm1, %v1899_v40 }
 0x3eb   : > { %v2050_v60 = vpop.f32.mrf.mxu3 }
 0x3ee   : > { %6838 = vrot.lane.b32.xlu0 %v6822_v9, %s12188_s12  ;;  %6848 = vrot.lane.b32.xlu2 %v6822_v9, %s12189_s9 }
 0x3ef   : > { %6843 = vrot.lane.b32.xlu1 %v6822_v9, %s12037_s6  ;;  %v9521_v35 = vpop.permute.xlu0 %6688  ;;  %v9524_v17 = vpop.permute.xlu2 %6728 }
 0x3f0   : > { %v9528_v41 = vpop.permute.xlu1 %6693 }
 0x3f1   : > { %5913 = vmatmul.msk.f32.gmra.mxu3 %vm974_vm1, %v1900_v26 }
 0x3f6   : > { %6853 = vrot.lane.b32.xlu0 %v6822_v9, %s12051_s3 }
 0x3f7   : > { %v9531_v3 = vpop.permute.xlu0 %6703  ;;  %v9533_v42 = vpop.permute.xlu2 %6743 }
 0x3f8   : > { %12190 = vst [vmem:[#allocation23_spill] sm:$0xff] %v9531_v3  ;;  %v9538_v10 = vpop.permute.xlu1 %6708  ;;  %v6701_v3 = vunpack.i.h.bf16 %v9503_v14 }
 0x3f9   : > { %5914 = vmatmul.msk.f32.gmra.mxu3 %vm974_vm1, %v1901_v55  ;;  %12192 = vst [vmem:[#allocation24_spill] sm:$0xff] %v9538_v10 }
 0x3fc   : > { %v2053_v36 = vpop.f32.mrf.mxu3 }
 0x3fd   : > { %v6867_v51 = vpack.i.bf16 %v2053_v36, %v2050_v60 }
 0x3ff   : > { %6868 = vrot.lane.b32.xlu0 %v6867_v51, %s12035_s30  ;;  %6863 = vrot.lane.b32.xlu2 %v6867_v51, %s12184_s14  ;;  %s12191_s30 = smov 8   ;;  %v9542_v50 = vpop.permute.xlu2 %6758 }
 0x400   : > { %6858 = vrot.lane.b32.xlu1 %v6867_v51, %s12039_s13  ;;  %v9540_v21 = vpop.permute.xlu0 %6718  ;;  %s12047_s13 = smov 98   ;;  %v9547_v46 = vpop.permute.xlu1 %6723 }
 0x404   : > { %v2056_v24 = vpop.f32.mrf.mxu3 }
 0x407   : > { %6883 = vrot.lane.b32.xlu0 %v6867_v51, %s12189_s9  ;;  %6878 = vrot.lane.b32.xlu2 %v6867_v51, %s12037_s6  ;;  %s12193_s6 = smov 6   ;;  %v9554_v58 = vpop.permute.xlu2 %6773 }
 0x408   : > { %6873 = vrot.lane.b32.xlu1 %v6867_v51, %s12188_s12  ;;  %v9549_v47 = vpop.permute.xlu0 %6733  ;;  %12196 = vst [vmem:[#allocation25_spill] sm:$0xff] %v9554_v58  ;;  %v9556_v29 = vpop.permute.xlu1 %6738 }
 0x409   : > { %12197 = vst [vmem:[#allocation26_spill] sm:$0xff] %v9556_v29 }
 0x40c   : > { %v2059_v48 = vpop.f32.mrf.mxu3 }
 0x40d   : > { %v6897_v62 = vpack.i.bf16 %v2059_v48, %v2056_v24 }
 0x40f   : > { %6898 = vrot.lane.b32.xlu0 %v6897_v62, %s12051_s3  ;;  %6893 = vrot.lane.b32.xlu2 %v6897_v62, %s12191_s30  ;;  %v9563_v22 = vpop.permute.xlu2 %6788 }
 0x410   : > { %6888 = vrot.lane.b32.xlu1 %v6867_v51, %s12051_s3  ;;  %v9560_v54 = vpop.permute.xlu0 %6748  ;;  %v9567_v4 = vpop.permute.xlu1 %6753 }
 0x414   : > { %v2062_v12 = vpop.f32.mrf.mxu3 }
 0x417   : > { %6913 = vrot.lane.b32.xlu0 %v6897_v62, %s12193_s6  ;;  %6908 = vrot.lane.b32.xlu2 %v6897_v62, %s12047_s13  ;;  %v9572_v6 = vpop.permute.xlu2 %6803 }
 0x418   : > { %6903 = vrot.lane.b32.xlu1 %v6897_v62, %s12194_s15  ;;  %v9570_v8 = vpop.permute.xlu0 %6763  ;;  %v9575_v20 = vpop.permute.xlu1 %6768 }
 0x419   : > { %v6770_v10 = vunpack.i.l.bf16 %v9575_v20 }
 0x41c   : > { %v2065_v2 = vpop.f32.mrf.mxu3 }
 0x41d   : > { %v6927_v53 = vpack.i.bf16 %v2065_v2, %v2062_v12 }
 0x41f   : > { %6928 = vrot.lane.b32.xlu0 %v6927_v53, %s12191_s30  ;;  %6923 = vrot.lane.b32.xlu2 %v6897_v62, %s12195_s27  ;;  %s8091_s30 = smov 41   ;;  %v9579_v15 = vpop.permute.xlu2 %6818 }
 0x420   : > { %6918 = vrot.lane.b32.xlu1 %v6897_v62, %s12049_s18  ;;  %v9577_v19 = vpop.permute.xlu0 %6778  ;;  %v9583_v30 = vpop.permute.xlu1 %6783 }
 0x421   : > { %12198 = vst [vmem:[#allocation27_spill] sm:$0xff] %v9577_v19  ;;  %v6771_v19 = vunpack.i.h.bf16 %v9575_v20  ;;  %v6661_v20 = vunpack.i.h.bf16 %v9499_v13 }
 0x424   : > { %v2068_v56 = vpop.f32.mrf.mxu3 }
 0x427   : > { %6943 = vrot.lane.b32.xlu0 %v6927_v53, %s12047_s13  ;;  %6938 = vrot.lane.b32.xlu2 %v6927_v53, %s12194_s15  ;;  %s8092_s15 = smov 42   ;;  %s8093_s13 = smov 40  }
 0x428   : > { %6933 = vrot.lane.b32.xlu1 %v6927_v53, %s12051_s3  ;;  %v9585_v25 = vpop.permute.xlu0 %6793  ;;  %s8094_s3 = smov 39   ;;  %v9591_v32 = vpop.permute.xlu1 %6798 }
 0x42c   : > { %v2071_v33 = vpop.f32.mrf.mxu3 }
 0x42d   : > { %v6972_v61 = vpack.i.bf16 %v2071_v33, %v2068_v56 }
 0x42f   : > { %6958 = vrot.lane.b32.xlu0 %v6927_v53, %s12195_s27  ;;  %6953 = vrot.lane.b32.xlu2 %v6927_v53, %s12049_s18  ;;  %s12200_s18 = smov 4  }
 0x430   : > { %6948 = vrot.lane.b32.xlu1 %v6927_v53, %s12193_s6  ;;  %s12199_s6 = smov 3   ;;  %v9596_v40 = vpop.permute.xlu0 %6808  ;;  %v9603_v55 = vpop.permute.xlu1 %6813 }
 0x431   : > { %12201 = vst [vmem:[#allocation28_spill] sm:$0xff] %v9596_v40  ;;  %v6700_v40 = vunpack.i.l.bf16 %v9503_v14  ;;  %v6635_v14 = vunpack.i.l.bf16 %v9479_v49 }
 0x434   : > { %v2074_v0 = vpop.f32.mrf.mxu3 }
 0x437   : > { %6973 = vrot.lane.b32.xlu0 %v6972_v61, %s8091_s30  ;;  %6968 = vrot.lane.b32.xlu2 %v6972_v61, %s12195_s27 }
 0x438   : > { %6963 = vrot.lane.b32.xlu1 %v6972_v61, %s8092_s15 }
 0x43c   : > { %v2077_v63 = vpop.f32.mrf.mxu3 }
 0x43d   : > { %v7002_v57 = vpack.i.bf16 %v2077_v63, %v2074_v0 }
 0x43f   : > { %6988 = vrot.lane.b32.xlu0 %v6972_v61, %s12199_s6  ;;  %6983 = vrot.lane.b32.xlu2 %v6972_v61, %s8093_s13 }
 0x440   : > { %6978 = vrot.lane.b32.xlu1 %v6972_v61, %s12200_s18  ;;  %v9587_v34 = vpop.permute.xlu2 %6833 }
 0x444   : > { %v2080_v23 = vpop.f32.mrf.mxu3 }
 0x447   : > { %7003 = vrot.lane.b32.xlu0 %v7002_v57, %s12195_s27  ;;  %6998 = vrot.lane.b32.xlu2 %v7002_v57, %s8092_s15  ;;  %s12203_s27 = smov 76   ;;  %s12206_s15 = smov 74  }
 0x448   : > { %6993 = vrot.lane.b32.xlu1 %v6972_v61, %s8094_s3  ;;  %v9598_v26 = vpop.permute.xlu2 %6848 }
 0x449   : > { %12202 = vst [vmem:[#allocation29_spill] sm:$0xff] %v9598_v26 }
 0x44c   : > { %v2083_v38 = vpop.f32.mrf.mxu3 }
 0x44d   : > { %v9593_v9 = vpack.i.bf16 %v2083_v38, %v2080_v23 }
 0x44f   : > { %7018 = vrot.lane.b32.xlu0 %v7002_v57, %s8093_s13  ;;  %7013 = vrot.lane.b32.xlu2 %v7002_v57, %s12200_s18  ;;  %s12204_s13 = smov 75   ;;  %s8095_s18 = smov 38  }
 0x450   : > { %7008 = vrot.lane.b32.xlu1 %v7002_v57, %s8091_s30  ;;  %s8096_s30 = smov 37  }
 0x454   : > { %v2086_v60 = vpop.f32.mrf.mxu3 }
 0x457   : > { %7028 = vrot.lane.b32.xlu2 %v7002_v57, %s8094_s3  ;;  %7033 = vrot.lane.b32.xlu0 %v9593_v9, %s12203_s27 }
 0x458   : > { %7023 = vrot.lane.b32.xlu1 %v7002_v57, %s12199_s6  ;;  %v9606_v36 = vpop.permute.xlu0 %6823  ;;  %s12210_s6 = smov 73  }
 0x459   : > { %v9608_v51 = vpop.permute.xlu2 %6863  ;;  %v9613_v48 = vpop.permute.xlu1 %6828 }
 0x45c   : > { %v2089_v24 = vpop.f32.mrf.mxu3 }
 0x45d   : > { %v9621_v53 = vpack.i.bf16 %v2089_v24, %v2086_v60  ;;  %v6736_v60 = vunpack.i.h.bf16 %v9549_v47  ;;  %v6735_v24 = vunpack.i.l.bf16 %v9549_v47  ;;  %v6805_v47 = vunpack.i.l.bf16 %v9572_v6 }
 0x45f   : > { %7043 = vrot.lane.b32.xlu2 %v9593_v9, %s12204_s13  ;;  %7048 = vrot.lane.b32.xlu0 %v9593_v9, %s8095_s18 }
 0x460   : > { %7038 = vrot.lane.b32.xlu1 %v9593_v9, %s8094_s3  ;;  %v9617_v62 = vpop.permute.xlu0 %6838 }
 0x461   : > { %v9619_v12 = vpop.permute.xlu2 %6878  ;;  %v9632_v0 = vpop.permute.xlu1 %6843 }
 0x462   : > { %12205 = vst [vmem:[#allocation30_spill] sm:$0xff] %v9619_v12 }
 0x463   : > { %12208 = vst [vmem:[#allocation32_spill] sm:$0xff] %v9632_v0 }
 0x464   : > { %v2092_v2 = vpop.f32.mrf.mxu3 }
 0x467   : > { %7058 = vrot.lane.b32.xlu2 %v9593_v9, %s8096_s30  ;;  %7073 = vrot.lane.b32.xlu0 %v9621_v53, %s12204_s13  ;;  %s8099_s13 = smov 109  }
 0x468   : > { %7053 = vrot.lane.b32.xlu1 %v9593_v9, %s12206_s15  ;;  %v9628_v56 = vpop.permute.xlu0 %6853 }
 0x469   : > { %v9630_v33 = vpop.permute.xlu2 %6893 }
 0x46a   : > { %12207 = vst [vmem:[#allocation31_spill] sm:$0xff] %v9630_v33  ;;  %v6806_v33 = vunpack.i.h.bf16 %v9572_v6  ;;  %v12093_v6 = vunpack.i.h.bf16 %v9617_v62 }
 0x46c   : > { %v2095_v61 = vpop.f32.mrf.mxu3 }
 0x46d   : > { %v9645_v38 = vpack.i.bf16 %v2095_v61, %v2092_v2  ;;  %v6666_v2 = vunpack.i.h.bf16 %v9508_v59 }
 0x46f   : > { %7088 = vrot.lane.b32.xlu0 %v9621_v53, %s8096_s30  ;;  %7068 = vrot.lane.b32.xlu2 %v9621_v53, %s8094_s3  ;;  %v2599_v26 = vsel %vm2216_vm12, %v6666_v2, %v6736_v60  ;;  %v6731_v2 = vunpack.i.h.bf16 %v9524_v17  ;;  %s8097_s3 = smov 108   ;;  %s12213_s30 = smov 71  }
 0x470   : > { %7063 = vrot.lane.b32.xlu1 %v9621_v53, %s12203_s27  ;;  %v2603_v59 = vsel %vm974_vm1, %v2599_v26, %v6806_v33  ;;  %v12092_v26 = vunpack.i.l.bf16 %v9617_v62  ;;  %s8098_s27 = smov 110  }
 0x471   : > { %v9639_v63 = vpop.permute.xlu0 %6868  ;;  %v9641_v23 = vpop.permute.xlu2 %6908 }
 0x472   : > { %12209 = vst [vmem:[#allocation33_spill] sm:$0xff] %v9641_v23  ;;  %v9643_v57 = vpop.permute.xlu1 %6858  ;;  %v6636_v23 = vunpack.i.h.bf16 %v9479_v49  ;;  %v12082_v33 = vunpack.i.h.bf16 %v9639_v63 }
 0x474   : > { %v9654_v0 = vpop.f32.mrf.mxu3 }
 0x477   : > { %7083 = vrot.lane.b32.xlu2 %v9621_v53, %s12206_s15  ;;  %7098 = vrot.lane.b32.xlu0 %v9645_v38, %s12210_s6  ;;  %s8100_s15 = smov 107  }
 0x478   : > { %7078 = vrot.lane.b32.xlu1 %v9621_v53, %s8095_s18  ;;  %s12212_s18 = smov 72  }
 0x479   : > { %v9659_v61 = vpop.permute.xlu0 %6883  ;;  %v9661_v58 = vpop.permute.xlu2 %6923 }
 0x47a   : > { %12211 = vst [vmem:[#allocation34_spill] sm:$0xff] %v9661_v58  ;;  %v9666_v12 = vpop.permute.xlu1 %6873  ;;  %v2598_v58 = vsel %vm2216_vm12, %v6665_v39, %v6735_v24  ;;  %v6801_v39 = vunpack.i.h.bf16 %v9591_v32 }
 0x47b   : > { %v12068_v5 = vunpack.i.h.bf16 %v9666_v12  ;;  %v12069_v29 = vunpack.i.l.bf16 %v9666_v12  ;;  %v2602_v60 = vsel %vm974_vm1, %v2598_v58, %v6805_v47 }
 0x47d   : > { %v2607_v7 = vsel %vm2225_vm13, %v2603_v59, %v12068_v5  ;;  %v2606_v49 = vsel %vm2225_vm13, %v2602_v60, %v12069_v29  ;;  %v6730_v59 = vunpack.i.l.bf16 %v9524_v17  ;;  %v2101_v5 = vpop.f32.mrf.mxu3  ;;  %v6696_v17 = vunpack.i.h.bf16 %v9528_v41 }
 0x47e   : > { %3029 = vmatpush.msra.mxu0 %v2607_v7  ;;  %5992 = vmatpush.msrb.mxu2 %v2607_v7  ;;  %v2597_v7 = vsel %vm2216_vm12, %v6636_v23, %v6701_v3  ;;  %v2596_v23 = vsel %vm2216_vm12, %v6635_v14, %v6700_v40  ;;  %v6660_v40 = vunpack.i.l.bf16 %v9499_v13  ;;  %v12070_v14 = vunpack.i.l.bf16 %v9639_v63 }
 0x47f   : > { %7113 = vrot.lane.b32.xlu0 %v9645_v38, %s8097_s3  ;;  %7093 = vrot.lane.b32.xlu2 %v9645_v38, %s8098_s27  ;;  %v2601_v58 = vsel %vm974_vm1, %v2597_v7, %v6771_v19  ;;  %v2600_v19 = vsel %vm974_vm1, %v2596_v23, %v6770_v10  ;;  %v6631_v7 = vunpack.i.h.bf16 %v9467_v44  ;;  %v6695_v23 = vunpack.i.l.bf16 %v9528_v41 }
 0x480   : > { %7103 = vrot.lane.b32.xlu1 %v9645_v38, %s8099_s13  ;;  %3030 = vmatpush.msra.mxu0 %v2606_v49  ;;  %v2605_v3 = vsel %vm2225_vm13, %v2601_v58, %v12093_v6  ;;  %v2604_v29 = vsel %vm2225_vm13, %v2600_v19, %v12092_v26  ;;  %v2475_v58 = vsel %vm2216_vm12, %v6661_v20, %v6731_v2  ;;  %v12078_v2 = vunpack.i.h.bf16 %v9587_v34  ;;  %v12242_v6 = vld [vmem:[#allocation31_spill] sm:$0xff] }
 0x481   : > { %5993 = vmatpush.msrb.mxu2 %v2606_v49  ;;  %v9698_v24 = vpop.permute.xlu0 %6898  ;;  %v9700_v47 = vpop.permute.xlu2 %6938  ;;  %v6800_v49 = vunpack.i.l.bf16 %v9591_v32  ;;  %v2479_v10 = vsel %vm974_vm1, %v2475_v58, %v6801_v39  ;;  %v6766_v32 = vunpack.i.h.bf16 %v9570_v8  ;;  %v9727_v13 = vpack.i.bf16 %v2101_v5, %v9654_v0 }
 0x482   : > { %v9707_v60 = vpop.permute.xlu1 %6888  ;;  %3031 = vmatpush.msra.mxu0 %v2605_v3  ;;  %v2474_v20 = vsel %vm2216_vm12, %v6660_v40, %v6730_v59  ;;  %v6630_v19 = vunpack.i.l.bf16 %v9467_v44  ;;  %v6765_v39 = vunpack.i.l.bf16 %v9570_v8  ;;  %v12077_v58 = vunpack.i.l.bf16 %v9587_v34 }
 0x483   : > { %5994 = vmatpush.msrb.mxu2 %v2605_v3  ;;  %v2483_v3 = vsel %vm2225_vm13, %v2479_v10, %v12082_v33  ;;  %v2478_v41 = vsel %vm974_vm1, %v2474_v20, %v6800_v49  ;;  %v2473_v5 = vsel %vm2216_vm12, %v6631_v7, %v6696_v17  ;;  %v6725_v8 = vunpack.i.l.bf16 %v9547_v46 }
 0x484   : > { %3032 = vmatpush.msra.mxu0 %v2604_v29  ;;  %v2482_v44 = vsel %vm2225_vm13, %v2478_v41, %v12070_v14  ;;  %v6796_v0 = vunpack.i.h.bf16 %v9585_v25  ;;  %v2477_v49 = vsel %vm974_vm1, %v2473_v5, %v6766_v32  ;;  %v6656_v40 = vunpack.i.h.bf16 %v9476_v45 }
 0x485   : > { %5995 = vmatpush.msrb.mxu2 %v2604_v29  ;;  %v6726_v29 = vunpack.i.h.bf16 %v9547_v46  ;;  %v12072_v10 = vunpack.i.h.bf16 %v9608_v51  ;;  %v2481_v46 = vsel %vm2225_vm13, %v2477_v49, %v12078_v2  ;;  %v2472_v7 = vsel %vm2216_vm12, %v6630_v19, %v6695_v23  ;;  %v12227_v2 = vld [vmem:[#allocation30_spill] sm:$0xff] }
 0x486   : > { %3033 = vmatpush.msra.mxu0 %v2483_v3  ;;  %v6655_v17 = vunpack.i.l.bf16 %v9476_v45  ;;  %v6626_v41 = vunpack.i.h.bf16 %v9485_v27  ;;  %v6795_v32 = vunpack.i.l.bf16 %v9585_v25  ;;  %v6691_v5 = vunpack.i.h.bf16 %v9521_v35 }
 0x487   : > { %5996 = vmatpush.msrb.mxu2 %v2483_v3  ;;  %7108 = vrot.lane.b32.xlu2 %v9645_v38, %s12212_s18  ;;  %v12071_v14 = vunpack.i.l.bf16 %v9608_v51  ;;  %v2351_v23 = vsel %vm2216_vm12, %v6656_v40, %v6726_v29  ;;  %v6690_v45 = vunpack.i.l.bf16 %v9521_v35  ;;  %v6761_v19 = vunpack.i.h.bf16 %v9542_v50 }
 0x488   : > { %7118 = vrot.lane.b32.xlu1 %v9645_v38, %s12213_s30  ;;  %7123 = vrot.lane.b32.xlu0 %v9727_v13, %s8098_s27  ;;  %v2355_v25 = vsel %vm974_vm1, %v2351_v23, %v6796_v0  ;;  %v6760_v29 = vunpack.i.l.bf16 %v9542_v50  ;;  %v6721_v40 = vunpack.i.h.bf16 %v9540_v21  ;;  %v12089_v0 = vunpack.i.l.bf16 %v9613_v48  ;;  %s8103_s27 = smov 86  }
 0x489   : > { %3034 = vmatpush.msra.mxu0 %v2482_v44  ;;  %5997 = vmatpush.msrb.mxu2 %v2482_v44  ;;  %v9747_v59 = vpop.permute.xlu0 %6913  ;;  %v9752_v3 = vpop.permute.xlu2 %6953  ;;  %v2476_v44 = vsel %vm974_vm1, %v2472_v7, %v6765_v39  ;;  %v2350_v39 = vsel %vm2216_vm12, %v6655_v17, %v6725_v8  ;;  %v2359_v7 = vsel %vm2225_vm13, %v2355_v25, %v12072_v10  ;;  %v6791_v8 = vunpack.i.h.bf16 %v9563_v22 }
 0x48a   : > { %12214 = vst [vmem:[#allocation35_spill] sm:$0xff] %v9747_v59  ;;  %v9754_v20 = vpop.permute.xlu1 %6903  ;;  %v2480_v49 = vsel %vm2225_vm13, %v2476_v44, %v12077_v58  ;;  %v6625_v44 = vunpack.i.l.bf16 %v9485_v27  ;;  %v2354_v35 = vsel %vm974_vm1, %v2350_v39, %v6795_v32  ;;  %v2349_v50 = vsel %vm2216_vm12, %v6626_v41, %v6691_v5 }
 0x48b   : > { %3035 = vmatpush.msra.mxu0 %v2481_v46  ;;  %5998 = vmatpush.msrb.mxu2 %v2481_v46  ;;  %v12088_v46 = vunpack.i.h.bf16 %v9613_v48  ;;  %v2358_v27 = vsel %vm2225_vm13, %v2354_v35, %v12071_v14  ;;  %v2353_v32 = vsel %vm974_vm1, %v2349_v50, %v6761_v19  ;;  %v6720_v5 = vunpack.i.l.bf16 %v9540_v21 }
 0x48c   : > { %v2348_v41 = vsel %vm2216_vm12, %v6625_v44, %v6690_v45  ;;  %v6686_v50 = vunpack.i.h.bf16 %v9489_v18  ;;  %v12076_v45 = vunpack.i.l.bf16 %v9643_v57  ;;  %v6651_v44 = vunpack.i.h.bf16 %v9487_v52 }
 0x48d   : > { %3036 = vmatpush.msra.mxu0 %v2480_v49  ;;  %5999 = vmatpush.msrb.mxu2 %v2480_v49  ;;  %v12075_v49 = vunpack.i.h.bf16 %v9643_v57  ;;  %v2357_v25 = vsel %vm2225_vm13, %v2353_v32, %v12088_v46  ;;  %v2352_v39 = vsel %vm974_vm1, %v2348_v41, %v6760_v29  ;;  %v6685_v32 = vunpack.i.l.bf16 %v9489_v18 }
 0x48e   : > { %v2356_v19 = vsel %vm2225_vm13, %v2352_v39, %v12089_v0  ;;  %v6755_v41 = vunpack.i.l.bf16 %v9567_v4  ;;  %v6821_v18 = vunpack.i.h.bf16 %v9579_v15  ;;  %v12074_v14 = vunpack.i.l.bf16 %v9707_v60 }
 0x48f   : > { %3037 = vmatpush.msra.mxu0 %v2359_v7  ;;  %6000 = vmatpush.msrb.mxu2 %v2359_v7  ;;  %v6790_v7 = vunpack.i.l.bf16 %v9563_v22  ;;  %v6756_v22 = vunpack.i.h.bf16 %v9567_v4  ;;  %v6786_v10 = vunpack.i.h.bf16 %v9583_v30 }
 0x490   : > { %7133 = vrot.lane.b32.xlu2 %v9727_v13, %s8099_s13  ;;  %7128 = vrot.lane.b32.xlu1 %v9727_v13, %s12210_s6  ;;  %s12301_s13 = smov 120  }
 0x491   : > { %7138 = vrot.lane.b32.xlu0 %v9727_v13, %s12212_s18  ;;  %3038 = vmatpush.msra.mxu0 %v2358_v27  ;;  %v9794_v17 = vpop.permute.xlu0 %6928  ;;  %v9807_v35 = vpop.permute.xlu2 %6968  ;;  %s12127_s18 = smov 26  }
 0x492   : > { %6001 = vmatpush.msrb.mxu2 %v2358_v27  ;;  %v9798_v23 = vpop.permute.xlu1 %6918  ;;  %v2220_v27 = vsel %vm2216_vm12, %v9405_v28, %v6721_v40  ;;  %v12095_v28 = vunpack.i.h.bf16 %v9606_v36  ;;  %v2219_v40 = vsel %vm2216_vm12, %v9399_v11, %v6720_v5  ;;  %v2218_v5 = vsel %vm2216_vm12, %v9388_v16, %v6686_v50 }
 0x493   : > { %3039 = vmatpush.msra.mxu0 %v2357_v25  ;;  %v2224_v21 = vsel %vm974_vm1, %v2220_v27, %v6791_v8  ;;  %v6751_v8 = vunpack.i.h.bf16 %v9560_v54  ;;  %v2223_v39 = vsel %vm974_vm1, %v2219_v40, %v6790_v7  ;;  %v6681_v7 = vunpack.i.h.bf16 %v9519_v31 }
 0x494   : > { %6002 = vmatpush.msrb.mxu2 %v2357_v25  ;;  %v2229_v29 = vsel %vm2225_vm13, %v2224_v21, %v12075_v49  ;;  %v6650_v25 = vunpack.i.l.bf16 %v9487_v52  ;;  %v2228_v11 = vsel %vm2225_vm13, %v2223_v39, %v12076_v45  ;;  %v6750_v27 = vunpack.i.l.bf16 %v9560_v54 }
 0x495   : > { %3040 = vmatpush.msra.mxu0 %v2356_v19  ;;  %v12073_v21 = vunpack.i.h.bf16 %v9707_v60  ;;  %v6716_v40 = vunpack.i.h.bf16 %v9514_v43  ;;  %v6820_v39 = vunpack.i.l.bf16 %v9579_v15  ;;  %v2217_v50 = vsel %vm2216_vm12, %v9381_v37, %v6685_v32  ;;  %v9870_v32 = vld [vmem:[#allocation10 + $0x30] sm:$0xff] }
 0x496   : > { %6003 = vmatpush.msrb.mxu2 %v2356_v19  ;;  %v12094_v19 = vunpack.i.l.bf16 %v9606_v36  ;;  %v6680_v54 = vunpack.i.l.bf16 %v9519_v31  ;;  %v6715_v15 = vunpack.i.l.bf16 %v9514_v43  ;;  %12216 = vst [vmem:[#allocation37_spill] sm:$0xff] %v9870_v32 }
 0x497   : > { %3041 = vmatpush.msra.mxu0 %v2229_v29 }
 0x498   : > { %6004 = vmatpush.msrb.mxu2 %v2229_v29  ;;  %7158 = vrot.lane.b32.xlu2 %v9727_v13, %s12213_s30  ;;  %s12298_s30 = smov 60  }
 0x499   : > { %7148 = vrot.lane.b32.xlu1 %v9727_v13, %s8097_s3  ;;  %7143 = vrot.lane.b32.xlu0 %v9593_v9, %s12210_s6  ;;  %v9841_v4 = vpop.permute.xlu0 %6943  ;;  %v2222_v9 = vsel %vm974_vm1, %v2218_v5, %v6756_v22  ;;  %v9861_v22 = vld [vmem:[#allocation10] sm:$0xff]  ;;  %v2971_v5 = vsel %vm2216_vm12, %v6681_v7, %v6751_v8  ;;  %v2970_v8 = vsel %vm2216_vm12, %v6680_v54, %v6750_v27  ;;  %v6816_v27 = vunpack.i.h.bf16 %v9603_v55 }
 0x49a   : > { %3042 = vmatpush.msra.mxu0 %v2228_v11  ;;  %6005 = vmatpush.msrb.mxu2 %v2228_v11  ;;  %v9848_v29 = vpop.permute.xlu1 %6933  ;;  %v2227_v16 = vsel %vm2225_vm13, %v2222_v9, %v12095_v28  ;;  %v2221_v11 = vsel %vm974_vm1, %v2217_v50, %v6755_v41  ;;  %12215 = vst [vmem:[#allocation36_spill] sm:$0xff] %v9861_v22  ;;  %v12091_v9 = vunpack.i.h.bf16 %v9628_v56  ;;  %v6785_v41 = vunpack.i.l.bf16 %v9583_v30 }
 0x49b   : > { %v2226_v37 = vsel %vm2225_vm13, %v2221_v11, %v12094_v19  ;;  %v2975_v31 = vsel %vm974_vm1, %v2971_v5, %v6821_v18  ;;  %v2974_v18 = vsel %vm974_vm1, %v2970_v8, %v6820_v39  ;;  %v2969_v7 = vsel %vm2216_vm12, %v6651_v44, %v6716_v40 }
 0x49c   : > { %3043 = vmatpush.msra.mxu0 %v2227_v16  ;;  %6006 = vmatpush.msrb.mxu2 %v2227_v16  ;;  %v9873_v16 = vpop.permute.xlu2 %6983  ;;  %v2979_v43 = vsel %vm2225_vm13, %v2975_v31, %v12073_v21  ;;  %v6746_v50 = vunpack.i.h.bf16 %v9533_v42  ;;  %v12090_v11 = vunpack.i.l.bf16 %v9628_v56  ;;  %v2978_v5 = vsel %vm2225_vm13, %v2974_v18, %v12074_v14 }
 0x49d   : > { %12217 = vst [vmem:[#allocation38_spill] sm:$0xff] %v9873_v16  ;;  %v6676_v30 = vunpack.i.h.bf16 %v9512_v1  ;;  %v2973_v44 = vsel %vm974_vm1, %v2969_v7, %v6786_v10  ;;  %v6745_v39 = vunpack.i.l.bf16 %v9533_v42  ;;  %v12079_v54 = vunpack.i.h.bf16 %v9659_v61  ;;  %v9918_v7 = vld [vmem:[#allocation10 + $0x10] sm:$0xff] }
 0x49e   : > { %3044 = vmatpush.msra.mxu0 %v2226_v37  ;;  %6007 = vmatpush.msrb.mxu2 %v2226_v37  ;;  %v6675_v10 = vunpack.i.l.bf16 %v9512_v1  ;;  %v6815_v31 = vunpack.i.l.bf16 %v9603_v55  ;;  %v12222_v1 = vld [vmem:[#allocation27_spill] sm:$0xff]  ;;  %v6896_v19 = vunpack.i.h.bf16 %v12242_v6  ;;  %v6895_v28 = vunpack.i.l.bf16 %v12242_v6 }
 0x49f   : > { %3045 = vmatmul.f32.vlgmr.msra.gmra.mxu0 %v9861_v22  ;;  %3054 = vmatmul.f32.vlgmr.msrb.gmra.mxu2 %v9870_v32  ;;  %v2847_v52 = vsel %vm2216_vm12, %v6676_v30, %v6746_v50  ;;  %v1919_v30 = vld [vmem:[%s11941_s7] sm:$0xff]  ;;  %v12246_v22 = vunpack.i.h.bf16 %v9606_v36  ;;  %v6901_v6 = vunpack.i.h.bf16 %v9698_v24 }
 0x4a0   : > { %3062 = vmatpush.msra.mxu2 %v2979_v43  ;;  %7163 = vrot.lane.b32.xlu2 %v9645_v38, %s8100_s15  ;;  %v2977_v38 = vsel %vm2225_vm13, %v2973_v44, %v12091_v9  ;;  %v12219_v43 = vld [vmem:[#allocation24_spill] sm:$0xff]  ;;  %v2851_v55 = vsel %vm974_vm1, %v2847_v52, %v6816_v27  ;;  %v2846_v50 = vsel %vm2216_vm12, %v6675_v10, %v6745_v39  ;;  %v1921_v52 = vld [vmem:[%s11941_s7 + $0x10] sm:$0xff] }
 0x4a1   : > { %7153 = vrot.lane.b32.xlu1 %v9621_v53, %s12210_s6  ;;  %v9896_v40 = vpop.permute.xlu0 %6958  ;;  %7168 = vrot.lane.b32.xlu0 %v9727_v13, %s8100_s15  ;;  %v2968_v53 = vsel %vm2216_vm12, %v6650_v25, %v6715_v15  ;;  %v6711_v8 = vunpack.i.h.bf16 %v12219_v43  ;;  %v12081_v13 = vunpack.i.l.bf16 %v9659_v61  ;;  %12220 = vst [vmem:[#allocation24_spill] sm:$0xff] %v9918_v7  ;;  %v12221_v25 = vld [vmem:[#allocation20_spill] sm:$0xff]  ;;  %v6710_v44 = vunpack.i.l.bf16 %v12219_v43  ;;  %s12125_s6 = smov 94  }
 0x4a2   : > { %3063 = vmatpush.msra.mxu2 %v2978_v5  ;;  %v9905_v37 = vpop.permute.xlu1 %6948  ;;  %v2972_v42 = vsel %vm974_vm1, %v2968_v53, %v6785_v41  ;;  %v6646_v15 = vunpack.i.h.bf16 %v12221_v25  ;;  %v6781_v5 = vunpack.i.h.bf16 %v12222_v1  ;;  %v1920_v41 = vld [vmem:[%s11941_s7 + $0x8] sm:$0xff]  ;;  %v6645_v27 = vunpack.i.l.bf16 %v12221_v25 }
 0x4a3   : > { %12218 = vst [vmem:[#allocation39_spill] sm:$0xff] %v9905_v37  ;;  %v2976_v18 = vsel %vm2225_vm13, %v2972_v42, %v12090_v11  ;;  %v2855_v42 = vsel %vm2225_vm13, %v2851_v55, %v12079_v54  ;;  %v2850_v43 = vsel %vm974_vm1, %v2846_v50, %v6815_v31  ;;  %v12224_v55 = vld [vmem:[#allocation26_spill] sm:$0xff]  ;;  %v12226_v31 = vld [vmem:[#allocation28_spill] sm:$0xff]  ;;  %v12086_v54 = vunpack.i.h.bf16 %v12227_v2 }
 0x4a4   : > { %3064 = vmatpush.msra.mxu2 %v2977_v38  ;;  %v12223_v38 = vld [vmem:[#allocation29_spill] sm:$0xff]  ;;  %v6741_v21 = vunpack.i.h.bf16 %v12224_v55  ;;  %v9945_v10 = vpop.permute.xlu2 %6998  ;;  %v2854_v25 = vsel %vm2225_vm13, %v2850_v43, %v12081_v13  ;;  %v6811_v50 = vunpack.i.h.bf16 %v12226_v31  ;;  %v6740_v58 = vunpack.i.l.bf16 %v12224_v55 }
 0x4a5   : > { %v12080_v53 = vunpack.i.h.bf16 %v12223_v38  ;;  %v12087_v39 = vunpack.i.l.bf16 %v12223_v38  ;;  %v10081_v16 = vsel %vm609_vm0, %v12246_v22, %v6896_v19  ;;  %v6940_v19 = vunpack.i.l.bf16 %v9700_v47 }
 0x4a6   : > { %3065 = vmatpush.msra.mxu2 %v2976_v18  ;;  %v6780_v18 = vunpack.i.l.bf16 %v12222_v1  ;;  %v2845_v1 = vsel %vm2216_vm12, %v6646_v15, %v6711_v8  ;;  %v2844_v15 = vsel %vm2216_vm12, %v6645_v27, %v6710_v44  ;;  %v12230_v44 = vld [vmem:[#allocation22_spill] sm:$0xff] }
 0x4a7   : > { %3048 = vmatmul.f32.gmra.mxu0 %v9918_v7  ;;  %v2849_v49 = vsel %vm974_vm1, %v2845_v1, %v6781_v5  ;;  %v12085_v1 = vunpack.i.l.bf16 %v12227_v2  ;;  %v6641_v27 = vunpack.i.h.bf16 %v12230_v44  ;;  %v6941_v2 = vunpack.i.h.bf16 %v9700_v47 }
 0x4a8   : > { %3066 = vmatpush.msra.mxu2 %v2855_v42  ;;  %3003 = vperm.xlu2 %6620, %v1920_v41   ;;  %v12225_v42 = vld [vmem:[#allocation21_spill] sm:$0xff]  ;;  %v2853_v41 = vsel %vm2225_vm13, %v2849_v49, %v12080_v53  ;;  %v2848_v5 = vsel %vm974_vm1, %v2844_v15, %v6780_v18  ;;  %v9972_v49 = vld [vmem:[#allocation10 + $0x20] sm:$0xff]  ;;  %v6906_v47 = vunpack.i.h.bf16 %v9754_v20 }
 0x4a9   : > { %v6671_v14 = vunpack.i.h.bf16 %v12225_v42  ;;  %2998 = vperm.xlu1 %6619, %v1919_v30   ;;  %v9954_v45 = vpop.permute.xlu0 %6973  ;;  %3008 = vperm.xlu0 %6621, %v1921_v52   ;;  %v6670_v43 = vunpack.i.l.bf16 %v12225_v42  ;;  %v6810_v30 = vunpack.i.l.bf16 %v12226_v31  ;;  %v2852_v52 = vsel %vm2225_vm13, %v2848_v5, %v12087_v39  ;;  %12229 = vst [vmem:[#allocation20_spill] sm:$0xff] %v9972_v49  ;;  %v12231_v42 = vld [vmem:[#allocation25_spill] sm:$0xff] }
 0x4aa   : > { %3067 = vmatpush.msra.mxu2 %v2854_v25  ;;  %v9961_v8 = vpop.permute.xlu1 %6963  ;;  %v12228_v25 = vld [vmem:[#allocation23_spill] sm:$0xff]  ;;  %v6776_v13 = vunpack.i.h.bf16 %v12231_v42 }
 0x4ab   : > { %v6706_v55 = vunpack.i.h.bf16 %v12228_v25  ;;  %v2723_v53 = vsel %vm2216_vm12, %v6671_v14, %v6741_v21  ;;  %v6705_v18 = vunpack.i.l.bf16 %v12228_v25  ;;  %v2722_v5 = vsel %vm2216_vm12, %v6670_v43, %v6740_v58  ;;  %v1922_v14 = vld [vmem:[%s11941_s7 + $0x18] sm:$0xff] }
 0x4ac   : > { %3068 = vmatpush.msra.mxu2 %v2853_v41  ;;  %v2727_v31 = vsel %vm974_vm1, %v2723_v53, %v6811_v50  ;;  %v12232_v41 = vld [vmem:[#allocation32_spill] sm:$0xff]  ;;  %v6775_v21 = vunpack.i.l.bf16 %v12231_v42  ;;  %v2726_v53 = vsel %vm974_vm1, %v2722_v5, %v6810_v30  ;;  %v6640_v50 = vunpack.i.l.bf16 %v12230_v44 }
 0x4ad   : > { %v12084_v15 = vunpack.i.h.bf16 %v12232_v41  ;;  %v2731_v33 = vsel %vm2225_vm13, %v2727_v31, %v12086_v54  ;;  %v12083_v25 = vunpack.i.l.bf16 %v12232_v41  ;;  %v2721_v58 = vsel %vm2216_vm12, %v6641_v27, %v6706_v55  ;;  %v9999_v31 = vpop.permute.xlu2 %7013  ;;  %v10008_v55 = vld [vmem:[#allocation10 + $0x8] sm:$0xff] }
 0x4ae   : > { %3069 = vmatpush.msra.mxu2 %v2852_v52  ;;  %v2730_v52 = vsel %vm2225_vm13, %v2726_v53, %v12085_v1  ;;  %v2725_v43 = vsel %vm974_vm1, %v2721_v58, %v6776_v13  ;;  %v2720_v44 = vsel %vm2216_vm12, %v6640_v50, %v6705_v18  ;;  %12233 = vst [vmem:[#allocation27_spill] sm:$0xff] %v10008_v55  ;;  %v10019_v53 = vld [vmem:[#allocation10 + $0x18] sm:$0xff] }
 0x4af   : > { %3051 = vmatmul.f32.gmra.mxu0 %v9972_v49  ;;  %v2724_v5 = vsel %vm974_vm1, %v2720_v44, %v6775_v21  ;;  %12234 = vst [vmem:[#allocation29_spill] sm:$0xff] %v10019_v53  ;;  %v10039_v44 = vld [vmem:[#allocation10 + $0x38] sm:$0xff]  ;;  %v12245_v49 = vld [vmem:[#allocation34_spill] sm:$0xff] }
 0x4b0   : > { %3070 = vmatpush.msra.mxu2 %v2731_v33  ;;  %v2729_v33 = vsel %vm2225_vm13, %v2725_v43, %v12084_v15  ;;  %v2728_v13 = vsel %vm2225_vm13, %v2724_v5, %v12083_v25  ;;  %12238 = vst [vmem:[#allocation23_spill] sm:$0xff] %v10039_v44  ;;  %v6925_v41 = vunpack.i.l.bf16 %v12245_v49 }
 0x4b1   : > { %3013 = vperm.xlu1 %6619, %v1922_v14   ;;  %v9997_v42 = vpop.permute.xlu0 %6988 }
 0x4b2   : > { %3071 = vmatpush.msra.mxu2 %v2730_v52  ;;  %v10004_v30 = vpop.permute.xlu1 %6978  ;;  %v10029_v52 = vld [vmem:[#allocation10 + $0x28] sm:$0xff] }
 0x4b3   : > { %12236 = vst [vmem:[#allocation21_spill] sm:$0xff] %v10029_v52 }
 0x4b4   : > { %3072 = vmatpush.msra.mxu2 %v2729_v33 }
 0x4b5   : > { %v10021_v18 = vpop.permute.xlu2 %7028 }
 0x4b6   : > { %3073 = vmatpush.msra.mxu2 %v2728_v13 }
 0x4b7   : > { %5915 = vmatmul.msk.f32.vlgmr.msra.gmra.mxu2 %vm3016_vm14, %v10008_v55  ;;  %v6926_v55 = vunpack.i.h.bf16 %v12245_v49 }
 0x4b9   : > { %v10015_v27 = vpop.permute.xlu0 %7003 }
 0x4ba   : > { %v10017_v14 = vpop.permute.xlu1 %6993 }
 0x4bd   : > { %v10031_v58 = vpop.permute.xlu2 %7043 }
 0x4bf   : > { %5916 = vmatmul.msk.f32.gmra.mxu2 %vm3016_vm14, %v10019_v53 }
 0x4c1   : > { %v10025_v21 = vpop.permute.xlu0 %7018 }
 0x4c2   : > { %12235 = vst [vmem:[#allocation26_spill] sm:$0xff] %v10025_v21  ;;  %v10027_v50 = vpop.permute.xlu1 %7008  ;;  %v12249_v21 = vunpack.i.l.bf16 %v9617_v62 }
 0x4c5   : > { %v10043_v5 = vpop.permute.xlu2 %7058 }
 0x4c7   : > { %5917 = vmatmul.msk.f32.gmra.mxu2 %vm3016_vm14, %v10029_v52 }
 0x4c9   : > { %v10035_v43 = vpop.permute.xlu0 %7033 }
 0x4ca   : > { %12237 = vst [vmem:[#allocation28_spill] sm:$0xff] %v10035_v43  ;;  %v10037_v33 = vpop.permute.xlu1 %7023 }
 0x4cd   : > { %v10051_v1 = vpop.permute.xlu2 %7068 }
 0x4cf   : > { %5918 = vmatmul.msk.f32.gmra.mxu2 %vm3016_vm14, %v10039_v44  ;;  %v12243_v44 = vld [vmem:[#allocation33_spill] sm:$0xff] }
 0x4d0   : > { %v6911_v52 = vunpack.i.h.bf16 %v12243_v44  ;;  %v6910_v32 = vunpack.i.l.bf16 %v12243_v44  ;;  %v12247_v44 = vunpack.i.l.bf16 %v9606_v36  ;;  %v6956_v36 = vunpack.i.h.bf16 %v9752_v3 }
 0x4d1   : > { %v10045_v13 = vpop.permute.xlu0 %7048 }
 0x4d2   : > { %v10047_v25 = vpop.permute.xlu1 %7038 }
 0x4d5   : > { %v10059_v0 = vpop.permute.xlu2 %7083 }
 0x4d6   : > { %12240 = vst [vmem:[#allocation25_spill] sm:$0xff] %v10059_v0  ;;  %v12248_v0 = vunpack.i.h.bf16 %v9617_v62  ;;  %v12252_v62 = vunpack.i.l.bf16 %v9613_v48 }
 0x4d8   : > { %v10093_v49 = vsel %vm609_vm0, %v12248_v0, %v6911_v52  ;;  %v12251_v0 = vunpack.i.l.bf16 %v9628_v56 }
 0x4d9   : > { %v10049_v15 = vpop.permute.xlu0 %7073 }
 0x4da   : > { %v10053_v54 = vpop.permute.xlu1 %7053  ;;  %v10111_v52 = vsel %vm609_vm0, %v12251_v0, %v6925_v41  ;;  %v6930_v41 = vunpack.i.l.bf16 %v9794_v17 }
 0x4db   : > { %12239 = vst [vmem:[#allocation22_spill] sm:$0xff] %v10053_v54  ;;  %v6900_v54 = vunpack.i.l.bf16 %v9698_v24  ;;  %v12250_v24 = vunpack.i.h.bf16 %v9628_v56  ;;  %v6931_v56 = vunpack.i.h.bf16 %v9794_v17  ;;  %v12257_v17 = vunpack.i.l.bf16 %v9659_v61 }
 0x4dd   : > { %v10065_v26 = vpop.permute.xlu2 %7093  ;;  %v10104_v22 = vsel %vm609_vm0, %v12250_v24, %v6926_v55  ;;  %v12253_v55 = vunpack.i.h.bf16 %v9613_v48  ;;  %v6971_v48 = vunpack.i.h.bf16 %v9807_v35 }
 0x4de   : > { %12241 = vst [vmem:[#allocation40_spill] sm:$0xff] %v10065_v26  ;;  %v10098_v26 = vsel %vm609_vm0, %v12249_v21, %v6910_v32  ;;  %v2360_v32 = vsel %vm609_vm0, %v12252_v62, %v6900_v54  ;;  %v6905_v21 = vunpack.i.l.bf16 %v9754_v20  ;;  %v12255_v54 = vunpack.i.l.bf16 %v9639_v63 }
 0x4df   : > { %v6970_v20 = vunpack.i.l.bf16 %v9807_v35  ;;  %v12259_v35 = vunpack.i.h.bf16 %v9587_v34 }
 0x4e0   : > { %v10133_v62 = vsel %vm609_vm0, %v12255_v54, %v6940_v19  ;;  %v6920_v19 = vunpack.i.l.bf16 %v9798_v23 }
 0x4e1   : > { %v10055_v39 = vpop.permute.xlu0 %7088  ;;  %v2485_v43 = vsel %vm609_vm0, %v12259_v35, %v6906_v47  ;;  %v6936_v47 = vunpack.i.h.bf16 %v9848_v29 }
 0x4e2   : > { %v10057_v46 = vpop.permute.xlu1 %7063 }
 0x4e5   : > { %v10128_v0 = vpop.permute.xlu2 %7108 }
 0x4e9   : > { %v10061_v11 = vpop.permute.xlu0 %7098 }
 0x4ea   : > { %v10063_v9 = vpop.permute.xlu1 %7078 }
 0x4f1   : > { %v10071_v53 = vpop.permute.xlu0 %7113 }
 0x4f2   : > { %12244 = vst [vmem:[#allocation31_spill] sm:$0xff] %v10071_v53  ;;  %v10074_v7 = vpop.permute.xlu1 %7103  ;;  %v10088_v53 = vsel %vm609_vm0, %v12247_v44, %v6895_v28  ;;  %v6955_v28 = vunpack.i.l.bf16 %v9752_v3  ;;  %v2361_v44 = vsel %vm609_vm0, %v12253_v55, %v6901_v6  ;;  %v12254_v3 = vunpack.i.h.bf16 %v9639_v63 }
 0x4f3   : > { %v6921_v6 = vunpack.i.h.bf16 %v9798_v23  ;;  %v12256_v55 = vunpack.i.h.bf16 %v9659_v61  ;;  %v10177_v35 = vsel %vm2234_vm15, %v2361_v44, %v6971_v48  ;;  %v12267_v44 = vunpack.i.h.bf16 %v9666_v12 }
 0x4f4   : > { %v10124_v24 = vsel %vm609_vm0, %v12254_v3, %v6941_v2  ;;  %v10147_v63 = vsel %vm609_vm0, %v12257_v17, %v6955_v28  ;;  %v12260_v2 = vunpack.i.l.bf16 %v9587_v34  ;;  %v12261_v28 = vunpack.i.l.bf16 %v9643_v57 }
 0x4f5   : > { %v10142_v3 = vsel %vm609_vm0, %v12256_v55, %v6956_v36  ;;  %12258 = vst [vmem:[#allocation33_spill] sm:$0xff] %v10147_v63  ;;  %v6946_v36 = vunpack.i.h.bf16 %v9841_v4  ;;  %v6945_v55 = vunpack.i.l.bf16 %v9841_v4  ;;  %v12262_v17 = vunpack.i.h.bf16 %v9643_v57 }
 0x4f6   : > { %v2484_v59 = vsel %vm609_vm0, %v12260_v2, %v6905_v21  ;;  %v2232_v23 = vsel %vm609_vm0, %v12261_v28, %v6930_v41  ;;  %v6935_v34 = vunpack.i.l.bf16 %v9848_v29  ;;  %v12263_v21 = vunpack.i.h.bf16 %v12223_v38 }
 0x4f7   : > { %v2233_v63 = vsel %vm609_vm0, %v12262_v17, %v6931_v56  ;;  %v6960_v4 = vunpack.i.l.bf16 %v9896_v40  ;;  %v10180_v41 = vsel %vm2234_vm15, %v2360_v32, %v6970_v20  ;;  %v12264_v57 = vunpack.i.l.bf16 %v12223_v38 }
 0x4f8   : > { %v10173_v2 = vsel %vm609_vm0, %v12263_v21, %v6921_v6  ;;  %v6961_v29 = vunpack.i.h.bf16 %v9896_v40  ;;  %v7001_v28 = vunpack.i.h.bf16 %v9945_v10  ;;  %v7000_v6 = vunpack.i.l.bf16 %v9945_v10 }
 0x4f9   : > { %v10185_v56 = vsel %vm609_vm0, %v12264_v57, %v6920_v19  ;;  %v12266_v17 = vunpack.i.l.bf16 %v9666_v12  ;;  %v2611_v32 = vsel %vm609_vm0, %v12267_v44, %v6946_v36  ;;  %v7016_v48 = vunpack.i.h.bf16 %v9999_v31 }
 0x4fa   : > { %v10150_v54 = vpop.permute.xlu0 %7123  ;;  %v10160_v61 = vpop.permute.xlu1 %7118  ;;  %12265 = vst [vmem:[#allocation34_spill] sm:$0xff] %v10185_v56  ;;  %v7015_v38 = vunpack.i.l.bf16 %v9999_v31  ;;  %v12268_v20 = vunpack.i.h.bf16 %v9608_v51  ;;  %v12269_v19 = vunpack.i.l.bf16 %v9608_v51  ;;  %v6976_v12 = vunpack.i.h.bf16 %v9954_v45 }
 0x4fb   : > { %v2610_v21 = vsel %vm609_vm0, %v12266_v17, %v6945_v55  ;;  %v12270_v36 = vunpack.i.l.bf16 %v9707_v60  ;;  %v6975_v17 = vunpack.i.l.bf16 %v9954_v45  ;;  %v12271_v51 = vunpack.i.h.bf16 %v9707_v60 }
 0x4fc   : > { %v10201_v40 = vsel %vm609_vm0, %v12268_v20, %v6936_v47  ;;  %v10206_v10 = vsel %vm609_vm0, %v12269_v19, %v6935_v34  ;;  %v7081_v47 = vunpack.i.h.bf16 %v10063_v9  ;;  %v6966_v44 = vunpack.i.h.bf16 %v9961_v8  ;;  %v10224_v20 = vpop.permute.xlu2 %7133 }
 0x4fd   : > { %v10213_v57 = vsel %vm609_vm0, %v12270_v36, %v6960_v4  ;;  %v10221_v34 = vsel %vm609_vm0, %v12271_v51, %v6961_v29  ;;  %v10227_v19 = vsel %vm2234_vm15, %v2233_v63, %v7001_v28  ;;  %v10230_v4 = vsel %vm2234_vm15, %v2232_v23, %v7000_v6 }
 0x4fe   : > { %v6965_v36 = vunpack.i.l.bf16 %v9961_v8  ;;  %v7080_v45 = vunpack.i.l.bf16 %v10063_v9  ;;  %v2615_v60 = vsel %vm2234_vm15, %v2611_v32, %v7016_v48  ;;  %v2614_v29 = vsel %vm2234_vm15, %v2610_v21, %v7015_v38 }
 0x4ff   : > { %v6981_v51 = vunpack.i.h.bf16 %v10004_v30  ;;  %v2489_v63 = vsel %vm2234_vm15, %v2485_v43, %v6976_v12  ;;  %v7051_v23 = vunpack.i.h.bf16 %v10045_v13  ;;  %v2619_v8 = vsel %vm979_vm9, %v2615_v60, %v7081_v47 }
 0x500   : > { %v2488_v9 = vsel %vm2234_vm15, %v2484_v59, %v6975_v17  ;;  %v6980_v28 = vunpack.i.l.bf16 %v10004_v30  ;;  %v7111_v6 = vunpack.i.h.bf16 %v10128_v0  ;;  %v10248_v32 = vsel %vm2234_vm15, %v10081_v16, %v6966_v44 }
 0x501   : > { %v6991_v43 = vunpack.i.h.bf16 %v9997_v42  ;;  %v7050_v48 = vunpack.i.l.bf16 %v10045_v13  ;;  %v2618_v38 = vsel %vm979_vm9, %v2614_v29, %v7080_v45  ;;  %v10255_v59 = vsel %vm2234_vm15, %v10088_v53, %v6965_v36 }
 0x502   : > { %v10234_v55 = vpop.permute.xlu1 %7128  ;;  %v7011_v30 = vunpack.i.h.bf16 %v10027_v50  ;;  %v7110_v12 = vunpack.i.l.bf16 %v10128_v0  ;;  %v2613_v16 = vsel %vm2234_vm15, %v10093_v49, %v6981_v51  ;;  %v7031_v13 = vunpack.i.h.bf16 %v10021_v18 }
 0x503   : > { %v7139_v31 = vpop.permute.xlu0 %7138  ;;  %v7076_v17 = vunpack.i.h.bf16 %v10049_v15  ;;  %v2617_v53 = vsel %vm979_vm9, %v2613_v16, %v7051_v23  ;;  %v7010_v47 = vunpack.i.l.bf16 %v10027_v50  ;;  %v7136_v44 = vunpack.i.h.bf16 %v10224_v20 }
 0x504   : > { %v7141_v37 = vunpack.i.h.bf16 %v7139_v31  ;;  %v7140_v56 = vunpack.i.l.bf16 %v7139_v31  ;;  %v6990_v31 = vunpack.i.l.bf16 %v9997_v42  ;;  %v2621_v0 = vsel %vm2243_vm2, %v2617_v53, %v7111_v6 }
 0x505   : > { %v7030_v49 = vunpack.i.l.bf16 %v10021_v18  ;;  %v7006_v36 = vunpack.i.h.bf16 %v10015_v27  ;;  %v7075_v45 = vunpack.i.l.bf16 %v10049_v15  ;;  %v7046_v51 = vunpack.i.h.bf16 %v10031_v58 }
 0x506   : > { %3145 = vmatpush.msrb.mxu2 %v7141_v37  ;;  %v2623_v21 = vsel %vm2243_vm2, %v2619_v8, %v7141_v37  ;;  %v2622_v37 = vsel %vm2243_vm2, %v2618_v38, %v7140_v56  ;;  %v7135_v23 = vunpack.i.l.bf16 %v10224_v20  ;;  %v10281_v8 = vpop.permute.xlu2 %7158  ;;  %v2491_v18 = vsel %vm2234_vm15, %v10124_v24, %v7011_v30 }
 0x507   : > { %3087 = vmatpush.msrb.mxu1 %v2623_v21  ;;  %v7005_v15 = vunpack.i.l.bf16 %v10015_v27  ;;  %v2495_v21 = vsel %vm979_vm9, %v2491_v18, %v7076_v17  ;;  %v7106_v20 = vunpack.i.h.bf16 %v10074_v7  ;;  %v7071_v24 = vunpack.i.h.bf16 %v10051_v1 }
 0x508   : > { %3146 = vmatpush.msrb.mxu2 %v7140_v56  ;;  %v2612_v56 = vsel %vm2234_vm15, %v10098_v26, %v6980_v28  ;;  %v7045_v28 = vunpack.i.l.bf16 %v10031_v58  ;;  %v2499_v38 = vsel %vm2243_vm2, %v2495_v21, %v7136_v44  ;;  %v7105_v27 = vunpack.i.l.bf16 %v10074_v7 }
 0x509   : > { %3088 = vmatpush.msrb.mxu1 %v2622_v37  ;;  %v2616_v50 = vsel %vm979_vm9, %v2612_v56, %v7050_v48  ;;  %v6995_v48 = vunpack.i.l.bf16 %v10017_v14  ;;  %v2987_v30 = vsel %vm2234_vm15, %v10221_v34, %v7031_v13  ;;  %v2493_v37 = vsel %vm979_vm9, %v2489_v63, %v7046_v51 }
 0x50a   : > { %3147 = vmatpush.msrb.mxu2 %v7111_v6  ;;  %v2620_v26 = vsel %vm2243_vm2, %v2616_v50, %v7110_v12  ;;  %v6996_v6 = vunpack.i.h.bf16 %v10017_v14  ;;  %v2986_v16 = vsel %vm2234_vm15, %v10213_v57, %v7030_v49  ;;  %v2492_v7 = vsel %vm979_vm9, %v2488_v9, %v7045_v28 }
 0x50b   : > { %v10274_v60 = vpop.permute.xlu0 %7143  ;;  %v10276_v29 = vpop.permute.xlu1 %7148  ;;  %3089 = vmatpush.msrb.mxu1 %v2621_v0  ;;  %v2367_v17 = vsel %vm2234_vm15, %v10201_v40, %v7006_v36  ;;  %v2366_v34 = vsel %vm2234_vm15, %v10206_v10, %v7005_v15  ;;  %v7061_v63 = vunpack.i.h.bf16 %v10043_v5  ;;  %v7131_v57 = vunpack.i.h.bf16 %v10234_v55 }
 0x50c   : > { %3148 = vmatpush.msrb.mxu2 %v7110_v12  ;;  %v2490_v12 = vsel %vm2234_vm15, %v10133_v62, %v7010_v47  ;;  %v10306_v62 = vsel %vm2234_vm15, %v10173_v2, %v6991_v43  ;;  %v2985_v13 = vsel %vm2234_vm15, %v10104_v22, %v6996_v6  ;;  %v2497_v2 = vsel %vm2243_vm2, %v2493_v37, %v7106_v20  ;;  %v12272_v37 = vld [vmem:[#allocation28_spill] sm:$0xff] }
 0x50d   : > { %3090 = vmatpush.msrb.mxu1 %v2620_v26  ;;  %v2494_v58 = vsel %vm979_vm9, %v2490_v12, %v7075_v45  ;;  %v2984_v43 = vsel %vm2234_vm15, %v10111_v52, %v6995_v48  ;;  %v7070_v9 = vunpack.i.l.bf16 %v10051_v1  ;;  %v7041_v40 = vunpack.i.h.bf16 %v10047_v25 }
 0x50e   : > { %3149 = vmatpush.msrb.mxu2 %v7136_v44  ;;  %v2498_v14 = vsel %vm2243_vm2, %v2494_v58, %v7135_v23  ;;  %v2496_v10 = vsel %vm2243_vm2, %v2492_v7, %v7105_v27  ;;  %v2371_v22 = vsel %vm979_vm9, %v2367_v17, %v7071_v24  ;;  %v7130_v47 = vunpack.i.l.bf16 %v10234_v55  ;;  %v10332_v50 = vpop.permute.xlu2 %7163 }
 0x50f   : > { %3091 = vmatpush.msrb.mxu1 %v2499_v38  ;;  %v7146_v44 = vunpack.i.h.bf16 %v10274_v60  ;;  %v7040_v52 = vunpack.i.l.bf16 %v10047_v25  ;;  %v7101_v1 = vunpack.i.h.bf16 %v10061_v11  ;;  %v7145_v55 = vunpack.i.l.bf16 %v10274_v60 }
 0x510   : > { %3150 = vmatpush.msrb.mxu2 %v7135_v23  ;;  %v2375_v51 = vsel %vm2243_vm2, %v2371_v22, %v7131_v57  ;;  %v7026_v25 = vunpack.i.h.bf16 %v10037_v33  ;;  %v7025_v18 = vunpack.i.l.bf16 %v10037_v33  ;;  %v2370_v28 = vsel %vm979_vm9, %v2366_v34, %v7070_v9 }
 0x511   : > { %3092 = vmatpush.msrb.mxu1 %v2498_v14  ;;  %v7100_v60 = vunpack.i.l.bf16 %v10061_v11  ;;  %v2374_v6 = vsel %vm2243_vm2, %v2370_v28, %v7130_v47  ;;  %v2369_v21 = vsel %vm979_vm9, %v10177_v35, %v7041_v40  ;;  %v2989_v48 = vsel %vm979_vm9, %v2985_v13, %v7146_v44 }
 0x512   : > { %3151 = vmatpush.msrb.mxu2 %v7106_v20  ;;  %v7066_v33 = vunpack.i.h.bf16 %v10057_v46  ;;  %v7166_v20 = vunpack.i.h.bf16 %v10332_v50  ;;  %v2368_v11 = vsel %vm979_vm9, %v10180_v41, %v7040_v52  ;;  %v7091_v12 = vunpack.i.h.bf16 %v10055_v39  ;;  %v12275_v52 = vld [vmem:[#allocation26_spill] sm:$0xff] }
 0x513   : > { %v7154_v53 = vpop.permute.xlu1 %7153  ;;  %3093 = vmatpush.msrb.mxu1 %v2497_v2  ;;  %v10326_v0 = vpop.permute.xlu0 %7168  ;;  %v7126_v24 = vunpack.i.h.bf16 %v10150_v54  ;;  %v2373_v35 = vsel %vm2243_vm2, %v2369_v21, %v7101_v1  ;;  %v7065_v58 = vunpack.i.l.bf16 %v10057_v46  ;;  %v7165_v14 = vunpack.i.l.bf16 %v10332_v50  ;;  %v12278_v21 = vld [vmem:[#allocation39_spill] sm:$0xff] }
 0x514   : > { %v7156_v56 = vunpack.i.h.bf16 %v7154_v53  ;;  %v7155_v49 = vunpack.i.l.bf16 %v7154_v53  ;;  %3152 = vmatpush.msrb.mxu2 %v7105_v27  ;;  %v7171_v36 = vunpack.i.h.bf16 %v10326_v0  ;;  %v7170_v45 = vunpack.i.l.bf16 %v10326_v0 }
 0x515   : > { %3094 = vmatpush.msrb.mxu1 %v2496_v10  ;;  %v2988_v27 = vsel %vm979_vm9, %v2984_v43, %v7145_v55  ;;  %v2993_v41 = vsel %vm2243_vm2, %v2989_v48, %v7166_v20  ;;  %v7090_v7 = vunpack.i.l.bf16 %v10055_v39  ;;  %v7125_v17 = vunpack.i.l.bf16 %v10150_v54  ;;  %v12273_v54 = vld [vmem:[#allocation40_spill] sm:$0xff]  ;;  %v12274_v10 = vld [vmem:[#allocation33_spill] sm:$0xff] }
 0x516   : > { %3153 = vmatpush.msrb.mxu2 %v7131_v57  ;;  %v2991_v23 = vsel %vm979_vm9, %v2987_v30, %v7156_v56  ;;  %v2990_v26 = vsel %vm979_vm9, %v2986_v16, %v7155_v49  ;;  %v7161_v30 = vunpack.i.h.bf16 %v10281_v8  ;;  %v7036_v16 = vunpack.i.h.bf16 %v12272_v37 }
 0x517   : > { %3095 = vmatpush.msrb.mxu1 %v2375_v51  ;;  %v2995_v15 = vsel %vm2243_vm2, %v2991_v23, %v7171_v36  ;;  %v2994_v38 = vsel %vm2243_vm2, %v2990_v26, %v7170_v45  ;;  %v2372_v34 = vsel %vm2243_vm2, %v2368_v11, %v7100_v60  ;;  %v7160_v46 = vunpack.i.l.bf16 %v10281_v8  ;;  %v12276_v23 = vld [vmem:[#allocation25_spill] sm:$0xff]  ;;  %v12282_v11 = vld [vmem:[#allocation38_spill] sm:$0xff] }
 0x518   : > { %3120 = vmatpush.msrb.mxu0 %v2995_v15  ;;  %3154 = vmatpush.msrb.mxu2 %v7130_v47  ;;  %v2992_v13 = vsel %vm2243_vm2, %v2988_v27, %v7165_v14  ;;  %v2242_v57 = vsel %vm979_vm9, %v10227_v19, %v7066_v33  ;;  %v2863_v2 = vsel %vm2234_vm15, %v10142_v3, %v7026_v25  ;;  %v7035_v39 = vunpack.i.l.bf16 %v12272_v37  ;;  %v12277_v15 = vld [vmem:[#allocation34_spill] sm:$0xff]  ;;  %v12296_v8 = vld [vmem:[#allocation29_spill] sm:$0xff] }
 0x519   : > { %3096 = vmatpush.msrb.mxu1 %v2374_v6  ;;  %v7096_v43 = vunpack.i.h.bf16 %v12273_v54  ;;  %v2247_v9 = vsel %vm2243_vm2, %v2242_v57, %v7126_v24  ;;  %v2867_v40 = vsel %vm979_vm9, %v2863_v2, %v7091_v12  ;;  %v7121_v53 = vunpack.i.h.bf16 %v10160_v61  ;;  %v12288_v2 = vld [vmem:[#allocation31_spill] sm:$0xff] }
 0x51a   : > { %3121 = vmatpush.msrb.mxu0 %v2994_v38  ;;  %3155 = vmatpush.msrb.mxu2 %v7101_v1  ;;  %v2871_v19 = vsel %vm2243_vm2, %v2867_v40, %v7161_v30  ;;  %v2241_v3 = vsel %vm979_vm9, %v10230_v4, %v7065_v58  ;;  %v2862_v22 = vsel %vm2234_vm15, %v12274_v10, %v7025_v18  ;;  %v7060_v47 = vunpack.i.l.bf16 %v10043_v5  ;;  %v12284_v58 = vld [vmem:[#allocation35_spill] sm:$0xff]  ;;  %v12290_v40 = vld [vmem:[#allocation32_spill] sm:$0xff] }
 0x51b   : > { %3097 = vmatpush.msrb.mxu1 %v2373_v35  ;;  %v7095_v44 = vunpack.i.l.bf16 %v12273_v54  ;;  %v2246_v56 = vsel %vm2243_vm2, %v2241_v3, %v7125_v17  ;;  %v2866_v49 = vsel %vm979_vm9, %v2862_v22, %v7090_v7  ;;  %v7021_v1 = vunpack.i.h.bf16 %v12275_v52 }
 0x51c   : > { %3122 = vmatpush.msrb.mxu0 %v2993_v41  ;;  %3156 = vmatpush.msrb.mxu2 %v7100_v60  ;;  %v7120_v55 = vunpack.i.l.bf16 %v10160_v61  ;;  %v2870_v4 = vsel %vm2243_vm2, %v2866_v49, %v7160_v46  ;;  %v2240_v51 = vsel %vm979_vm9, %v10248_v32, %v7036_v16  ;;  %v7086_v26 = vunpack.i.h.bf16 %v12276_v23  ;;  %v3046_v50 = vpop.f32.mrf.mxu0 }
 0x51d   : > { %3098 = vmatpush.msrb.mxu1 %v2372_v34  ;;  %v2245_v25 = vsel %vm2243_vm2, %v2240_v51, %v7096_v43  ;;  %v2865_v18 = vsel %vm979_vm9, %v10306_v62, %v7061_v63  ;;  %v2860_v28 = vsel %vm2234_vm15, %v12277_v15, %v6990_v31  ;;  %v7020_v60 = vunpack.i.l.bf16 %v12275_v52  ;;  %v12280_v62 = vld [vmem:[#allocation30_spill] sm:$0xff]  ;;  %v10485_v15 = vpop.permute.xlu1 %2998 }
 0x51e   : > { %3123 = vmatpush.msrb.mxu0 %v2992_v13  ;;  %3157 = vmatpush.msrb.mxu2 %v7126_v24  ;;  %v7151_v32 = vunpack.i.h.bf16 %v10276_v29  ;;  %v2869_v6 = vsel %vm2243_vm2, %v2865_v18, %v7121_v53  ;;  %v2239_v5 = vsel %vm979_vm9, %v10255_v59, %v7035_v39  ;;  %v12279_v48 = vunpack.i.h.bf16 %v12278_v21  ;;  %v12283_v59 = vld [vmem:[#allocation36_spill] sm:$0xff]  ;;  %v3310_v18 = vld [vmem:[#allocation7 + $0x8] sm:$0xff] }
 0x51f   : > { %3099 = vmatpush.msrb.mxu1 %v2247_v9  ;;  %v12281_v63 = vunpack.i.h.bf16 %v12280_v62  ;;  %v7085_v31 = vunpack.i.l.bf16 %v12276_v23  ;;  %v2244_v33 = vsel %vm2243_vm2, %v2239_v5, %v7095_v44  ;;  %v2864_v38 = vsel %vm979_vm9, %v2860_v28, %v7060_v47  ;;  %v3313_v23 = vld [vmem:[#allocation7 + $0x20] sm:$0x3] }
 0x520   : > { %3124 = vmatpush.msrb.mxu0 %v2871_v19  ;;  %3158 = vmatpush.msrb.mxu2 %v7125_v17  ;;  %v6986_v12 = vunpack.i.h.bf16 %v12282_v11  ;;  %v7150_v24 = vunpack.i.l.bf16 %v10276_v29  ;;  %v2868_v35 = vsel %vm2243_vm2, %v2864_v38, %v7120_v55  ;;  %v6915_v41 = vunpack.i.l.bf16 %v12284_v58  ;;  %v12287_v17 = vld [vmem:[#allocation22_spill] sm:$0xff]  ;;  %v3309_v28 = vld [vmem:[#allocation7] sm:$0xff]  ;;  %v10499_v29 = vpop.permute.xlu2 %3003 }
 0x521   : > { %3100 = vmatpush.msrb.mxu1 %v2246_v56  ;;  %v2735_v42 = vsel %vm609_vm0, %v12281_v63, %v12279_v48  ;;  %v12285_v37 = vunpack.i.l.bf16 %v12278_v21  ;;  %v12286_v16 = vunpack.i.l.bf16 %v12280_v62  ;;  %v7056_v34 = vunpack.i.h.bf16 %v12287_v17  ;;  %v12299_v5 = vld [vmem:[#allocation21_spill] sm:$0xff] }
 0x522   : > { %3125 = vmatpush.msrb.mxu0 %v2870_v4  ;;  %3159 = vmatpush.msrb.mxu2 %v7096_v43  ;;  %v2739_v27 = vsel %vm2234_vm15, %v2735_v42, %v7021_v1  ;;  %v6985_v57 = vunpack.i.l.bf16 %v12282_v11  ;;  %v7116_v39 = vunpack.i.h.bf16 %v12288_v2  ;;  %v12289_v9 = vunpack.i.h.bf16 %v12284_v58  ;;  %v10509_v42 = vpop.permute.xlu0 %3008 }
 0x523   : > { %3101 = vmatpush.msrb.mxu1 %v2245_v25  ;;  %v2734_v7 = vsel %vm609_vm0, %v12286_v16, %v12285_v37  ;;  %v2743_v13 = vsel %vm979_vm9, %v2739_v27, %v7086_v26  ;;  %v12291_v19 = vunpack.i.h.bf16 %v12290_v40  ;;  %v7055_v10 = vunpack.i.l.bf16 %v12287_v17  ;;  %v3312_v26 = vld [vmem:[#allocation7 + $0x18] sm:$0xff]  ;;  %v3311_v25 = vld [vmem:[#allocation7 + $0x10] sm:$0xff] }
 0x524   : > { %3126 = vmatpush.msrb.mxu0 %v2869_v6  ;;  %3160 = vmatpush.msrb.mxu2 %v7095_v44  ;;  %v2747_v54 = vsel %vm2243_vm2, %v2743_v13, %v7151_v32  ;;  %v2738_v43 = vsel %vm2234_vm15, %v2734_v7, %v7020_v60  ;;  %v7115_v47 = vunpack.i.l.bf16 %v12288_v2  ;;  %v12292_v56 = vunpack.i.l.bf16 %v12290_v40  ;;  %v3049_v61 = vpop.f32.mrf.mxu0  ;;  %v12297_v6 = vld [vmem:[#allocation37_spill] sm:$0xff] }
 0x525   : > { %3102 = vmatpush.msrb.mxu1 %v2244_v33  ;;  %3161 = vmatmul.f32.vlgmr.msrb.gmra.mxu2 %v12283_v59  ;;  %v2733_v3 = vsel %vm609_vm0, %v12291_v19, %v12289_v9  ;;  %v2742_v22 = vsel %vm979_vm9, %v2738_v43, %v7085_v31  ;;  %v12300_v33 = vld [vmem:[#allocation23_spill] sm:$0xff] }
 0x526   : > { %3103 = vmatmul.f32.vlgmr.msrb.gmra.mxu1 %v12283_v59  ;;  %3127 = vmatpush.msrb.mxu0 %v2868_v35  ;;  %v2737_v44 = vsel %vm2234_vm15, %v2733_v3, %v6986_v12  ;;  %v2732_v49 = vsel %vm609_vm0, %v12292_v56, %v6915_v41  ;;  %vm3390_vm0 = vcmask 1041408  }
 0x527   : > { %3178 = vmatpush.msra.mxu1 %v7171_v36  ;;  %v2746_v36 = vsel %vm2243_vm2, %v2742_v22, %v7150_v24  ;;  %v2741_v52 = vsel %vm979_vm9, %v2737_v44, %v7056_v34  ;;  %v2736_v4 = vsel %vm2234_vm15, %v2732_v49, %v6985_v57  ;;  %vm4954_vm15 = vcmask 261120  }
 0x528   : > { %3128 = vmatpush.msrb.mxu0 %v2747_v54  ;;  %v2745_v1 = vsel %vm2243_vm2, %v2741_v52, %v7116_v39  ;;  %v2740_v0 = vsel %vm979_vm9, %v2736_v4, %v7055_v10  ;;  %vm3255_vm9 = vcmask 211968  }
 0x529   : > { %3179 = vmatpush.msra.mxu1 %v7170_v45  ;;  %v12293_v45 = vld [vmem:[#allocation24_spill] sm:$0xff]  ;;  %v2744_v51 = vsel %vm2243_vm2, %v2740_v0, %v7115_v47  ;;  %vm4952_vm2 = vcmask 1047559  }
 0x52a   : > { %3129 = vmatpush.msrb.mxu0 %v2746_v36 }
 0x52b   : > { %3180 = vmatpush.msra.mxu1 %v7166_v20  ;;  %v12294_v20 = vld [vmem:[#allocation27_spill] sm:$0xff] }
 0x52c   : > { %3130 = vmatpush.msrb.mxu0 %v2745_v1  ;;  %v3052_v63 = vpop.f32.mrf.mxu0 }
 0x52d   : > { %3181 = vmatpush.msra.mxu1 %v7165_v14  ;;  %3164 = vmatmul.f32.gmra.mxu2 %v12293_v45  ;;  %v3055_v14 = vpop.f32.mrf.mxu2  ;;  %v3053_v31 = vadd.f32 %v3052_v63, %v10509_v42 }
 0x52e   : > { %3106 = vmatmul.f32.gmra.mxu1 %v12293_v45  ;;  %3131 = vmatpush.msrb.mxu0 %v2744_v51 }
 0x52f   : > { %3182 = vmatpush.msra.mxu1 %v7161_v30  ;;  %5919 = vmatmul.msk.f32.vlgmr.msrb.gmra.mxu0 %vm3016_vm14, %v12294_v20  ;;  %v12295_v30 = vld [vmem:[#allocation20_spill] sm:$0xff] }
 0x530   : > { %5927 = vmatpush.msk.msra.mxu0 %vm3390_vm0, %v3313_v23 }
 0x531   : > { %3183 = vmatpush.msra.mxu1 %v7160_v46  ;;  %v3047_v46 = vadd.f32 %v3046_v50, %v10485_v15 }
 0x532   : > { %3406 = vmatpush.msra.mxu0 %v3312_v26 }
 0x533   : > { %3184 = vmatpush.msra.mxu1 %v7121_v53 }
 0x534   : > { %3407 = vmatpush.msra.mxu0 %v3311_v25 }
 0x535   : > { %3185 = vmatpush.msra.mxu1 %v7120_v55  ;;  %3167 = vmatmul.f32.gmra.mxu2 %v12295_v30 }
 0x536   : > { %3109 = vmatmul.f32.gmra.mxu1 %v12295_v30  ;;  %3408 = vmatpush.msra.mxu0 %v3310_v18 }
 0x537   : > { %3186 = vmatpush.msra.mxu1 %v7151_v32  ;;  %5920 = vmatmul.msk.f32.gmra.mxu0 %vm3016_vm14, %v12296_v8  ;;  %v3050_v32 = vadd.f32 %v3049_v61, %v10499_v29 }
 0x538   : > { %3409 = vmatpush.msra.mxu0 %v3309_v28 }
 0x539   : > { %3187 = vmatpush.msra.mxu1 %v7150_v24  ;;  %v10516_v24 = vpop.permute.xlu1 %3013 }
 0x53a   : > { %v3075_v53 = vpop.f32.mrf.mxu2  ;;  %v3056_v59 = vadd.f32 %v3055_v14, %v10516_v24 }
 0x53b   : > { %v3076_v60 = vadd.f32 %v3075_v53, %v3047_v46  ;;  %3188 = vmatpush.msra.mxu1 %v7116_v39 }
 0x53d   : > { %v3203_v55 = vmax.f32 %v3076_v60, 0.0  ;;  %3189 = vmatpush.msra.mxu1 %v7115_v47  ;;  %3170 = vmatmul.f32.gmra.mxu2 %v12297_v6 }
 0x53e   : > { %3112 = vmatmul.f32.gmra.mxu1 %v12297_v6 }
 0x53f   : > { %3239 = vrot.lane.b32.xlu1 %v3203_v55, %s12127_s18  ;;  %3227 = vrot.lane.b32.xlu0 %v3203_v55, %s12298_s30 }
 0x540   : > { %3219 = vrot.lane.b32.xlu2 %v3203_v55, %s12125_s6  ;;  %5921 = vmatmul.msk.f32.gmra.mxu0 %vm3016_vm14, %v12299_v5 }
 0x541   : > { %6008 = vmatpush.msk.msrb.mxu1 %vm3390_vm0, %v3313_v23 }
 0x542   : > { %v3078_v21 = vpop.f32.mrf.mxu2 }
 0x543   : > { %v3079_v48 = vadd.f32 %v3078_v21, %v3050_v32  ;;  %6009 = vmatpush.msrb.mxu1 %v3312_v26 }
 0x545   : > { %v3206_v62 = vmax.f32 %v3079_v48, 0.0  ;;  %6010 = vmatpush.msrb.mxu1 %v3311_v25 }
 0x546   : > { %5923 = vmatmul.msk.f32.vlgmr.msra.gmra.mxu1 %vm3016_vm14, %v12294_v20 }
 0x547   : > { %3229 = vrot.lane.b32.xlu1 %v3206_v62, %s12298_s30  ;;  %3221 = vrot.lane.b32.xlu0 %v3206_v62, %s12125_s6 }
 0x548   : > { %5922 = vmatmul.msk.f32.gmra.mxu0 %vm3016_vm14, %v12300_v33  ;;  %6011 = vmatpush.msrb.mxu1 %v3310_v18 }
 0x54a   : > { %v3081_v38 = vpop.f32.mrf.mxu2  ;;  %6012 = vmatpush.msrb.mxu1 %v3309_v28 }
 0x54b   : > { %v3082_v11 = vadd.f32 %v3081_v38, %v3053_v31 }
 0x54d   : > { %v3209_v12 = vmax.f32 %v3082_v11, 0.0 }
 0x54e   : > { %5924 = vmatmul.msk.f32.gmra.mxu1 %vm3016_vm14, %v12296_v8 }
 0x54f   : > { %3223 = vrot.lane.b32.xlu1 %v3209_v12, %s12125_s6  ;;  %3243 = vrot.lane.b32.xlu0 %v3206_v62, %s12127_s18 }
 0x550   : > { %3231 = vrot.lane.b32.xlu2 %v3209_v12, %s12298_s30  ;;  %5928 = vmatmul.msk.f32.vlgmr.msra.gmra.mxu0 %vm2216_vm12, %v3203_v55 }
 0x552   : > { %v3084_v35 = vpop.f32.mrf.mxu2 }
 0x553   : > { %v3085_v27 = vadd.f32 %v3084_v35, %v3056_v59 }
 0x555   : > { %v3212_v58 = vmax.f32 %v3085_v27, 0.0 }
 0x556   : > { %5925 = vmatmul.msk.f32.gmra.mxu1 %vm3016_vm14, %v12299_v5 }
 0x557   : > { %3251 = vrot.lane.b32.xlu1 %v3212_v58, %s12127_s18  ;;  %3233 = vrot.lane.b32.xlu0 %v3212_v58, %s12298_s30 }
 0x558   : > { %3247 = vrot.lane.b32.xlu2 %v3209_v12, %s12127_s18  ;;  %5929 = vmatmul.msk.f32.gmra.mxu0 %vm2216_vm12, %v3206_v62 }
 0x55e   : > { %5926 = vmatmul.msk.f32.gmra.mxu1 %vm3016_vm14, %v12300_v33 }
 0x560   : > { %3225 = vrot.lane.b32.xlu2 %v3212_v58, %s12125_s6  ;;  %5930 = vmatmul.msk.f32.gmra.mxu0 %vm2216_vm12, %v3209_v12  ;;  %s8104_s6 = smov 18  }
 0x568   : > { %5931 = vmatmul.msk.f32.gmra.mxu0 %vm2216_vm12, %v3212_v58 }
 0x59a   : > { %v3220_v41 = vpop.permute.xlu2 %3219 }
 0x59b   : > { %5932 = vmatmul.msk.f32.gmra.mxu0 %vm2216_vm12, %v3220_v41 }
 0x5a3   : > { %v3104_v37 = vpop.f32.mrf.mxu1 }
 0x5a4   : > { %v3105_v16 = vadd.f32 %v3104_v37, %v10485_v15 }
 0x5a8   : > { %v3162_v14 = vpop.f32.mrf.mxu2 }
 0x5a9   : > { %v3163_v30 = vadd.f32 %v3162_v14, %v10485_v15 }
 0x5aa   : > { %v3232_v39 = vpop.permute.xlu2 %3231 }
 0x5ab   : > { %v3107_v34 = vpop.f32.mrf.mxu1 }
 0x5ac   : > { %v3133_v7 = vpop.f32.mrf.mxu0  ;;  %v3108_v54 = vadd.f32 %v3107_v34, %v10499_v29 }
 0x5ad   : > { %v3134_v17 = vadd.f32 %v3133_v7, %v3105_v16 }
 0x5af   : > { %v3204_v13 = vmax.f32 %v3134_v17, 0.0 }
 0x5b0   : > { %v3165_v28 = vpop.f32.mrf.mxu2 }
 0x5b1   : > { %v10538_v57 = vpop.permute.xlu1 %3239  ;;  %v3228_v2 = vpop.permute.xlu0 %3227  ;;  %3268 = vrot.lane.b32.xlu1 %v3204_v13, %s8103_s27  ;;  %3260 = vrot.lane.b32.xlu0 %v3204_v13, %s12301_s13  ;;  %v3166_v61 = vadd.f32 %v3165_v28, %v10499_v29 }
 0x5b2   : > { %3241 = vrot.lane.b32.xlu2 %v3204_v13, %s12127_s18  ;;  %v10548_v10 = vpop.permute.xlu2 %3247 }
 0x5b3   : > { %v3110_v22 = vpop.f32.mrf.mxu1 }
 0x5b4   : > { %v3136_v43 = vpop.f32.mrf.mxu0  ;;  %v3111_v44 = vadd.f32 %v3110_v22, %v10509_v42 }
 0x5b5   : > { %v3137_v9 = vadd.f32 %v3136_v43, %v3108_v54 }
 0x5b7   : > { %v3207_v40 = vmax.f32 %v3137_v9, 0.0 }
 0x5b8   : > { %v3168_v15 = vpop.f32.mrf.mxu2 }
 0x5b9   : > { %v3230_v19 = vpop.permute.xlu1 %3229  ;;  %v3222_v3 = vpop.permute.xlu0 %3221  ;;  %3245 = vrot.lane.b32.xlu1 %v3207_v40, %s12127_s18  ;;  %3288 = vrot.lane.b32.xlu0 %v3204_v13, %s8104_s6  ;;  %v3169_v63 = vadd.f32 %v3168_v15, %v10509_v42 }
 0x5ba   : > { %5933 = vmatmul.msk.f32.gmra.mxu0 %vm2216_vm12, %v3222_v3  ;;  %3276 = vrot.lane.b32.xlu2 %v3204_v13, %s8074_s1  ;;  %v3226_v52 = vpop.permute.xlu2 %3225 }
 0x5bb   : > { %v3113_v4 = vpop.f32.mrf.mxu1 }
 0x5bc   : > { %v3114_v0 = vadd.f32 %v3113_v4, %v10516_v24 }
 0x5bd   : > { %v3139_v47 = vpop.f32.mrf.mxu0 }
 0x5be   : > { %v3140_v56 = vadd.f32 %v3139_v47, %v3111_v44 }
 0x5c0   : > { %v3210_v49 = vmax.f32 %v3140_v56, 0.0  ;;  %v3171_v29 = vpop.f32.mrf.mxu2 }
 0x5c1   : > { %v3224_v36 = vpop.permute.xlu1 %3223  ;;  %3262 = vrot.lane.b32.xlu1 %v3207_v40, %s12301_s13  ;;  %3278 = vrot.lane.b32.xlu0 %v3207_v40, %s8074_s1  ;;  %v3244_v26 = vpop.permute.xlu0 %3243  ;;  %v3172_v62 = vadd.f32 %v3171_v29, %v10516_v24 }
 0x5c2   : > { %5934 = vmatmul.msk.f32.gmra.mxu0 %vm2216_vm12, %v3224_v36  ;;  %3270 = vrot.lane.b32.xlu2 %v3207_v40, %s8103_s27 }
 0x5c3   : > { %v3191_v25 = vpop.f32.mrf.mxu1 }
 0x5c4   : > { %v3192_v46 = vadd.f32 %v3191_v25, %v3163_v30 }
 0x5c5   : > { %v3142_v1 = vpop.f32.mrf.mxu0 }
 0x5c6   : > { %v3143_v51 = vadd.f32 %v3142_v1, %v3114_v0  ;;  %v3205_v60 = vmax.f32 %v3192_v46, 0.0 }
 0x5c8   : > { %v3213_v23 = vmax.f32 %v3143_v51, 0.0 }
 0x5c9   : > { %3280 = vrot.lane.b32.xlu1 %v3210_v49, %s8074_s1  ;;  %3249 = vrot.lane.b32.xlu0 %v3210_v49, %s12127_s18  ;;  %v3234_v18 = vpop.permute.xlu0 %3233  ;;  %v3252_v59 = vpop.permute.xlu1 %3251 }
 0x5ca   : > { %5935 = vmatmul.msk.f32.gmra.mxu0 %vm2216_vm12, %v3226_v52  ;;  %3292 = vrot.lane.b32.xlu2 %v3207_v40, %s8104_s6 }
 0x5cb   : > { %v3194_v53 = vpop.f32.mrf.mxu1 }
 0x5cc   : > { %v3195_v55 = vadd.f32 %v3194_v53, %v3166_v61 }
 0x5cd   : > { %v10562_v45 = vpop.f32.mrf.mxu0 }
 0x5ce   : > { %v3208_v21 = vmax.f32 %v3195_v55, 0.0 }
 0x5d1   : > { %3296 = vrot.lane.b32.xlu1 %v3210_v49, %s8104_s6  ;;  %3272 = vrot.lane.b32.xlu0 %v3210_v49, %s8103_s27 }
 0x5d2   : > { %5936 = vmatmul.msk.f32.gmra.mxu0 %vm2216_vm12, %v3228_v2  ;;  %3264 = vrot.lane.b32.xlu2 %v3210_v49, %s12301_s13 }
 0x5d3   : > { %v3197_v32 = vpop.f32.mrf.mxu1 }
 0x5d4   : > { %v3198_v33 = vadd.f32 %v3197_v32, %v3169_v63 }
 0x5d5   : > { %v10570_v20 = vpop.f32.mrf.mxu0 }
 0x5d6   : > { %v7172_v50 = vpack.i.bf16 %v10570_v20, %v10562_v45  ;;  %v3211_v11 = vmax.f32 %v3198_v33, 0.0 }
 0x5d9   : > { %3274 = vrot.lane.b32.xlu1 %v3213_v23, %s8103_s27  ;;  %3266 = vrot.lane.b32.xlu0 %v3213_v23, %s12301_s13  ;;  %s12306_s27 = smov 14   ;;  %s12308_s13 = smov 33  }
 0x5da   : > { %5937 = vmatmul.msk.f32.gmra.mxu0 %vm2216_vm12, %v3230_v19  ;;  %3253 = vrot.lane.b32.xlu2 %v3213_v23, %s12127_s18  ;;  %s12316_s18 = smov 83  }
 0x5db   : > { %v3200_v48 = vpop.f32.mrf.mxu1 }
 0x5dc   : > { %v3201_v31 = vadd.f32 %v3200_v48, %v3172_v62 }
 0x5dd   : > { %v10581_v8 = vpop.f32.mrf.mxu0 }
 0x5de   : > { %v3214_v38 = vmax.f32 %v3201_v31, 0.0 }
 0x5e1   : > { %7173 = vrot.lane.b32.xlu1 %v7172_v50, %s8097_s3  ;;  %3300 = vrot.lane.b32.xlu0 %v3213_v23, %s8104_s6 }
 0x5e2   : > { %5938 = vmatmul.msk.f32.gmra.mxu0 %vm2216_vm12, %v3232_v39  ;;  %3282 = vrot.lane.b32.xlu2 %v3213_v23, %s8074_s1  ;;  %s8105_s1 = smov 106  }
 0x5e5   : > { %v10588_v6 = vpop.f32.mrf.mxu0 }
 0x5e6   : > { %v7212_v5 = vpack.i.bf16 %v10588_v6, %v10581_v8 }
 0x5e9   : > { %7188 = vrot.lane.b32.xlu1 %v7172_v50, %s8025_s19  ;;  %7183 = vrot.lane.b32.xlu0 %v7172_v50, %s8100_s15 }
 0x5ea   : > { %5939 = vmatmul.msk.f32.gmra.mxu0 %vm2216_vm12, %v3234_v18  ;;  %7178 = vrot.lane.b32.xlu2 %v7172_v50, %s8023_s29 }
 0x5f1   : > { %3290 = vrot.lane.b32.xlu1 %v3205_v60, %s8104_s6  ;;  %7198 = vrot.lane.b32.xlu0 %v7172_v50, %s8027_s17 }
 0x5f2   : > { %7193 = vrot.lane.b32.xlu2 %v7172_v50, %s8105_s1 }
 0x5f9   : > { %7213 = vrot.lane.b32.xlu1 %v7212_v5, %s8100_s15  ;;  %3294 = vrot.lane.b32.xlu0 %v3208_v21, %s8104_s6  ;;  %s12304_s15 = smov 15  }
 0x5fa   : > { %7203 = vrot.lane.b32.xlu2 %v7212_v5, %s8097_s3  ;;  %s12303_s3 = smov 123  }
 0x601   : > { %7228 = vrot.lane.b32.xlu1 %v7212_v5, %s8027_s17  ;;  %7208 = vrot.lane.b32.xlu0 %v7212_v5, %s8023_s29  ;;  %s12302_s29 = smov 16  }
 0x602   : > { %7218 = vrot.lane.b32.xlu2 %v7212_v5, %s8025_s19  ;;  %s8106_s19 = smov 17  }
 0x609   : > { %3302 = vrot.lane.b32.xlu1 %v3214_v38, %s8104_s6  ;;  %7223 = vrot.lane.b32.xlu0 %v7212_v5, %s8105_s1  ;;  %s12309_s1 = smov 13  }
 0x60a   : > { %3298 = vrot.lane.b32.xlu2 %v3211_v11, %s8104_s6  ;;  %s12305_s6 = smov 124  }
 0x60c   : > { %v3242_v12 = vpop.permute.xlu2 %3241 }
 0x60d   : > { %v3256_v24 = vsel %vm3255_vm9, %v10538_v57, %v3242_v12 }
 0x60e   : > { %5940 = vmatmul.msk.f32.gmra.mxu0 %vm2216_vm12, %v3256_v24 }
 0x614   : > { %v3277_v42 = vpop.permute.xlu2 %3276 }
 0x618   : > { %v3423_v7 = vpop.f32.mrf.mxu0 }
 0x61c   : > { %v10607_v58 = vpop.permute.xlu2 %3270 }
 0x623   : > { %v10605_v35 = vpop.permute.xlu1 %3268  ;;  %v3261_v27 = vpop.permute.xlu0 %3260 }
 0x624   : > { %v10613_v17 = vpop.permute.xlu2 %3292 }
 0x62b   : > { %v3246_v41 = vpop.permute.xlu1 %3245  ;;  %v10610_v16 = vpop.permute.xlu0 %3288 }
 0x62c   : > { %v3257_v37 = vsel %vm3255_vm9, %v3244_v26, %v3246_v41  ;;  %v3265_v39 = vpop.permute.xlu2 %3264 }
 0x62d   : > { %5941 = vmatmul.msk.f32.gmra.mxu0 %vm2216_vm12, %v3257_v37 }
 0x633   : > { %v3263_v34 = vpop.permute.xlu1 %3262  ;;  %v3279_v13 = vpop.permute.xlu0 %3278 }
 0x634   : > { %v3254_v19 = vpop.permute.xlu2 %3253 }
 0x635   : > { %v3259_v47 = vsel %vm3255_vm9, %v3252_v59, %v3254_v19 }
 0x637   : > { %v3426_v57 = vpop.f32.mrf.mxu0 }
 0x638   : > { %v7242_v2 = vpack.i.bf16 %v3426_v57, %v3423_v7 }
 0x63a   : > { %7243 = vrot.lane.b32.xlu1 %v7242_v2, %s12302_s29  ;;  %7238 = vrot.lane.b32.xlu0 %v7242_v2, %s8027_s17 }
 0x63b   : > { %7233 = vrot.lane.b32.xlu2 %v7242_v2, %s8106_s19  ;;  %v3281_v54 = vpop.permute.xlu1 %3280  ;;  %v3250_v43 = vpop.permute.xlu0 %3249 }
 0x63c   : > { %v3258_v9 = vsel %vm3255_vm9, %v10548_v10, %v3250_v43  ;;  %v3283_v49 = vpop.permute.xlu2 %3282 }
 0x63d   : > { %5942 = vmatmul.msk.f32.gmra.mxu0 %vm2216_vm12, %v3258_v9 }
 0x63f   : > { %v3429_v40 = vpop.f32.mrf.mxu0 }
 0x642   : > { %7258 = vrot.lane.b32.xlu1 %v7242_v2, %s12303_s3  ;;  %7253 = vrot.lane.b32.xlu0 %v7242_v2, %s12304_s15 }
 0x643   : > { %7248 = vrot.lane.b32.xlu2 %v7242_v2, %s12305_s6  ;;  %v10623_v3 = vpop.permute.xlu1 %3296  ;;  %v3273_v22 = vpop.permute.xlu0 %3272 }
 0x644   : > { %5950 = vmatmul.msk.f32.vlgmr.msrb.gmra.mxu1 %vm2216_vm12, %v3273_v22  ;;  %v10639_v51 = vpop.permute.xlu2 %7178 }
 0x645   : > { %5943 = vmatmul.msk.f32.gmra.mxu0 %vm2216_vm12, %v3259_v47 }
 0x647   : > { %v3432_v36 = vpop.f32.mrf.mxu0 }
 0x648   : > { %v7272_v10 = vpack.i.bf16 %v3432_v36, %v3429_v40 }
 0x64a   : > { %7273 = vrot.lane.b32.xlu1 %v7272_v10, %s8027_s17  ;;  %7268 = vrot.lane.b32.xlu0 %v7272_v10, %s8106_s19  ;;  %s12307_s17 = smov 34   ;;  %s12311_s19 = smov 31  }
 0x64b   : > { %7263 = vrot.lane.b32.xlu2 %v7242_v2, %s12306_s27  ;;  %v3275_v44 = vpop.permute.xlu1 %3274  ;;  %v3267_v52 = vpop.permute.xlu0 %3266 }
 0x64c   : > { %5951 = vmatmul.msk.f32.gmra.mxu1 %vm2216_vm12, %v3275_v44  ;;  %v10651_v14 = vpop.permute.xlu2 %7193 }
 0x64d   : > { %5944 = vmatmul.msk.f32.gmra.mxu0 %vm2216_vm12, %v3261_v27  ;;  %v7181_v27 = vunpack.i.h.bf16 %v10639_v51 }
 0x64f   : > { %v3435_v56 = vpop.f32.mrf.mxu0 }
 0x652   : > { %7288 = vrot.lane.b32.xlu1 %v7272_v10, %s12304_s15  ;;  %7283 = vrot.lane.b32.xlu0 %v7272_v10, %s12305_s6  ;;  %s8107_s15 = smov 50   ;;  %s8108_s6 = smov 51  }
 0x653   : > { %7278 = vrot.lane.b32.xlu2 %v7272_v10, %s12302_s29  ;;  %v10637_v4 = vpop.permute.xlu1 %7173  ;;  %v3301_v23 = vpop.permute.xlu0 %3300  ;;  %s12310_s29 = smov 12  }
 0x654   : > { %5952 = vmatmul.msk.f32.gmra.mxu1 %vm2216_vm12, %v3277_v42  ;;  %v10660_v28 = vpop.permute.xlu2 %7203  ;;  %v7176_v36 = vunpack.i.h.bf16 %v10637_v4 }
 0x655   : > { %5945 = vmatmul.msk.f32.gmra.mxu0 %vm2216_vm12, %v3263_v34 }
 0x657   : > { %v3438_v1 = vpop.f32.mrf.mxu0 }
 0x658   : > { %v7302_v0 = vpack.i.bf16 %v3438_v1, %v3435_v56 }
 0x65a   : > { %7298 = vrot.lane.b32.xlu0 %v7272_v10, %s12306_s27  ;;  %7303 = vrot.lane.b32.xlu1 %v7302_v0, %s12307_s17 }
 0x65b   : > { %7293 = vrot.lane.b32.xlu2 %v7272_v10, %s12303_s3  ;;  %v10646_v26 = vpop.permute.xlu1 %7188  ;;  %v10653_v25 = vpop.permute.xlu0 %7183  ;;  %s12312_s3 = smov 32   ;;  %v7175_v10 = vunpack.i.l.bf16 %v10637_v4 }
 0x65c   : > { %5953 = vmatmul.msk.f32.gmra.mxu1 %vm2216_vm12, %v3279_v13  ;;  %v10677_v15 = vpop.permute.xlu2 %7218 }
 0x65d   : > { %5946 = vmatmul.msk.f32.gmra.mxu0 %vm2216_vm12, %v3265_v39  ;;  %v7221_v4 = vunpack.i.h.bf16 %v10677_v15 }
 0x65f   : > { %v3441_v50 = vpop.f32.mrf.mxu0 }
 0x662   : > { %7313 = vrot.lane.b32.xlu0 %v7302_v0, %s12308_s13  ;;  %7318 = vrot.lane.b32.xlu1 %v7302_v0, %s12309_s1 }
 0x663   : > { %7308 = vrot.lane.b32.xlu2 %v7302_v0, %s12306_s27  ;;  %v3291_v18 = vpop.permute.xlu1 %3290  ;;  %v10665_v46 = vpop.permute.xlu0 %7198 }
 0x664   : > { %5954 = vmatmul.msk.f32.gmra.mxu1 %vm2216_vm12, %v3281_v54  ;;  %v3305_v60 = vsel %vm3304_vm4, %v10610_v16, %v3291_v18  ;;  %v3299_v21 = vpop.permute.xlu2 %3298 }
 0x665   : > { %5947 = vmatmul.msk.f32.gmra.mxu0 %vm2216_vm12, %v3267_v52  ;;  %v3307_v29 = vsel %vm3304_vm4, %v10623_v3, %v3299_v21 }
 0x667   : > { %v3444_v30 = vpop.f32.mrf.mxu0 }
 0x668   : > { %v7347_v53 = vpack.i.bf16 %v3444_v30, %v3441_v50  ;;  %v7220_v30 = vunpack.i.l.bf16 %v10677_v15 }
 0x66a   : > { %7328 = vrot.lane.b32.xlu0 %v7302_v0, %s12310_s29  ;;  %7333 = vrot.lane.b32.xlu1 %v7302_v0, %s12311_s19 }
 0x66b   : > { %7323 = vrot.lane.b32.xlu2 %v7302_v0, %s12312_s3  ;;  %v10672_v61 = vpop.permute.xlu1 %7213  ;;  %v3295_v55 = vpop.permute.xlu0 %3294 }
 0x66c   : > { %5955 = vmatmul.msk.f32.gmra.mxu1 %vm2216_vm12, %v3283_v49  ;;  %v3306_v32 = vsel %vm3304_vm4, %v10613_v17, %v3295_v55 }
 0x66d   : > { %5948 = vmatmul.msk.f32.gmra.mxu0 %vm2216_vm12, %v10605_v35 }
 0x672   : > { %7348 = vrot.lane.b32.xlu1 %v7347_v53, %s12308_s13  ;;  %7343 = vrot.lane.b32.xlu0 %v7347_v53, %s12306_s27  ;;  %s12313_s27 = smov 29   ;;  %s12314_s13 = smov 30  }
 0x673   : > { %7338 = vrot.lane.b32.xlu2 %v7347_v53, %s12307_s17  ;;  %v10685_v5 = vpop.permute.xlu1 %7228  ;;  %v10695_v31 = vpop.permute.xlu0 %7208  ;;  %s8109_s17 = smov 49  }
 0x674   : > { %5956 = vmatmul.msk.f32.gmra.mxu1 %vm2216_vm12, %v3305_v60 }
 0x675   : > { %5949 = vmatmul.msk.f32.gmra.mxu0 %vm2216_vm12, %v10607_v58  ;;  %v7180_v58 = vunpack.i.l.bf16 %v10639_v51 }
 0x67a   : > { %7363 = vrot.lane.b32.xlu1 %v7347_v53, %s12310_s29  ;;  %7358 = vrot.lane.b32.xlu0 %v7347_v53, %s12312_s3  ;;  %s12129_s29 = smov 85   ;;  %s12315_s3 = smov 84  }
 0x67b   : > { %7353 = vrot.lane.b32.xlu2 %v7347_v53, %s12309_s1  ;;  %v3303_v48 = vpop.permute.xlu1 %3302  ;;  %v7224_v11 = vpop.permute.xlu0 %7223  ;;  %s12130_s1 = smov 48  }
 0x67c   : > { %5957 = vmatmul.msk.f32.gmra.mxu1 %vm2216_vm12, %v3306_v32  ;;  %v3308_v62 = vsel %vm3304_vm4, %v3301_v23, %v3303_v48  ;;  %v7226_v2 = vunpack.i.h.bf16 %v7224_v11  ;;  %v7225_v39 = vunpack.i.l.bf16 %v7224_v11 }
 0x683   : > { %7368 = vrot.lane.b32.xlu2 %v7347_v53, %s12311_s19 }
 0x684   : > { %5958 = vmatmul.msk.f32.gmra.mxu1 %vm2216_vm12, %v3307_v29 }
 0x68b   : > { %v3447_v38 = vpop.f32.mrf.mxu0 }
 0x68c   : > { %5959 = vmatmul.msk.f32.gmra.mxu1 %vm2216_vm12, %v3308_v62 }
 0x695   : > { %v10693_v63 = vpop.permute.xlu2 %7233 }
 0x696   : > { %v7236_v29 = vunpack.i.h.bf16 %v10693_v63  ;;  %v7235_v48 = vunpack.i.l.bf16 %v10693_v63 }
 0x69d   : > { %v10697_v33 = vpop.permute.xlu2 %7248 }
 0x6a5   : > { %v10699_v12 = vpop.permute.xlu2 %7263 }
 0x6aa   : > { %v3450_v24 = vpop.f32.mrf.mxu0 }
 0x6ab   : > { %v7382_v35 = vpack.i.bf16 %v3450_v24, %v3447_v38 }
 0x6ac   : > { %v7244_v42 = vpop.permute.xlu1 %7243  ;;  %v7239_v59 = vpop.permute.xlu0 %7238 }
 0x6ad   : > { %v7246_v41 = vunpack.i.h.bf16 %v7244_v42  ;;  %v7245_v37 = vunpack.i.l.bf16 %v7244_v42  ;;  %v10703_v16 = vpop.permute.xlu2 %7278  ;;  %7383 = vrot.lane.b32.xlu2 %v7382_v35, %s8107_s15  ;;  %7378 = vrot.lane.b32.xlu1 %v7382_v35, %s12311_s19  ;;  %v7241_v19 = vunpack.i.h.bf16 %v7239_v59  ;;  %v7240_v3 = vunpack.i.l.bf16 %v7239_v59 }
 0x6ae   : > { %7373 = vrot.lane.b32.xlu0 %v7382_v35, %s8108_s6 }
 0x6af   : > { %v10708_v7 = vsel %vm3619_vm5, %v7181_v27, %v7246_v41  ;;  %v10711_v17 = vsel %vm3619_vm5, %v7180_v58, %v7245_v37  ;;  %v3752_v52 = vsel %vm3619_vm5, %v7176_v36, %v7241_v19  ;;  %v3751_v1 = vsel %vm3619_vm5, %v7175_v10, %v7240_v3 }
 0x6b0   : > { %v3621_v58 = vsel %vm3619_vm5, %v10570_v20, %v7236_v29  ;;  %v3620_v41 = vsel %vm3619_vm5, %v10562_v45, %v7235_v48  ;;  %v7215_v10 = vunpack.i.l.bf16 %v10672_v61  ;;  %v7201_v29 = vunpack.i.h.bf16 %v10665_v46 }
 0x6b4   : > { %v10714_v34 = vpop.permute.xlu1 %7258  ;;  %v10716_v13 = vpop.permute.xlu0 %7253 }
 0x6b5   : > { %v7294_v57 = vpop.permute.xlu2 %7293  ;;  %7398 = vrot.lane.b32.xlu2 %v7382_v35, %s12313_s27  ;;  %7393 = vrot.lane.b32.xlu1 %v7382_v35, %s8109_s17  ;;  %v7261_v48 = vunpack.i.h.bf16 %v10714_v34 }
 0x6b6   : > { %v7296_v54 = vunpack.i.h.bf16 %v7294_v57  ;;  %v7295_v43 = vunpack.i.l.bf16 %v7294_v57  ;;  %7388 = vrot.lane.b32.xlu0 %v7382_v35, %s12314_s13 }
 0x6b8   : > { %v10722_v9 = vsel %vm3619_vm5, %v7226_v2, %v7296_v54  ;;  %v10725_v40 = vsel %vm3619_vm5, %v7225_v39, %v7295_v43 }
 0x6ba   : > { %v3453_v39 = vpop.f32.mrf.mxu0 }
 0x6bc   : > { %v10727_v22 = vpop.permute.xlu1 %7273  ;;  %v7269_v47 = vpop.permute.xlu0 %7268 }
 0x6bd   : > { %v7309_v44 = vpop.permute.xlu2 %7308  ;;  %v7271_v62 = vunpack.i.h.bf16 %v7269_v47  ;;  %v7270_v38 = vunpack.i.l.bf16 %v7269_v47 }
 0x6be   : > { %v7311_v56 = vunpack.i.h.bf16 %v7309_v44  ;;  %v7310_v49 = vunpack.i.l.bf16 %v7309_v44  ;;  %7403 = vrot.lane.b32.xlu0 %v7382_v35, %s12130_s1 }
 0x6bf   : > { %v3623_v63 = vsel %vm3619_vm5, %v10588_v6, %v7271_v62  ;;  %v3622_v2 = vsel %vm3619_vm5, %v10581_v8, %v7270_v38  ;;  %v7216_v8 = vunpack.i.h.bf16 %v10672_v61  ;;  %v7196_v62 = vunpack.i.h.bf16 %v10651_v14 }
 0x6c0   : > { %v10735_v0 = vsel %vm2216_vm12, %v3752_v52, %v7311_v56  ;;  %v10738_v51 = vsel %vm2216_vm12, %v3751_v1, %v7310_v49  ;;  %v7195_v38 = vunpack.i.l.bf16 %v10651_v14 }
 0x6c1   : > { %v3477_v23 = vpop.f32.mrf.mxu1 }
 0x6c4   : > { %v7289_v50 = vpop.permute.xlu1 %7288  ;;  %v7284_v18 = vpop.permute.xlu0 %7283 }
 0x6c5   : > { %v7291_v53 = vunpack.i.h.bf16 %v7289_v50  ;;  %v7290_v60 = vunpack.i.l.bf16 %v7289_v50  ;;  %v10742_v55 = vpop.permute.xlu2 %7323  ;;  %v7286_v19 = vunpack.i.h.bf16 %v7284_v18  ;;  %v7285_v6 = vunpack.i.l.bf16 %v7284_v18 }
 0x6c7   : > { %v10745_v32 = vsel %vm3619_vm5, %v7221_v4, %v7291_v53  ;;  %v10748_v21 = vsel %vm3619_vm5, %v7220_v30, %v7290_v60  ;;  %v4001_v50 = vsel %vm3619_vm5, %v7215_v10, %v7285_v6  ;;  %v7266_v4 = vunpack.i.h.bf16 %v10699_v12  ;;  %v3456_v60 = vpop.f32.mrf.mxu0 }
 0x6c8   : > { %v7211_v10 = vunpack.i.h.bf16 %v10695_v31 }
 0x6c9   : > { %v3480_v11 = vpop.f32.mrf.mxu1 }
 0x6ca   : > { %v7407_v42 = vpack.i.bf16 %v3480_v11, %v3477_v23  ;;  %v4002_v23 = vsel %vm3619_vm5, %v7216_v8, %v7286_v19  ;;  %v7200_v11 = vunpack.i.l.bf16 %v10665_v46  ;;  %v7280_v8 = vunpack.i.l.bf16 %v10703_v16 }
 0x6cc   : > { %v10752_v24 = vpop.permute.xlu0 %7298  ;;  %v7304_v15 = vpop.permute.xlu1 %7303  ;;  %7408 = vrot.lane.b32.xlu2 %v7407_v42, %s12129_s29  ;;  %7418 = vrot.lane.b32.xlu1 %v7407_v42, %s12315_s3  ;;  %s12317_s29 = smov 82  }
 0x6cd   : > { %v7306_v59 = vunpack.i.h.bf16 %v7304_v15  ;;  %v7305_v35 = vunpack.i.l.bf16 %v7304_v15  ;;  %v7339_v27 = vpop.permute.xlu2 %7338  ;;  %7413 = vrot.lane.b32.xlu0 %v7407_v42, %s12184_s14 }
 0x6ce   : > { %v7341_v37 = vunpack.i.h.bf16 %v7339_v27  ;;  %v7340_v57 = vunpack.i.l.bf16 %v7339_v27 }
 0x6cf   : > { %v10765_v54 = vsel %vm2216_vm12, %v3621_v58, %v7306_v59  ;;  %v10768_v20 = vsel %vm2216_vm12, %v3620_v41, %v7305_v35  ;;  %v4372_v59 = vsel %vm3619_vm5, %v7201_v29, %v7266_v4  ;;  %v7452_v58 = vpack.i.bf16 %v3456_v60, %v3453_v39 }
 0x6d0   : > { %v10772_v45 = vsel %vm2216_vm12, %v3623_v63, %v7341_v37  ;;  %v10775_v43 = vsel %vm2216_vm12, %v3622_v2, %v7340_v57 }
 0x6d1   : > { %v3483_v3 = vpop.f32.mrf.mxu1 }
 0x6d4   : > { %v7314_v47 = vpop.permute.xlu0 %7313  ;;  %v10778_v36 = vpop.permute.xlu1 %7318  ;;  %7423 = vrot.lane.b32.xlu2 %v7407_v42, %s12188_s12  ;;  %7433 = vrot.lane.b32.xlu1 %v7407_v42, %s12189_s9 }
 0x6d5   : > { %v7316_v44 = vunpack.i.h.bf16 %v7314_v47  ;;  %v7315_v56 = vunpack.i.l.bf16 %v7314_v47  ;;  %v7354_v49 = vpop.permute.xlu2 %7353  ;;  %7428 = vrot.lane.b32.xlu0 %v7407_v42, %s12316_s18 }
 0x6d6   : > { %v7356_v52 = vunpack.i.h.bf16 %v7354_v49  ;;  %v7355_v1 = vunpack.i.l.bf16 %v7354_v49 }
 0x6d7   : > { %v10787_v18 = vsel %vm2216_vm12, %v10708_v7, %v7316_v44  ;;  %v10791_v61 = vsel %vm2216_vm12, %v10711_v17, %v7315_v56  ;;  %v7265_v7 = vunpack.i.l.bf16 %v10699_v12  ;;  %v7260_v17 = vunpack.i.l.bf16 %v10714_v34 }
 0x6d8   : > { %v10796_v30 = vsel %vm2216_vm12, %v4002_v23, %v7356_v52  ;;  %v10799_v53 = vsel %vm2216_vm12, %v4001_v50, %v7355_v1  ;;  %v4248_v34 = vsel %vm3619_vm5, %v7196_v62, %v7261_v48  ;;  %v7210_v44 = vunpack.i.l.bf16 %v10695_v31 }
 0x6d9   : > { %v3486_v15 = vpop.f32.mrf.mxu1  ;;  %v4371_v63 = vsel %vm3619_vm5, %v7200_v11, %v7265_v7  ;;  %v4247_v2 = vsel %vm3619_vm5, %v7195_v38, %v7260_v17 }
 0x6da   : > { %v10827_v6 = vpack.i.bf16 %v3486_v15, %v3483_v3  ;;  %v3877_v50 = vsel %vm3619_vm5, %v7210_v44, %v7280_v8 }
 0x6dc   : > { %v7329_v35 = vpop.permute.xlu0 %7328  ;;  %v7334_v27 = vpop.permute.xlu1 %7333  ;;  %7438 = vrot.lane.b32.xlu2 %v7407_v42, %s12317_s29  ;;  %7443 = vrot.lane.b32.xlu1 %v7452_v58, %s8108_s6  ;;  %v7281_v42 = vunpack.i.h.bf16 %v10703_v16  ;;  %s12320_s6 = smov 81  }
 0x6dd   : > { %v7331_v41 = vunpack.i.h.bf16 %v7329_v35  ;;  %v7330_v37 = vunpack.i.l.bf16 %v7329_v35  ;;  %v7336_v57 = vunpack.i.h.bf16 %v7334_v27  ;;  %v7335_v12 = vunpack.i.l.bf16 %v7334_v27  ;;  %7453 = vrot.lane.b32.xlu0 %v7452_v58, %s8107_s15  ;;  %v3459_v35 = vpop.f32.mrf.mxu0  ;;  %s12319_s15 = smov 101  }
 0x6de   : > { %v3878_v23 = vsel %vm3619_vm5, %v7211_v10, %v7281_v42 }
 0x6df   : > { %v10815_v14 = vsel %vm2216_vm12, %v4248_v34, %v7331_v41  ;;  %v10818_v46 = vsel %vm2216_vm12, %v4247_v2, %v7330_v37  ;;  %v10821_v39 = vsel %vm2216_vm12, %v4372_v59, %v7336_v57  ;;  %v10824_v19 = vsel %vm2216_vm12, %v4371_v63, %v7335_v12 }
 0x6e1   : > { %v3489_v47 = vpop.f32.mrf.mxu1 }
 0x6e4   : > { %v7349_v56 = vpop.permute.xlu1 %7348  ;;  %v10833_v49 = vpop.permute.xlu0 %7343  ;;  %7448 = vrot.lane.b32.xlu2 %v7452_v58, %s12311_s19  ;;  %7458 = vrot.lane.b32.xlu1 %v7452_v58, %s12314_s13  ;;  %s12318_s19 = smov 102   ;;  %s12323_s13 = smov 67  }
 0x6e5   : > { %v7351_v52 = vunpack.i.h.bf16 %v7349_v56  ;;  %v7350_v1 = vunpack.i.l.bf16 %v7349_v56  ;;  %7468 = vrot.lane.b32.xlu0 %v7452_v58, %s12313_s27  ;;  %s12321_s27 = smov 80   ;;  %v7251_v56 = vunpack.i.h.bf16 %v10697_v33 }
 0x6e7   : > { %v10840_v16 = vsel %vm2216_vm12, %v3878_v23, %v7351_v52  ;;  %v10843_v3 = vsel %vm2216_vm12, %v3877_v50, %v7350_v1  ;;  %v7250_v52 = vunpack.i.l.bf16 %v10697_v33  ;;  %v7255_v33 = vunpack.i.l.bf16 %v10716_v13 }
 0x6e9   : > { %v3492_v31 = vpop.f32.mrf.mxu1 }
 0x6ea   : > { %v10848_v62 = vpack.i.bf16 %v3492_v31, %v3489_v47 }
 0x6ec   : > { %v7364_v4 = vpop.permute.xlu1 %7363  ;;  %v7359_v60 = vpop.permute.xlu0 %7358  ;;  %7463 = vrot.lane.b32.xlu2 %v7452_v58, %s8109_s17  ;;  %7473 = vrot.lane.b32.xlu1 %v7452_v58, %s12130_s1  ;;  %s12322_s17 = smov 100  }
 0x6ed   : > { %v7366_v29 = vunpack.i.h.bf16 %v7364_v4  ;;  %v7365_v7 = vunpack.i.l.bf16 %v7364_v4  ;;  %v7361_v48 = vunpack.i.h.bf16 %v7359_v60  ;;  %v7360_v17 = vunpack.i.l.bf16 %v7359_v60  ;;  %7478 = vrot.lane.b32.xlu0 %v10827_v6, %s12318_s19 }
 0x6ee   : > { %v7256_v4 = vunpack.i.h.bf16 %v10716_v13  ;;  %v7186_v60 = vunpack.i.h.bf16 %v10653_v25  ;;  %v7320_v13 = vunpack.i.l.bf16 %v10778_v36 }
 0x6ef   : > { %v10852_v38 = vsel %vm2216_vm12, %v10722_v9, %v7366_v29  ;;  %v10856_v11 = vsel %vm2216_vm12, %v10725_v40, %v7365_v7  ;;  %v10860_v15 = vsel %vm2216_vm12, %v10745_v32, %v7361_v48  ;;  %v10864_v59 = vsel %vm2216_vm12, %v10748_v21, %v7360_v17  ;;  %v3462_v9 = vpop.f32.mrf.mxu0  ;;  %v10879_v32 = vpop.permute.xlu2 %7368 }
 0x6f0   : > { %v7512_v40 = vpack.i.bf16 %v3462_v9, %v3459_v35  ;;  %v7326_v29 = vunpack.i.h.bf16 %v10742_v55  ;;  %v7321_v7 = vunpack.i.h.bf16 %v10778_v36 }
 0x6f1   : > { %v3495_v48 = vpop.f32.mrf.mxu1 }
 0x6f4   : > { %7488 = vrot.lane.b32.xlu2 %v10827_v6, %s12319_s15  ;;  %7483 = vrot.lane.b32.xlu1 %v10827_v6, %s12317_s29 }
 0x6f5   : > { %7493 = vrot.lane.b32.xlu0 %v10827_v6, %s12320_s6 }
 0x6f7   : > { %v3465_v57 = vpop.f32.mrf.mxu0 }
 0x6fc   : > { %7503 = vrot.lane.b32.xlu2 %v10827_v6, %s12321_s27  ;;  %7498 = vrot.lane.b32.xlu1 %v10827_v6, %s12322_s17 }
 0x6fd   : > { %7513 = vrot.lane.b32.xlu0 %v7512_v40, %s12130_s1  ;;  %s8112_s1 = smov 46  }
 0x6ff   : > { %v3468_v2 = vpop.f32.mrf.mxu0 }
 0x700   : > { %v7572_v42 = vpack.i.bf16 %v3468_v2, %v3465_v57 }
 0x704   : > { %7518 = vrot.lane.b32.xlu1 %v7512_v40, %s12323_s13  ;;  %7508 = vrot.lane.b32.xlu2 %v7512_v40, %s12324_s0 }
 0x705   : > { %7528 = vrot.lane.b32.xlu0 %v7512_v40, %s12183_s25 }
 0x707   : > { %v7384_v21 = vpop.permute.xlu2 %7383 }
 0x708   : > { %v7386_v27 = vunpack.i.h.bf16 %v7384_v21  ;;  %v7385_v58 = vunpack.i.l.bf16 %v7384_v21 }
 0x70a   : > { %v10886_v41 = vsel %vm3628_vm3, %v10787_v18, %v7386_v27  ;;  %v10890_v37 = vsel %vm3628_vm3, %v10791_v61, %v7385_v58 }
 0x70c   : > { %7533 = vrot.lane.b32.xlu1 %v7512_v40, %s8112_s1  ;;  %7523 = vrot.lane.b32.xlu2 %v7512_v40, %s8113_s2 }
 0x70d   : > { %7553 = vrot.lane.b32.xlu0 %v10848_v62, %s12319_s15  ;;  %s8116_s15 = smov 117  }
 0x70f   : > { %v7399_v12 = vpop.permute.xlu2 %7398 }
 0x710   : > { %v7401_v63 = vunpack.i.h.bf16 %v7399_v12  ;;  %v7400_v34 = vunpack.i.l.bf16 %v7399_v12 }
 0x712   : > { %v10898_v18 = vsel %vm3628_vm3, %v10815_v14, %v7401_v63  ;;  %v10902_v61 = vsel %vm3628_vm3, %v10818_v46, %v7400_v34 }
 0x714   : > { %7543 = vrot.lane.b32.xlu1 %v10848_v62, %s12318_s19  ;;  %7538 = vrot.lane.b32.xlu2 %v7512_v40, %s12184_s14  ;;  %s8115_s19 = smov 119  }
 0x715   : > { %7568 = vrot.lane.b32.xlu0 %v10848_v62, %s12321_s27  ;;  %s12329_s27 = smov 85  }
 0x71c   : > { %7558 = vrot.lane.b32.xlu1 %v10848_v62, %s12320_s6  ;;  %7548 = vrot.lane.b32.xlu2 %v10848_v62, %s12317_s29  ;;  %s12328_s6 = smov 98  }
 0x71d   : > { %7573 = vrot.lane.b32.xlu0 %v7572_v42, %s12324_s0  ;;  %s12325_s0 = smov 48  }
 0x71f   : > { %v7379_v14 = vpop.permute.xlu1 %7378 }
 0x720   : > { %v7381_v46 = vunpack.i.h.bf16 %v7379_v14  ;;  %v7380_v8 = vunpack.i.l.bf16 %v7379_v14  ;;  %v7374_v47 = vpop.permute.xlu0 %7373 }
 0x721   : > { %v7376_v10 = vunpack.i.h.bf16 %v7374_v47  ;;  %v7375_v44 = vunpack.i.l.bf16 %v7374_v47 }
 0x722   : > { %v10918_v1 = vsel %vm3628_vm3, %v10735_v0, %v7381_v46  ;;  %v10922_v23 = vsel %vm3628_vm3, %v10738_v51, %v7380_v8  ;;  %v7185_v0 = vunpack.i.l.bf16 %v10653_v25  ;;  %v7325_v51 = vunpack.i.l.bf16 %v10742_v55 }
 0x723   : > { %v10926_v50 = vsel %vm3628_vm3, %v10765_v54, %v7376_v10  ;;  %v10930_v31 = vsel %vm3628_vm3, %v10768_v20, %v7375_v44  ;;  %v7191_v54 = vunpack.i.h.bf16 %v10646_v26  ;;  %v7190_v20 = vunpack.i.l.bf16 %v10646_v26  ;;  %v3498_v10 = vpop.f32.mrf.mxu1 }
 0x724   : > { %7563 = vrot.lane.b32.xlu2 %v10848_v62, %s12322_s17  ;;  %7578 = vrot.lane.b32.xlu1 %v7572_v42, %s12325_s0  ;;  %v4000_v25 = vsel %vm3619_vm5, %v7186_v60, %v7251_v56  ;;  %v3999_v55 = vsel %vm3619_vm5, %v7185_v0, %v7250_v52  ;;  %v10981_v60 = vpack.i.bf16 %v3498_v10, %v3495_v48  ;;  %v3471_v0 = vpop.f32.mrf.mxu0  ;;  %s12334_s0 = sld [smem:[#allocation48_spill]] }
 0x725   : > { %7588 = vrot.lane.b32.xlu0 %v7572_v42, %s8113_s2  ;;  %v4124_v9 = vsel %vm3619_vm5, %v7191_v54, %v7256_v4  ;;  %v4123_v40 = vsel %vm3619_vm5, %v7190_v20, %v7255_v33  ;;  %v4004_v63 = vsel %vm2216_vm12, %v4000_v25, %v7321_v7  ;;  %v4003_v34 = vsel %vm2216_vm12, %v3999_v55, %v7320_v13  ;;  %s8114_s2 = smov 118  }
 0x726   : > { %v10948_v17 = vpop.permute.xlu2 %7408  ;;  %v4128_v58 = vsel %vm2216_vm12, %v4124_v9, %v7326_v29  ;;  %v4127_v36 = vsel %vm2216_vm12, %v4123_v40, %v7325_v51  ;;  %v7275_v51 = vunpack.i.l.bf16 %v10727_v22  ;;  %v7345_v54 = vunpack.i.l.bf16 %v10833_v49 }
 0x727   : > { %v7394_v35 = vpop.permute.xlu1 %7393  ;;  %v7205_v20 = vunpack.i.l.bf16 %v10660_v28 }
 0x728   : > { %v7396_v21 = vunpack.i.h.bf16 %v7394_v35  ;;  %v7395_v26 = vunpack.i.l.bf16 %v7394_v35  ;;  %v7389_v27 = vpop.permute.xlu0 %7388 }
 0x729   : > { %v7391_v57 = vunpack.i.h.bf16 %v7389_v27  ;;  %v7390_v12 = vunpack.i.l.bf16 %v7389_v27  ;;  %v3753_v13 = vsel %vm3619_vm5, %v7205_v20, %v7275_v51 }
 0x72a   : > { %v10957_v2 = vsel %vm3628_vm3, %v4128_v58, %v7396_v21  ;;  %v10960_v14 = vsel %vm3628_vm3, %v4127_v36, %v7395_v26 }
 0x72b   : > { %v10963_v46 = vsel %vm3628_vm3, %v4004_v63, %v7391_v57  ;;  %v10966_v8 = vsel %vm3628_vm3, %v4003_v34, %v7390_v12  ;;  %v3501_v27 = vpop.f32.mrf.mxu1 }
 0x72c   : > { %7583 = vrot.lane.b32.xlu2 %v7572_v42, %s12323_s13  ;;  %7593 = vrot.lane.b32.xlu1 %v7572_v42, %s12183_s25  ;;  %s12326_s25 = smov 99   ;;  %v3474_v48 = vpop.f32.mrf.mxu0 }
 0x72d   : > { %7603 = vrot.lane.b32.xlu0 %v7572_v42, %s12184_s14  ;;  %v7637_v26 = vpack.i.bf16 %v3474_v48, %v3471_v0 }
 0x72e   : > { %v10971_v47 = vpop.permute.xlu2 %7423 }
 0x730   : > { %v7404_v44 = vpop.permute.xlu0 %7403 }
 0x731   : > { %v7406_v56 = vunpack.i.h.bf16 %v7404_v44  ;;  %v7405_v52 = vunpack.i.l.bf16 %v7404_v44 }
 0x733   : > { %v10975_v4 = vsel %vm3628_vm3, %v10821_v39, %v7406_v56  ;;  %v10979_v33 = vsel %vm3628_vm3, %v10824_v19, %v7405_v52  ;;  %v7276_v39 = vunpack.i.h.bf16 %v10727_v22  ;;  %v7346_v19 = vunpack.i.h.bf16 %v10833_v49  ;;  %v3504_v51 = vpop.f32.mrf.mxu1 }
 0x734   : > { %7598 = vrot.lane.b32.xlu2 %v7572_v42, %s8112_s1  ;;  %7618 = vrot.lane.b32.xlu1 %v10981_v60, %s8114_s2  ;;  %s12327_s1 = smov 97   ;;  %v7206_v42 = vunpack.i.h.bf16 %v10660_v28  ;;  %v3757_v28 = vsel %vm2216_vm12, %v3753_v13, %v7345_v54 }
 0x735   : > { %7613 = vrot.lane.b32.xlu0 %v10981_v60, %s12326_s25 }
 0x736   : > { %v10988_v29 = vpop.permute.xlu2 %7438  ;;  %v3754_v49 = vsel %vm3619_vm5, %v7206_v42, %v7276_v39 }
 0x737   : > { %v3758_v9 = vsel %vm2216_vm12, %v3754_v49, %v7346_v19 }
 0x73c   : > { %7608 = vrot.lane.b32.xlu2 %v10981_v60, %s8115_s19  ;;  %7633 = vrot.lane.b32.xlu1 %v10981_v60, %s12327_s1 }
 0x73d   : > { %7628 = vrot.lane.b32.xlu0 %v10981_v60, %s8116_s15 }
 0x73e   : > { %v11002_v22 = vpop.permute.xlu1 %7418  ;;  %v7449_v7 = vpop.permute.xlu2 %7448 }
 0x73f   : > { %v11006_v25 = vpop.permute.xlu0 %7413  ;;  %v7451_v55 = vunpack.i.h.bf16 %v7449_v7  ;;  %v7450_v35 = vunpack.i.l.bf16 %v7449_v7  ;;  %v7672_v7 = vpack.i.bf16 %v3504_v51, %v3501_v27 }
 0x741   : > { %v11011_v40 = vsel %vm3628_vm3, %v3758_v9, %v7451_v55  ;;  %v11014_v21 = vsel %vm3628_vm3, %v3757_v28, %v7450_v35  ;;  %v7301_v35 = vunpack.i.h.bf16 %v10752_v24 }
 0x744   : > { %7623 = vrot.lane.b32.xlu2 %v10981_v60, %s12328_s6  ;;  %7638 = vrot.lane.b32.xlu1 %v7637_v26, %s12329_s27  ;;  %s12332_s27 = smov 26  }
 0x745   : > { %7648 = vrot.lane.b32.xlu0 %v7637_v26, %s12315_s3 }
 0x746   : > { %v11020_v58 = vpop.permute.xlu1 %7433  ;;  %v7464_v36 = vpop.permute.xlu2 %7463 }
 0x747   : > { %v11022_v57 = vpop.permute.xlu0 %7428  ;;  %v7466_v12 = vunpack.i.h.bf16 %v7464_v36  ;;  %v7465_v63 = vunpack.i.l.bf16 %v7464_v36  ;;  %v7231_v36 = vunpack.i.h.bf16 %v10685_v5 }
 0x749   : > { %v11026_v34 = vsel %vm3628_vm3, %v10860_v15, %v7466_v12  ;;  %v11030_v10 = vsel %vm3628_vm3, %v10864_v59, %v7465_v63  ;;  %v7371_v12 = vunpack.i.h.bf16 %v10879_v32 }
 0x74c   : > { %7643 = vrot.lane.b32.xlu2 %v7637_v26, %s12184_s14  ;;  %7653 = vrot.lane.b32.xlu1 %v7637_v26, %s12188_s12  ;;  %s8117_s14 = smov 116  }
 0x74d   : > { %7663 = vrot.lane.b32.xlu0 %v7637_v26, %s12189_s9 }
 0x74e   : > { %v11035_v44 = vpop.permute.xlu2 %7488  ;;  %v7444_v56 = vpop.permute.xlu1 %7443 }
 0x74f   : > { %v7454_v52 = vpop.permute.xlu0 %7453  ;;  %v7446_v0 = vunpack.i.h.bf16 %v7444_v56  ;;  %v7445_v39 = vunpack.i.l.bf16 %v7444_v56 }
 0x750   : > { %v7456_v19 = vunpack.i.h.bf16 %v7454_v52  ;;  %v7455_v15 = vunpack.i.l.bf16 %v7454_v52 }
 0x751   : > { %v11039_v54 = vsel %vm3628_vm3, %v10772_v45, %v7446_v0  ;;  %v11043_v59 = vsel %vm3628_vm3, %v10775_v43, %v7445_v39 }
 0x752   : > { %v11047_v42 = vsel %vm3628_vm3, %v10840_v16, %v7456_v19  ;;  %v11051_v20 = vsel %vm3628_vm3, %v10843_v3, %v7455_v15  ;;  %v7300_v3 = vunpack.i.l.bf16 %v10752_v24  ;;  %v7230_v24 = vunpack.i.l.bf16 %v10685_v5 }
 0x754   : > { %7658 = vrot.lane.b32.xlu2 %v7637_v26, %s12316_s18  ;;  %7668 = vrot.lane.b32.xlu1 %v7637_v26, %s12317_s29  ;;  %s12330_s18 = sld [smem:[#allocation47_spill]] }
 0x755   : > { %7673 = vrot.lane.b32.xlu0 %v7672_v7, %s8115_s19  ;;  %s12331_s19 = smov 94   ;;  %s12333_s29 = sld [smem:[#allocation49_spill]] }
 0x756   : > { %v11056_v45 = vpop.permute.xlu2 %7503  ;;  %v7459_v49 = vpop.permute.xlu1 %7458 }
 0x757   : > { %v7469_v43 = vpop.permute.xlu0 %7468  ;;  %v7461_v13 = vunpack.i.h.bf16 %v7459_v49  ;;  %v7460_v48 = vunpack.i.l.bf16 %v7459_v49 }
 0x758   : > { %v7471_v55 = vunpack.i.h.bf16 %v7469_v43  ;;  %v7470_v16 = vunpack.i.l.bf16 %v7469_v43 }
 0x759   : > { %v11062_v9 = vsel %vm3628_vm3, %v10796_v30, %v7461_v13  ;;  %v11066_v28 = vsel %vm3628_vm3, %v10799_v53, %v7460_v48  ;;  %v7370_v30 = vunpack.i.l.bf16 %v10879_v32  ;;  %v4374_v53 = vsel %vm3619_vm5, %v7231_v36, %v7301_v35 }
 0x75a   : > { %v11070_v26 = vsel %vm3628_vm3, %v10852_v38, %v7471_v55  ;;  %v11074_v27 = vsel %vm3628_vm3, %v10856_v11, %v7470_v16  ;;  %v4373_v38 = vsel %vm3619_vm5, %v7230_v24, %v7300_v3  ;;  %v4378_v32 = vsel %vm2216_vm12, %v4374_v53, %v7371_v12 }
 0x75b   : > { %v4377_v51 = vsel %vm2216_vm12, %v4373_v38, %v7370_v30  ;;  %vm4943_vm12 = vcmask 1044484  }
 0x75c   : > { %7683 = vrot.lane.b32.xlu2 %v7672_v7, %s8114_s2  ;;  %7678 = vrot.lane.b32.xlu1 %v7672_v7, %s12326_s25 }
 0x75d   : > { %7688 = vrot.lane.b32.xlu0 %v7672_v7, %s12328_s6  ;;  %s8121_s6 = smov 43  }
 0x75e   : > { %v7474_v11 = vpop.permute.xlu1 %7473  ;;  %v7509_v63 = vpop.permute.xlu2 %7508 }
 0x75f   : > { %v11085_v56 = vpop.permute.xlu0 %7478  ;;  %v7476_v52 = vunpack.i.h.bf16 %v7474_v11  ;;  %v7475_v5 = vunpack.i.l.bf16 %v7474_v11  ;;  %v7511_v0 = vunpack.i.h.bf16 %v7509_v63  ;;  %v7510_v39 = vunpack.i.l.bf16 %v7509_v63 }
 0x761   : > { %v11090_v19 = vsel %vm3628_vm3, %v4378_v32, %v7476_v52  ;;  %v11093_v15 = vsel %vm3628_vm3, %v4377_v51, %v7475_v5  ;;  %v11097_v49 = vsel %vm974_vm1, %v10926_v50, %v7511_v0  ;;  %v11101_v43 = vsel %vm974_vm1, %v10930_v31, %v7510_v39  ;;  %v3325_v32 = vld [vmem:[%s12330_s18 + $0x18] sm:$0xff] }
 0x764   : > { %7708 = vrot.lane.b32.xlu2 %v10981_v60, %s8117_s14  ;;  %7698 = vrot.lane.b32.xlu1 %v7672_v7, %s8116_s15  ;;  %s8120_s15 = smov 9  }
 0x765   : > { %7693 = vrot.lane.b32.xlu0 %v10827_v6, %s12326_s25 }
 0x766   : > { %v11107_v13 = vpop.permute.xlu1 %7483  ;;  %v7524_v48 = vpop.permute.xlu2 %7523 }
 0x767   : > { %v11109_v55 = vpop.permute.xlu0 %7493  ;;  %v7526_v16 = vunpack.i.h.bf16 %v7524_v48  ;;  %v7525_v50 = vunpack.i.l.bf16 %v7524_v48 }
 0x769   : > { %v11113_v35 = vsel %vm974_vm1, %v10963_v46, %v7526_v16  ;;  %v11117_v31 = vsel %vm974_vm1, %v10966_v8, %v7525_v50 }
 0x76c   : > { %7713 = vrot.lane.b32.xlu2 %v7672_v7, %s12327_s1  ;;  %7703 = vrot.lane.b32.xlu1 %v10848_v62, %s12326_s25  ;;  %v3323_v62 = vld [vmem:[%s12330_s18 + $0x8] sm:$0xff]  ;;  %s8118_s25 = smov 77   ;;  %s8119_s1 = smov 111  }
 0x76d   : > { %7718 = vrot.lane.b32.xlu0 %v7672_v7, %s8117_s14  ;;  %v3322_v7 = vld [vmem:[%s12330_s18] sm:$0xff]  ;;  %s5986_s14 = sshll.u32 %s8211_s28, 3  ;;  %s5666_s28 = scalar_lea.sflag [#allocation4], %s8327_s26 }
 0x76e   : > { %v11122_v6 = vpop.permute.xlu1 %7498  ;;  %v7539_v60 = vpop.permute.xlu2 %7538  ;;  %s5676_s3 = scalar_lea.hbm %s12333_s29, %s5986_s14  ;;  %s7953_s14 = scalar_lea.hbm %s12333_s29, 16 }
 0x76f   : > { %v7514_v3 = vpop.permute.xlu0 %7513  ;;  %v7541_v36 = vunpack.i.h.bf16 %v7539_v60  ;;  %v7540_v24 = vunpack.i.l.bf16 %v7539_v60 }
 0x770   : > { %v7516_v12 = vunpack.i.h.bf16 %v7514_v3  ;;  %v7515_v30 = vunpack.i.l.bf16 %v7514_v3 }
 0x771   : > { %v11126_v46 = vsel %vm974_vm1, %v10975_v4, %v7541_v36  ;;  %v11130_v8 = vsel %vm974_vm1, %v10979_v33, %v7540_v24  ;;  %v3324_v33 = vld [vmem:[%s12330_s18 + $0x10] sm:$0xff] }
 0x772   : > { %v11140_v53 = vsel %vm974_vm1, %v10918_v1, %v7516_v12  ;;  %v11144_v4 = vsel %vm974_vm1, %v10922_v23, %v7515_v30 }
 0x774   : > { %4406 = vperm.xlu2 %6620, %v3323_v62   ;;  %4401 = vperm.xlu1 %6619, %v3322_v7   ;;  %v7421_v62 = vunpack.i.h.bf16 %v11002_v22  ;;  %v7420_v7 = vunpack.i.l.bf16 %v11002_v22  ;;  %v7411_v22 = vunpack.i.h.bf16 %v10948_v17 }
 0x775   : > { %4411 = vperm.xlu0 %6621, %v3324_v33  }
 0x776   : > { %v7519_v38 = vpop.permute.xlu1 %7518  ;;  %v11149_v11 = vpop.permute.xlu2 %7548 }
 0x777   : > { %v7521_v63 = vunpack.i.h.bf16 %v7519_v38  ;;  %v7520_v52 = vunpack.i.l.bf16 %v7519_v38  ;;  %v7529_v5 = vpop.permute.xlu0 %7528 }
 0x778   : > { %v7531_v0 = vunpack.i.h.bf16 %v7529_v5  ;;  %v7530_v1 = vunpack.i.l.bf16 %v7529_v5 }
 0x779   : > { %v11153_v39 = vsel %vm974_vm1, %v10886_v41, %v7521_v63  ;;  %v11157_v23 = vsel %vm974_vm1, %v10890_v37, %v7520_v52 }
 0x77a   : > { %v11164_v51 = vsel %vm974_vm1, %v10957_v2, %v7531_v0  ;;  %v11168_v48 = vsel %vm974_vm1, %v10960_v14, %v7530_v1  ;;  %v7410_v1 = vunpack.i.l.bf16 %v10948_v17 }
 0x77c   : > { %4416 = vperm.xlu1 %6619, %v3325_v32  }
 0x77e   : > { %v7534_v16 = vpop.permute.xlu1 %7533  ;;  %v11170_v41 = vpop.permute.xlu2 %7563 }
 0x77f   : > { %v7536_v50 = vunpack.i.h.bf16 %v7534_v16  ;;  %v7535_v60 = vunpack.i.l.bf16 %v7534_v16  ;;  %v7554_v37 = vpop.permute.xlu0 %7553 }
 0x780   : > { %v7556_v33 = vunpack.i.h.bf16 %v7554_v37  ;;  %v7555_v38 = vunpack.i.l.bf16 %v7554_v37 }
 0x781   : > { %v11174_v3 = vsel %vm974_vm1, %v10898_v18, %v7536_v50  ;;  %v11178_v36 = vsel %vm974_vm1, %v10902_v61, %v7535_v60 }
 0x786   : > { %v7544_v2 = vpop.permute.xlu1 %7543  ;;  %v7584_v24 = vpop.permute.xlu2 %7583 }
 0x787   : > { %v7569_v12 = vpop.permute.xlu0 %7568  ;;  %v7586_v14 = vunpack.i.h.bf16 %v7584_v24  ;;  %v7585_v30 = vunpack.i.l.bf16 %v7584_v24  ;;  %v7546_v24 = vunpack.i.h.bf16 %v7544_v2 }
 0x789   : > { %v3890_v18 = vsel %vm974_vm1, %v11047_v42, %v7586_v14  ;;  %v3889_v63 = vsel %vm974_vm1, %v11051_v20, %v7585_v30  ;;  %v7436_v42 = vunpack.i.h.bf16 %v11020_v58  ;;  %v7435_v20 = vunpack.i.l.bf16 %v11020_v58 }
 0x78a   : > { %v3894_v61 = vsel %vm3637_vm6, %v3890_v18, %v7421_v62  ;;  %v3893_v52 = vsel %vm3637_vm6, %v3889_v63, %v7420_v7  ;;  %v7545_v14 = vunpack.i.l.bf16 %v7544_v2  ;;  %v7571_v7 = vunpack.i.h.bf16 %v7569_v12 }
 0x78b   : > { %v11189_v5 = vsel %vm2225_vm13, %v3894_v61, %v7556_v33  ;;  %v11192_v0 = vsel %vm2225_vm13, %v3893_v52, %v7555_v38  ;;  %v7570_v33 = vunpack.i.l.bf16 %v7569_v12 }
 0x78e   : > { %v7559_v32 = vpop.permute.xlu1 %7558  ;;  %v7599_v16 = vpop.permute.xlu2 %7598 }
 0x78f   : > { %v7601_v50 = vunpack.i.h.bf16 %v7599_v16  ;;  %v7600_v60 = vunpack.i.l.bf16 %v7599_v16  ;;  %v7574_v37 = vpop.permute.xlu0 %7573  ;;  %v7425_v16 = vunpack.i.l.bf16 %v10971_v47 }
 0x790   : > { %v7576_v30 = vunpack.i.h.bf16 %v7574_v37  ;;  %v7575_v62 = vunpack.i.l.bf16 %v7574_v37 }
 0x791   : > { %v4262_v38 = vsel %vm974_vm1, %v11070_v26, %v7601_v50  ;;  %v4261_v17 = vsel %vm974_vm1, %v11074_v27, %v7600_v60 }
 0x792   : > { %v3636_v18 = vsel %vm974_vm1, %v11039_v54, %v7576_v30  ;;  %v3635_v58 = vsel %vm974_vm1, %v11043_v59, %v7575_v62  ;;  %v4266_v63 = vsel %vm3637_vm6, %v4262_v38, %v7436_v42  ;;  %v4265_v2 = vsel %vm3637_vm6, %v4261_v17, %v7435_v20 }
 0x793   : > { %v3641_v61 = vsel %vm3637_vm6, %v3636_v18, %v7411_v22  ;;  %v11210_v12 = vsel %vm2225_vm13, %v4266_v63, %v7571_v7  ;;  %v3640_v26 = vsel %vm3637_vm6, %v3635_v58, %v7410_v1  ;;  %v11214_v52 = vsel %vm2225_vm13, %v4265_v2, %v7570_v33 }
 0x794   : > { %v11217_v27 = vsel %vm2225_vm13, %v3641_v61, %v7546_v24  ;;  %v11220_v54 = vsel %vm2225_vm13, %v3640_v26, %v7545_v14  ;;  %v7426_v59 = vunpack.i.h.bf16 %v10971_v47  ;;  %v7416_v20 = vunpack.i.h.bf16 %v11006_v25 }
 0x795   : > { %v7415_v1 = vunpack.i.l.bf16 %v11006_v25  ;;  %v7551_v24 = vunpack.i.h.bf16 %v11149_v11  ;;  %v7550_v30 = vunpack.i.l.bf16 %v11149_v11  ;;  %v7561_v7 = vunpack.i.h.bf16 %v7559_v32 }
 0x796   : > { %v11224_v42 = vpop.permute.xlu2 %7608  ;;  %v7579_v22 = vpop.permute.xlu1 %7578  ;;  %v7560_v33 = vunpack.i.l.bf16 %v7559_v32  ;;  %v7441_v61 = vunpack.i.h.bf16 %v10988_v29  ;;  %v7440_v26 = vunpack.i.l.bf16 %v10988_v29 }
 0x797   : > { %v7581_v50 = vunpack.i.h.bf16 %v7579_v22  ;;  %v7580_v60 = vunpack.i.l.bf16 %v7579_v22  ;;  %v7589_v37 = vpop.permute.xlu0 %7588 }
 0x798   : > { %v7591_v14 = vunpack.i.h.bf16 %v7589_v37  ;;  %v7590_v62 = vunpack.i.l.bf16 %v7589_v37  ;;  %v7566_v37 = vunpack.i.h.bf16 %v11170_v41 }
 0x799   : > { %v3766_v47 = vsel %vm974_vm1, %v11011_v40, %v7581_v50  ;;  %v3765_v38 = vsel %vm974_vm1, %v11014_v21, %v7580_v60 }
 0x79a   : > { %v4014_v25 = vsel %vm974_vm1, %v11062_v9, %v7591_v14  ;;  %v4013_v17 = vsel %vm974_vm1, %v11066_v28, %v7590_v62  ;;  %v3770_v18 = vsel %vm3637_vm6, %v3766_v47, %v7416_v20  ;;  %v3769_v11 = vsel %vm3637_vm6, %v3765_v38, %v7415_v1 }
 0x79b   : > { %v4018_v58 = vsel %vm3637_vm6, %v4014_v25, %v7426_v59  ;;  %v4017_v32 = vsel %vm3637_vm6, %v4013_v17, %v7425_v16  ;;  %v11243_v63 = vsel %vm2225_vm13, %v3770_v18, %v7551_v24  ;;  %v11246_v40 = vsel %vm2225_vm13, %v3769_v11, %v7550_v30 }
 0x79c   : > { %v11249_v21 = vsel %vm2225_vm13, %v4018_v58, %v7561_v7  ;;  %v11252_v9 = vsel %vm2225_vm13, %v4017_v32, %v7560_v33  ;;  %v7431_v20 = vunpack.i.h.bf16 %v11022_v57  ;;  %v7430_v1 = vunpack.i.l.bf16 %v11022_v57 }
 0x79d   : > { %v7565_v24 = vunpack.i.l.bf16 %v11170_v41  ;;  %v7486_v17 = vunpack.i.h.bf16 %v11107_v13  ;;  %v7485_v18 = vunpack.i.l.bf16 %v11107_v13  ;;  %v7501_v13 = vunpack.i.h.bf16 %v11122_v6 }
 0x79e   : > { %v11254_v28 = vpop.permute.xlu2 %7623  ;;  %v7594_v2 = vpop.permute.xlu1 %7593 }
 0x79f   : > { %v7596_v59 = vunpack.i.h.bf16 %v7594_v2  ;;  %v7595_v16 = vunpack.i.l.bf16 %v7594_v2  ;;  %v7604_v22 = vpop.permute.xlu0 %7603 }
 0x7a0   : > { %v7606_v50 = vunpack.i.h.bf16 %v7604_v22  ;;  %v7605_v60 = vunpack.i.l.bf16 %v7604_v22 }
 0x7a1   : > { %v4138_v30 = vsel %vm974_vm1, %v11026_v34, %v7596_v59  ;;  %v4137_v14 = vsel %vm974_vm1, %v11030_v10, %v7595_v16 }
 0x7a2   : > { %v4386_v29 = vsel %vm974_vm1, %v11090_v19, %v7606_v50  ;;  %v4385_v62 = vsel %vm974_vm1, %v11093_v15, %v7605_v60  ;;  %v4142_v57 = vsel %vm3637_vm6, %v4138_v30, %v7431_v20  ;;  %v4141_v7 = vsel %vm3637_vm6, %v4137_v14, %v7430_v1 }
 0x7a3   : > { %v11273_v33 = vsel %vm3637_vm6, %v4386_v29, %v7441_v61  ;;  %v11276_v41 = vsel %vm3637_vm6, %v4385_v62, %v7440_v26  ;;  %v11279_v34 = vsel %vm2225_vm13, %v4142_v57, %v7566_v37  ;;  %v11282_v10 = vsel %vm2225_vm13, %v4141_v7, %v7565_v24 }
 0x7a4   : > { %vm3646_vm1 = vcmask 973824   ;;  %v7480_v62 = vunpack.i.l.bf16 %v11085_v56 }
 0x7a6   : > { %v11284_v19 = vpop.permute.xlu1 %7618  ;;  %v7644_v47 = vpop.permute.xlu2 %7643 }
 0x7a7   : > { %v11286_v15 = vpop.permute.xlu0 %7613  ;;  %v7646_v38 = vunpack.i.h.bf16 %v7644_v47  ;;  %v7645_v25 = vunpack.i.l.bf16 %v7644_v47  ;;  %v7491_v47 = vunpack.i.h.bf16 %v11035_v44 }
 0x7a9   : > { %v3768_v11 = vsel %vm3637_vm6, %v11140_v53, %v7646_v38  ;;  %v3767_v58 = vsel %vm3637_vm6, %v11144_v4, %v7645_v25  ;;  %v7500_v53 = vunpack.i.l.bf16 %v11122_v6  ;;  %v7490_v38 = vunpack.i.l.bf16 %v11035_v44 }
 0x7aa   : > { %v11295_v32 = vsel %vm2225_vm13, %v3768_v11, %v7486_v17  ;;  %v11298_v2 = vsel %vm2225_vm13, %v3767_v58, %v7485_v18 }
 0x7ae   : > { %v11300_v61 = vpop.permute.xlu1 %7633  ;;  %v7659_v26 = vpop.permute.xlu2 %7658 }
 0x7af   : > { %v11302_v59 = vpop.permute.xlu0 %7628  ;;  %v7661_v16 = vunpack.i.h.bf16 %v7659_v26  ;;  %v7660_v22 = vunpack.i.l.bf16 %v7659_v26 }
 0x7b0   : > { %v7631_v20 = vunpack.i.h.bf16 %v11302_v59  ;;  %v7630_v4 = vunpack.i.l.bf16 %v11302_v59 }
 0x7b1   : > { %v4140_v1 = vsel %vm3637_vm6, %v11164_v51, %v7661_v16  ;;  %v4139_v50 = vsel %vm3637_vm6, %v11168_v48, %v7660_v22  ;;  %v7481_v48 = vunpack.i.h.bf16 %v11085_v56 }
 0x7b2   : > { %v4144_v60 = vsel %vm2225_vm13, %v4140_v1, %v7501_v13  ;;  %v4143_v37 = vsel %vm2225_vm13, %v4139_v50, %v7500_v53  ;;  %v7496_v13 = vunpack.i.h.bf16 %v11109_v55  ;;  %v7506_v1 = vunpack.i.h.bf16 %v11056_v45 }
 0x7b3   : > { %v11317_v24 = vsel %vm3646_vm1, %v4144_v60, %v7631_v20  ;;  %v11322_v6 = vsel %vm3646_vm1, %v4143_v37, %v7630_v4  ;;  %v7505_v50 = vunpack.i.l.bf16 %v11056_v45 }
 0x7b6   : > { %v7639_v30 = vpop.permute.xlu1 %7638 }
 0x7b7   : > { %v7649_v51 = vpop.permute.xlu0 %7648  ;;  %v7641_v14 = vunpack.i.h.bf16 %v7639_v30  ;;  %v7640_v29 = vunpack.i.l.bf16 %v7639_v30 }
 0x7b8   : > { %v7651_v57 = vunpack.i.h.bf16 %v7649_v51  ;;  %v7650_v7 = vunpack.i.l.bf16 %v7649_v51 }
 0x7b9   : > { %v3639_v25 = vsel %vm3637_vm6, %v11097_v49, %v7641_v14  ;;  %v3638_v17 = vsel %vm3637_vm6, %v11101_v43, %v7640_v29 }
 0x7ba   : > { %v3892_v18 = vsel %vm3637_vm6, %v11153_v39, %v7651_v57  ;;  %v3891_v11 = vsel %vm3637_vm6, %v11157_v23, %v7650_v7  ;;  %v11337_v56 = vsel %vm2225_vm13, %v3639_v25, %v7481_v48  ;;  %v11340_v58 = vsel %vm2225_vm13, %v3638_v17, %v7480_v62  ;;  %v11368_v62 = vpop.permute.xlu2 %7683 }
 0x7bb   : > { %v3896_v44 = vsel %vm2225_vm13, %v3892_v18, %v7491_v47  ;;  %v3895_v26 = vsel %vm2225_vm13, %v3891_v11, %v7490_v38  ;;  %v7495_v39 = vunpack.i.l.bf16 %v11109_v55  ;;  %v7626_v47 = vunpack.i.h.bf16 %v11254_v28 }
 0x7bc   : > { %v7625_v25 = vunpack.i.l.bf16 %v11254_v28  ;;  %v7686_v17 = vunpack.i.h.bf16 %v11368_v62  ;;  %v3318_v28 = vld [vmem:[#allocation11 + $0x20] sm:$0xff] }
 0x7be   : > { %v7654_v49 = vpop.permute.xlu1 %7653 }
 0x7bf   : > { %v7664_v16 = vpop.permute.xlu0 %7663  ;;  %v7656_v22 = vunpack.i.h.bf16 %v7654_v49  ;;  %v7655_v43 = vunpack.i.l.bf16 %v7654_v49  ;;  %v7685_v49 = vunpack.i.l.bf16 %v11368_v62 }
 0x7c0   : > { %v7666_v53 = vunpack.i.h.bf16 %v7664_v16  ;;  %v7665_v23 = vunpack.i.l.bf16 %v7664_v16 }
 0x7c1   : > { %v4016_v60 = vsel %vm3637_vm6, %v11113_v35, %v7656_v22  ;;  %v4015_v37 = vsel %vm3637_vm6, %v11117_v31, %v7655_v43  ;;  %v3902_v22 = vsel %vm3646_vm1, %v11189_v5, %v7686_v17  ;;  %v7621_v43 = vunpack.i.h.bf16 %v11284_v19 }
 0x7c2   : > { %v4020_v30 = vsel %vm2225_vm13, %v4016_v60, %v7496_v13  ;;  %v4019_v51 = vsel %vm2225_vm13, %v4015_v37, %v7495_v39  ;;  %v4264_v14 = vsel %vm3637_vm6, %v11174_v3, %v7666_v53  ;;  %v4263_v55 = vsel %vm3637_vm6, %v11178_v36, %v7665_v23 }
 0x7c3   : > { %v11359_v29 = vsel %vm2225_vm13, %v4264_v14, %v7506_v1  ;;  %v11362_v45 = vsel %vm2225_vm13, %v4263_v55, %v7505_v50  ;;  %v4024_v11 = vsel %vm3646_vm1, %v4020_v30, %v7626_v47  ;;  %v4023_v16 = vsel %vm3646_vm1, %v4019_v51, %v7625_v25 }
 0x7c4   : > { %v3901_v13 = vsel %vm3646_vm1, %v11192_v0, %v7685_v49  ;;  %v7620_v39 = vunpack.i.l.bf16 %v11284_v19  ;;  %v3900_v50 = vsel %vm3646_vm1, %v3896_v44, %v7621_v43  ;;  %v3321_v19 = vld [vmem:[#allocation11 + $0x38] sm:$0xff] }
 0x7c6   : > { %v7669_v35 = vpop.permute.xlu1 %7668  ;;  %v3899_v0 = vsel %vm3646_vm1, %v3895_v26, %v7620_v39 }
 0x7c7   : > { %v11364_v48 = vpop.permute.xlu0 %7673  ;;  %v7671_v53 = vunpack.i.h.bf16 %v7669_v35  ;;  %v7670_v51 = vunpack.i.l.bf16 %v7669_v35 }
 0x7ce   : > { %v11366_v31 = vpop.permute.xlu1 %7678 }
 0x7cf   : > { %v11370_v57 = vpop.permute.xlu0 %7688  ;;  %v7681_v23 = vunpack.i.h.bf16 %v11366_v31  ;;  %v7680_v14 = vunpack.i.l.bf16 %v11366_v31 }
 0x7d0   : > { %v7691_v3 = vunpack.i.h.bf16 %v11370_v57  ;;  %v7690_v7 = vunpack.i.l.bf16 %v11370_v57 }
 0x7d1   : > { %v3778_v26 = vsel %vm3646_vm1, %v11243_v63, %v7681_v23  ;;  %v3777_v63 = vsel %vm3646_vm1, %v11246_v40, %v7680_v14 }
 0x7d2   : > { %v4026_v36 = vsel %vm3646_vm1, %v11249_v21, %v7691_v3  ;;  %v4025_v38 = vsel %vm3646_vm1, %v11252_v9, %v7690_v7  ;;  %v11394_v9 = vpop.permute.xlu2 %7708 }
 0x7d3   : > { %4431 = vmatpush.msra.mxu2 %v4026_v36  ;;  %v7710_v40 = vunpack.i.l.bf16 %v11394_v9 }
 0x7d5   : > { %4432 = vmatpush.msra.mxu2 %v4025_v38 }
 0x7d6   : > { %v11385_v18 = vpop.permute.xlu1 %7698 }
 0x7d7   : > { %v7694_v21 = vpop.permute.xlu0 %7693  ;;  %4433 = vmatpush.msra.mxu2 %v4024_v11 }
 0x7d8   : > { %v7696_v5 = vunpack.i.h.bf16 %v7694_v21  ;;  %v7695_v38 = vunpack.i.l.bf16 %v7694_v21  ;;  %v7616_v21 = vunpack.i.h.bf16 %v11286_v15 }
 0x7d9   : > { %4434 = vmatpush.msra.mxu2 %v4023_v16  ;;  %v4388_v16 = vsel %vm3637_vm6, %v11126_v46, %v7671_v53  ;;  %v4387_v46 = vsel %vm3637_vm6, %v11130_v8, %v7670_v51  ;;  %v7615_v53 = vunpack.i.l.bf16 %v11286_v15 }
 0x7db   : > { %4435 = vmatpush.msra.mxu2 %v3902_v22  ;;  %v11432_v22 = vpop.permute.xlu2 %7713 }
 0x7dd   : > { %4436 = vmatpush.msra.mxu2 %v3901_v13 }
 0x7de   : > { %v7704_v1 = vpop.permute.xlu1 %7703 }
 0x7df   : > { %v11410_v60 = vpop.permute.xlu0 %7718  ;;  %v7706_v37 = vunpack.i.h.bf16 %v7704_v1  ;;  %v7705_v30 = vunpack.i.l.bf16 %v7704_v1  ;;  %4437 = vmatpush.msra.mxu2 %v3900_v50  ;;  %v3776_v1 = vsel %vm3646_vm1, %v11295_v32, %v7616_v21  ;;  %v4391_v50 = vsel %vm2225_vm13, %v4387_v46, %v7695_v38 }
 0x7e0   : > { %v7721_v55 = vunpack.i.h.bf16 %v11410_v60  ;;  %v7720_v36 = vunpack.i.l.bf16 %v11410_v60  ;;  %v3775_v32 = vsel %vm3646_vm1, %v11298_v2, %v7615_v53  ;;  %v4395_v51 = vsel %vm3646_vm1, %v4391_v50, %v7710_v40 }
 0x7e1   : > { %4438 = vmatpush.msra.mxu2 %v3899_v0  ;;  %v4394_v44 = vsel %vm2225_vm13, %v11273_v33, %v7706_v37  ;;  %v4393_v11 = vsel %vm2225_vm13, %v11276_v41, %v7705_v30  ;;  %v4392_v33 = vsel %vm2225_vm13, %v4388_v16, %v7696_v5  ;;  %v7711_v41 = vunpack.i.h.bf16 %v11394_v9 }
 0x7e2   : > { %v4398_v35 = vsel %vm3646_vm1, %v4394_v44, %v7721_v55  ;;  %v4397_v13 = vsel %vm3646_vm1, %v4393_v11, %v7720_v36  ;;  %v7676_v5 = vunpack.i.h.bf16 %v11364_v48  ;;  %v7716_v37 = vunpack.i.h.bf16 %v11432_v22 }
 0x7e3   : > { %4439 = vmatpush.msra.mxu2 %v3778_v26  ;;  %4464 = vmatpush.msra.mxu1 %v4398_v35  ;;  %v4396_v8 = vsel %vm3646_vm1, %v4392_v33, %v7711_v41  ;;  %v7675_v30 = vunpack.i.l.bf16 %v11364_v48  ;;  %v7715_v0 = vunpack.i.l.bf16 %v11432_v22  ;;  %v7611_v11 = vunpack.i.h.bf16 %v11224_v42  ;;  %v4407_v48 = vpop.permute.xlu2 %4406 }
 0x7e4   : > { %v3650_v38 = vsel %vm3646_vm1, %v11217_v27, %v7676_v5  ;;  %v4274_v44 = vsel %vm3646_vm1, %v11210_v12, %v7716_v37  ;;  %v7636_v26 = vunpack.i.h.bf16 %v11300_v61  ;;  %v7610_v16 = vunpack.i.l.bf16 %v11224_v42 }
 0x7e5   : > { %4440 = vmatpush.msra.mxu2 %v3777_v63  ;;  %4465 = vmatpush.msra.mxu1 %v4397_v13  ;;  %v3649_v2 = vsel %vm3646_vm1, %v11220_v54, %v7675_v30  ;;  %v4273_v35 = vsel %vm3646_vm1, %v11214_v52, %v7715_v0  ;;  %v7635_v12 = vunpack.i.l.bf16 %v11300_v61  ;;  %v7701_v27 = vunpack.i.h.bf16 %v11385_v18  ;;  %v3314_v54 = vld [vmem:[#allocation11] sm:$0xff] }
 0x7e6   : > { %v3648_v22 = vsel %vm3646_vm1, %v11337_v56, %v7611_v11  ;;  %v4272_v33 = vsel %vm3646_vm1, %v11359_v29, %v7636_v26  ;;  %v7700_v63 = vunpack.i.l.bf16 %v11385_v18  ;;  %v3647_v52 = vsel %vm3646_vm1, %v11340_v58, %v7610_v16  ;;  %v3316_v58 = vld [vmem:[#allocation11 + $0x10] sm:$0xff]  ;;  %v3315_v29 = vld [vmem:[#allocation11 + $0x8] sm:$0xff]  ;;  %v4402_v15 = vpop.permute.xlu1 %4401 }
 0x7e7   : > { %4441 = vmatpush.msra.mxu2 %v3776_v1  ;;  %4466 = vmatpush.msra.mxu1 %v4396_v8  ;;  %v4271_v42 = vsel %vm3646_vm1, %v11362_v45, %v7635_v12  ;;  %v4150_v61 = vsel %vm3646_vm1, %v11279_v34, %v7701_v27  ;;  %v3317_v34 = vld [vmem:[#allocation11 + $0x18] sm:$0xff]  ;;  %vm4946_vm13 = vcmask 1045509  }
 0x7e8   : > { %v4149_v56 = vsel %vm3646_vm1, %v11282_v10, %v7700_v63  ;;  %v3320_v10 = vld [vmem:[#allocation11 + $0x30] sm:$0xff] }
 0x7e9   : > { %4442 = vmatpush.msra.mxu2 %v3775_v32  ;;  %4467 = vmatpush.msra.mxu1 %v4395_v51 }
 0x7eb   : > { %4443 = vmatpush.msra.mxu2 %v3650_v38  ;;  %4468 = vmatpush.msra.mxu1 %v4274_v44 }
 0x7ed   : > { %4444 = vmatpush.msra.mxu2 %v3649_v2  ;;  %4469 = vmatpush.msra.mxu1 %v4273_v35 }
 0x7ef   : > { %4445 = vmatpush.msra.mxu2 %v3648_v22  ;;  %4470 = vmatpush.msra.mxu1 %v4272_v33 }
 0x7f1   : > { %4446 = vmatpush.msra.mxu2 %v3647_v52  ;;  %4471 = vmatpush.msra.mxu1 %v4271_v42 }
 0x7f2   : > { %4447 = vmatmul.f32.vlgmr.msra.gmra.mxu2 %v3314_v54 }
 0x7f3   : > { %4489 = vmatpush.msrb.mxu2 %v7691_v3  ;;  %4472 = vmatpush.msra.mxu1 %v4150_v61 }
 0x7f5   : > { %4490 = vmatpush.msrb.mxu2 %v7690_v7  ;;  %4473 = vmatpush.msra.mxu1 %v4149_v56 }
 0x7f7   : > { %4491 = vmatpush.msrb.mxu2 %v7626_v47  ;;  %4474 = vmatpush.msra.mxu1 %v11317_v24  ;;  %v3319_v24 = vld [vmem:[#allocation11 + $0x28] sm:$0xff] }
 0x7f9   : > { %4492 = vmatpush.msrb.mxu2 %v7625_v25  ;;  %4475 = vmatpush.msra.mxu1 %v11322_v6  ;;  %v4412_v25 = vpop.permute.xlu0 %4411 }
 0x7fa   : > { %4450 = vmatmul.f32.gmra.mxu2 %v3316_v58  ;;  %5960 = vmatmul.msk.f32.vlgmr.msra.gmra.mxu1 %vm3016_vm14, %v3315_v29 }
 0x7fb   : > { %4493 = vmatpush.msrb.mxu2 %v7686_v17  ;;  %4522 = vmatpush.msrb.mxu1 %v7721_v55 }
 0x7fd   : > { %4494 = vmatpush.msrb.mxu2 %v7685_v49  ;;  %4523 = vmatpush.msrb.mxu1 %v7720_v36 }
 0x7ff   : > { %4495 = vmatpush.msrb.mxu2 %v7621_v43  ;;  %4524 = vmatpush.msrb.mxu1 %v7711_v41 }
 0x801   : > { %4496 = vmatpush.msrb.mxu2 %v7620_v39  ;;  %4525 = vmatpush.msrb.mxu1 %v7710_v40  ;;  %v4417_v39 = vpop.permute.xlu1 %4416 }
 0x802   : > { %4453 = vmatmul.f32.gmra.mxu2 %v3318_v28  ;;  %5961 = vmatmul.msk.f32.gmra.mxu1 %vm3016_vm14, %v3317_v34 }
 0x803   : > { %4497 = vmatpush.msrb.mxu2 %v7681_v23  ;;  %4526 = vmatpush.msrb.mxu1 %v7716_v37 }
 0x805   : > { %4498 = vmatpush.msrb.mxu2 %v7680_v14  ;;  %4527 = vmatpush.msrb.mxu1 %v7715_v0 }
 0x807   : > { %4499 = vmatpush.msrb.mxu2 %v7616_v21  ;;  %4528 = vmatpush.msrb.mxu1 %v7636_v26 }
 0x809   : > { %4500 = vmatpush.msrb.mxu2 %v7615_v53  ;;  %4529 = vmatpush.msrb.mxu1 %v7635_v12 }
 0x80a   : > { %4456 = vmatmul.f32.gmra.mxu2 %v3320_v10  ;;  %5962 = vmatmul.msk.f32.gmra.mxu1 %vm3016_vm14, %v3319_v24 }
 0x80b   : > { %4501 = vmatpush.msrb.mxu2 %v7676_v5  ;;  %4530 = vmatpush.msrb.mxu1 %v7701_v27 }
 0x80d   : > { %4502 = vmatpush.msrb.mxu2 %v7675_v30  ;;  %4531 = vmatpush.msrb.mxu1 %v7700_v63 }
 0x80f   : > { %4503 = vmatpush.msrb.mxu2 %v7611_v11  ;;  %4532 = vmatpush.msrb.mxu1 %v7631_v20 }
 0x811   : > { %4504 = vmatpush.msrb.mxu2 %v7610_v16  ;;  %4533 = vmatpush.msrb.mxu1 %v7630_v4 }
 0x812   : > { %4505 = vmatmul.f32.vlgmr.msrb.gmra.mxu2 %v3314_v54  ;;  %5963 = vmatmul.msk.f32.gmra.mxu1 %vm3016_vm14, %v3321_v19 }
 0x81a   : > { %4508 = vmatmul.f32.gmra.mxu2 %v3316_v58  ;;  %5964 = vmatmul.msk.f32.vlgmr.msrb.gmra.mxu1 %vm3016_vm14, %v3315_v29 }
 0x822   : > { %4511 = vmatmul.f32.gmra.mxu2 %v3318_v28  ;;  %5965 = vmatmul.msk.f32.gmra.mxu1 %vm3016_vm14, %v3317_v34 }
 0x82a   : > { %4514 = vmatmul.f32.gmra.mxu2 %v3320_v10  ;;  %5966 = vmatmul.msk.f32.gmra.mxu1 %vm3016_vm14, %v3319_v24 }
 0x832   : > { %5967 = vmatmul.msk.f32.gmra.mxu1 %vm3016_vm14, %v3321_v19  ;;  %vm4949_vm14 = vcmask 1046534  }
 0x875   : > { %v4448_v20 = vpop.f32.mrf.mxu2 }
 0x876   : > { %v4449_v6 = vadd.f32 %v4448_v20, %v4402_v15 }
 0x877   : > { %v4477_v45 = vpop.f32.mrf.mxu1 }
 0x878   : > { %v4478_v59 = vadd.f32 %v4477_v45, %v4449_v6 }
 0x87a   : > { %v4547_v4 = vmax.f32 %v4478_v59, 0.0 }
 0x87c   : > { %4679 = vrot.lane.b32.xlu2 %v4547_v4, %s8118_s25  ;;  %4635 = vrot.lane.b32.xlu1 %v4547_v4, %s12331_s19 }
 0x87d   : > { %v4451_v31 = vpop.f32.mrf.mxu2  ;;  %4591 = vrot.lane.b32.xlu0 %v4547_v4, %s8119_s1 }
 0x87e   : > { %v4452_v62 = vadd.f32 %v4451_v31, %v4407_v48 }
 0x87f   : > { %v4480_v57 = vpop.f32.mrf.mxu1 }
 0x880   : > { %v4481_v3 = vadd.f32 %v4480_v57, %v4452_v62 }
 0x882   : > { %v4549_v7 = vmax.f32 %v4481_v3, 0.0 }
 0x884   : > { %4863 = vrot.lane.b32.xlu2 %v4549_v7, %s8120_s15  ;;  %4593 = vrot.lane.b32.xlu1 %v4549_v7, %s8119_s1 }
 0x885   : > { %4723 = vrot.lane.b32.xlu0 %v4547_v4, %s12298_s30  ;;  %v4454_v47 = vpop.f32.mrf.mxu2 }
 0x886   : > { %v4455_v17 = vadd.f32 %v4454_v47, %v4412_v25 }
 0x887   : > { %v4483_v18 = vpop.f32.mrf.mxu1 }
 0x888   : > { %v4484_v49 = vadd.f32 %v4483_v18, %v4455_v17 }
 0x88a   : > { %v4551_v9 = vmax.f32 %v4484_v49, 0.0 }
 0x88c   : > { %4637 = vrot.lane.b32.xlu1 %v4549_v7, %s12331_s19 }
 0x88d   : > { %4767 = vrot.lane.b32.xlu0 %v4547_v4, %s8121_s6  ;;  %v4457_v43 = vpop.f32.mrf.mxu2 }
 0x88e   : > { %v4458_v23 = vadd.f32 %v4457_v43, %v4417_v39 }
 0x88f   : > { %v4486_v60 = vpop.f32.mrf.mxu1 }
 0x890   : > { %v4487_v14 = vadd.f32 %v4486_v60, %v4458_v23 }
 0x892   : > { %v4553_v55 = vmax.f32 %v4487_v14, 0.0 }
 0x894   : > { %4769 = vrot.lane.b32.xlu1 %v4549_v7, %s8121_s6 }
 0x895   : > { %4811 = vrot.lane.b32.xlu0 %v4547_v4, %s12332_s27  ;;  %v4506_v36 = vpop.f32.mrf.mxu2 }
 0x896   : > { %v4507_v46 = vadd.f32 %v4506_v36, %v4402_v15 }
 0x897   : > { %v4535_v21 = vpop.f32.mrf.mxu1 }
 0x898   : > { %v4536_v1 = vadd.f32 %v4535_v21, %v4507_v46 }
 0x89a   : > { %v4548_v40 = vmax.f32 %v4536_v1, 0.0 }
 0x89c   : > { %4639 = vrot.lane.b32.xlu1 %v4551_v9, %s12331_s19 }
 0x89d   : > { %4859 = vrot.lane.b32.xlu0 %v4547_v4, %s8120_s15  ;;  %v4509_v41 = vpop.f32.mrf.mxu2 }
 0x89e   : > { %v4510_v5 = vadd.f32 %v4509_v41, %v4407_v48 }
 0x89f   : > { %v4538_v13 = vpop.f32.mrf.mxu1 }
 0x8a0   : > { %v4539_v8 = vadd.f32 %v4538_v13, %v4510_v5 }
 0x8a2   : > { %v4550_v32 = vmax.f32 %v4539_v8, 0.0 }
 0x8a4   : > { %4683 = vrot.lane.b32.xlu1 %v4551_v9, %s8118_s25 }
 0x8a5   : > { %4681 = vrot.lane.b32.xlu0 %v4549_v7, %s8118_s25  ;;  %v4512_v53 = vpop.f32.mrf.mxu2 }
 0x8a6   : > { %v4513_v37 = vadd.f32 %v4512_v53, %v4412_v25 }
 0x8a7   : > { %v4541_v50 = vpop.f32.mrf.mxu1 }
 0x8a8   : > { %v4542_v30 = vadd.f32 %v4541_v50, %v4513_v37 }
 0x8aa   : > { %4555 = vxpose.xlu2.b32.start [1/4] (short) (narrow) %v4547_v4, 24  ;;  %v4552_v38 = vmax.f32 %v4542_v30, 0.0 }
 0x8ac   : > { %4771 = vrot.lane.b32.xlu1 %v4551_v9, %s8121_s6 }
 0x8ad   : > { %4725 = vrot.lane.b32.xlu0 %v4549_v7, %s12298_s30  ;;  %v4515_v0 = vpop.f32.mrf.mxu2 }
 0x8ae   : > { %v4516_v51 = vadd.f32 %v4515_v0, %v4417_v39 }
 0x8af   : > { %v4544_v44 = vpop.f32.mrf.mxu1 }
 0x8b0   : > { %v4545_v11 = vadd.f32 %v4544_v44, %v4516_v51 }
 0x8b2   : > { %4556 = vxpose.xlu2.b32.cont [2/4] (short) (narrow) %v4549_v7, 24  ;;  %v4554_v26 = vmax.f32 %v4545_v11, 0.0  ;;  %v4924_v11 = vld [vmem:[#allocation13 + $0x38] sm:$0xff] }
 0x8b3   : > { %4969 = vmatpush.msra.mxu2 %v4924_v11 }
 0x8b4   : > { %4867 = vrot.lane.b32.xlu1 %v4551_v9, %s8120_s15 }
 0x8b5   : > { %4813 = vrot.lane.b32.xlu0 %v4549_v7, %s12332_s27 }
 0x8ba   : > { %4557 = vxpose.xlu2.b32.cont [3/4] (short) (narrow) %v4551_v9, 24 }
 0x8bc   : > { %4597 = vrot.lane.b32.xlu1 %v4553_v55, %s8119_s1 }
 0x8bd   : > { %4595 = vrot.lane.b32.xlu0 %v4551_v9, %s8119_s1 }
 0x8c2   : > { %4558 = vxpose.xlu2.b32.end [4/4] (short) (narrow) %v4553_v55, 24 }
 0x8c4   : > { %4641 = vrot.lane.b32.xlu1 %v4553_v55, %s12331_s19  ;;  %s5680_s19 = sshll.u32 %s5676_s3, 4  ;;  %s5681_s19 = int_to_ptr.hbm [resolvable:$true] %s5680_s19 }
 0x8c5   : > { %4727 = vrot.lane.b32.xlu0 %v4551_v9, %s12298_s30  ;;  %s7947_s1 = sshra.s32 %s5681_s19, 4  ;;  %s7948_s1 = int_to_ptr.hbm [resolvable:$true] %s7947_s1 }
 0x8c6   : > { %p7954_p12 = scmp.lt.s32.totalorder %s7948_s1, %s12333_s29 }
 0x8cc   : > { %4729 = vrot.lane.b32.xlu1 %v4553_v55, %s12298_s30  ;;  %s5829_s30 = sshll.u32 %s8327_s26, 3 }
 0x8cd   : > { %4815 = vrot.lane.b32.xlu0 %v4551_v9, %s12332_s27  ;;  %s533_s2 = scalar_lea.vmem [#allocation14], %s5829_s30 }
 0x8d4   : > { %4817 = vrot.lane.b32.xlu1 %v4553_v55, %s12332_s27 }
 0x8d5   : > { %4773 = vrot.lane.b32.xlu0 %v4553_v55, %s8121_s6 }
 0x8d6   : > { %v4680_v20 = vpop.permute.xlu2 %4679 }
 0x8dc   : > { %4861 = vrot.lane.b32.xlu1 %v4548_v40, %s8120_s15 }
 0x8dd   : > { %4871 = vrot.lane.b32.xlu0 %v4553_v55, %s8120_s15 }
 0x8de   : > { %v4864_v59 = vpop.permute.xlu2 %4863 }
 0x8e4   : > { %4865 = vrot.lane.b32.xlu1 %v4550_v32, %s8120_s15 }
 0x8e5   : > { %4869 = vrot.lane.b32.xlu0 %v4552_v38, %s8120_s15 }
 0x8ec   : > { %4873 = vrot.lane.b32.xlu1 %v4554_v26, %s8120_s15  ;;  %v4919_v26 = vld [vmem:[#allocation13 + $0x18] sm:$0xff]  ;;  %s7949_s15 = scalar_lea.hbm %s7948_s1, 8 }
 0x8ed   : > { %5005 = vmatpush.msra.mxu1 %v4919_v26  ;;  %p7950_p1 = scmp.ne.s32.totalorder %s7948_s1, %s7949_s15  ;;  %p7955_p7 = scmp.lt.s32.totalorder %s7953_s14, %s7949_s15 }
 0x8ee   : > { %v4636_v2 = vpop.permute.xlu1 %4635 }
 0x8ef   : > { %v4592_v35 = vpop.permute.xlu0 %4591  ;;  %p7951_p3 = pnand %p7950_p1, %p8293_p4  ;;  %p7956_p8 = por %p7955_p7, %p7954_p12 }
 0x8f1   : > { %p7952_p5 = pneg %p7951_p3 }
 0x8f3   : > { %p7957_p9 = pnand %p7956_p8, %p7952_p5 }
 0x8f6   : > { %v4594_v16 = vpop.permute.xlu1 %4593 }
 0x8f7   : > { %v4724_v12 = vpop.permute.xlu0 %4723 }
 0x8fe   : > { %v4638_v27 = vpop.permute.xlu1 %4637 }
 0x8ff   : > { %v4768_v22 = vpop.permute.xlu0 %4767 }
 0x906   : > { %v4770_v33 = vpop.permute.xlu1 %4769 }
 0x907   : > { %4603 = vxpose.xlu0.b32.start [1/4] (short) (narrow) %v4592_v35, 24  ;;  %v4812_v54 = vpop.permute.xlu0 %4811  ;;  %v4918_v35 = vld [vmem:[#allocation13 + $0x10] sm:$0xff] }
 0x908   : > { %5006 = vmatpush.msra.mxu1 %v4918_v35 }
 0x90e   : > { %v4640_v63 = vpop.permute.xlu1 %4639 }
 0x90f   : > { %4604 = vxpose.xlu0.b32.cont [2/4] (short) (narrow) %v4594_v16, 24  ;;  %v4860_v52 = vpop.permute.xlu0 %4859 }
 0x916   : > { %v4684_v42 = vpop.permute.xlu1 %4683 }
 0x917   : > { %v4682_v61 = vpop.permute.xlu0 %4681 }
 0x91e   : > { %v4772_v56 = vpop.permute.xlu1 %4771 }
 0x91f   : > { %v4726_v58 = vpop.permute.xlu0 %4725 }
 0x921   : > { %4647 = vxpose.xlu1.b32.start [1/4] (short) (narrow) %v4636_v2, 24  ;;  %v4923_v2 = vld [vmem:[#allocation13 + $0x30] sm:$0xff] }
 0x922   : > { %4970 = vmatpush.msra.mxu2 %v4923_v2 }
 0x926   : > { %v4868_v29 = vpop.permute.xlu1 %4867 }
 0x927   : > { %v4814_v28 = vpop.permute.xlu0 %4813 }
 0x929   : > { %4648 = vxpose.xlu1.b32.cont [2/4] (short) (narrow) %v4638_v27, 24 }
 0x92b   : > { %4685 = vrot.lane.b32.xlu2 %v4553_v55, %s8118_s25  ;;  %s5678_s25 = sshll.u32 %s533_s2, 4  ;;  %s5679_s25 = int_to_ptr.vmem [resolvable:$true] %s5678_s25 }
 0x92e   : > { %v4598_v34 = vpop.permute.xlu1 %4597 }
 0x92f   : > { %v4596_v10 = vpop.permute.xlu0 %4595 }
 0x930   : > { %4605 = vxpose.xlu0.b32.cont [3/4] (short) (narrow) %v4596_v10, 24  ;;  %v5057_v10 = vld [vmem:[#allocation13 + $0x68] sm:$0xff] }
 0x931   : > { %4649 = vxpose.xlu1.b32.cont [3/4] (short) (narrow) %v4640_v63, 24  ;;  %v4916_v63 = vld [vmem:[#allocation13] sm:$0xff] }
 0x936   : > { %v4642_v24 = vpop.permute.xlu1 %4641 }
 0x937   : > { %v4728_v19 = vpop.permute.xlu0 %4727 }
 0x938   : > { %4606 = vxpose.xlu0.b32.end [4/4] (short) (narrow) %v4598_v34, 24  ;;  %v5015_v34 = vld [vmem:[#allocation13 + $0x48] sm:$0xff] }
 0x939   : > { %4650 = vxpose.xlu1.b32.end [4/4] (short) (narrow) %v4642_v24, 24  ;;  %v5014_v24 = vld [vmem:[#allocation13 + $0x40] sm:$0xff] }
 0x93e   : > { %v4730_v6 = vpop.permute.xlu1 %4729 }
 0x93f   : > { %v4816_v15 = vpop.permute.xlu0 %4815 }
 0x940   : > { %4735 = vxpose.xlu0.b32.start [1/4] (short) (narrow) %v4724_v12, 24 }
 0x941   : > { %4779 = vxpose.xlu1.b32.start [1/4] (short) (narrow) %v4768_v22, 24  ;;  %v4922_v22 = vld [vmem:[#allocation13 + $0x28] sm:$0xff] }
 0x942   : > { %4971 = vmatpush.msra.mxu2 %v4922_v22 }
 0x943   : > { %v11574_v4 = vpop.trf.xlu2 }
 0x946   : > { %v4818_v31 = vpop.permute.xlu1 %4817 }
 0x947   : > { %v4774_v45 = vpop.permute.xlu0 %4773 }
 0x948   : > { %4736 = vxpose.xlu0.b32.cont [2/4] (short) (narrow) %v4726_v58, 24 }
 0x949   : > { %4780 = vxpose.xlu1.b32.cont [2/4] (short) (narrow) %v4770_v33, 24  ;;  %v4917_v33 = vld [vmem:[#allocation13 + $0x8] sm:$0xff] }
 0x94a   : > { %5007 = vmatpush.msra.mxu1 %v4917_v33 }
 0x94b   : > { %v11576_v48 = vpop.trf.xlu2 }
 0x94c   : > { %v5530_v13 = vrot.slane %v11576_v48, 6  ;;  %v5572_v46 = vrot.slane %v11576_v48, 7  ;;  %5008 = vmatpush.msra.mxu1 %v4916_v63 }
 0x94e   : > { %v4862_v3 = vpop.permute.xlu1 %4861 }
 0x94f   : > { %v4876_v7 = vsel %vm4875_vm8, %v4860_v52, %v4862_v3  ;;  %v4872_v47 = vpop.permute.xlu0 %4871  ;;  %v5017_v52 = vld [vmem:[#allocation13 + $0x58] sm:$0xff] }
 0x950   : > { %4737 = vxpose.xlu0.b32.cont [3/4] (short) (narrow) %v4728_v19, 24 }
 0x951   : > { %4691 = vxpose.xlu2.b32.start [1/4] (short) (narrow) %v4680_v20, 24  ;;  %4781 = vxpose.xlu1.b32.cont [3/4] (short) (narrow) %v4772_v56, 24  ;;  %v5058_v56 = vld [vmem:[#allocation13 + $0x70] sm:$0xff]  ;;  %v5446_v20 = vrot.slane %v11576_v48, 4 }
 0x953   : > { %v4573_v62 = vpop.trf.xlu2 }
 0x956   : > { %v4866_v25 = vpop.permute.xlu1 %4865 }
 0x957   : > { %v4877_v17 = vsel %vm4875_vm8, %v4864_v59, %v4866_v25  ;;  %v4870_v18 = vpop.permute.xlu0 %4869 }
 0x958   : > { %4738 = vxpose.xlu0.b32.end [4/4] (short) (narrow) %v4730_v6, 24  ;;  %v4878_v49 = vsel %vm4875_vm8, %v4868_v29, %v4870_v18 }
 0x959   : > { %4692 = vxpose.xlu2.b32.cont [2/4] (short) (narrow) %v4682_v61, 24  ;;  %4782 = vxpose.xlu1.b32.end [4/4] (short) (narrow) %v4774_v45, 24  ;;  %v5016_v61 = vld [vmem:[#allocation13 + $0x50] sm:$0xff] }
 0x95e   : > { %v4874_v9 = vpop.permute.xlu1 %4873 }
 0x95f   : > { %v4879_v43 = vsel %vm4875_vm8, %v4872_v47, %v4874_v9 }
 0x960   : > { %4823 = vxpose.xlu0.b32.start [1/4] (short) (narrow) %v4812_v54, 24  ;;  %v4921_v54 = vld [vmem:[#allocation13 + $0x20] sm:$0xff] }
 0x961   : > { %4693 = vxpose.xlu2.b32.cont [3/4] (short) (narrow) %v4684_v42, 24  ;;  %4972 = vmatpush.msra.mxu2 %v4921_v54  ;;  %v5059_v42 = vld [vmem:[#allocation13 + $0x78] sm:$0xff] }
 0x962   : > { %5088 = vmatpush.msrb.mxu1 %v5059_v42  ;;  %v5018_v42 = vrot.slane %v11574_v4, 2 }
 0x963   : > { %5046 = vmatpush.msrb.mxu2 %v5017_v52 }
 0x964   : > { %5089 = vmatpush.msrb.mxu1 %v5058_v56 }
 0x965   : > { %5047 = vmatpush.msrb.mxu2 %v5016_v61  ;;  %v5060_v61 = vrot.slane %v11574_v4, 3 }
 0x966   : > { %5090 = vmatpush.msrb.mxu1 %v5057_v10 }
 0x967   : > { %5048 = vmatpush.msrb.mxu2 %v5015_v34 }
 0x968   : > { %4824 = vxpose.xlu0.b32.cont [2/4] (short) (narrow) %v4814_v28, 24 }
 0x969   : > { %5049 = vmatpush.msrb.mxu2 %v5014_v24 }
 0x970   : > { %4825 = vxpose.xlu0.b32.cont [3/4] (short) (narrow) %v4816_v15, 24  ;;  %v5056_v15 = vld [vmem:[#allocation13 + $0x60] sm:$0xff] }
 0x971   : > { %5091 = vmatpush.msrb.mxu1 %v5056_v15 }
 0x978   : > { %4826 = vxpose.xlu0.b32.end [4/4] (short) (narrow) %v4818_v31, 24 }
 0x985   : > { %v4686_v57 = vpop.permute.xlu2 %4685 }
 0x986   : > { %4694 = vxpose.xlu2.b32.end [4/4] (short) (narrow) %v4686_v57, 24 }
 0x98e   : > { %4884 = vxpose.xlu2.b32.start [1/4] (short) (narrow) %v4876_v7, 24 }
 0x996   : > { %4885 = vxpose.xlu2.b32.cont [2/4] (short) (narrow) %v4877_v17, 24 }
 0x99e   : > { %4886 = vxpose.xlu2.b32.cont [3/4] (short) (narrow) %v4878_v49, 24 }
 0x9a6   : > { %4887 = vxpose.xlu2.b32.end [4/4] (short) (narrow) %v4879_v43, 24 }
 0x9c4   : > { %v11578_v39 = vpop.trf.xlu0 }
 0x9c5   : > { %v11580_v23 = vpop.trf.xlu1  ;;  %v4977_v57 = vrot.slane %v11578_v39, 7  ;;  %v5019_v2 = vrot.slane %v11578_v39, 1  ;;  %v5061_v63 = vrot.slane %v11578_v39, 2 }
 0x9c6   : > { %v4936_v7 = vrot.slane %v11580_v23, 7  ;;  %v5063_v10 = vrot.slane %v11580_v23, 1 }
 0x9c7   : > { %v5020_v15 = vsel %vm4934_vm7, %v5019_v2, %v5018_v42 }
 0x9cc   : > { %v11582_v60 = vpop.trf.xlu0 }
 0x9cd   : > { %v11584_v14 = vpop.trf.xlu1  ;;  %v5531_v55 = vrot.slane %v11582_v60, 5  ;;  %v5573_v36 = vrot.slane %v11582_v60, 6  ;;  %v5447_v19 = vrot.slane %v11582_v60, 3 }
 0x9ce   : > { %v5533_v21 = vrot.slane %v11584_v14, 4  ;;  %v5575_v41 = vrot.slane %v11584_v14, 5  ;;  %v5449_v6 = vrot.slane %v11584_v14, 2 }
 0x9cf   : > { %v5532_v53 = vsel %vm4934_vm7, %v5531_v55, %v5530_v13  ;;  %v5574_v1 = vsel %vm4934_vm7, %v5573_v36, %v5572_v46  ;;  %v5448_v45 = vsel %vm4934_vm7, %v5447_v19, %v5446_v20 }
 0x9d0   : > { %v11595_v40 = vsel %vm4937_vm10, %v5533_v21, %v5532_v53  ;;  %v11598_v5 = vsel %vm4937_vm10, %v5575_v41, %v5574_v1  ;;  %v5450_v17 = vsel %vm4937_vm10, %v5449_v6, %v5448_v45  ;;  %v4979_v41 = vrot.slane %v11580_v23, 6 }
 0x9d1   : > { %v5062_v6 = vsel %vm4934_vm7, %v5061_v63, %v5060_v61  ;;  %v5102_v45 = vrot.slane %v11574_v4, 4  ;;  %v5099_v61 = vld [vmem:[#allocation13 + $0x88] sm:$0xff] }
 0x9d4   : > { %v4621_v50 = vpop.trf.xlu0 }
 0x9d5   : > { %v5622_v37 = vrot.slane %v4621_v50, 7  ;;  %v4665_v8 = vpop.trf.xlu1  ;;  %v4978_v50 = vsel %vm4934_vm7, %v4977_v57, %v11574_v4  ;;  %v5145_v57 = vrot.slane %v11578_v39, 4 }
 0x9d6   : > { %v5624_v30 = vrot.slane %v4665_v8, 6  ;;  %v4980_v33 = vsel %vm4937_vm10, %v4979_v41, %v4978_v50 }
 0x9d7   : > { %v5623_v0 = vsel %vm4934_vm7, %v5622_v37, %v4573_v62  ;;  %v4933_v62 = vrot.slane %v11574_v4, 1 }
 0x9d8   : > { %v11602_v32 = vsel %vm4937_vm10, %v5624_v30, %v5623_v0 }
 0x9d9   : > { %v4935_v26 = vsel %vm4934_vm7, %v11578_v39, %v4933_v62 }
 0x9da   : > { %v4938_v22 = vsel %vm4937_vm10, %v4936_v7, %v4935_v26 }
 0x9e4   : > { %v11604_v51 = vpop.trf.xlu0 }
 0x9e5   : > { %v11610_v16 = vpop.trf.xlu1  ;;  %v4983_v54 = vrot.slane %v11604_v51, 4 }
 0x9e6   : > { %v4945_v56 = vrot.slane %v11610_v16, 4  ;;  %v4985_v34 = vrot.slane %v11610_v16, 3 }
 0x9ec   : > { %v11606_v38 = vpop.trf.xlu0 }
 0x9ed   : > { %v11616_v58 = vpop.trf.xlu1  ;;  %v5537_v21 = vrot.slane %v11606_v38, 2  ;;  %v5579_v53 = vrot.slane %v11606_v38, 3 }
 0x9f4   : > { %v11608_v44 = vpop.trf.xlu0 }
 0x9f5   : > { %v4797_v31 = vpop.trf.xlu1  ;;  %v5628_v47 = vrot.slane %v11608_v44, 4 }
 0x9f6   : > { %v5630_v9 = vrot.slane %v4797_v31, 3 }
 0xa04   : > { %v11612_v12 = vpop.trf.xlu0 }
 0xa05   : > { %v4948_v31 = vrot.slane %v11612_v12, 3  ;;  %v4987_v62 = vrot.slane %v11612_v12, 2  ;;  %v5070_v42 = vrot.slane %v11612_v12, 5 }
 0xa07   : > { %v11614_v27 = vpop.trf.xlu2 }
 0xa08   : > { %v4939_v37 = vrot.slane %v11614_v27, 6  ;;  %v4981_v8 = vrot.slane %v11614_v27, 5  ;;  %v5022_v20 = vrot.slane %v11614_v27, 7 }
 0xa0a   : > { %v4982_v52 = vsel %vm4940_vm11, %v4981_v8, %v4980_v33  ;;  %v5026_v8 = vrot.slane %v11610_v16, 5  ;;  %v5107_v33 = vrot.slane %v11614_v27, 1 }
 0xa0b   : > { %v4984_v19 = vsel %vm4943_vm12, %v4983_v54, %v4982_v52  ;;  %v5149_v54 = vrot.slane %v11614_v27, 2  ;;  %v5028_v52 = vrot.slane %v11612_v12, 4 }
 0xa0c   : > { %v11618_v29 = vpop.trf.xlu0  ;;  %v4986_v7 = vsel %vm4946_vm13, %v4985_v34, %v4984_v19 }
 0xa0f   : > { %v11620_v28 = vpop.trf.xlu2 }
 0xa10   : > { %v5451_v59 = vrot.slane %v11620_v28, 1  ;;  %v5535_v18 = vrot.slane %v11620_v28, 3  ;;  %v5577_v43 = vrot.slane %v11620_v28, 4 }
 0xa12   : > { %v5452_v36 = vsel %vm4940_vm11, %v5451_v59, %v5450_v17  ;;  %v5536_v0 = vsel %vm4940_vm11, %v5535_v18, %v11595_v40  ;;  %v5578_v11 = vsel %vm4940_vm11, %v5577_v43, %v11598_v5  ;;  %v4942_v40 = vrot.slane %v11604_v51, 5 }
 0xa13   : > { %v11641_v46 = vsel %vm4943_vm12, %v11606_v38, %v5452_v36  ;;  %v11656_v44 = vsel %vm4943_vm12, %v5537_v21, %v5536_v0  ;;  %v11664_v35 = vsel %vm4943_vm12, %v5579_v53, %v5578_v11  ;;  %v4941_v5 = vsel %vm4940_vm11, %v4939_v37, %v4938_v22  ;;  %v5101_v53 = vld [vmem:[#allocation13 + $0x98] sm:$0xff]  ;;  %v5100_v22 = vld [vmem:[#allocation13 + $0x90] sm:$0xff] }
 0xa14   : > { %v4841_v3 = vpop.trf.xlu0  ;;  %v4944_v24 = vsel %vm4943_vm12, %v4942_v40, %v4941_v5  ;;  %v5103_v59 = vrot.slane %v11578_v39, 3  ;;  %v5024_v17 = vrot.slane %v11604_v51, 6  ;;  %v5064_v18 = vsel %vm4937_vm10, %v5063_v10, %v5062_v6  ;;  %v5142_v40 = vld [vmem:[#allocation13 + $0xb0] sm:$0xff]  ;;  %v5140_v6 = vld [vmem:[#allocation13 + $0xa0] sm:$0xff] }
 0xa15   : > { %v5632_v55 = vrot.slane %v4841_v3, 2  ;;  %v4947_v3 = vsel %vm4946_vm13, %v4945_v56, %v4944_v24  ;;  %v5065_v36 = vsel %vm4940_vm11, %v11614_v27, %v5064_v18  ;;  %v5144_v21 = vrot.slane %v11574_v4, 5  ;;  %v5141_v56 = vld [vmem:[#allocation13 + $0xa8] sm:$0xff] }
 0xa16   : > { %v4950_v41 = vsel %vm4949_vm14, %v4948_v31, %v4947_v3  ;;  %v5105_v0 = vrot.slane %v11580_v23, 2  ;;  %v5147_v11 = vrot.slane %v11580_v23, 3  ;;  %v5104_v63 = vsel %vm4934_vm7, %v5103_v59, %v5102_v45 }
 0xa17   : > { %v4709_v25 = vpop.trf.xlu2  ;;  %v5146_v5 = vsel %vm4934_vm7, %v5145_v57, %v5144_v21  ;;  %v5151_v31 = vrot.slane %v11604_v51, 1  ;;  %v5229_v57 = vrot.slane %v11578_v39, 6  ;;  %v5189_v21 = vrot.slane %v11580_v23, 4 }
 0xa18   : > { %v5626_v49 = vrot.slane %v4709_v25, 5  ;;  %v5106_v45 = vsel %vm4937_vm10, %v5105_v0, %v5104_v63  ;;  %v5148_v59 = vsel %vm4937_vm10, %v5147_v11, %v5146_v5  ;;  %v5154_v0 = vrot.slane %v11612_v12, 7  ;;  %v5183_v11 = vld [vmem:[#allocation13 + $0xc8] sm:$0xff]  ;;  %v5224_v63 = vld [vmem:[#allocation13 + $0xe0] sm:$0xff] }
 0xa19   : > { %v5108_v3 = vsel %vm4940_vm11, %v5107_v33, %v5106_v45  ;;  %v5269_v45 = vld [vmem:[#allocation13 + $0x118] sm:$0xff] }
 0xa1a   : > { %v5627_v13 = vsel %vm4940_vm11, %v5626_v49, %v11602_v32  ;;  %v5066_v49 = vrot.slane %v11604_v51, 7 }
 0xa1b   : > { %v5629_v1 = vsel %vm4943_vm12, %v5628_v47, %v5627_v13  ;;  %v5021_v47 = vsel %vm4937_vm10, %v11580_v23, %v5020_v15  ;;  %v4988_v13 = vsel %vm4949_vm14, %v4987_v62, %v4986_v7  ;;  %v5187_v62 = vrot.slane %v11578_v39, 5 }
 0xa1c   : > { %v5631_v30 = vsel %vm4946_vm13, %v5630_v9, %v5629_v1  ;;  %v5143_v1 = vld [vmem:[#allocation13 + $0xb8] sm:$0xff]  ;;  %v5067_v2 = vsel %vm4943_vm12, %v5066_v49, %v5065_v36  ;;  %v5150_v7 = vsel %vm4940_vm11, %v5149_v54, %v5148_v59  ;;  %v5110_v36 = vrot.slane %v11610_v16, 7  ;;  %v5182_v54 = vld [vmem:[#allocation13 + $0xc0] sm:$0xff] }
 0xa1d   : > { %v11653_v32 = vsel %vm4949_vm14, %v5632_v55, %v5631_v30  ;;  %v5023_v55 = vsel %vm4940_vm11, %v5022_v20, %v5021_v47  ;;  %v5068_v30 = vrot.slane %v11610_v16, 6  ;;  %v5098_v20 = vld [vmem:[#allocation13 + $0x80] sm:$0xff]  ;;  %v5186_v47 = vrot.slane %v11574_v4, 6  ;;  %v5185_v49 = vld [vmem:[#allocation13 + $0xd8] sm:$0xff] }
 0xa1e   : > { %v5025_v26 = vsel %vm4943_vm12, %v5024_v17, %v5023_v55  ;;  %v5319_v59 = vld [vmem:[#allocation13 + $0x138] sm:$0xff] }
 0xa1f   : > { %v5027_v34 = vsel %vm4946_vm13, %v5026_v8, %v5025_v26  ;;  %v5069_v24 = vsel %vm4946_vm13, %v5068_v30, %v5067_v2  ;;  %v5188_v8 = vsel %vm4934_vm7, %v5187_v62, %v5186_v47  ;;  %v5112_v30 = vrot.slane %v11612_v12, 6  ;;  %v5225_v26 = vld [vmem:[#allocation13 + $0xe8] sm:$0xff] }
 0xa20   : > { %v5029_v17 = vsel %vm4949_vm14, %v5028_v52, %v5027_v34  ;;  %v5071_v18 = vsel %vm4949_vm14, %v5070_v42, %v5069_v24  ;;  %v5190_v5 = vsel %vm4937_vm10, %v5189_v21, %v5188_v8  ;;  %v5193_v52 = vrot.slane %v11604_v51, 2 }
 0xa27   : > { %v11692_v25 = vpop.trf.xlu2 }
 0xa28   : > { %v4951_v9 = vrot.slane %v11692_v25, 2  ;;  %v4989_v43 = vrot.slane %v11692_v25, 1  ;;  %v5030_v10 = vrot.slane %v11692_v25, 3  ;;  %v5072_v19 = vrot.slane %v11692_v25, 4 }
 0xa2a   : > { %v4953_v50 = vsel %vm4952_vm2, %v4951_v9, %v4950_v41  ;;  %v4990_v37 = vsel %vm4952_vm2, %v4989_v43, %v4988_v13  ;;  %v5227_v9 = vld [vmem:[#allocation13 + $0xf8] sm:$0xff]  ;;  %v5228_v43 = vrot.slane %v11574_v4, 7  ;;  %v5031_v55 = vsel %vm4952_vm2, %v5030_v10, %v5029_v17  ;;  %v5268_v17 = vld [vmem:[#allocation13 + $0x110] sm:$0xff] }
 0xa2b   : > { %5968 = vmatmul.msk.f32.vlgmr.msra.gmra.mxu2 %vm4954_vm15, %v4953_v50  ;;  %5969 = vmatmul.msk.f32.vlgmr.msra.gmra.mxu1 %vm4954_vm15, %v4990_v37  ;;  %v5073_v39 = vsel %vm4952_vm2, %v5072_v19, %v5071_v18  ;;  %v5231_v41 = vrot.slane %v11580_v23, 5  ;;  %v5109_v13 = vsel %vm4943_vm12, %v11604_v51, %v5108_v3  ;;  %v5152_v4 = vsel %vm4943_vm12, %v5151_v31, %v5150_v7  ;;  %v5318_v18 = vld [vmem:[#allocation13 + $0x130] sm:$0xff] }
 0xa2c   : > { %5130 = vmatpush.msra.mxu2 %v5101_v53  ;;  %5172 = vmatpush.msra.mxu1 %v5143_v1  ;;  %v5184_v53 = vld [vmem:[#allocation13 + $0xd0] sm:$0xff]  ;;  %v5191_v50 = vrot.slane %v11614_v27, 3  ;;  %v5233_v37 = vrot.slane %v11614_v27, 4  ;;  %v5230_v23 = vsel %vm4934_vm7, %v5229_v57, %v5228_v43  ;;  %v5111_v2 = vsel %vm4946_vm13, %v5110_v36, %v5109_v13  ;;  %v5317_v36 = vld [vmem:[#allocation13 + $0x128] sm:$0xff] }
 0xa2d   : > { %v5226_v1 = vld [vmem:[#allocation13 + $0xf0] sm:$0xff]  ;;  %v5156_v27 = vrot.slane %v11692_v25, 6  ;;  %v5232_v42 = vsel %vm4937_vm10, %v5231_v41, %v5230_v23  ;;  %v5113_v19 = vsel %vm4949_vm14, %v5112_v30, %v5111_v2  ;;  %v5237_v57 = vrot.slane %v11610_v16, 2 }
 0xa2e   : > { %5131 = vmatpush.msra.mxu2 %v5100_v22  ;;  %5173 = vmatpush.msra.mxu1 %v5142_v40  ;;  %v5114_v22 = vrot.slane %v11692_v25, 5  ;;  %v5153_v40 = vsel %vm4946_vm13, %v11610_v16, %v5152_v4  ;;  %v5192_v10 = vsel %vm4940_vm11, %v5191_v50, %v5190_v5  ;;  %v5234_v24 = vsel %vm4940_vm11, %v5233_v37, %v5232_v42 }
 0xa2f   : > { %v11725_v15 = vpop.trf.xlu2  ;;  %v5280_v3 = vrot.slane %v11584_v14, 6  ;;  %v5322_v7 = vrot.slane %v11584_v14, 7  ;;  %v5194_v47 = vsel %vm4943_vm12, %v5193_v52, %v5192_v10  ;;  %v5198_v13 = vrot.slane %v11692_v25, 7  ;;  %v5402_v10 = vld [vmem:[#allocation13 + $0x170] sm:$0xff] }
 0xa30   : > { %5132 = vmatpush.msra.mxu2 %v5099_v61  ;;  %5174 = vmatpush.msra.mxu1 %v5141_v56  ;;  %v5235_v61 = vrot.slane %v11604_v51, 3  ;;  %v5278_v56 = vrot.slane %v11582_v60, 7  ;;  %v5115_v31 = vsel %vm4952_vm2, %v5114_v22, %v5113_v19  ;;  %v5284_v37 = vrot.slane %v11606_v38, 4 }
 0xa31   : > { %v5326_v23 = vrot.slane %v11606_v38, 5  ;;  %v5363_v30 = vrot.slane %v11582_v60, 1  ;;  %v5362_v2 = vrot.slane %v11576_v48, 2  ;;  %v5404_v22 = vrot.slane %v11576_v48, 3 }
 0xa32   : > { %5133 = vmatpush.msra.mxu2 %v5098_v20  ;;  %5175 = vmatpush.msra.mxu1 %v5140_v6  ;;  %v5155_v20 = vsel %vm4949_vm14, %v5154_v0, %v5153_v40  ;;  %v5195_v6 = vrot.slane %v11610_v16, 1  ;;  %v5324_v16 = vrot.slane %v11620_v28, 6  ;;  %v5279_v43 = vsel %vm4934_vm7, %v5278_v56, %v11576_v48 }
 0xa33   : > { %5970 = vmatmul.msk.f32.vlgmr.msrb.gmra.mxu2 %vm4954_vm15, %v5031_v55  ;;  %5971 = vmatmul.msk.f32.vlgmr.msrb.gmra.mxu1 %vm4954_vm15, %v5073_v39  ;;  %v5157_v62 = vsel %vm4952_vm2, %v5156_v27, %v5155_v20  ;;  %v5239_v55 = vrot.slane %v11612_v12, 1  ;;  %v5267_v39 = vld [vmem:[#allocation13 + $0x108] sm:$0xff]  ;;  %v5281_v50 = vsel %vm4937_vm10, %v5280_v3, %v5279_v43  ;;  %v5405_v0 = vrot.slane %v11582_v60, 2 }
 0xa34   : > { %5214 = vmatpush.msrb.mxu2 %v5185_v49  ;;  %5256 = vmatpush.msrb.mxu1 %v5227_v9  ;;  %v5320_v49 = vrot.slane %v11576_v48, 1  ;;  %v5282_v9 = vrot.slane %v11620_v28, 5  ;;  %v5196_v41 = vsel %vm4946_vm13, %v5195_v6, %v5194_v47  ;;  %v5286_v52 = vrot.slane %v11616_v58, 3  ;;  %v5400_v47 = vld [vmem:[#allocation13 + $0x160] sm:$0xff] }
 0xa35   : > { %v5197_v40 = vsel %vm4949_vm14, %v11612_v12, %v5196_v41  ;;  %v5328_v42 = vrot.slane %v11616_v58, 4  ;;  %v5406_v19 = vsel %vm4934_vm7, %v5405_v0, %v5404_v22  ;;  %v5288_v20 = vrot.slane %v11618_v29, 2  ;;  %v5487_v41 = vld [vmem:[#allocation13 + $0x1b8] sm:$0xff] }
 0xa36   : > { %5215 = vmatpush.msrb.mxu2 %v5184_v53  ;;  %5257 = vmatpush.msrb.mxu1 %v5226_v1  ;;  %v5321_v21 = vsel %vm4934_vm7, %v11582_v60, %v5320_v49  ;;  %v5266_v53 = vld [vmem:[#allocation13 + $0x100] sm:$0xff]  ;;  %v5330_v6 = vrot.slane %v11618_v29, 3  ;;  %v5332_v3 = vrot.slane %v11725_v15, 2  ;;  %v5410_v49 = vrot.slane %v11606_v38, 7 }
 0xa37   : > { %v4902_v33 = vpop.trf.xlu2  ;;  %v5316_v1 = vld [vmem:[#allocation13 + $0x120] sm:$0xff]  ;;  %v5323_v8 = vsel %vm4937_vm10, %v5322_v7, %v5321_v21  ;;  %v5445_v21 = vld [vmem:[#allocation13 + $0x198] sm:$0xff]  ;;  %v5372_v0 = vrot.slane %v11618_v29, 4  ;;  %v5374_v22 = vrot.slane %v11725_v15, 3 }
 0xa38   : > { %v5634_v34 = vrot.slane %v4902_v33, 1  ;;  %5216 = vmatpush.msrb.mxu2 %v5183_v11  ;;  %5258 = vmatpush.msrb.mxu1 %v5225_v26  ;;  %v5283_v11 = vsel %vm4940_vm11, %v5282_v9, %v5281_v50  ;;  %v5325_v26 = vsel %vm4940_vm11, %v5324_v16, %v5323_v8  ;;  %v5361_v33 = vld [vmem:[#allocation13 + $0x158] sm:$0xff]  ;;  %v5358_v7 = vld [vmem:[#allocation13 + $0x140] sm:$0xff]  ;;  %v5489_v9 = vrot.slane %v11582_v60, 4  ;;  %v5486_v8 = vld [vmem:[#allocation13 + $0x1b0] sm:$0xff] }
 0xa39   : > { %v5285_v12 = vsel %vm4943_vm12, %v5284_v37, %v5283_v11  ;;  %v5327_v56 = vsel %vm4943_vm12, %v5326_v23, %v5325_v26  ;;  %v5370_v60 = vrot.slane %v11616_v58, 5  ;;  %v5444_v37 = vld [vmem:[#allocation13 + $0x190] sm:$0xff]  ;;  %v5493_v23 = vrot.slane %v11620_v28, 2  ;;  %v5443_v11 = vld [vmem:[#allocation13 + $0x188] sm:$0xff] }
 0xa3a   : > { %v11771_v51 = vsel %vm4952_vm2, %v5634_v34, %v11653_v32  ;;  %5217 = vmatpush.msrb.mxu2 %v5182_v54  ;;  %5259 = vmatpush.msrb.mxu1 %v5224_v63  ;;  %v5236_v32 = vsel %vm4943_vm12, %v5235_v61, %v5234_v24  ;;  %v5403_v54 = vld [vmem:[#allocation13 + $0x178] sm:$0xff]  ;;  %v5199_v63 = vsel %vm4952_vm2, %v5198_v13, %v5197_v40  ;;  %v5407_v61 = vrot.slane %v11584_v14, 1  ;;  %v5360_v34 = vld [vmem:[#allocation13 + $0x150] sm:$0xff]  ;;  %v5485_v26 = vld [vmem:[#allocation13 + $0x1a8] sm:$0xff] }
 0xa3b   : > { %5972 = vmatmul.msk.f32.vlgmr.msra.gmra.mxu2 %vm4954_vm15, %v5115_v31  ;;  %5973 = vmatmul.msk.f32.vlgmr.msra.gmra.mxu1 %vm4954_vm15, %v5157_v62  ;;  %v5238_v4 = vsel %vm4946_vm13, %v5237_v57, %v5236_v32  ;;  %v5364_v24 = vsel %vm4934_vm7, %v5363_v30, %v5362_v2  ;;  %v5287_v31 = vsel %vm4946_vm13, %v5286_v52, %v5285_v12  ;;  %v5290_v62 = vrot.slane %v11725_v15, 1  ;;  %v5571_v12 = vld [vmem:[#allocation13 + $0x1f8] sm:$0xff] }
 0xa3c   : > { %5306 = vmatpush.msra.mxu2 %v5269_v45  ;;  %5348 = vmatpush.msra.mxu1 %v5319_v59  ;;  %v5240_v27 = vsel %vm4949_vm14, %v5239_v55, %v5238_v4  ;;  %v5359_v45 = vld [vmem:[#allocation13 + $0x148] sm:$0xff]  ;;  %v5329_v57 = vsel %vm4946_vm13, %v5328_v42, %v5327_v56  ;;  %v5365_v32 = vsel %vm4937_vm10, %v11584_v14, %v5364_v24  ;;  %v5488_v55 = vrot.slane %v11576_v48, 5  ;;  %v5570_v24 = vld [vmem:[#allocation13 + $0x1f0] sm:$0xff] }
 0xa3d   : > { %v5241_v5 = vsel %vm4952_vm2, %v11692_v25, %v5240_v27  ;;  %v5366_v25 = vrot.slane %v11620_v28, 7  ;;  %v5401_v59 = vld [vmem:[#allocation13 + $0x168] sm:$0xff]  ;;  %v5416_v27 = vrot.slane %v11725_v15, 4 }
 0xa3e   : > { %5307 = vmatpush.msra.mxu2 %v5268_v17  ;;  %5349 = vmatpush.msra.mxu1 %v5318_v18  ;;  %v5368_v17 = vrot.slane %v11606_v38, 6  ;;  %v5408_v18 = vsel %vm4937_vm10, %v5407_v61, %v5406_v19  ;;  %v5490_v30 = vsel %vm4934_vm7, %v5489_v9, %v5488_v55  ;;  %v5529_v61 = vld [vmem:[#allocation13 + $0x1d8] sm:$0xff]  ;;  %v5456_v19 = vrot.slane %v11618_v29, 6  ;;  %v5611_v55 = vld [vmem:[#allocation13 + $0x208] sm:$0xff] }
 0xa3f   : > { %v5367_v16 = vsel %vm4940_vm11, %v5366_v25, %v5365_v32  ;;  %v5409_v43 = vsel %vm4940_vm11, %v11620_v28, %v5408_v18  ;;  %v5442_v28 = vld [vmem:[#allocation13 + $0x180] sm:$0xff]  ;;  %v5528_v25 = vld [vmem:[#allocation13 + $0x1d0] sm:$0xff]  ;;  %v5581_v9 = vrot.slane %v11616_v58, 2 }
 0xa40   : > { %5308 = vmatpush.msra.mxu2 %v5267_v39  ;;  %5350 = vmatpush.msra.mxu1 %v5317_v36  ;;  %v5289_v39 = vsel %vm4949_vm14, %v5288_v20, %v5287_v31  ;;  %v5331_v36 = vsel %vm4949_vm14, %v5330_v6, %v5329_v57  ;;  %v5369_v48 = vsel %vm4943_vm12, %v5368_v17, %v5367_v16  ;;  %v5498_v20 = vrot.slane %v11618_v29, 7  ;;  %v5527_v6 = vld [vmem:[#allocation13 + $0x1c8] sm:$0xff]  ;;  %v5613_v17 = vld [vmem:[#allocation13 + $0x218] sm:$0xff]  ;;  %v5612_v16 = vld [vmem:[#allocation13 + $0x210] sm:$0xff] }
 0xa41   : > { %v5291_v13 = vsel %vm4952_vm2, %v5290_v62, %v5289_v39  ;;  %v5333_v4 = vsel %vm4952_vm2, %v5332_v3, %v5331_v36  ;;  %v5411_v50 = vsel %vm4943_vm12, %v5410_v49, %v5409_v43  ;;  %v5371_v2 = vsel %vm4946_vm13, %v5370_v60, %v5369_v48  ;;  %v5526_v3 = vld [vmem:[#allocation13 + $0x1c0] sm:$0xff] }
 0xa42   : > { %5309 = vmatpush.msra.mxu2 %v5266_v53  ;;  %5351 = vmatpush.msra.mxu1 %v5316_v1  ;;  %v5412_v53 = vrot.slane %v11616_v58, 6  ;;  %v5491_v1 = vrot.slane %v11584_v14, 3  ;;  %v5414_v14 = vrot.slane %v11618_v29, 5  ;;  %v5373_v52 = vsel %vm4949_vm14, %v5372_v0, %v5371_v2 }
 0xa43   : > { %5974 = vmatmul.msk.f32.vlgmr.msrb.gmra.mxu2 %vm4954_vm15, %v5199_v63  ;;  %5975 = vmatmul.msk.f32.vlgmr.msrb.gmra.mxu1 %vm4954_vm15, %v5241_v5  ;;  %v5495_v63 = vrot.slane %v11606_v38, 1  ;;  %v5375_v56 = vsel %vm4952_vm2, %v5374_v22, %v5373_v52  ;;  %v5458_v31 = vrot.slane %v11725_v15, 5  ;;  %v5500_v57 = vrot.slane %v11725_v15, 6 }
 0xa44   : > { %5390 = vmatpush.msrb.mxu2 %v5361_v33  ;;  %5432 = vmatpush.msrb.mxu1 %v5403_v54  ;;  %v5413_v40 = vsel %vm4946_vm13, %v5412_v53, %v5411_v50  ;;  %v5484_v33 = vld [vmem:[#allocation13 + $0x1a0] sm:$0xff]  ;;  %v5492_v54 = vsel %vm4937_vm10, %v5491_v1, %v5490_v30  ;;  %v5539_v49 = vrot.slane %v11616_v58, 1  ;;  %v5583_v43 = vrot.slane %v11618_v29, 1 }
 0xa45   : > { %v5494_v5 = vsel %vm4940_vm11, %v5493_v23, %v5492_v54  ;;  %v5415_v42 = vsel %vm4949_vm14, %v5414_v14, %v5413_v40  ;;  %v5542_v36 = vrot.slane %v11725_v15, 7 }
 0xa46   : > { %5391 = vmatpush.msrb.mxu2 %v5360_v34  ;;  %5433 = vmatpush.msrb.mxu1 %v5402_v10  ;;  %v5417_v34 = vsel %vm4952_vm2, %v5416_v27, %v5415_v42  ;;  %v5454_v10 = vrot.slane %v11616_v58, 7  ;;  %v5496_v38 = vsel %vm4943_vm12, %v5495_v63, %v5494_v5  ;;  %v5540_v39 = vsel %vm4946_vm13, %v5539_v49, %v11656_v44 }
 0xa47   : > { %v5497_v62 = vsel %vm4946_vm13, %v11616_v58, %v5496_v38  ;;  %v5541_v58 = vsel %vm4949_vm14, %v11618_v29, %v5540_v39 }
 0xa48   : > { %5392 = vmatpush.msrb.mxu2 %v5359_v45  ;;  %5434 = vmatpush.msrb.mxu1 %v5401_v59  ;;  %v5569_v45 = vld [vmem:[#allocation13 + $0x1e8] sm:$0xff]  ;;  %v5455_v59 = vsel %vm4946_vm13, %v5454_v10, %v11641_v46  ;;  %v5499_v32 = vsel %vm4949_vm14, %v5498_v20, %v5497_v62 }
 0xa49   : > { %v5501_v18 = vsel %vm4952_vm2, %v5500_v57, %v5499_v32 }
 0xa4a   : > { %5393 = vmatpush.msrb.mxu2 %v5358_v7  ;;  %5435 = vmatpush.msrb.mxu1 %v5400_v47  ;;  %v5568_v7 = vld [vmem:[#allocation13 + $0x1e0] sm:$0xff]  ;;  %v5457_v47 = vsel %vm4949_vm14, %v5456_v19, %v5455_v59 }
 0xa4b   : > { %5976 = vmatmul.msk.f32.vlgmr.msra.gmra.mxu2 %vm4954_vm15, %v5291_v13  ;;  %5977 = vmatmul.msk.f32.vlgmr.msra.gmra.mxu1 %vm4954_vm15, %v5333_v4  ;;  %v5459_v46 = vsel %vm4952_vm2, %v5458_v31, %v5457_v47  ;;  %v5543_v4 = vsel %vm4952_vm2, %v5542_v36, %v5541_v58 }
 0xa4c   : > { %5474 = vmatpush.msra.mxu2 %v5445_v21  ;;  %5516 = vmatpush.msra.mxu1 %v5487_v41  ;;  %v5582_v21 = vsel %vm4946_vm13, %v5581_v9, %v11664_v35  ;;  %v5610_v41 = vld [vmem:[#allocation13 + $0x200] sm:$0xff] }
 0xa4d   : > { %v5584_v13 = vsel %vm4949_vm14, %v5583_v43, %v5582_v21 }
 0xa4e   : > { %5475 = vmatpush.msra.mxu2 %v5444_v37  ;;  %5517 = vmatpush.msra.mxu1 %v5486_v8  ;;  %v5585_v60 = vsel %vm4952_vm2, %v11725_v15, %v5584_v13 }
 0xa50   : > { %5476 = vmatpush.msra.mxu2 %v5443_v11  ;;  %5518 = vmatpush.msra.mxu1 %v5485_v26 }
 0xa52   : > { %5477 = vmatpush.msra.mxu2 %v5442_v28  ;;  %5519 = vmatpush.msra.mxu1 %v5484_v33 }
 0xa53   : > { %5978 = vmatmul.msk.f32.vlgmr.msrb.gmra.mxu2 %vm4954_vm15, %v5375_v56  ;;  %5979 = vmatmul.msk.f32.vlgmr.msrb.gmra.mxu1 %vm4954_vm15, %v5417_v34  ;;  %v7722_v34 = vld [vmem:[%s12334_s0] ss:$0 sm:$0xff] }
 0xa54   : > { %5558 = vmatpush.msrb.mxu2 %v5529_v61  ;;  %5600 = vmatpush.msrb.mxu1 %v5571_v12 }
 0xa56   : > { %5559 = vmatpush.msrb.mxu2 %v5528_v25  ;;  %5601 = vmatpush.msrb.mxu1 %v5570_v24 }
 0xa58   : > { %5560 = vmatpush.msrb.mxu2 %v5527_v6  ;;  %5602 = vmatpush.msrb.mxu1 %v5569_v45 }
 0xa5a   : > { %5561 = vmatpush.msrb.mxu2 %v5526_v3  ;;  %5603 = vmatpush.msrb.mxu1 %v5568_v7 }
 0xa5b   : > { %5980 = vmatmul.msk.f32.vlgmr.msra.gmra.mxu2 %vm4954_vm15, %v5459_v46  ;;  %5981 = vmatmul.msk.f32.vlgmr.msra.gmra.mxu1 %vm4954_vm15, %v5501_v18 }
 0xa5c   : > { %5650 = vmatpush.msra.mxu2 %v5613_v17 }
 0xa5e   : > { %5651 = vmatpush.msra.mxu2 %v5612_v16 }
 0xa60   : > { %5652 = vmatpush.msra.mxu2 %v5611_v55 }
 0xa62   : > { %5653 = vmatpush.msra.mxu2 %v5610_v41 }
 0xa63   : > { %5982 = vmatmul.msk.f32.vlgmr.msrb.gmra.mxu2 %vm4954_vm15, %v5543_v4  ;;  %5983 = vmatmul.msk.f32.vlgmr.msrb.gmra.mxu1 %vm4954_vm15, %v5585_v60 }
 0xa6b   : > { %5984 = vmatmul.msk.f32.vlgmr.msra.gmra.mxu2 %vm4954_vm15, %v11771_v51 }
 0xaa8   : > { %v5010_v44 = vpop.f32.mrf.mxu1 }
 0xaae   : > { %v4974_v35 = vpop.f32.mrf.mxu2 }
 0xaaf   : > { %v5011_v50 = vadd.f32 %v5010_v44, %v4974_v35 }
 0xab0   : > { %v5093_v53 = vpop.f32.mrf.mxu1 }
 0xab6   : > { %v5051_v1 = vpop.f32.mrf.mxu2 }
 0xab7   : > { %v5054_v8 = vadd.f32 %v5051_v1, %v5011_v50 }
 0xab8   : > { %v5177_v29 = vpop.f32.mrf.mxu1 }
 0xab9   : > { %v5096_v30 = vadd.f32 %v5093_v53, %v5054_v8 }
 0xabe   : > { %v5135_v48 = vpop.f32.mrf.mxu2 }
 0xabf   : > { %v5138_v15 = vadd.f32 %v5135_v48, %v5096_v30 }
 0xac0   : > { %v5261_v37 = vpop.f32.mrf.mxu1 }
 0xac1   : > { %v5180_v11 = vadd.f32 %v5177_v29, %v5138_v15 }
 0xac6   : > { %v5219_v23 = vpop.f32.mrf.mxu2 }
 0xac7   : > { %v5222_v26 = vadd.f32 %v5219_v23, %v5180_v11 }
 0xac8   : > { %v5353_v0 = vpop.f32.mrf.mxu1 }
 0xac9   : > { %v5264_v2 = vadd.f32 %v5261_v37, %v5222_v26 }
 0xace   : > { %v5311_v14 = vpop.f32.mrf.mxu2 }
 0xacf   : > { %v5314_v22 = vadd.f32 %v5311_v14, %v5264_v2 }
 0xad0   : > { %v5437_v40 = vpop.f32.mrf.mxu1 }
 0xad1   : > { %v5356_v27 = vadd.f32 %v5353_v0, %v5314_v22 }
 0xad6   : > { %v5395_v51 = vpop.f32.mrf.mxu2 }
 0xad7   : > { %v5398_v28 = vadd.f32 %v5395_v51, %v5356_v27 }
 0xad8   : > { %v5521_v63 = vpop.f32.mrf.mxu1 }
 0xad9   : > { %v5440_v54 = vadd.f32 %v5437_v40, %v5398_v28 }
 0xade   : > { %v5479_v33 = vpop.f32.mrf.mxu2 }
 0xadf   : > { %v5482_v5 = vadd.f32 %v5479_v33, %v5440_v54 }
 0xae0   : > { %v5605_v12 = vpop.f32.mrf.mxu1 }
 0xae1   : > { %v5524_v42 = vadd.f32 %v5521_v63, %v5482_v5 }
 0xae6   : > { %v5563_v52 = vpop.f32.mrf.mxu2 }
 0xae7   : > { %v5566_v61 = vadd.f32 %v5563_v52, %v5524_v42 }
 0xae9   : > { %v5608_v56 = vadd.f32 %v5605_v12, %v5566_v61 }
 0xaee   : > { %v5655_v10 = vpop.f32.mrf.mxu2 }
 0xaef   : > { %v5658_v38 = vadd.f32 %v5655_v10, %v5608_v56 }
 0xaf1   : > { %v5663_v25 = vadd.f32 %v7722_v34, %v5658_v38 }
 0xaf3   : > { %5664 = vst [vmem:[%s533_s2] sm:$0xff] %v5663_v25 }
 0xaf4   : > { %7960 = shalt.err (!%p7957_p9)
}
 0xaf5   : > { %6039 = dma.vmem_to_hbm [thread:$0]  (%p8293_p4), %s5679_s25, 128, %s5681_s19, %s5666_s28  }
 0xaf6 PF: > { %s5692_s26 = sand.u32 1, %s7999_s21   ;;  %p12335_p10 = scmp.ge.s32.totalorder %s8011_s24, 2 }
 0xaf7   : > { %s5693_s9 = scalar_lea.sflag [#allocation4], %s5692_s26 }
 0xaf8   : > { %p6065_p13 = pnand %p12335_p10, %p8297_p6 }
 0xafa   : > { %p6066_p11 = pneg %p6065_p13 }
 0xafc   : > { %7994 = dma.done.wait (%p6066_p11), %s5693_s9, 128  }
 0xafd   : > { %7996 = vsyncadd (%p6066_p11), %s5693_s9, 4294967168  ;;  %p28_p0 = scmp.ge.s32.totalorder %s8267_s20, 4   ;;  %s12336_s21 = smov %s8003_s22 }
 0xafe   : > { %s12337_s22 = smov %s8007_s23  ;;  %s12338_s23 = smov %s8278_s4 }
 0xaff   : > { %s12339_s24 = smov %s8267_s20  ;;  %30 = sbr.rel (!%p28_p0) target bundleno = 18 (0x12), region = 153 }
 0xb04   :  { %5699 = vsyncpa [#allocation3], 1 }
 0xb05   :  { %5701 = vsyncpa [#allocation3 + $0x1], 1 }
 0xb06   :  { %5702 = vsyncpa [#allocation6], 1 }
 0xb07   :  { %5703 = vsyncpa [#allocation9], 1 }
 0xb08   :  { %5704 = vsyncpa [#allocation12], 1 }
 0xb09   :  { %5705 = vsyncpa [#allocation4], 1 }
 0xb0a   :  { %5707 = vsyncpa [#allocation4 + $0x1], 1 }

</bundles_post_ra>
